<compile_context>
chip_gen: v7x
topology: tpu7x:2x2x1
jax: 0.10.0
libtpu: 0.0.40
codegen_flags: <defaults>
</compile_context>

<pallas_src>
from functools import partial

import numpy as np
import jax
import jax.numpy as jnp
from jax import lax
from jax.experimental import pallas as pl
from jax.experimental.pallas import tpu as pltpu

DIRECTIONS = [(1, 1), (1, -1), (-1, 1), (-1, -1), (1, 0), (-1, 0), (0, 1), (0, -1)]


def _ksigmoid(x):
    # exp on the EUP, reciprocal on the EUP (approx) -> keeps the VPU free.
    return pl.reciprocal(1.0 + jnp.exp(-x), approx=True)


# ----------------------------- Pallas kernels -------------------------------

def make_se_kernel(nc):
    """Fused SE2d (_h branch) + SEGate2d (z branch).

    One grid step == one batch element.  The encoder conv for BOTH branches is
    a single (P, Cin) @ (Cin, 2*n*C) matmul; the per-direction attention is
    applied lane-dense so the outputs are (P, n*C) slabs (128 lanes)."""
    def kernel(x_ref, wen_ref, wsm_h_ref, wsx_h_ref, we_h_ref,
               wsm_z_ref, wsx_z_ref, we_z_ref, h_out_ref, z_out_ref):
        xe = jnp.dot(x_ref[...], wen_ref[...],
                     preferred_element_type=jnp.float32)          # (P, 2*nc)
        xh = xe[:, :nc]                                            # (P, nc)
        xz = xe[:, nc:]                                            # (P, nc)

        def excite(xen, wsm, wsx, we):
            mean = jnp.mean(xen, axis=0, keepdims=True)            # (1, nc)
            mx = jnp.max(xen, axis=0, keepdims=True)               # (1, nc)
            s = jnp.maximum(
                jnp.dot(mean, wsm, preferred_element_type=jnp.float32)
                + jnp.dot(mx, wsx, preferred_element_type=jnp.float32), 0.0)
            return _ksigmoid(jnp.dot(s, we, preferred_element_type=jnp.float32))

        e_h = excite(xh, wsm_h_ref[...], wsx_h_ref[...], we_h_ref[...])   # (1, nc)
        e_z = excite(xz, wsm_z_ref[...], wsx_z_ref[...], we_z_ref[...])   # (1, nc)
        h_out_ref[...] = xh * e_h
        z_out_ref[...] = _ksigmoid(xz * e_z)
    return kernel


def make_scan_kernel(c):
    """Generic GRU direction scan on a canonical (T, B, S*C) slab.

    out[t] = z[t] * ~h[t] + (1 - z[t]) * prev, where prev is the previous
    scanned row, optionally lane-shifted by +-C (diagonal directions, h0 fed
    in at the border) and the scan order optionally reversed (negative
    directions).  rev / shift are scalar-prefetched per direction."""
    def kernel(rev_ref, shift_ref, z_ref, h_ref, h0_ref, out_ref):
        T, Bb, M = z_ref.shape
        d = pl.program_id(0)
        rev = rev_ref[d]
        shift = shift_ref[d]
        # hoisted out of the loop (no per-iteration broadcasts)
        h0_full = jnp.broadcast_to(h0_ref[...], (Bb, M))           # (B, S*C)
        h0_blk = h0_full[:, :c]                                    # (B, C)

        def body(t, carry):
            r = jnp.where(rev > 0, T - 1 - t, t)                   # in-kernel reversal
            z = z_ref[r]
            hh = h_ref[r]
            # lane shift of the carry by +-C with h0 inserted at the border
            p_pos = jnp.concatenate([h0_blk, carry[:, :M - c]], axis=1)
            p_neg = jnp.concatenate([carry[:, c:], h0_blk], axis=1)
            prev = jnp.where(shift > 0, p_pos,
                             jnp.where(shift < 0, p_neg, carry))
            hcur = z * hh + (1.0 - z) * prev
            out_ref[r] = hcur
            return hcur

        # full unroll for short scans (LLO scheduler visibility); partial
        # unroll for long ones to bound code size.
        lax.fori_loop(0, T, body, h0_full, unroll=True if T <= 32 else 8)
    return kernel


def make_sort_attn_kernel(n_dir, c_out):
    """SortAttn2d hot path on a pixel tile: [x | sort(x)] -> fused MLP ->
    sigmoid scores -> weighted sum over the n_dir direction groups."""
    def kernel(x_ref, xs_ref, a_ref, b_ref, out_ref):
        x = x_ref[...]                                             # (TP, nc)
        se = jnp.concatenate([x, xs_ref[...]], axis=-1)            # (TP, 2*nc)
        h1 = jnp.maximum(
            jnp.dot(se, a_ref[...], preferred_element_type=jnp.float32), 0.0)
        scores = _ksigmoid(
            jnp.dot(h1, b_ref[...], preferred_element_type=jnp.float32))
        y = x * scores
        acc = y[:, 0:c_out]
        for i in range(1, n_dir):
            acc = acc + y[:, i * c_out:(i + 1) * c_out]
        # TODO(synk): final store is c_out(=16) lanes wide (masked vst); a
        # lane-packing relayout would trade XLU work for dense stores.
        out_ref[...] = acc
    return kernel


# ------------------------------ Pallas forward -------------------------------

def _full_spec(shape):
    zeros = (0,) * len(shape)
    return pl.BlockSpec(shape, lambda b, _z=zeros: _z)


def _run_scan(z, h, h0_t, rev, shift, c):
    nd, T, Bb, M = z.shape

    def slab():
        return pl.BlockSpec((None, T, Bb, M), lambda d, *_: (d, 0, 0, 0))

    grid_spec = pltpu.PrefetchScalarGridSpec(
        num_scalar_prefetch=2,
        grid=(nd,),
        in_specs=[slab(), slab(),
                  pl.BlockSpec((None, 1, M), lambda d, *_: (d, 0, 0))],
        out_specs=slab(),
    )
    return pl.pallas_call(
        make_scan_kernel(c),
        grid_spec=grid_spec,
        out_shape=jax.ShapeDtypeStruct(z.shape, jnp.float32),
        compiler_params=pltpu.CompilerParams(dimension_semantics=("parallel",)),
    )(rev, shift, z, h, h0_t)


@partial(jax.jit, static_argnums=(2, 3))
def gru2d_forward(x_nchw, params, c_out, n_dir):
    assert n_dir == 8, "layout grouping assumes the default 8-direction set"
    B, c_in, H, W = x_nchw.shape
    C = c_out
    nc = n_dir * C
    P = H * W
    x_l = jnp.transpose(x_nchw, (0, 2, 3, 1)).reshape(B, P, c_in)

    # --- weights reshaped once into kernel-friendly, lane-dense layouts ---
    hid_se = params['w_s_h'].shape[1]
    w_en_both = jnp.concatenate(
        [jnp.tile(params['w_en_h'], (1, n_dir)),
         jnp.tile(params['w_en_z'], (1, n_dir))], axis=1)          # (Cin, 2*nc)
    zpad = jnp.zeros((nc - C, hid_se), jnp.float32)
    wsm_h = jnp.concatenate([params['w_s_h'][:C], zpad], axis=0)   # (nc, hid_se)
    wsx_h = jnp.concatenate([params['w_s_h'][C:], zpad], axis=0)
    wsm_z = jnp.concatenate([params['w_s_z'][:C], zpad], axis=0)
    wsx_z = jnp.concatenate([params['w_s_z'][C:], zpad], axis=0)

    # --- fused SE2d / SEGate2d, lane-dense (B, P, n*C) outputs ---
    hs_all, zs_all = pl.pallas_call(
        make_se_kernel(nc),
        out_shape=(jax.ShapeDtypeStruct((B, P, nc), jnp.float32),
                   jax.ShapeDtypeStruct((B, P, nc), jnp.float32)),
        grid=(B,),
        in_specs=[pl.BlockSpec((None, P, c_in), lambda b: (b, 0, 0)),
                  _full_spec((c_in, 2 * nc)),
                  _full_spec((nc, hid_se)), _full_spec((nc, hid_se)),
                  _full_spec((hid_se, nc)),
                  _full_spec((nc, hid_se)), _full_spec((nc, hid_se)),
                  _full_spec((hid_se, nc))],
        out_specs=(pl.BlockSpec((None, P, nc), lambda b: (b, 0, 0)),
                   pl.BlockSpec((None, P, nc), lambda b: (b, 0, 0))),
        compiler_params=pltpu.CompilerParams(dimension_semantics=("parallel",)),
    )(x_l, w_en_both, wsm_h, wsx_h, params['w_e_h'],
      wsm_z, wsx_z, params['w_e_z'])

    hs_hw = hs_all.reshape(B, H, W, nc)
    zs_hw = zs_all.reshape(B, H, W, nc)

    # --- canonical scan layouts: ONE grouped transpose per scan family
    #     (flips are done inside the kernel, not here) ---
    def to_row(a):            # dirs 0..5 (scan along H): (6, H, B, W*C)
        g = a[..., :6 * C].reshape(B, H, W, 6, C)
        return jnp.transpose(g, (3, 1, 0, 2, 4)).reshape(6, H, B, W * C)

    def to_col(a):            # dirs 6..7 (scan along W): (2, W, B, H*C)
        g = a[..., 6 * C:].reshape(B, H, W, 2, C)
        return jnp.transpose(g, (3, 2, 0, 1, 4)).reshape(2, W, B, H * C)

    h0 = params['h0']                                              # (n, C)
    h0_row = jnp.tile(h0[:6], (1, W)).reshape(6, 1, W * C)
    h0_col = jnp.tile(h0[6:], (1, H)).reshape(2, 1, H * C)

    # per-direction scan config: rev (scan order), shift (carry lane shift /C)
    rev_row = jnp.array([0, 0, 1, 1, 0, 1], jnp.int32)   # (1,1)(1,-1)(-1,1)(-1,-1)(1,0)(-1,0)
    shf_row = jnp.array([1, -1, 1, -1, 0, 0], jnp.int32)
    rev_col = jnp.array([0, 1], jnp.int32)               # (0,1)(0,-1)
    shf_col = jnp.array([0, 0], jnp.int32)

    out_row = _run_scan(to_row(zs_hw), to_row(hs_hw), h0_row, rev_row, shf_row, C)
    out_col = _run_scan(to_col(zs_hw), to_col(hs_hw), h0_col, rev_col, shf_col, C)

    # back to channel-major (B, H, W, n*C) in the original direction order
    hr = jnp.transpose(out_row.reshape(6, H, B, W, C),
                       (2, 1, 3, 0, 4)).reshape(B, H, W, 6 * C)
    hc = jnp.transpose(out_col.reshape(2, W, B, H, C),
                       (2, 3, 1, 0, 4)).reshape(B, H, W, 2 * C)
    x_cat = jnp.concatenate([hr, hc], axis=-1).reshape(B * P, nc)

    # TODO(synk): torch.sort along channels has no clean Mosaic lowering (would
    # need an in-kernel bitonic network over the 128 lanes); done in plain JAX.
    xs = jnp.sort(x_cat, axis=-1)

    # --- SortAttn2d fusion, tiled over pixels (largest tile dividing B*P) ---
    hid_attn = params['attn_B'].shape[0]
    bp = B * P
    tile_p = next((t for t in (1024, 512, 256, 128) if bp % t == 0), bp)
    y = pl.pallas_call(
        make_sort_attn_kernel(n_dir, C),
        out_shape=jax.ShapeDtypeStruct((bp, C), jnp.float32),
        grid=(bp // tile_p,),
        in_specs=[pl.BlockSpec((tile_p, nc), lambda p: (p, 0)),
                  pl.BlockSpec((tile_p, nc), lambda p: (p, 0)),
                  _full_spec((2 * nc, hid_attn)),
                  _full_spec((hid_attn, nc))],
        out_specs=pl.BlockSpec((tile_p, C), lambda p: (p, 0)),
        compiler_params=pltpu.CompilerParams(dimension_semantics=("parallel",)),
    )(x_cat, xs, params['attn_A'], params['attn_B'])

    y = y.reshape(B, H, W, C)
    return jnp.transpose(y, (0, 3, 1, 2))                          # back to NCHW


# ------------------------- parameter construction ----------------------------

def expand_grouped(w, groups):
    """torch grouped 1x1 conv weight (Cout, Cin/groups) -> dense (Cin, Cout) for x@W."""
    w = np.asarray(w)
    c_out, c_in_pg = w.shape
    out_pg = c_out // groups
    dense = np.zeros((c_in_pg * groups, c_out), np.float32)
    for o in range(c_out):
        gi = o // out_pg
        dense[gi * c_in_pg:(gi + 1) * c_in_pg, o] = w[o]
    return jnp.asarray(dense)


def shuffle_perm_matrix(channels, groups):
    """P such that (x @ P)[j] == ChannelShuffle(groups)(x)[j]."""
    perm = np.arange(channels).reshape(groups, channels // groups).T.reshape(-1)
    P = np.zeros((channels, channels), np.float32)
    P[perm, np.arange(channels)] = 1.0
    return jnp.asarray(P)


def init_params(key, c_in, c_out, n_dir):
    h = c_out // 4                     # SE hidden per direction (fact=4)
    hid_se = h * n_dir
    nc = n_dir * c_out
    g = 2 * n_dir                      # SortAttn shuffle groups
    hid_attn = nc // 4
    ks = jax.random.split(key, 12)

    def w(k, shape, fan_in):
        return jax.random.normal(k, shape, jnp.float32) * (1.0 / np.sqrt(fan_in))

    p = {}
    p['h0'] = 0.1 * jax.random.normal(ks[0], (n_dir, c_out), jnp.float32)
    # SE2d (_h branch)
    p['w_en_h'] = w(ks[1], (c_in, c_out), c_in)
    p['w_s_h'] = w(ks[2], (2 * c_out, hid_se), 2 * c_out)
    p['w_e_h'] = expand_grouped(w(ks[3], (nc, h), h), n_dir)          # (hid_se, n*C)
    # SEGate2d (z branch)
    p['w_en_z'] = w(ks[4], (c_in, c_out), c_in)
    p['w_s_z'] = w(ks[5], (2 * c_out, hid_se), 2 * c_out)
    p['w_e_z'] = expand_grouped(w(ks[6], (nc, h), h), n_dir)
    # SortAttn2d (the linear chain conv1..conv3 + shuffles folds into attn_A)
    w1d = expand_grouped(w(ks[7], (hid_attn, 2 * nc // (2 * g)), 2 * nc // (2 * g)), 2 * g)
    w2d = expand_grouped(w(ks[8], (hid_attn, hid_attn // g), hid_attn // g), g)
    w3d = expand_grouped(w(ks[9], (hid_attn, hid_attn // g), hid_attn // g), g)
    w4d = expand_grouped(w(ks[10], (nc, hid_attn // g), hid_attn // g), g)
    P = shuffle_perm_matrix(hid_attn, g)
    p['attn_A'] = w1d @ P @ w2d @ P @ w3d                              # (2*n*C, hid_attn)
    p['attn_B'] = P @ w4d                                              # (hid_attn, n*C)
    p['_raw'] = dict(W1d=w1d, W2d=w2d, W3d=w3d, W4d=w4d)
    return p


# --------------------- pure-JAX reference (torch semantics) ------------------

def _ref_se(x_nchw, w_en, w_s, w_e, n_dir, c_out, gated):
    x_en = jnp.einsum('bihw,ic->bchw', x_nchw, w_en)
    mean = x_en.mean(axis=(2, 3))
    mx = x_en.max(axis=(2, 3))
    pooled = jnp.concatenate([mean, mx], axis=1)
    s = jnp.maximum(pooled @ w_s, 0.0)
    e = jax.nn.sigmoid(s @ w_e)
    outs = []
    for i in range(n_dir):
        attn = e[:, i * c_out:(i + 1) * c_out][:, :, None, None]
        y = x_en * attn
        if gated:
            y = jax.nn.sigmoid(y)
        outs.append(y)
    return outs


def _ref_dir1(z, hh, h0, d1, d2):
    ds = (d1, d2)
    idx = 0 if ds[0] != 0 else 1
    axis = idx + 2
    dval = ds[idx]
    flip = (lambda a: jnp.flip(a, axis=axis)) if dval < 0 else (lambda a: a)
    trans = lambda a: jnp.swapaxes(a, -1, axis)
    hh = trans(flip(hh))
    z = trans(flip(z))
    Bz, Cz, Hc, Wc = z.shape
    d = abs(dval)
    h = jnp.ones((Bz, Cz, Hc, Wc + d), jnp.float32) * h0[None, :, None, None]
    t_num = (Wc + d - 1) // d
    for ti in range(t_num):
        t0, t1, t2 = ti * d, (ti + 1) * d, (ti + 2) * d
        upd = z[..., t0:t1] * hh[..., t0:t1] + (1 - z[..., t0:t1]) * h[..., t0:t1]
        h = h.at[..., t1:t2].set(upd)
    h = h[..., d:]
    return flip(trans(h))


def _ref_dir2(z, hh, h0, d1, d2):
    flip_axes = tuple(i + 2 for i, v in enumerate((d1, d2)) if v < 0)
    flip = (lambda a: jnp.flip(a, axis=flip_axes)) if flip_axes else (lambda a: a)
    hh = flip(hh)
    z = flip(z)
    Bz, Cz, Hc, Wc = z.shape
    dh, dw = abs(d1), abs(d2)
    h = jnp.ones((Bz, Cz, Hc + dh, Wc + dw), jnp.float32) * h0[None, :, None, None]
    t_num = min((Hc + dh - 1) // dh, (Wc + dw - 1) // dw)
    for ti in range(t_num):
        th0, th1, th2 = ti * dh, (ti + 1) * dh, (ti + 2) * dh
        tw0, tw1, tw2 = ti * dw, (ti + 1) * dw, (ti + 2) * dw
        upd = (z[..., th0:th1, tw0:] * hh[..., th0:th1, tw0:]
               + (1 - z[..., th0:th1, tw0:]) * h[..., th0:th1, tw0:-dw])
        h = h.at[..., th1:th2, tw1:].set(upd)
        if Hc - th1 > 0:
            upd = (z[..., th1:, tw0:tw1] * hh[..., th1:, tw0:tw1]
                   + (1 - z[..., th1:, tw0:tw1]) * h[..., th1:-dh, tw0:tw1])
            h = h.at[..., th2:, tw1:tw2].set(upd)
    h = h[..., dh:, dw:]
    return flip(h)


def _ref_channel_shuffle(t, g):
    C = t.shape[-1]
    perm = np.arange(C).reshape(g, C // g).T.reshape(-1)
    return t[..., perm]


def _ref_sort_attn(hs, raw, n_dir, c_out):
    g = 2 * n_dir
    x = jnp.concatenate(hs, axis=1)                     # (B, n*C, H, W)
    xs = jnp.sort(x, axis=1)
    se = jnp.concatenate([x, xs], axis=1)
    t = jnp.moveaxis(se, 1, -1)
    t = t @ raw['W1d']
    t = _ref_channel_shuffle(t, g)
    t = t @ raw['W2d']
    t = _ref_channel_shuffle(t, g)
    t = t @ raw['W3d']
    t = jnp.maximum(t, 0.0)
    t = _ref_channel_shuffle(t, g)
    scores = jax.nn.sigmoid(t @ raw['W4d'])
    x_l = jnp.moveaxis(x, 1, -1)
    y = x_l * scores
    y = y.reshape(y.shape[0], y.shape[1], y.shape[2], n_dir, c_out).sum(axis=3)
    return jnp.moveaxis(y, -1, 1)


def gru2d_reference(x_nchw, params, c_out, n_dir):
    _hs = _ref_se(x_nchw, params['w_en_h'], params['w_s_h'], params['w_e_h'],
                  n_dir, c_out, gated=False)
    zs = _ref_se(x_nchw, params['w_en_z'], params['w_s_z'], params['w_e_z'],
                 n_dir, c_out, gated=True)
    hs = []
    for i, (d1, d2) in enumerate(DIRECTIONS):
        h0i = params['h0'][i]
        if d1 != 0 and d2 != 0:
            hs.append(_ref_dir2(zs[i], _hs[i], h0i, d1, d2))
        else:
            hs.append(_ref_dir1(zs[i], _hs[i], h0i, d1, d2))
    return _ref_sort_attn(hs, params['_raw'], n_dir, c_out)


# ----------------------------------- main ------------------------------------

if __name__ == "__main__":
    B, C_IN, H, W = 2, 4, 16, 16
    C_OUT, N_DIR = 16, 8

    key = jax.random.PRNGKey(0)
    k_x, k_p = jax.random.split(key)
    x = jax.random.normal(k_x, (B, C_IN, H, W), jnp.float32)
    params = init_params(k_p, C_IN, C_OUT, N_DIR)

    out = jax.block_until_ready(gru2d_forward(x, params, C_OUT, N_DIR))
    assert out.shape == (B, C_OUT, H, W)

    ref = jax.block_until_ready(gru2d_reference(x, params, C_OUT, N_DIR))
    max_err = float(jnp.max(jnp.abs(out - ref)))
    if max_err > 5e-2:
        raise AssertionError(f"Pallas output mismatch vs reference: max_err={max_err}")

    print("KERNEL_OK")
</pallas_src>

<mosaic_0001>
module attributes {stable_mosaic.version = 11 : i64} {
  func.func @kernel(%arg0: i32, %arg1: memref<1x256x4xf32, #tpu.memory_space<vmem>>, %arg2: memref<4x256xf32, #tpu.memory_space<vmem>>, %arg3: memref<128x32xf32, #tpu.memory_space<vmem>>, %arg4: memref<128x32xf32, #tpu.memory_space<vmem>>, %arg5: memref<32x128xf32, #tpu.memory_space<vmem>>, %arg6: memref<128x32xf32, #tpu.memory_space<vmem>>, %arg7: memref<128x32xf32, #tpu.memory_space<vmem>>, %arg8: memref<32x128xf32, #tpu.memory_space<vmem>>, %arg9: memref<1x256x128xf32, #tpu.memory_space<vmem>>, %arg10: memref<1x256x128xf32, #tpu.memory_space<vmem>>) attributes {dimension_semantics = [#tpu.dimension_semantics<parallel>], iteration_bounds = array<i64: 2>, scalar_prefetch = 0 : i64, scratch_operands = 0 : i64, tpu.core_type = #tpu.core_type<tc>, window_params = [{transform_indices = @transform_0, window_bounds = array<i64: 1, 256, 4>}, {pipeline_mode = #tpu.pipeline_mode<synchronous>, transform_indices = @transform_1, window_bounds = array<i64: 4, 256>}, {pipeline_mode = #tpu.pipeline_mode<synchronous>, transform_indices = @transform_2, window_bounds = array<i64: 128, 32>}, {pipeline_mode = #tpu.pipeline_mode<synchronous>, transform_indices = @transform_3, window_bounds = array<i64: 128, 32>}, {pipeline_mode = #tpu.pipeline_mode<synchronous>, transform_indices = @transform_4, window_bounds = array<i64: 32, 128>}, {pipeline_mode = #tpu.pipeline_mode<synchronous>, transform_indices = @transform_5, window_bounds = array<i64: 128, 32>}, {pipeline_mode = #tpu.pipeline_mode<synchronous>, transform_indices = @transform_6, window_bounds = array<i64: 128, 32>}, {pipeline_mode = #tpu.pipeline_mode<synchronous>, transform_indices = @transform_7, window_bounds = array<i64: 32, 128>}, {transform_indices = @transform_8, window_bounds = array<i64: 1, 256, 128>}, {transform_indices = @transform_9, window_bounds = array<i64: 1, 256, 128>}]} {
    %c0 = arith.constant 0 : index
    %c0_0 = arith.constant 0 : index
    %c0_1 = arith.constant 0 : index
    %0 = vector.load %arg1[%c0, %c0_0, %c0_1] : memref<1x256x4xf32, #tpu.memory_space<vmem>>, vector<1x256x4xf32>
    %1 = vector.shape_cast %0 : vector<1x256x4xf32> to vector<256x4xf32>
    %c0_2 = arith.constant 0 : index
    %c0_3 = arith.constant 0 : index
    %2 = vector.load %arg2[%c0_2, %c0_3] : memref<4x256xf32, #tpu.memory_space<vmem>>, vector<4x256xf32>
    %cst = arith.constant dense<0.000000e+00> : vector<256x256xf32>
    %3 = tpu.matmul %1, %2, %cst {dimension_numbers = #tpu.dot_dimension_numbers<[1], [0], [0], [1], [0, 0, 1, 1], [], []>} : vector<256x4xf32>, vector<4x256xf32>, vector<256x256xf32> -> vector<256x256xf32>
    %4 = vector.extract_strided_slice %3 {offsets = [0, 0], sizes = [256, 128], strides = [1, 1]} : vector<256x256xf32> to vector<256x128xf32>
    %5 = vector.extract_strided_slice %3 {offsets = [0, 128], sizes = [256, 128], strides = [1, 1]} : vector<256x256xf32> to vector<256x128xf32>
    %c0_4 = arith.constant 0 : index
    %c0_5 = arith.constant 0 : index
    %6 = vector.load %arg3[%c0_4, %c0_5] : memref<128x32xf32, #tpu.memory_space<vmem>>, vector<128x32xf32>
    %c0_6 = arith.constant 0 : index
    %c0_7 = arith.constant 0 : index
    %7 = vector.load %arg4[%c0_6, %c0_7] : memref<128x32xf32, #tpu.memory_space<vmem>>, vector<128x32xf32>
    %c0_8 = arith.constant 0 : index
    %c0_9 = arith.constant 0 : index
    %8 = vector.load %arg5[%c0_8, %c0_9] : memref<32x128xf32, #tpu.memory_space<vmem>>, vector<32x128xf32>
    %cst_10 = arith.constant dense<0.000000e+00> : vector<128xf32>
    %9 = vector.multi_reduction <add>, %4, %cst_10 [0] : vector<256x128xf32> to vector<128xf32>
    %10 = vector.shape_cast %9 : vector<128xf32> to vector<1x128xf32>
    %cst_11 = arith.constant 2.560000e+02 : f32
    %11 = vector.broadcast %cst_11 : f32 to vector<1x128xf32>
    %12 = arith.divf %10, %11 : vector<1x128xf32>
    %cst_12 = arith.constant dense<0xFF800000> : vector<128xf32>
    %13 = vector.multi_reduction <maximumf>, %4, %cst_12 [0] : vector<256x128xf32> to vector<128xf32>
    %14 = vector.shape_cast %13 : vector<128xf32> to vector<1x128xf32>
    %cst_13 = arith.constant dense<0.000000e+00> : vector<1x32xf32>
    %15 = tpu.matmul %12, %6, %cst_13 {dimension_numbers = #tpu.dot_dimension_numbers<[1], [0], [0], [1], [0, 0, 1, 1], [], []>} : vector<1x128xf32>, vector<128x32xf32>, vector<1x32xf32> -> vector<1x32xf32>
    %cst_14 = arith.constant dense<0.000000e+00> : vector<1x32xf32>
    %16 = tpu.matmul %14, %7, %cst_14 {dimension_numbers = #tpu.dot_dimension_numbers<[1], [0], [0], [1], [0, 0, 1, 1], [], []>} : vector<1x128xf32>, vector<128x32xf32>, vector<1x32xf32> -> vector<1x32xf32>
    %17 = arith.addf %15, %16 : vector<1x32xf32>
    %cst_15 = arith.constant 0.000000e+00 : f32
    %18 = vector.broadcast %cst_15 : f32 to vector<1x32xf32>
    %19 = arith.maximumf %17, %18 : vector<1x32xf32>
    %cst_16 = arith.constant dense<0.000000e+00> : vector<1x128xf32>
    %20 = tpu.matmul %19, %8, %cst_16 {dimension_numbers = #tpu.dot_dimension_numbers<[1], [0], [0], [1], [0, 0, 1, 1], [], []>} : vector<1x32xf32>, vector<32x128xf32>, vector<1x128xf32> -> vector<1x128xf32>
    %cst_17 = arith.constant 0.000000e+00 : f32
    %21 = vector.broadcast %cst_17 : f32 to vector<1x128xf32>
    %22 = arith.subf %21, %20 : vector<1x128xf32>
    %23 = math.exp %22 : vector<1x128xf32>
    %cst_18 = arith.constant 1.000000e+00 : f32
    %24 = vector.broadcast %cst_18 : f32 to vector<1x128xf32>
    %25 = arith.addf %24, %23 : vector<1x128xf32>
    %26 = tpu.reciprocal %25 {approx = true} : vector<1x128xf32> -> vector<1x128xf32>
    %c0_19 = arith.constant 0 : index
    %c0_20 = arith.constant 0 : index
    %27 = vector.load %arg6[%c0_19, %c0_20] : memref<128x32xf32, #tpu.memory_space<vmem>>, vector<128x32xf32>
    %c0_21 = arith.constant 0 : index
    %c0_22 = arith.constant 0 : index
    %28 = vector.load %arg7[%c0_21, %c0_22] : memref<128x32xf32, #tpu.memory_space<vmem>>, vector<128x32xf32>
    %c0_23 = arith.constant 0 : index
    %c0_24 = arith.constant 0 : index
    %29 = vector.load %arg8[%c0_23, %c0_24] : memref<32x128xf32, #tpu.memory_space<vmem>>, vector<32x128xf32>
    %cst_25 = arith.constant dense<0.000000e+00> : vector<128xf32>
    %30 = vector.multi_reduction <add>, %5, %cst_25 [0] : vector<256x128xf32> to vector<128xf32>
    %31 = vector.shape_cast %30 : vector<128xf32> to vector<1x128xf32>
    %cst_26 = arith.constant 2.560000e+02 : f32
    %32 = vector.broadcast %cst_26 : f32 to vector<1x128xf32>
    %33 = arith.divf %31, %32 : vector<1x128xf32>
    %cst_27 = arith.constant dense<0xFF800000> : vector<128xf32>
    %34 = vector.multi_reduction <maximumf>, %5, %cst_27 [0] : vector<256x128xf32> to vector<128xf32>
    %35 = vector.shape_cast %34 : vector<128xf32> to vector<1x128xf32>
    %cst_28 = arith.constant dense<0.000000e+00> : vector<1x32xf32>
    %36 = tpu.matmul %33, %27, %cst_28 {dimension_numbers = #tpu.dot_dimension_numbers<[1], [0], [0], [1], [0, 0, 1, 1], [], []>} : vector<1x128xf32>, vector<128x32xf32>, vector<1x32xf32> -> vector<1x32xf32>
    %cst_29 = arith.constant dense<0.000000e+00> : vector<1x32xf32>
    %37 = tpu.matmul %35, %28, %cst_29 {dimension_numbers = #tpu.dot_dimension_numbers<[1], [0], [0], [1], [0, 0, 1, 1], [], []>} : vector<1x128xf32>, vector<128x32xf32>, vector<1x32xf32> -> vector<1x32xf32>
    %38 = arith.addf %36, %37 : vector<1x32xf32>
    %cst_30 = arith.constant 0.000000e+00 : f32
    %39 = vector.broadcast %cst_30 : f32 to vector<1x32xf32>
    %40 = arith.maximumf %38, %39 : vector<1x32xf32>
    %cst_31 = arith.constant dense<0.000000e+00> : vector<1x128xf32>
    %41 = tpu.matmul %40, %29, %cst_31 {dimension_numbers = #tpu.dot_dimension_numbers<[1], [0], [0], [1], [0, 0, 1, 1], [], []>} : vector<1x32xf32>, vector<32x128xf32>, vector<1x128xf32> -> vector<1x128xf32>
    %cst_32 = arith.constant 0.000000e+00 : f32
    %42 = vector.broadcast %cst_32 : f32 to vector<1x128xf32>
    %43 = arith.subf %42, %41 : vector<1x128xf32>
    %44 = math.exp %43 : vector<1x128xf32>
    %cst_33 = arith.constant 1.000000e+00 : f32
    %45 = vector.broadcast %cst_33 : f32 to vector<1x128xf32>
    %46 = arith.addf %45, %44 : vector<1x128xf32>
    %47 = tpu.reciprocal %46 {approx = true} : vector<1x128xf32> -> vector<1x128xf32>
    %48 = vector.broadcast %26 : vector<1x128xf32> to vector<256x128xf32>
    %49 = arith.mulf %4, %48 : vector<256x128xf32>
    %c0_34 = arith.constant 0 : index
    %c0_35 = arith.constant 0 : index
    %c0_36 = arith.constant 0 : index
    %50 = vector.load %arg9[%c0_34, %c0_35, %c0_36] : memref<1x256x128xf32, #tpu.memory_space<vmem>>, vector<1x256x128xf32>
    %51 = vector.shape_cast %50 : vector<1x256x128xf32> to vector<256x128xf32>
    %52 = vector.shape_cast %49 : vector<256x128xf32> to vector<1x256x128xf32>
    tpu.vector_store %arg9[%c0_34, %c0_35, %c0_36], %52 {strides = array<i32>} : memref<1x256x128xf32, #tpu.memory_space<vmem>>, vector<1x256x128xf32>,
    %53 = vector.broadcast %47 : vector<1x128xf32> to vector<256x128xf32>
    %54 = arith.mulf %5, %53 : vector<256x128xf32>
    %cst_37 = arith.constant 0.000000e+00 : f32
    %55 = vector.broadcast %cst_37 : f32 to vector<256x128xf32>
    %56 = arith.subf %55, %54 : vector<256x128xf32>
    %57 = math.exp %56 : vector<256x128xf32>
    %cst_38 = arith.constant 1.000000e+00 : f32
    %58 = vector.broadcast %cst_38 : f32 to vector<256x128xf32>
    %59 = arith.addf %58, %57 : vector<256x128xf32>
    %60 = tpu.reciprocal %59 {approx = true} : vector<256x128xf32> -> vector<256x128xf32>
    %c0_39 = arith.constant 0 : index
    %c0_40 = arith.constant 0 : index
    %c0_41 = arith.constant 0 : index
    %61 = vector.load %arg10[%c0_39, %c0_40, %c0_41] : memref<1x256x128xf32, #tpu.memory_space<vmem>>, vector<1x256x128xf32>
    %62 = vector.shape_cast %61 : vector<1x256x128xf32> to vector<256x128xf32>
    %63 = vector.shape_cast %60 : vector<256x128xf32> to vector<1x256x128xf32>
    tpu.vector_store %arg10[%c0_39, %c0_40, %c0_41], %63 {strides = array<i32>} : memref<1x256x128xf32, #tpu.memory_space<vmem>>, vector<1x256x128xf32>,
    return
  }
  func.func @transform_0(%arg0: i32) -> (i32, i32, i32) {
    %c0_i32 = arith.constant 0 : i32
    %c0_i32_0 = arith.constant 0 : i32
    %c0_i32_1 = arith.constant 0 : i32
    return %arg0, %c0_i32, %c0_i32_0 : i32, i32, i32
  }
  func.func @transform_1(%arg0: i32) -> (i32, i32) {
    %c0_i32 = arith.constant 0 : i32
    %c0_i32_0 = arith.constant 0 : i32
    %c0_i32_1 = arith.constant 0 : i32
    return %c0_i32, %c0_i32_0 : i32, i32
  }
  func.func @transform_2(%arg0: i32) -> (i32, i32) {
    %c0_i32 = arith.constant 0 : i32
    %c0_i32_0 = arith.constant 0 : i32
    %c0_i32_1 = arith.constant 0 : i32
    return %c0_i32, %c0_i32_0 : i32, i32
  }
  func.func @transform_3(%arg0: i32) -> (i32, i32) {
    %c0_i32 = arith.constant 0 : i32
    %c0_i32_0 = arith.constant 0 : i32
    %c0_i32_1 = arith.constant 0 : i32
    return %c0_i32, %c0_i32_0 : i32, i32
  }
  func.func @transform_4(%arg0: i32) -> (i32, i32) {
    %c0_i32 = arith.constant 0 : i32
    %c0_i32_0 = arith.constant 0 : i32
    %c0_i32_1 = arith.constant 0 : i32
    return %c0_i32, %c0_i32_0 : i32, i32
  }
  func.func @transform_5(%arg0: i32) -> (i32, i32) {
    %c0_i32 = arith.constant 0 : i32
    %c0_i32_0 = arith.constant 0 : i32
    %c0_i32_1 = arith.constant 0 : i32
    return %c0_i32, %c0_i32_0 : i32, i32
  }
  func.func @transform_6(%arg0: i32) -> (i32, i32) {
    %c0_i32 = arith.constant 0 : i32
    %c0_i32_0 = arith.constant 0 : i32
    %c0_i32_1 = arith.constant 0 : i32
    return %c0_i32, %c0_i32_0 : i32, i32
  }
  func.func @transform_7(%arg0: i32) -> (i32, i32) {
    %c0_i32 = arith.constant 0 : i32
    %c0_i32_0 = arith.constant 0 : i32
    %c0_i32_1 = arith.constant 0 : i32
    return %c0_i32, %c0_i32_0 : i32, i32
  }
  func.func @transform_8(%arg0: i32) -> (i32, i32, i32) {
    %c0_i32 = arith.constant 0 : i32
    %c0_i32_0 = arith.constant 0 : i32
    %c0_i32_1 = arith.constant 0 : i32
    return %arg0, %c0_i32, %c0_i32_0 : i32, i32, i32
  }
  func.func @transform_9(%arg0: i32) -> (i32, i32, i32) {
    %c0_i32 = arith.constant 0 : i32
    %c0_i32_0 = arith.constant 0 : i32
    %c0_i32_1 = arith.constant 0 : i32
    return %arg0, %c0_i32, %c0_i32_0 : i32, i32, i32
  }
}

module attributes {stable_mosaic.version = 11 : i64} {
  func.func @kernel(%arg0: i32, %arg1: memref<2xi32, #tpu.memory_space<smem>>, %arg2: memref<2xi32, #tpu.memory_space<smem>>, %arg3: memref<1x16x2x256xf32, #tpu.memory_space<vmem>>, %arg4: memref<1x16x2x256xf32, #tpu.memory_space<vmem>>, %arg5: memref<1x1x256xf32, #tpu.memory_space<vmem>>, %arg6: memref<1x16x2x256xf32, #tpu.memory_space<vmem>>) attributes {dimension_semantics = [#tpu.dimension_semantics<parallel>], iteration_bounds = array<i64: 2>, scalar_prefetch = 2 : i64, scratch_operands = 0 : i64, tpu.core_type = #tpu.core_type<tc>, window_params = [{transform_indices = @transform_0, window_bounds = array<i64: 1, 16, 2, 256>}, {transform_indices = @transform_1, window_bounds = array<i64: 1, 16, 2, 256>}, {transform_indices = @transform_2, window_bounds = array<i64: 1, 1, 256>}, {transform_indices = @transform_3, window_bounds = array<i64: 1, 16, 2, 256>}]} {
    %0 = arith.index_cast %arg0 : i32 to index
    %1 = memref.load %arg1[%0] : memref<2xi32, #tpu.memory_space<smem>>
    %2 = arith.index_cast %arg0 : i32 to index
    %3 = memref.load %arg2[%2] : memref<2xi32, #tpu.memory_space<smem>>
    %c0 = arith.constant 0 : index
    %c0_0 = arith.constant 0 : index
    %c0_1 = arith.constant 0 : index
    %4 = vector.load %arg5[%c0, %c0_0, %c0_1] : memref<1x1x256xf32, #tpu.memory_space<vmem>>, vector<1x1x256xf32>
    %5 = vector.shape_cast %4 : vector<1x1x256xf32> to vector<1x256xf32>
    %6 = vector.shape_cast %5 : vector<1x256xf32> to vector<1x256xf32>
    %7 = vector.broadcast %6 : vector<1x256xf32> to vector<2x256xf32>
    %8 = vector.extract_strided_slice %7 {offsets = [0, 0], sizes = [2, 16], strides = [1, 1]} : vector<2x256xf32> to vector<2x16xf32>
    %c0_i32 = arith.constant 0 : i32
    %c0_i32_2 = arith.constant 0 : i32
    %9 = arith.cmpi sgt, %1, %c0_i32_2 : i32
    %c15_i32 = arith.constant 15 : i32
    %10 = arith.subi %c15_i32, %c0_i32 : i32
    %11 = arith.select %9, %10, %c0_i32 : i32
    %c0_3 = arith.constant 0 : index
    %12 = arith.index_cast %11 : i32 to index
    %c0_4 = arith.constant 0 : index
    %c0_5 = arith.constant 0 : index
    %13 = vector.load %arg3[%c0_3, %12, %c0_4, %c0_5] : memref<1x16x2x256xf32, #tpu.memory_space<vmem>>, vector<1x1x2x256xf32>
    %14 = vector.shape_cast %13 : vector<1x1x2x256xf32> to vector<2x256xf32>
    %c0_6 = arith.constant 0 : index
    %15 = arith.index_cast %11 : i32 to index
    %c0_7 = arith.constant 0 : index
    %c0_8 = arith.constant 0 : index
    %16 = vector.load %arg4[%c0_6, %15, %c0_7, %c0_8] : memref<1x16x2x256xf32, #tpu.memory_space<vmem>>, vector<1x1x2x256xf32>
    %17 = vector.shape_cast %16 : vector<1x1x2x256xf32> to vector<2x256xf32>
    %18 = vector.extract_strided_slice %7 {offsets = [0, 0], sizes = [2, 240], strides = [1, 1]} : vector<2x256xf32> to vector<2x240xf32>
    %19 = tpu.concatenate %8, %18 in 1 : vector<2x16xf32>, vector<2x240xf32> -> vector<2x256xf32>
    %20 = vector.extract_strided_slice %7 {offsets = [0, 16], sizes = [2, 240], strides = [1, 1]} : vector<2x256xf32> to vector<2x240xf32>
    %21 = tpu.concatenate %20, %8 in 1 : vector<2x240xf32>, vector<2x16xf32> -> vector<2x256xf32>
    %c0_i32_9 = arith.constant 0 : i32
    %22 = arith.cmpi sgt, %3, %c0_i32_9 : i32
    %c0_i32_10 = arith.constant 0 : i32
    %23 = arith.cmpi slt, %3, %c0_i32_10 : i32
    %24 = arith.select %23, %21, %7 : vector<2x256xf32>
    %25 = arith.select %22, %19, %24 : vector<2x256xf32>
    %26 = arith.mulf %14, %17 : vector<2x256xf32>
    %cst = arith.constant 1.000000e+00 : f32
    %27 = vector.broadcast %cst : f32 to vector<2x256xf32>
    %28 = arith.subf %27, %14 : vector<2x256xf32>
    %29 = arith.mulf %28, %25 : vector<2x256xf32>
    %30 = arith.addf %26, %29 : vector<2x256xf32>
    %c0_11 = arith.constant 0 : index
    %31 = arith.index_cast %11 : i32 to index
    %c0_12 = arith.constant 0 : index
    %c0_13 = arith.constant 0 : index
    %32 = vector.load %arg6[%c0_11, %31, %c0_12, %c0_13] : memref<1x16x2x256xf32, #tpu.memory_space<vmem>>, vector<1x1x2x256xf32>
    %33 = vector.shape_cast %32 : vector<1x1x2x256xf32> to vector<2x256xf32>
    %34 = vector.shape_cast %30 : vector<2x256xf32> to vector<1x1x2x256xf32>
    tpu.vector_store %arg6[%c0_11, %31, %c0_12, %c0_13], %34 {strides = array<i32>} : memref<1x16x2x256xf32, #tpu.memory_space<vmem>>, vector<1x1x2x256xf32>,
    %c1_i32 = arith.constant 1 : i32
    %c0_i32_14 = arith.constant 0 : i32
    %35 = arith.cmpi sgt, %1, %c0_i32_14 : i32
    %c15_i32_15 = arith.constant 15 : i32
    %36 = arith.subi %c15_i32_15, %c1_i32 : i32
    %37 = arith.select %35, %36, %c1_i32 : i32
    %c0_16 = arith.constant 0 : index
    %38 = arith.index_cast %37 : i32 to index
    %c0_17 = arith.constant 0 : index
    %c0_18 = arith.constant 0 : index
    %39 = vector.load %arg3[%c0_16, %38, %c0_17, %c0_18] : memref<1x16x2x256xf32, #tpu.memory_space<vmem>>, vector<1x1x2x256xf32>
    %40 = vector.shape_cast %39 : vector<1x1x2x256xf32> to vector<2x256xf32>
    %c0_19 = arith.constant 0 : index
    %41 = arith.index_cast %37 : i32 to index
    %c0_20 = arith.constant 0 : index
    %c0_21 = arith.constant 0 : index
    %42 = vector.load %arg4[%c0_19, %41, %c0_20, %c0_21] : memref<1x16x2x256xf32, #tpu.memory_space<vmem>>, vector<1x1x2x256xf32>
    %43 = vector.shape_cast %42 : vector<1x1x2x256xf32> to vector<2x256xf32>
    %44 = vector.extract_strided_slice %30 {offsets = [0, 0], sizes = [2, 240], strides = [1, 1]} : vector<2x256xf32> to vector<2x240xf32>
    %45 = tpu.concatenate %8, %44 in 1 : vector<2x16xf32>, vector<2x240xf32> -> vector<2x256xf32>
    %46 = vector.extract_strided_slice %30 {offsets = [0, 16], sizes = [2, 240], strides = [1, 1]} : vector<2x256xf32> to vector<2x240xf32>
    %47 = tpu.concatenate %46, %8 in 1 : vector<2x240xf32>, vector<2x16xf32> -> vector<2x256xf32>
    %c0_i32_22 = arith.constant 0 : i32
    %48 = arith.cmpi sgt, %3, %c0_i32_22 : i32
    %c0_i32_23 = arith.constant 0 : i32
    %49 = arith.cmpi slt, %3, %c0_i32_23 : i32
    %50 = arith.select %49, %47, %30 : vector<2x256xf32>
    %51 = arith.select %48, %45, %50 : vector<2x256xf32>
    %52 = arith.mulf %40, %43 : vector<2x256xf32>
    %cst_24 = arith.constant 1.000000e+00 : f32
    %53 = vector.broadcast %cst_24 : f32 to vector<2x256xf32>
    %54 = arith.subf %53, %40 : vector<2x256xf32>
    %55 = arith.mulf %54, %51 : vector<2x256xf32>
    %56 = arith.addf %52, %55 : vector<2x256xf32>
    %c0_25 = arith.constant 0 : index
    %57 = arith.index_cast %37 : i32 to index
    %c0_26 = arith.constant 0 : index
    %c0_27 = arith.constant 0 : index
    %58 = vector.load %arg6[%c0_25, %57, %c0_26, %c0_27] : memref<1x16x2x256xf32, #tpu.memory_space<vmem>>, vector<1x1x2x256xf32>
    %59 = vector.shape_cast %58 : vector<1x1x2x256xf32> to vector<2x256xf32>
    %60 = vector.shape_cast %56 : vector<2x256xf32> to vector<1x1x2x256xf32>
    tpu.vector_store %arg6[%c0_25, %57, %c0_26, %c0_27], %60 {strides = array<i32>} : memref<1x16x2x256xf32, #tpu.memory_space<vmem>>, vector<1x1x2x256xf32>,
    %c2_i32 = arith.constant 2 : i32
    %c0_i32_28 = arith.constant 0 : i32
    %61 = arith.cmpi sgt, %1, %c0_i32_28 : i32
    %c15_i32_29 = arith.constant 15 : i32
    %62 = arith.subi %c15_i32_29, %c2_i32 : i32
    %63 = arith.select %61, %62, %c2_i32 : i32
    %c0_30 = arith.constant 0 : index
    %64 = arith.index_cast %63 : i32 to index
    %c0_31 = arith.constant 0 : index
    %c0_32 = arith.constant 0 : index
    %65 = vector.load %arg3[%c0_30, %64, %c0_31, %c0_32] : memref<1x16x2x256xf32, #tpu.memory_space<vmem>>, vector<1x1x2x256xf32>
    %66 = vector.shape_cast %65 : vector<1x1x2x256xf32> to vector<2x256xf32>
    %c0_33 = arith.constant 0 : index
    %67 = arith.index_cast %63 : i32 to index
    %c0_34 = arith.constant 0 : index
    %c0_35 = arith.constant 0 : index
    %68 = vector.load %arg4[%c0_33, %67, %c0_34, %c0_35] : memref<1x16x2x256xf32, #tpu.memory_space<vmem>>, vector<1x1x2x256xf32>
    %69 = vector.shape_cast %68 : vector<1x1x2x256xf32> to vector<2x256xf32>
    %70 = vector.extract_strided_slice %56 {offsets = [0, 0], sizes = [2, 240], strides = [1, 1]} : vector<2x256xf32> to vector<2x240xf32>
    %71 = tpu.concatenate %8, %70 in 1 : vector<2x16xf32>, vector<2x240xf32> -> vector<2x256xf32>
    %72 = vector.extract_strided_slice %56 {offsets = [0, 16], sizes = [2, 240], strides = [1, 1]} : vector<2x256xf32> to vector<2x240xf32>
    %73 = tpu.concatenate %72, %8 in 1 : vector<2x240xf32>, vector<2x16xf32> -> vector<2x256xf32>
    %c0_i32_36 = arith.constant 0 : i32
    %74 = arith.cmpi sgt, %3, %c0_i32_36 : i32
    %c0_i32_37 = arith.constant 0 : i32
    %75 = arith.cmpi slt, %3, %c0_i32_37 : i32
    %76 = arith.select %75, %73, %56 : vector<2x256xf32>
    %77 = arith.select %74, %71, %76 : vector<2x256xf32>
    %78 = arith.mulf %66, %69 : vector<2x256xf32>
    %cst_38 = arith.constant 1.000000e+00 : f32
    %79 = vector.broadcast %cst_38 : f32 to vector<2x256xf32>
    %80 = arith.subf %79, %66 : vector<2x256xf32>
    %81 = arith.mulf %80, %77 : vector<2x256xf32>
    %82 = arith.addf %78, %81 : vector<2x256xf32>
    %c0_39 = arith.constant 0 : index
    %83 = arith.index_cast %63 : i32 to index
    %c0_40 = arith.constant 0 : index
    %c0_41 = arith.constant 0 : index
    %84 = vector.load %arg6[%c0_39, %83, %c0_40, %c0_41] : memref<1x16x2x256xf32, #tpu.memory_space<vmem>>, vector<1x1x2x256xf32>
    %85 = vector.shape_cast %84 : vector<1x1x2x256xf32> to vector<2x256xf32>
    %86 = vector.shape_cast %82 : vector<2x256xf32> to vector<1x1x2x256xf32>
    tpu.vector_store %arg6[%c0_39, %83, %c0_40, %c0_41], %86 {strides = array<i32>} : memref<1x16x2x256xf32, #tpu.memory_space<vmem>>, vector<1x1x2x256xf32>,
    %c3_i32 = arith.constant 3 : i32
    %c0_i32_42 = arith.constant 0 : i32
    %87 = arith.cmpi sgt, %1, %c0_i32_42 : i32
    %c15_i32_43 = arith.constant 15 : i32
    %88 = arith.subi %c15_i32_43, %c3_i32 : i32
    %89 = arith.select %87, %88, %c3_i32 : i32
    %c0_44 = arith.constant 0 : index
    %90 = arith.index_cast %89 : i32 to index
    %c0_45 = arith.constant 0 : index
    %c0_46 = arith.constant 0 : index
    %91 = vector.load %arg3[%c0_44, %90, %c0_45, %c0_46] : memref<1x16x2x256xf32, #tpu.memory_space<vmem>>, vector<1x1x2x256xf32>
    %92 = vector.shape_cast %91 : vector<1x1x2x256xf32> to vector<2x256xf32>
    %c0_47 = arith.constant 0 : index
    %93 = arith.index_cast %89 : i32 to index
    %c0_48 = arith.constant 0 : index
    %c0_49 = arith.constant 0 : index
    %94 = vector.load %arg4[%c0_47, %93, %c0_48, %c0_49] : memref<1x16x2x256xf32, #tpu.memory_space<vmem>>, vector<1x1x2x256xf32>
    %95 = vector.shape_cast %94 : vector<1x1x2x256xf32> to vector<2x256xf32>
    %96 = vector.extract_strided_slice %82 {offsets = [0, 0], sizes = [2, 240], strides = [1, 1]} : vector<2x256xf32> to vector<2x240xf32>
    %97 = tpu.concatenate %8, %96 in 1 : vector<2x16xf32>, vector<2x240xf32> -> vector<2x256xf32>
    %98 = vector.extract_strided_slice %82 {offsets = [0, 16], sizes = [2, 240], strides = [1, 1]} : vector<2x256xf32> to vector<2x240xf32>
    %99 = tpu.concatenate %98, %8 in 1 : vector<2x240xf32>, vector<2x16xf32> -> vector<2x256xf32>
    %c0_i32_50 = arith.constant 0 : i32
    %100 = arith.cmpi sgt, %3, %c0_i32_50 : i32
    %c0_i32_51 = arith.constant 0 : i32
    %101 = arith.cmpi slt, %3, %c0_i32_51 : i32
    %102 = arith.select %101, %99, %82 : vector<2x256xf32>
    %103 = arith.select %100, %97, %102 : vector<2x256xf32>
    %104 = arith.mulf %92, %95 : vector<2x256xf32>
    %cst_52 = arith.constant 1.000000e+00 : f32
    %105 = vector.broadcast %cst_52 : f32 to vector<2x256xf32>
    %106 = arith.subf %105, %92 : vector<2x256xf32>
    %107 = arith.mulf %106, %103 : vector<2x256xf32>
    %108 = arith.addf %104, %107 : vector<2x256xf32>
    %c0_53 = arith.constant 0 : index
    %109 = arith.index_cast %89 : i32 to index
    %c0_54 = arith.constant 0 : index
    %c0_55 = arith.constant 0 : index
    %110 = vector.load %arg6[%c0_53, %109, %c0_54, %c0_55] : memref<1x16x2x256xf32, #tpu.memory_space<vmem>>, vector<1x1x2x256xf32>
    %111 = vector.shape_cast %110 : vector<1x1x2x256xf32> to vector<2x256xf32>
    %112 = vector.shape_cast %108 : vector<2x256xf32> to vector<1x1x2x256xf32>
    tpu.vector_store %arg6[%c0_53, %109, %c0_54, %c0_55], %112 {strides = array<i32>} : memref<1x16x2x256xf32, #tpu.memory_space<vmem>>, vector<1x1x2x256xf32>,
    %c4_i32 = arith.constant 4 : i32
    %c0_i32_56 = arith.constant 0 : i32
    %113 = arith.cmpi sgt, %1, %c0_i32_56 : i32
    %c15_i32_57 = arith.constant 15 : i32
    %114 = arith.subi %c15_i32_57, %c4_i32 : i32
    %115 = arith.select %113, %114, %c4_i32 : i32
    %c0_58 = arith.constant 0 : index
    %116 = arith.index_cast %115 : i32 to index
    %c0_59 = arith.constant 0 : index
    %c0_60 = arith.constant 0 : index
    %117 = vector.load %arg3[%c0_58, %116, %c0_59, %c0_60] : memref<1x16x2x256xf32, #tpu.memory_space<vmem>>, vector<1x1x2x256xf32>
    %118 = vector.shape_cast %117 : vector<1x1x2x256xf32> to vector<2x256xf32>
    %c0_61 = arith.constant 0 : index
    %119 = arith.index_cast %115 : i32 to index
    %c0_62 = arith.constant 0 : index
    %c0_63 = arith.constant 0 : index
    %120 = vector.load %arg4[%c0_61, %119, %c0_62, %c0_63] : memref<1x16x2x256xf32, #tpu.memory_space<vmem>>, vector<1x1x2x256xf32>
    %121 = vector.shape_cast %120 : vector<1x1x2x256xf32> to vector<2x256xf32>
    %122 = vector.extract_strided_slice %108 {offsets = [0, 0], sizes = [2, 240], strides = [1, 1]} : vector<2x256xf32> to vector<2x240xf32>
    %123 = tpu.concatenate %8, %122 in 1 : vector<2x16xf32>, vector<2x240xf32> -> vector<2x256xf32>
    %124 = vector.extract_strided_slice %108 {offsets = [0, 16], sizes = [2, 240], strides = [1, 1]} : vector<2x256xf32> to vector<2x240xf32>
    %125 = tpu.concatenate %124, %8 in 1 : vector<2x240xf32>, vector<2x16xf32> -> vector<2x256xf32>
    %c0_i32_64 = arith.constant 0 : i32
    %126 = arith.cmpi sgt, %3, %c0_i32_64 : i32
    %c0_i32_65 = arith.constant 0 : i32
    %127 = arith.cmpi slt, %3, %c0_i32_65 : i32
    %128 = arith.select %127, %125, %108 : vector<2x256xf32>
    %129 = arith.select %126, %123, %128 : vector<2x256xf32>
    %130 = arith.mulf %118, %121 : vector<2x256xf32>
    %cst_66 = arith.constant 1.000000e+00 : f32
    %131 = vector.broadcast %cst_66 : f32 to vector<2x256xf32>
    %132 = arith.subf %131, %118 : vector<2x256xf32>
    %133 = arith.mulf %132, %129 : vector<2x256xf32>
    %134 = arith.addf %130, %133 : vector<2x256xf32>
    %c0_67 = arith.constant 0 : index
    %135 = arith.index_cast %115 : i32 to index
    %c0_68 = arith.constant 0 : index
    %c0_69 = arith.constant 0 : index
    %136 = vector.load %arg6[%c0_67, %135, %c0_68, %c0_69] : memref<1x16x2x256xf32, #tpu.memory_space<vmem>>, vector<1x1x2x256xf32>
    %137 = vector.shape_cast %136 : vector<1x1x2x256xf32> to vector<2x256xf32>
    %138 = vector.shape_cast %134 : vector<2x256xf32> to vector<1x1x2x256xf32>
    tpu.vector_store %arg6[%c0_67, %135, %c0_68, %c0_69], %138 {strides = array<i32>} : memref<1x16x2x256xf32, #tpu.memory_space<vmem>>, vector<1x1x2x256xf32>,
    %c5_i32 = arith.constant 5 : i32
    %c0_i32_70 = arith.constant 0 : i32
    %139 = arith.cmpi sgt, %1, %c0_i32_70 : i32
    %c15_i32_71 = arith.constant 15 : i32
    %140 = arith.subi %c15_i32_71, %c5_i32 : i32
    %141 = arith.select %139, %140, %c5_i32 : i32
    %c0_72 = arith.constant 0 : index
    %142 = arith.index_cast %141 : i32 to index
    %c0_73 = arith.constant 0 : index
    %c0_74 = arith.constant 0 : index
    %143 = vector.load %arg3[%c0_72, %142, %c0_73, %c0_74] : memref<1x16x2x256xf32, #tpu.memory_space<vmem>>, vector<1x1x2x256xf32>
    %144 = vector.shape_cast %143 : vector<1x1x2x256xf32> to vector<2x256xf32>
    %c0_75 = arith.constant 0 : index
    %145 = arith.index_cast %141 : i32 to index
    %c0_76 = arith.constant 0 : index
    %c0_77 = arith.constant 0 : index
    %146 = vector.load %arg4[%c0_75, %145, %c0_76, %c0_77] : memref<1x16x2x256xf32, #tpu.memory_space<vmem>>, vector<1x1x2x256xf32>
    %147 = vector.shape_cast %146 : vector<1x1x2x256xf32> to vector<2x256xf32>
    %148 = vector.extract_strided_slice %134 {offsets = [0, 0], sizes = [2, 240], strides = [1, 1]} : vector<2x256xf32> to vector<2x240xf32>
    %149 = tpu.concatenate %8, %148 in 1 : vector<2x16xf32>, vector<2x240xf32> -> vector<2x256xf32>
    %150 = vector.extract_strided_slice %134 {offsets = [0, 16], sizes = [2, 240], strides = [1, 1]} : vector<2x256xf32> to vector<2x240xf32>
    %151 = tpu.concatenate %150, %8 in 1 : vector<2x240xf32>, vector<2x16xf32> -> vector<2x256xf32>
    %c0_i32_78 = arith.constant 0 : i32
    %152 = arith.cmpi sgt, %3, %c0_i32_78 : i32
    %c0_i32_79 = arith.constant 0 : i32
    %153 = arith.cmpi slt, %3, %c0_i32_79 : i32
    %154 = arith.select %153, %151, %134 : vector<2x256xf32>
    %155 = arith.select %152, %149, %154 : vector<2x256xf32>
    %156 = arith.mulf %144, %147 : vector<2x256xf32>
    %cst_80 = arith.constant 1.000000e+00 : f32
    %157 = vector.broadcast %cst_80 : f32 to vector<2x256xf32>
    %158 = arith.subf %157, %144 : vector<2x256xf32>
    %159 = arith.mulf %158, %155 : vector<2x256xf32>
    %160 = arith.addf %156, %159 : vector<2x256xf32>
    %c0_81 = arith.constant 0 : index
    %161 = arith.index_cast %141 : i32 to index
    %c0_82 = arith.constant 0 : index
    %c0_83 = arith.constant 0 : index
    %162 = vector.load %arg6[%c0_81, %161, %c0_82, %c0_83] : memref<1x16x2x256xf32, #tpu.memory_space<vmem>>, vector<1x1x2x256xf32>
    %163 = vector.shape_cast %162 : vector<1x1x2x256xf32> to vector<2x256xf32>
    %164 = vector.shape_cast %160 : vector<2x256xf32> to vector<1x1x2x256xf32>
    tpu.vector_store %arg6[%c0_81, %161, %c0_82, %c0_83], %164 {strides = array<i32>} : memref<1x16x2x256xf32, #tpu.memory_space<vmem>>, vector<1x1x2x256xf32>,
    %c6_i32 = arith.constant 6 : i32
    %c0_i32_84 = arith.constant 0 : i32
    %165 = arith.cmpi sgt, %1, %c0_i32_84 : i32
    %c15_i32_85 = arith.constant 15 : i32
    %166 = arith.subi %c15_i32_85, %c6_i32 : i32
    %167 = arith.select %165, %166, %c6_i32 : i32
    %c0_86 = arith.constant 0 : index
    %168 = arith.index_cast %167 : i32 to index
    %c0_87 = arith.constant 0 : index
    %c0_88 = arith.constant 0 : index
    %169 = vector.load %arg3[%c0_86, %168, %c0_87, %c0_88] : memref<1x16x2x256xf32, #tpu.memory_space<vmem>>, vector<1x1x2x256xf32>
    %170 = vector.shape_cast %169 : vector<1x1x2x256xf32> to vector<2x256xf32>
    %c0_89 = arith.constant 0 : index
    %171 = arith.index_cast %167 : i32 to index
    %c0_90 = arith.constant 0 : index
    %c0_91 = arith.constant 0 : index
    %172 = vector.load %arg4[%c0_89, %171, %c0_90, %c0_91] : memref<1x16x2x256xf32, #tpu.memory_space<vmem>>, vector<1x1x2x256xf32>
    %173 = vector.shape_cast %172 : vector<1x1x2x256xf32> to vector<2x256xf32>
    %174 = vector.extract_strided_slice %160 {offsets = [0, 0], sizes = [2, 240], strides = [1, 1]} : vector<2x256xf32> to vector<2x240xf32>
    %175 = tpu.concatenate %8, %174 in 1 : vector<2x16xf32>, vector<2x240xf32> -> vector<2x256xf32>
    %176 = vector.extract_strided_slice %160 {offsets = [0, 16], sizes = [2, 240], strides = [1, 1]} : vector<2x256xf32> to vector<2x240xf32>
    %177 = tpu.concatenate %176, %8 in 1 : vector<2x240xf32>, vector<2x16xf32> -> vector<2x256xf32>
    %c0_i32_92 = arith.constant 0 : i32
    %178 = arith.cmpi sgt, %3, %c0_i32_92 : i32
    %c0_i32_93 = arith.constant 0 : i32
    %179 = arith.cmpi slt, %3, %c0_i32_93 : i32
    %180 = arith.select %179, %177, %160 : vector<2x256xf32>
    %181 = arith.select %178, %175, %180 : vector<2x256xf32>
    %182 = arith.mulf %170, %173 : vector<2x256xf32>
    %cst_94 = arith.constant 1.000000e+00 : f32
    %183 = vector.broadcast %cst_94 : f32 to vector<2x256xf32>
    %184 = arith.subf %183, %170 : vector<2x256xf32>
    %185 = arith.mulf %184, %181 : vector<2x256xf32>
    %186 = arith.addf %182, %185 : vector<2x256xf32>
    %c0_95 = arith.constant 0 : index
    %187 = arith.index_cast %167 : i32 to index
    %c0_96 = arith.constant 0 : index
    %c0_97 = arith.constant 0 : index
    %188 = vector.load %arg6[%c0_95, %187, %c0_96, %c0_97] : memref<1x16x2x256xf32, #tpu.memory_space<vmem>>, vector<1x1x2x256xf32>
    %189 = vector.shape_cast %188 : vector<1x1x2x256xf32> to vector<2x256xf32>
    %190 = vector.shape_cast %186 : vector<2x256xf32> to vector<1x1x2x256xf32>
    tpu.vector_store %arg6[%c0_95, %187, %c0_96, %c0_97], %190 {strides = array<i32>} : memref<1x16x2x256xf32, #tpu.memory_space<vmem>>, vector<1x1x2x256xf32>,
    %c7_i32 = arith.constant 7 : i32
    %c0_i32_98 = arith.constant 0 : i32
    %191 = arith.cmpi sgt, %1, %c0_i32_98 : i32
    %c15_i32_99 = arith.constant 15 : i32
    %192 = arith.subi %c15_i32_99, %c7_i32 : i32
    %193 = arith.select %191, %192, %c7_i32 : i32
    %c0_100 = arith.constant 0 : index
    %194 = arith.index_cast %193 : i32 to index
    %c0_101 = arith.constant 0 : index
    %c0_102 = arith.constant 0 : index
    %195 = vector.load %arg3[%c0_100, %194, %c0_101, %c0_102] : memref<1x16x2x256xf32, #tpu.memory_space<vmem>>, vector<1x1x2x256xf32>
    %196 = vector.shape_cast %195 : vector<1x1x2x256xf32> to vector<2x256xf32>
    %c0_103 = arith.constant 0 : index
    %197 = arith.index_cast %193 : i32 to index
    %c0_104 = arith.constant 0 : index
    %c0_105 = arith.constant 0 : index
    %198 = vector.load %arg4[%c0_103, %197, %c0_104, %c0_105] : memref<1x16x2x256xf32, #tpu.memory_space<vmem>>, vector<1x1x2x256xf32>
    %199 = vector.shape_cast %198 : vector<1x1x2x256xf32> to vector<2x256xf32>
    %200 = vector.extract_strided_slice %186 {offsets = [0, 0], sizes = [2, 240], strides = [1, 1]} : vector<2x256xf32> to vector<2x240xf32>
    %201 = tpu.concatenate %8, %200 in 1 : vector<2x16xf32>, vector<2x240xf32> -> vector<2x256xf32>
    %202 = vector.extract_strided_slice %186 {offsets = [0, 16], sizes = [2, 240], strides = [1, 1]} : vector<2x256xf32> to vector<2x240xf32>
    %203 = tpu.concatenate %202, %8 in 1 : vector<2x240xf32>, vector<2x16xf32> -> vector<2x256xf32>
    %c0_i32_106 = arith.constant 0 : i32
    %204 = arith.cmpi sgt, %3, %c0_i32_106 : i32
    %c0_i32_107 = arith.constant 0 : i32
    %205 = arith.cmpi slt, %3, %c0_i32_107 : i32
    %206 = arith.select %205, %203, %186 : vector<2x256xf32>
    %207 = arith.select %204, %201, %206 : vector<2x256xf32>
    %208 = arith.mulf %196, %199 : vector<2x256xf32>
    %cst_108 = arith.constant 1.000000e+00 : f32
    %209 = vector.broadcast %cst_108 : f32 to vector<2x256xf32>
    %210 = arith.subf %209, %196 : vector<2x256xf32>
    %211 = arith.mulf %210, %207 : vector<2x256xf32>
    %212 = arith.addf %208, %211 : vector<2x256xf32>
    %c0_109 = arith.constant 0 : index
    %213 = arith.index_cast %193 : i32 to index
    %c0_110 = arith.constant 0 : index
    %c0_111 = arith.constant 0 : index
    %214 = vector.load %arg6[%c0_109, %213, %c0_110, %c0_111] : memref<1x16x2x256xf32, #tpu.memory_space<vmem>>, vector<1x1x2x256xf32>
    %215 = vector.shape_cast %214 : vector<1x1x2x256xf32> to vector<2x256xf32>
    %216 = vector.shape_cast %212 : vector<2x256xf32> to vector<1x1x2x256xf32>
    tpu.vector_store %arg6[%c0_109, %213, %c0_110, %c0_111], %216 {strides = array<i32>} : memref<1x16x2x256xf32, #tpu.memory_space<vmem>>, vector<1x1x2x256xf32>,
    %c8_i32 = arith.constant 8 : i32
    %c0_i32_112 = arith.constant 0 : i32
    %217 = arith.cmpi sgt, %1, %c0_i32_112 : i32
    %c15_i32_113 = arith.constant 15 : i32
    %218 = arith.subi %c15_i32_113, %c8_i32 : i32
    %219 = arith.select %217, %218, %c8_i32 : i32
    %c0_114 = arith.constant 0 : index
    %220 = arith.index_cast %219 : i32 to index
    %c0_115 = arith.constant 0 : index
    %c0_116 = arith.constant 0 : index
    %221 = vector.load %arg3[%c0_114, %220, %c0_115, %c0_116] : memref<1x16x2x256xf32, #tpu.memory_space<vmem>>, vector<1x1x2x256xf32>
    %222 = vector.shape_cast %221 : vector<1x1x2x256xf32> to vector<2x256xf32>
    %c0_117 = arith.constant 0 : index
    %223 = arith.index_cast %219 : i32 to index
    %c0_118 = arith.constant 0 : index
    %c0_119 = arith.constant 0 : index
    %224 = vector.load %arg4[%c0_117, %223, %c0_118, %c0_119] : memref<1x16x2x256xf32, #tpu.memory_space<vmem>>, vector<1x1x2x256xf32>
    %225 = vector.shape_cast %224 : vector<1x1x2x256xf32> to vector<2x256xf32>
    %226 = vector.extract_strided_slice %212 {offsets = [0, 0], sizes = [2, 240], strides = [1, 1]} : vector<2x256xf32> to vector<2x240xf32>
    %227 = tpu.concatenate %8, %226 in 1 : vector<2x16xf32>, vector<2x240xf32> -> vector<2x256xf32>
    %228 = vector.extract_strided_slice %212 {offsets = [0, 16], sizes = [2, 240], strides = [1, 1]} : vector<2x256xf32> to vector<2x240xf32>
    %229 = tpu.concatenate %228, %8 in 1 : vector<2x240xf32>, vector<2x16xf32> -> vector<2x256xf32>
    %c0_i32_120 = arith.constant 0 : i32
    %230 = arith.cmpi sgt, %3, %c0_i32_120 : i32
    %c0_i32_121 = arith.constant 0 : i32
    %231 = arith.cmpi slt, %3, %c0_i32_121 : i32
    %232 = arith.select %231, %229, %212 : vector<2x256xf32>
    %233 = arith.select %230, %227, %232 : vector<2x256xf32>
    %234 = arith.mulf %222, %225 : vector<2x256xf32>
    %cst_122 = arith.constant 1.000000e+00 : f32
    %235 = vector.broadcast %cst_122 : f32 to vector<2x256xf32>
    %236 = arith.subf %235, %222 : vector<2x256xf32>
    %237 = arith.mulf %236, %233 : vector<2x256xf32>
    %238 = arith.addf %234, %237 : vector<2x256xf32>
    %c0_123 = arith.constant 0 : index
    %239 = arith.index_cast %219 : i32 to index
    %c0_124 = arith.constant 0 : index
    %c0_125 = arith.constant 0 : index
    %240 = vector.load %arg6[%c0_123, %239, %c0_124, %c0_125] : memref<1x16x2x256xf32, #tpu.memory_space<vmem>>, vector<1x1x2x256xf32>
    %241 = vector.shape_cast %240 : vector<1x1x2x256xf32> to vector<2x256xf32>
    %242 = vector.shape_cast %238 : vector<2x256xf32> to vector<1x1x2x256xf32>
    tpu.vector_store %arg6[%c0_123, %239, %c0_124, %c0_125], %242 {strides = array<i32>} : memref<1x16x2x256xf32, #tpu.memory_space<vmem>>, vector<1x1x2x256xf32>,
    %c9_i32 = arith.constant 9 : i32
    %c0_i32_126 = arith.constant 0 : i32
    %243 = arith.cmpi sgt, %1, %c0_i32_126 : i32
    %c15_i32_127 = arith.constant 15 : i32
    %244 = arith.subi %c15_i32_127, %c9_i32 : i32
    %245 = arith.select %243, %244, %c9_i32 : i32
    %c0_128 = arith.constant 0 : index
    %246 = arith.index_cast %245 : i32 to index
    %c0_129 = arith.constant 0 : index
    %c0_130 = arith.constant 0 : index
    %247 = vector.load %arg3[%c0_128, %246, %c0_129, %c0_130] : memref<1x16x2x256xf32, #tpu.memory_space<vmem>>, vector<1x1x2x256xf32>
    %248 = vector.shape_cast %247 : vector<1x1x2x256xf32> to vector<2x256xf32>
    %c0_131 = arith.constant 0 : index
    %249 = arith.index_cast %245 : i32 to index
    %c0_132 = arith.constant 0 : index
    %c0_133 = arith.constant 0 : index
    %250 = vector.load %arg4[%c0_131, %249, %c0_132, %c0_133] : memref<1x16x2x256xf32, #tpu.memory_space<vmem>>, vector<1x1x2x256xf32>
    %251 = vector.shape_cast %250 : vector<1x1x2x256xf32> to vector<2x256xf32>
    %252 = vector.extract_strided_slice %238 {offsets = [0, 0], sizes = [2, 240], strides = [1, 1]} : vector<2x256xf32> to vector<2x240xf32>
    %253 = tpu.concatenate %8, %252 in 1 : vector<2x16xf32>, vector<2x240xf32> -> vector<2x256xf32>
    %254 = vector.extract_strided_slice %238 {offsets = [0, 16], sizes = [2, 240], strides = [1, 1]} : vector<2x256xf32> to vector<2x240xf32>
    %255 = tpu.concatenate %254, %8 in 1 : vector<2x240xf32>, vector<2x16xf32> -> vector<2x256xf32>
    %c0_i32_134 = arith.constant 0 : i32
    %256 = arith.cmpi sgt, %3, %c0_i32_134 : i32
    %c0_i32_135 = arith.constant 0 : i32
    %257 = arith.cmpi slt, %3, %c0_i32_135 : i32
    %258 = arith.select %257, %255, %238 : vector<2x256xf32>
    %259 = arith.select %256, %253, %258 : vector<2x256xf32>
    %260 = arith.mulf %248, %251 : vector<2x256xf32>
    %cst_136 = arith.constant 1.000000e+00 : f32
    %261 = vector.broadcast %cst_136 : f32 to vector<2x256xf32>
    %262 = arith.subf %261, %248 : vector<2x256xf32>
    %263 = arith.mulf %262, %259 : vector<2x256xf32>
    %264 = arith.addf %260, %263 : vector<2x256xf32>
    %c0_137 = arith.constant 0 : index
    %265 = arith.index_cast %245 : i32 to index
    %c0_138 = arith.constant 0 : index
    %c0_139 = arith.constant 0 : index
    %266 = vector.load %arg6[%c0_137, %265, %c0_138, %c0_139] : memref<1x16x2x256xf32, #tpu.memory_space<vmem>>, vector<1x1x2x256xf32>
    %267 = vector.shape_cast %266 : vector<1x1x2x256xf32> to vector<2x256xf32>
    %268 = vector.shape_cast %264 : vector<2x256xf32> to vector<1x1x2x256xf32>
    tpu.vector_store %arg6[%c0_137, %265, %c0_138, %c0_139], %268 {strides = array<i32>} : memref<1x16x2x256xf32, #tpu.memory_space<vmem>>, vector<1x1x2x256xf32>,
    %c10_i32 = arith.constant 10 : i32
    %c0_i32_140 = arith.constant 0 : i32
    %269 = arith.cmpi sgt, %1, %c0_i32_140 : i32
    %c15_i32_141 = arith.constant 15 : i32
    %270 = arith.subi %c15_i32_141, %c10_i32 : i32
    %271 = arith.select %269, %270, %c10_i32 : i32
    %c0_142 = arith.constant 0 : index
    %272 = arith.index_cast %271 : i32 to index
    %c0_143 = arith.constant 0 : index
    %c0_144 = arith.constant 0 : index
    %273 = vector.load %arg3[%c0_142, %272, %c0_143, %c0_144] : memref<1x16x2x256xf32, #tpu.memory_space<vmem>>, vector<1x1x2x256xf32>
    %274 = vector.shape_cast %273 : vector<1x1x2x256xf32> to vector<2x256xf32>
    %c0_145 = arith.constant 0 : index
    %275 = arith.index_cast %271 : i32 to index
    %c0_146 = arith.constant 0 : index
    %c0_147 = arith.constant 0 : index
    %276 = vector.load %arg4[%c0_145, %275, %c0_146, %c0_147] : memref<1x16x2x256xf32, #tpu.memory_space<vmem>>, vector<1x1x2x256xf32>
    %277 = vector.shape_cast %276 : vector<1x1x2x256xf32> to vector<2x256xf32>
    %278 = vector.extract_strided_slice %264 {offsets = [0, 0], sizes = [2, 240], strides = [1, 1]} : vector<2x256xf32> to vector<2x240xf32>
    %279 = tpu.concatenate %8, %278 in 1 : vector<2x16xf32>, vector<2x240xf32> -> vector<2x256xf32>
    %280 = vector.extract_strided_slice %264 {offsets = [0, 16], sizes = [2, 240], strides = [1, 1]} : vector<2x256xf32> to vector<2x240xf32>
    %281 = tpu.concatenate %280, %8 in 1 : vector<2x240xf32>, vector<2x16xf32> -> vector<2x256xf32>
    %c0_i32_148 = arith.constant 0 : i32
    %282 = arith.cmpi sgt, %3, %c0_i32_148 : i32
    %c0_i32_149 = arith.constant 0 : i32
    %283 = arith.cmpi slt, %3, %c0_i32_149 : i32
    %284 = arith.select %283, %281, %264 : vector<2x256xf32>
    %285 = arith.select %282, %279, %284 : vector<2x256xf32>
    %286 = arith.mulf %274, %277 : vector<2x256xf32>
    %cst_150 = arith.constant 1.000000e+00 : f32
    %287 = vector.broadcast %cst_150 : f32 to vector<2x256xf32>
    %288 = arith.subf %287, %274 : vector<2x256xf32>
    %289 = arith.mulf %288, %285 : vector<2x256xf32>
    %290 = arith.addf %286, %289 : vector<2x256xf32>
    %c0_151 = arith.constant 0 : index
    %291 = arith.index_cast %271 : i32 to index
    %c0_152 = arith.constant 0 : index
    %c0_153 = arith.constant 0 : index
    %292 = vector.load %arg6[%c0_151, %291, %c0_152, %c0_153] : memref<1x16x2x256xf32, #tpu.memory_space<vmem>>, vector<1x1x2x256xf32>
    %293 = vector.shape_cast %292 : vector<1x1x2x256xf32> to vector<2x256xf32>
    %294 = vector.shape_cast %290 : vector<2x256xf32> to vector<1x1x2x256xf32>
    tpu.vector_store %arg6[%c0_151, %291, %c0_152, %c0_153], %294 {strides = array<i32>} : memref<1x16x2x256xf32, #tpu.memory_space<vmem>>, vector<1x1x2x256xf32>,
    %c11_i32 = arith.constant 11 : i32
    %c0_i32_154 = arith.constant 0 : i32
    %295 = arith.cmpi sgt, %1, %c0_i32_154 : i32
    %c15_i32_155 = arith.constant 15 : i32
    %296 = arith.subi %c15_i32_155, %c11_i32 : i32
    %297 = arith.select %295, %296, %c11_i32 : i32
    %c0_156 = arith.constant 0 : index
    %298 = arith.index_cast %297 : i32 to index
    %c0_157 = arith.constant 0 : index
    %c0_158 = arith.constant 0 : index
    %299 = vector.load %arg3[%c0_156, %298, %c0_157, %c0_158] : memref<1x16x2x256xf32, #tpu.memory_space<vmem>>, vector<1x1x2x256xf32>
    %300 = vector.shape_cast %299 : vector<1x1x2x256xf32> to vector<2x256xf32>
    %c0_159 = arith.constant 0 : index
    %301 = arith.index_cast %297 : i32 to index
    %c0_160 = arith.constant 0 : index
    %c0_161 = arith.constant 0 : index
    %302 = vector.load %arg4[%c0_159, %301, %c0_160, %c0_161] : memref<1x16x2x256xf32, #tpu.memory_space<vmem>>, vector<1x1x2x256xf32>
    %303 = vector.shape_cast %302 : vector<1x1x2x256xf32> to vector<2x256xf32>
    %304 = vector.extract_strided_slice %290 {offsets = [0, 0], sizes = [2, 240], strides = [1, 1]} : vector<2x256xf32> to vector<2x240xf32>
    %305 = tpu.concatenate %8, %304 in 1 : vector<2x16xf32>, vector<2x240xf32> -> vector<2x256xf32>
    %306 = vector.extract_strided_slice %290 {offsets = [0, 16], sizes = [2, 240], strides = [1, 1]} : vector<2x256xf32> to vector<2x240xf32>
    %307 = tpu.concatenate %306, %8 in 1 : vector<2x240xf32>, vector<2x16xf32> -> vector<2x256xf32>
    %c0_i32_162 = arith.constant 0 : i32
    %308 = arith.cmpi sgt, %3, %c0_i32_162 : i32
    %c0_i32_163 = arith.constant 0 : i32
    %309 = arith.cmpi slt, %3, %c0_i32_163 : i32
    %310 = arith.select %309, %307, %290 : vector<2x256xf32>
    %311 = arith.select %308, %305, %310 : vector<2x256xf32>
    %312 = arith.mulf %300, %303 : vector<2x256xf32>
    %cst_164 = arith.constant 1.000000e+00 : f32
    %313 = vector.broadcast %cst_164 : f32 to vector<2x256xf32>
    %314 = arith.subf %313, %300 : vector<2x256xf32>
    %315 = arith.mulf %314, %311 : vector<2x256xf32>
    %316 = arith.addf %312, %315 : vector<2x256xf32>
    %c0_165 = arith.constant 0 : index
    %317 = arith.index_cast %297 : i32 to index
    %c0_166 = arith.constant 0 : index
    %c0_167 = arith.constant 0 : index
    %318 = vector.load %arg6[%c0_165, %317, %c0_166, %c0_167] : memref<1x16x2x256xf32, #tpu.memory_space<vmem>>, vector<1x1x2x256xf32>
    %319 = vector.shape_cast %318 : vector<1x1x2x256xf32> to vector<2x256xf32>
    %320 = vector.shape_cast %316 : vector<2x256xf32> to vector<1x1x2x256xf32>
    tpu.vector_store %arg6[%c0_165, %317, %c0_166, %c0_167], %320 {strides = array<i32>} : memref<1x16x2x256xf32, #tpu.memory_space<vmem>>, vector<1x1x2x256xf32>,
    %c12_i32 = arith.constant 12 : i32
    %c0_i32_168 = arith.constant 0 : i32
    %321 = arith.cmpi sgt, %1, %c0_i32_168 : i32
    %c15_i32_169 = arith.constant 15 : i32
    %322 = arith.subi %c15_i32_169, %c12_i32 : i32
    %323 = arith.select %321, %322, %c12_i32 : i32
    %c0_170 = arith.constant 0 : index
    %324 = arith.index_cast %323 : i32 to index
    %c0_171 = arith.constant 0 : index
    %c0_172 = arith.constant 0 : index
    %325 = vector.load %arg3[%c0_170, %324, %c0_171, %c0_172] : memref<1x16x2x256xf32, #tpu.memory_space<vmem>>, vector<1x1x2x256xf32>
    %326 = vector.shape_cast %325 : vector<1x1x2x256xf32> to vector<2x256xf32>
    %c0_173 = arith.constant 0 : index
    %327 = arith.index_cast %323 : i32 to index
    %c0_174 = arith.constant 0 : index
    %c0_175 = arith.constant 0 : index
    %328 = vector.load %arg4[%c0_173, %327, %c0_174, %c0_175] : memref<1x16x2x256xf32, #tpu.memory_space<vmem>>, vector<1x1x2x256xf32>
    %329 = vector.shape_cast %328 : vector<1x1x2x256xf32> to vector<2x256xf32>
    %330 = vector.extract_strided_slice %316 {offsets = [0, 0], sizes = [2, 240], strides = [1, 1]} : vector<2x256xf32> to vector<2x240xf32>
    %331 = tpu.concatenate %8, %330 in 1 : vector<2x16xf32>, vector<2x240xf32> -> vector<2x256xf32>
    %332 = vector.extract_strided_slice %316 {offsets = [0, 16], sizes = [2, 240], strides = [1, 1]} : vector<2x256xf32> to vector<2x240xf32>
    %333 = tpu.concatenate %332, %8 in 1 : vector<2x240xf32>, vector<2x16xf32> -> vector<2x256xf32>
    %c0_i32_176 = arith.constant 0 : i32
    %334 = arith.cmpi sgt, %3, %c0_i32_176 : i32
    %c0_i32_177 = arith.constant 0 : i32
    %335 = arith.cmpi slt, %3, %c0_i32_177 : i32
    %336 = arith.select %335, %333, %316 : vector<2x256xf32>
    %337 = arith.select %334, %331, %336 : vector<2x256xf32>
    %338 = arith.mulf %326, %329 : vector<2x256xf32>
    %cst_178 = arith.constant 1.000000e+00 : f32
    %339 = vector.broadcast %cst_178 : f32 to vector<2x256xf32>
    %340 = arith.subf %339, %326 : vector<2x256xf32>
    %341 = arith.mulf %340, %337 : vector<2x256xf32>
    %342 = arith.addf %338, %341 : vector<2x256xf32>
    %c0_179 = arith.constant 0 : index
    %343 = arith.index_cast %323 : i32 to index
    %c0_180 = arith.constant 0 : index
    %c0_181 = arith.constant 0 : index
    %344 = vector.load %arg6[%c0_179, %343, %c0_180, %c0_181] : memref<1x16x2x256xf32, #tpu.memory_space<vmem>>, vector<1x1x2x256xf32>
    %345 = vector.shape_cast %344 : vector<1x1x2x256xf32> to vector<2x256xf32>
    %346 = vector.shape_cast %342 : vector<2x256xf32> to vector<1x1x2x256xf32>
    tpu.vector_store %arg6[%c0_179, %343, %c0_180, %c0_181], %346 {strides = array<i32>} : memref<1x16x2x256xf32, #tpu.memory_space<vmem>>, vector<1x1x2x256xf32>,
    %c13_i32 = arith.constant 13 : i32
    %c0_i32_182 = arith.constant 0 : i32
    %347 = arith.cmpi sgt, %1, %c0_i32_182 : i32
    %c15_i32_183 = arith.constant 15 : i32
    %348 = arith.subi %c15_i32_183, %c13_i32 : i32
    %349 = arith.select %347, %348, %c13_i32 : i32
    %c0_184 = arith.constant 0 : index
    %350 = arith.index_cast %349 : i32 to index
    %c0_185 = arith.constant 0 : index
    %c0_186 = arith.constant 0 : index
    %351 = vector.load %arg3[%c0_184, %350, %c0_185, %c0_186] : memref<1x16x2x256xf32, #tpu.memory_space<vmem>>, vector<1x1x2x256xf32>
    %352 = vector.shape_cast %351 : vector<1x1x2x256xf32> to vector<2x256xf32>
    %c0_187 = arith.constant 0 : index
    %353 = arith.index_cast %349 : i32 to index
    %c0_188 = arith.constant 0 : index
    %c0_189 = arith.constant 0 : index
    %354 = vector.load %arg4[%c0_187, %353, %c0_188, %c0_189] : memref<1x16x2x256xf32, #tpu.memory_space<vmem>>, vector<1x1x2x256xf32>
    %355 = vector.shape_cast %354 : vector<1x1x2x256xf32> to vector<2x256xf32>
    %356 = vector.extract_strided_slice %342 {offsets = [0, 0], sizes = [2, 240], strides = [1, 1]} : vector<2x256xf32> to vector<2x240xf32>
    %357 = tpu.concatenate %8, %356 in 1 : vector<2x16xf32>, vector<2x240xf32> -> vector<2x256xf32>
    %358 = vector.extract_strided_slice %342 {offsets = [0, 16], sizes = [2, 240], strides = [1, 1]} : vector<2x256xf32> to vector<2x240xf32>
    %359 = tpu.concatenate %358, %8 in 1 : vector<2x240xf32>, vector<2x16xf32> -> vector<2x256xf32>
    %c0_i32_190 = arith.constant 0 : i32
    %360 = arith.cmpi sgt, %3, %c0_i32_190 : i32
    %c0_i32_191 = arith.constant 0 : i32
    %361 = arith.cmpi slt, %3, %c0_i32_191 : i32
    %362 = arith.select %361, %359, %342 : vector<2x256xf32>
    %363 = arith.select %360, %357, %362 : vector<2x256xf32>
    %364 = arith.mulf %352, %355 : vector<2x256xf32>
    %cst_192 = arith.constant 1.000000e+00 : f32
    %365 = vector.broadcast %cst_192 : f32 to vector<2x256xf32>
    %366 = arith.subf %365, %352 : vector<2x256xf32>
    %367 = arith.mulf %366, %363 : vector<2x256xf32>
    %368 = arith.addf %364, %367 : vector<2x256xf32>
    %c0_193 = arith.constant 0 : index
    %369 = arith.index_cast %349 : i32 to index
    %c0_194 = arith.constant 0 : index
    %c0_195 = arith.constant 0 : index
    %370 = vector.load %arg6[%c0_193, %369, %c0_194, %c0_195] : memref<1x16x2x256xf32, #tpu.memory_space<vmem>>, vector<1x1x2x256xf32>
    %371 = vector.shape_cast %370 : vector<1x1x2x256xf32> to vector<2x256xf32>
    %372 = vector.shape_cast %368 : vector<2x256xf32> to vector<1x1x2x256xf32>
    tpu.vector_store %arg6[%c0_193, %369, %c0_194, %c0_195], %372 {strides = array<i32>} : memref<1x16x2x256xf32, #tpu.memory_space<vmem>>, vector<1x1x2x256xf32>,
    %c14_i32 = arith.constant 14 : i32
    %c0_i32_196 = arith.constant 0 : i32
    %373 = arith.cmpi sgt, %1, %c0_i32_196 : i32
    %c15_i32_197 = arith.constant 15 : i32
    %374 = arith.subi %c15_i32_197, %c14_i32 : i32
    %375 = arith.select %373, %374, %c14_i32 : i32
    %c0_198 = arith.constant 0 : index
    %376 = arith.index_cast %375 : i32 to index
    %c0_199 = arith.constant 0 : index
    %c0_200 = arith.constant 0 : index
    %377 = vector.load %arg3[%c0_198, %376, %c0_199, %c0_200] : memref<1x16x2x256xf32, #tpu.memory_space<vmem>>, vector<1x1x2x256xf32>
    %378 = vector.shape_cast %377 : vector<1x1x2x256xf32> to vector<2x256xf32>
    %c0_201 = arith.constant 0 : index
    %379 = arith.index_cast %375 : i32 to index
    %c0_202 = arith.constant 0 : index
    %c0_203 = arith.constant 0 : index
    %380 = vector.load %arg4[%c0_201, %379, %c0_202, %c0_203] : memref<1x16x2x256xf32, #tpu.memory_space<vmem>>, vector<1x1x2x256xf32>
    %381 = vector.shape_cast %380 : vector<1x1x2x256xf32> to vector<2x256xf32>
    %382 = vector.extract_strided_slice %368 {offsets = [0, 0], sizes = [2, 240], strides = [1, 1]} : vector<2x256xf32> to vector<2x240xf32>
    %383 = tpu.concatenate %8, %382 in 1 : vector<2x16xf32>, vector<2x240xf32> -> vector<2x256xf32>
    %384 = vector.extract_strided_slice %368 {offsets = [0, 16], sizes = [2, 240], strides = [1, 1]} : vector<2x256xf32> to vector<2x240xf32>
    %385 = tpu.concatenate %384, %8 in 1 : vector<2x240xf32>, vector<2x16xf32> -> vector<2x256xf32>
    %c0_i32_204 = arith.constant 0 : i32
    %386 = arith.cmpi sgt, %3, %c0_i32_204 : i32
    %c0_i32_205 = arith.constant 0 : i32
    %387 = arith.cmpi slt, %3, %c0_i32_205 : i32
    %388 = arith.select %387, %385, %368 : vector<2x256xf32>
    %389 = arith.select %386, %383, %388 : vector<2x256xf32>
    %390 = arith.mulf %378, %381 : vector<2x256xf32>
    %cst_206 = arith.constant 1.000000e+00 : f32
    %391 = vector.broadcast %cst_206 : f32 to vector<2x256xf32>
    %392 = arith.subf %391, %378 : vector<2x256xf32>
    %393 = arith.mulf %392, %389 : vector<2x256xf32>
    %394 = arith.addf %390, %393 : vector<2x256xf32>
    %c0_207 = arith.constant 0 : index
    %395 = arith.index_cast %375 : i32 to index
    %c0_208 = arith.constant 0 : index
    %c0_209 = arith.constant 0 : index
    %396 = vector.load %arg6[%c0_207, %395, %c0_208, %c0_209] : memref<1x16x2x256xf32, #tpu.memory_space<vmem>>, vector<1x1x2x256xf32>
    %397 = vector.shape_cast %396 : vector<1x1x2x256xf32> to vector<2x256xf32>
    %398 = vector.shape_cast %394 : vector<2x256xf32> to vector<1x1x2x256xf32>
    tpu.vector_store %arg6[%c0_207, %395, %c0_208, %c0_209], %398 {strides = array<i32>} : memref<1x16x2x256xf32, #tpu.memory_space<vmem>>, vector<1x1x2x256xf32>,
    %c15_i32_210 = arith.constant 15 : i32
    %c0_i32_211 = arith.constant 0 : i32
    %399 = arith.cmpi sgt, %1, %c0_i32_211 : i32
    %c15_i32_212 = arith.constant 15 : i32
    %400 = arith.subi %c15_i32_212, %c15_i32_210 : i32
    %401 = arith.select %399, %400, %c15_i32_210 : i32
    %c0_213 = arith.constant 0 : index
    %402 = arith.index_cast %401 : i32 to index
    %c0_214 = arith.constant 0 : index
    %c0_215 = arith.constant 0 : index
    %403 = vector.load %arg3[%c0_213, %402, %c0_214, %c0_215] : memref<1x16x2x256xf32, #tpu.memory_space<vmem>>, vector<1x1x2x256xf32>
    %404 = vector.shape_cast %403 : vector<1x1x2x256xf32> to vector<2x256xf32>
    %c0_216 = arith.constant 0 : index
    %405 = arith.index_cast %401 : i32 to index
    %c0_217 = arith.constant 0 : index
    %c0_218 = arith.constant 0 : index
    %406 = vector.load %arg4[%c0_216, %405, %c0_217, %c0_218] : memref<1x16x2x256xf32, #tpu.memory_space<vmem>>, vector<1x1x2x256xf32>
    %407 = vector.shape_cast %406 : vector<1x1x2x256xf32> to vector<2x256xf32>
    %408 = vector.extract_strided_slice %394 {offsets = [0, 0], sizes = [2, 240], strides = [1, 1]} : vector<2x256xf32> to vector<2x240xf32>
    %409 = tpu.concatenate %8, %408 in 1 : vector<2x16xf32>, vector<2x240xf32> -> vector<2x256xf32>
    %410 = vector.extract_strided_slice %394 {offsets = [0, 16], sizes = [2, 240], strides = [1, 1]} : vector<2x256xf32> to vector<2x240xf32>
    %411 = tpu.concatenate %410, %8 in 1 : vector<2x240xf32>, vector<2x16xf32> -> vector<2x256xf32>
    %c0_i32_219 = arith.constant 0 : i32
    %412 = arith.cmpi sgt, %3, %c0_i32_219 : i32
    %c0_i32_220 = arith.constant 0 : i32
    %413 = arith.cmpi slt, %3, %c0_i32_220 : i32
    %414 = arith.select %413, %411, %394 : vector<2x256xf32>
    %415 = arith.select %412, %409, %414 : vector<2x256xf32>
    %416 = arith.mulf %404, %407 : vector<2x256xf32>
    %cst_221 = arith.constant 1.000000e+00 : f32
    %417 = vector.broadcast %cst_221 : f32 to vector<2x256xf32>
    %418 = arith.subf %417, %404 : vector<2x256xf32>
    %419 = arith.mulf %418, %415 : vector<2x256xf32>
    %420 = arith.addf %416, %419 : vector<2x256xf32>
    %c0_222 = arith.constant 0 : index
    %421 = arith.index_cast %401 : i32 to index
    %c0_223 = arith.constant 0 : index
    %c0_224 = arith.constant 0 : index
    %422 = vector.load %arg6[%c0_222, %421, %c0_223, %c0_224] : memref<1x16x2x256xf32, #tpu.memory_space<vmem>>, vector<1x1x2x256xf32>
    %423 = vector.shape_cast %422 : vector<1x1x2x256xf32> to vector<2x256xf32>
    %424 = vector.shape_cast %420 : vector<2x256xf32> to vector<1x1x2x256xf32>
    tpu.vector_store %arg6[%c0_222, %421, %c0_223, %c0_224], %424 {strides = array<i32>} : memref<1x16x2x256xf32, #tpu.memory_space<vmem>>, vector<1x1x2x256xf32>,
    %c16_i32 = arith.constant 16 : i32
    return
  }
  func.func @transform_0(%arg0: i32, %arg1: memref<2xi32, #tpu.memory_space<smem>>, %arg2: memref<2xi32, #tpu.memory_space<smem>>) -> (i32, i32, i32, i32) {
    %c0_i32 = arith.constant 0 : i32
    %c0_i32_0 = arith.constant 0 : i32
    %c0_i32_1 = arith.constant 0 : i32
    %c0_i32_2 = arith.constant 0 : i32
    return %arg0, %c0_i32, %c0_i32_0, %c0_i32_1 : i32, i32, i32, i32
  }
  func.func @transform_1(%arg0: i32, %arg1: memref<2xi32, #tpu.memory_space<smem>>, %arg2: memref<2xi32, #tpu.memory_space<smem>>) -> (i32, i32, i32, i32) {
    %c0_i32 = arith.constant 0 : i32
    %c0_i32_0 = arith.constant 0 : i32
    %c0_i32_1 = arith.constant 0 : i32
    %c0_i32_2 = arith.constant 0 : i32
    return %arg0, %c0_i32, %c0_i32_0, %c0_i32_1 : i32, i32, i32, i32
  }
  func.func @transform_2(%arg0: i32, %arg1: memref<2xi32, #tpu.memory_space<smem>>, %arg2: memref<2xi32, #tpu.memory_space<smem>>) -> (i32, i32, i32) {
    %c0_i32 = arith.constant 0 : i32
    %c0_i32_0 = arith.constant 0 : i32
    %c0_i32_1 = arith.constant 0 : i32
    return %arg0, %c0_i32, %c0_i32_0 : i32, i32, i32
  }
  func.func @transform_3(%arg0: i32, %arg1: memref<2xi32, #tpu.memory_space<smem>>, %arg2: memref<2xi32, #tpu.memory_space<smem>>) -> (i32, i32, i32, i32) {
    %c0_i32 = arith.constant 0 : i32
    %c0_i32_0 = arith.constant 0 : i32
    %c0_i32_1 = arith.constant 0 : i32
    %c0_i32_2 = arith.constant 0 : i32
    return %arg0, %c0_i32, %c0_i32_0, %c0_i32_1 : i32, i32, i32, i32
  }
}

module attributes {stable_mosaic.version = 11 : i64} {
  func.func @kernel(%arg0: i32, %arg1: memref<6xi32, #tpu.memory_space<smem>>, %arg2: memref<6xi32, #tpu.memory_space<smem>>, %arg3: memref<1x16x2x256xf32, #tpu.memory_space<vmem>>, %arg4: memref<1x16x2x256xf32, #tpu.memory_space<vmem>>, %arg5: memref<1x1x256xf32, #tpu.memory_space<vmem>>, %arg6: memref<1x16x2x256xf32, #tpu.memory_space<vmem>>) attributes {dimension_semantics = [#tpu.dimension_semantics<parallel>], iteration_bounds = array<i64: 6>, scalar_prefetch = 2 : i64, scratch_operands = 0 : i64, tpu.core_type = #tpu.core_type<tc>, window_params = [{transform_indices = @transform_0, window_bounds = array<i64: 1, 16, 2, 256>}, {transform_indices = @transform_1, window_bounds = array<i64: 1, 16, 2, 256>}, {transform_indices = @transform_2, window_bounds = array<i64: 1, 1, 256>}, {transform_indices = @transform_3, window_bounds = array<i64: 1, 16, 2, 256>}]} {
    %0 = arith.index_cast %arg0 : i32 to index
    %1 = memref.load %arg1[%0] : memref<6xi32, #tpu.memory_space<smem>>
    %2 = arith.index_cast %arg0 : i32 to index
    %3 = memref.load %arg2[%2] : memref<6xi32, #tpu.memory_space<smem>>
    %c0 = arith.constant 0 : index
    %c0_0 = arith.constant 0 : index
    %c0_1 = arith.constant 0 : index
    %4 = vector.load %arg5[%c0, %c0_0, %c0_1] : memref<1x1x256xf32, #tpu.memory_space<vmem>>, vector<1x1x256xf32>
    %5 = vector.shape_cast %4 : vector<1x1x256xf32> to vector<1x256xf32>
    %6 = vector.shape_cast %5 : vector<1x256xf32> to vector<1x256xf32>
    %7 = vector.broadcast %6 : vector<1x256xf32> to vector<2x256xf32>
    %8 = vector.extract_strided_slice %7 {offsets = [0, 0], sizes = [2, 16], strides = [1, 1]} : vector<2x256xf32> to vector<2x16xf32>
    %c0_i32 = arith.constant 0 : i32
    %c0_i32_2 = arith.constant 0 : i32
    %9 = arith.cmpi sgt, %1, %c0_i32_2 : i32
    %c15_i32 = arith.constant 15 : i32
    %10 = arith.subi %c15_i32, %c0_i32 : i32
    %11 = arith.select %9, %10, %c0_i32 : i32
    %c0_3 = arith.constant 0 : index
    %12 = arith.index_cast %11 : i32 to index
    %c0_4 = arith.constant 0 : index
    %c0_5 = arith.constant 0 : index
    %13 = vector.load %arg3[%c0_3, %12, %c0_4, %c0_5] : memref<1x16x2x256xf32, #tpu.memory_space<vmem>>, vector<1x1x2x256xf32>
    %14 = vector.shape_cast %13 : vector<1x1x2x256xf32> to vector<2x256xf32>
    %c0_6 = arith.constant 0 : index
    %15 = arith.index_cast %11 : i32 to index
    %c0_7 = arith.constant 0 : index
    %c0_8 = arith.constant 0 : index
    %16 = vector.load %arg4[%c0_6, %15, %c0_7, %c0_8] : memref<1x16x2x256xf32, #tpu.memory_space<vmem>>, vector<1x1x2x256xf32>
    %17 = vector.shape_cast %16 : vector<1x1x2x256xf32> to vector<2x256xf32>
    %18 = vector.extract_strided_slice %7 {offsets = [0, 0], sizes = [2, 240], strides = [1, 1]} : vector<2x256xf32> to vector<2x240xf32>
    %19 = tpu.concatenate %8, %18 in 1 : vector<2x16xf32>, vector<2x240xf32> -> vector<2x256xf32>
    %20 = vector.extract_strided_slice %7 {offsets = [0, 16], sizes = [2, 240], strides = [1, 1]} : vector<2x256xf32> to vector<2x240xf32>
    %21 = tpu.concatenate %20, %8 in 1 : vector<2x240xf32>, vector<2x16xf32> -> vector<2x256xf32>
    %c0_i32_9 = arith.constant 0 : i32
    %22 = arith.cmpi sgt, %3, %c0_i32_9 : i32
    %c0_i32_10 = arith.constant 0 : i32
    %23 = arith.cmpi slt, %3, %c0_i32_10 : i32
    %24 = arith.select %23, %21, %7 : vector<2x256xf32>
    %25 = arith.select %22, %19, %24 : vector<2x256xf32>
    %26 = arith.mulf %14, %17 : vector<2x256xf32>
    %cst = arith.constant 1.000000e+00 : f32
    %27 = vector.broadcast %cst : f32 to vector<2x256xf32>
    %28 = arith.subf %27, %14 : vector<2x256xf32>
    %29 = arith.mulf %28, %25 : vector<2x256xf32>
    %30 = arith.addf %26, %29 : vector<2x256xf32>
    %c0_11 = arith.constant 0 : index
    %31 = arith.index_cast %11 : i32 to index
    %c0_12 = arith.constant 0 : index
    %c0_13 = arith.constant 0 : index
    %32 = vector.load %arg6[%c0_11, %31, %c0_12, %c0_13] : memref<1x16x2x256xf32, #tpu.memory_space<vmem>>, vector<1x1x2x256xf32>
    %33 = vector.shape_cast %32 : vector<1x1x2x256xf32> to vector<2x256xf32>
    %34 = vector.shape_cast %30 : vector<2x256xf32> to vector<1x1x2x256xf32>
    tpu.vector_store %arg6[%c0_11, %31, %c0_12, %c0_13], %34 {strides = array<i32>} : memref<1x16x2x256xf32, #tpu.memory_space<vmem>>, vector<1x1x2x256xf32>,
    %c1_i32 = arith.constant 1 : i32
    %c0_i32_14 = arith.constant 0 : i32
    %35 = arith.cmpi sgt, %1, %c0_i32_14 : i32
    %c15_i32_15 = arith.constant 15 : i32
    %36 = arith.subi %c15_i32_15, %c1_i32 : i32
    %37 = arith.select %35, %36, %c1_i32 : i32
    %c0_16 = arith.constant 0 : index
    %38 = arith.index_cast %37 : i32 to index
    %c0_17 = arith.constant 0 : index
    %c0_18 = arith.constant 0 : index
    %39 = vector.load %arg3[%c0_16, %38, %c0_17, %c0_18] : memref<1x16x2x256xf32, #tpu.memory_space<vmem>>, vector<1x1x2x256xf32>
    %40 = vector.shape_cast %39 : vector<1x1x2x256xf32> to vector<2x256xf32>
    %c0_19 = arith.constant 0 : index
    %41 = arith.index_cast %37 : i32 to index
    %c0_20 = arith.constant 0 : index
    %c0_21 = arith.constant 0 : index
    %42 = vector.load %arg4[%c0_19, %41, %c0_20, %c0_21] : memref<1x16x2x256xf32, #tpu.memory_space<vmem>>, vector<1x1x2x256xf32>
    %43 = vector.shape_cast %42 : vector<1x1x2x256xf32> to vector<2x256xf32>
    %44 = vector.extract_strided_slice %30 {offsets = [0, 0], sizes = [2, 240], strides = [1, 1]} : vector<2x256xf32> to vector<2x240xf32>
    %45 = tpu.concatenate %8, %44 in 1 : vector<2x16xf32>, vector<2x240xf32> -> vector<2x256xf32>
    %46 = vector.extract_strided_slice %30 {offsets = [0, 16], sizes = [2, 240], strides = [1, 1]} : vector<2x256xf32> to vector<2x240xf32>
    %47 = tpu.concatenate %46, %8 in 1 : vector<2x240xf32>, vector<2x16xf32> -> vector<2x256xf32>
    %c0_i32_22 = arith.constant 0 : i32
    %48 = arith.cmpi sgt, %3, %c0_i32_22 : i32
    %c0_i32_23 = arith.constant 0 : i32
    %49 = arith.cmpi slt, %3, %c0_i32_23 : i32
    %50 = arith.select %49, %47, %30 : vector<2x256xf32>
    %51 = arith.select %48, %45, %50 : vector<2x256xf32>
    %52 = arith.mulf %40, %43 : vector<2x256xf32>
    %cst_24 = arith.constant 1.000000e+00 : f32
    %53 = vector.broadcast %cst_24 : f32 to vector<2x256xf32>
    %54 = arith.subf %53, %40 : vector<2x256xf32>
    %55 = arith.mulf %54, %51 : vector<2x256xf32>
    %56 = arith.addf %52, %55 : vector<2x256xf32>
    %c0_25 = arith.constant 0 : index
    %57 = arith.index_cast %37 : i32 to index
    %c0_26 = arith.constant 0 : index
    %c0_27 = arith.constant 0 : index
    %58 = vector.load %arg6[%c0_25, %57, %c0_26, %c0_27] : memref<1x16x2x256xf32, #tpu.memory_space<vmem>>, vector<1x1x2x256xf32>
    %59 = vector.shape_cast %58 : vector<1x1x2x256xf32> to vector<2x256xf32>
    %60 = vector.shape_cast %56 : vector<2x256xf32> to vector<1x1x2x256xf32>
    tpu.vector_store %arg6[%c0_25, %57, %c0_26, %c0_27], %60 {strides = array<i32>} : memref<1x16x2x256xf32, #tpu.memory_space<vmem>>, vector<1x1x2x256xf32>,
    %c2_i32 = arith.constant 2 : i32
    %c0_i32_28 = arith.constant 0 : i32
    %61 = arith.cmpi sgt, %1, %c0_i32_28 : i32
    %c15_i32_29 = arith.constant 15 : i32
    %62 = arith.subi %c15_i32_29, %c2_i32 : i32
    %63 = arith.select %61, %62, %c2_i32 : i32
    %c0_30 = arith.constant 0 : index
    %64 = arith.index_cast %63 : i32 to index
    %c0_31 = arith.constant 0 : index
    %c0_32 = arith.constant 0 : index
    %65 = vector.load %arg3[%c0_30, %64, %c0_31, %c0_32] : memref<1x16x2x256xf32, #tpu.memory_space<vmem>>, vector<1x1x2x256xf32>
    %66 = vector.shape_cast %65 : vector<1x1x2x256xf32> to vector<2x256xf32>
    %c0_33 = arith.constant 0 : index
    %67 = arith.index_cast %63 : i32 to index
    %c0_34 = arith.constant 0 : index
    %c0_35 = arith.constant 0 : index
    %68 = vector.load %arg4[%c0_33, %67, %c0_34, %c0_35] : memref<1x16x2x256xf32, #tpu.memory_space<vmem>>, vector<1x1x2x256xf32>
    %69 = vector.shape_cast %68 : vector<1x1x2x256xf32> to vector<2x256xf32>
    %70 = vector.extract_strided_slice %56 {offsets = [0, 0], sizes = [2, 240], strides = [1, 1]} : vector<2x256xf32> to vector<2x240xf32>
    %71 = tpu.concatenate %8, %70 in 1 : vector<2x16xf32>, vector<2x240xf32> -> vector<2x256xf32>
    %72 = vector.extract_strided_slice %56 {offsets = [0, 16], sizes = [2, 240], strides = [1, 1]} : vector<2x256xf32> to vector<2x240xf32>
    %73 = tpu.concatenate %72, %8 in 1 : vector<2x240xf32>, vector<2x16xf32> -> vector<2x256xf32>
    %c0_i32_36 = arith.constant 0 : i32
    %74 = arith.cmpi sgt, %3, %c0_i32_36 : i32
    %c0_i32_37 = arith.constant 0 : i32
    %75 = arith.cmpi slt, %3, %c0_i32_37 : i32
    %76 = arith.select %75, %73, %56 : vector<2x256xf32>
    %77 = arith.select %74, %71, %76 : vector<2x256xf32>
    %78 = arith.mulf %66, %69 : vector<2x256xf32>
    %cst_38 = arith.constant 1.000000e+00 : f32
    %79 = vector.broadcast %cst_38 : f32 to vector<2x256xf32>
    %80 = arith.subf %79, %66 : vector<2x256xf32>
    %81 = arith.mulf %80, %77 : vector<2x256xf32>
    %82 = arith.addf %78, %81 : vector<2x256xf32>
    %c0_39 = arith.constant 0 : index
    %83 = arith.index_cast %63 : i32 to index
    %c0_40 = arith.constant 0 : index
    %c0_41 = arith.constant 0 : index
    %84 = vector.load %arg6[%c0_39, %83, %c0_40, %c0_41] : memref<1x16x2x256xf32, #tpu.memory_space<vmem>>, vector<1x1x2x256xf32>
    %85 = vector.shape_cast %84 : vector<1x1x2x256xf32> to vector<2x256xf32>
    %86 = vector.shape_cast %82 : vector<2x256xf32> to vector<1x1x2x256xf32>
    tpu.vector_store %arg6[%c0_39, %83, %c0_40, %c0_41], %86 {strides = array<i32>} : memref<1x16x2x256xf32, #tpu.memory_space<vmem>>, vector<1x1x2x256xf32>,
    %c3_i32 = arith.constant 3 : i32
    %c0_i32_42 = arith.constant 0 : i32
    %87 = arith.cmpi sgt, %1, %c0_i32_42 : i32
    %c15_i32_43 = arith.constant 15 : i32
    %88 = arith.subi %c15_i32_43, %c3_i32 : i32
    %89 = arith.select %87, %88, %c3_i32 : i32
    %c0_44 = arith.constant 0 : index
    %90 = arith.index_cast %89 : i32 to index
    %c0_45 = arith.constant 0 : index
    %c0_46 = arith.constant 0 : index
    %91 = vector.load %arg3[%c0_44, %90, %c0_45, %c0_46] : memref<1x16x2x256xf32, #tpu.memory_space<vmem>>, vector<1x1x2x256xf32>
    %92 = vector.shape_cast %91 : vector<1x1x2x256xf32> to vector<2x256xf32>
    %c0_47 = arith.constant 0 : index
    %93 = arith.index_cast %89 : i32 to index
    %c0_48 = arith.constant 0 : index
    %c0_49 = arith.constant 0 : index
    %94 = vector.load %arg4[%c0_47, %93, %c0_48, %c0_49] : memref<1x16x2x256xf32, #tpu.memory_space<vmem>>, vector<1x1x2x256xf32>
    %95 = vector.shape_cast %94 : vector<1x1x2x256xf32> to vector<2x256xf32>
    %96 = vector.extract_strided_slice %82 {offsets = [0, 0], sizes = [2, 240], strides = [1, 1]} : vector<2x256xf32> to vector<2x240xf32>
    %97 = tpu.concatenate %8, %96 in 1 : vector<2x16xf32>, vector<2x240xf32> -> vector<2x256xf32>
    %98 = vector.extract_strided_slice %82 {offsets = [0, 16], sizes = [2, 240], strides = [1, 1]} : vector<2x256xf32> to vector<2x240xf32>
    %99 = tpu.concatenate %98, %8 in 1 : vector<2x240xf32>, vector<2x16xf32> -> vector<2x256xf32>
    %c0_i32_50 = arith.constant 0 : i32
    %100 = arith.cmpi sgt, %3, %c0_i32_50 : i32
    %c0_i32_51 = arith.constant 0 : i32
    %101 = arith.cmpi slt, %3, %c0_i32_51 : i32
    %102 = arith.select %101, %99, %82 : vector<2x256xf32>
    %103 = arith.select %100, %97, %102 : vector<2x256xf32>
    %104 = arith.mulf %92, %95 : vector<2x256xf32>
    %cst_52 = arith.constant 1.000000e+00 : f32
    %105 = vector.broadcast %cst_52 : f32 to vector<2x256xf32>
    %106 = arith.subf %105, %92 : vector<2x256xf32>
    %107 = arith.mulf %106, %103 : vector<2x256xf32>
    %108 = arith.addf %104, %107 : vector<2x256xf32>
    %c0_53 = arith.constant 0 : index
    %109 = arith.index_cast %89 : i32 to index
    %c0_54 = arith.constant 0 : index
    %c0_55 = arith.constant 0 : index
    %110 = vector.load %arg6[%c0_53, %109, %c0_54, %c0_55] : memref<1x16x2x256xf32, #tpu.memory_space<vmem>>, vector<1x1x2x256xf32>
    %111 = vector.shape_cast %110 : vector<1x1x2x256xf32> to vector<2x256xf32>
    %112 = vector.shape_cast %108 : vector<2x256xf32> to vector<1x1x2x256xf32>
    tpu.vector_store %arg6[%c0_53, %109, %c0_54, %c0_55], %112 {strides = array<i32>} : memref<1x16x2x256xf32, #tpu.memory_space<vmem>>, vector<1x1x2x256xf32>,
    %c4_i32 = arith.constant 4 : i32
    %c0_i32_56 = arith.constant 0 : i32
    %113 = arith.cmpi sgt, %1, %c0_i32_56 : i32
    %c15_i32_57 = arith.constant 15 : i32
    %114 = arith.subi %c15_i32_57, %c4_i32 : i32
    %115 = arith.select %113, %114, %c4_i32 : i32
    %c0_58 = arith.constant 0 : index
    %116 = arith.index_cast %115 : i32 to index
    %c0_59 = arith.constant 0 : index
    %c0_60 = arith.constant 0 : index
    %117 = vector.load %arg3[%c0_58, %116, %c0_59, %c0_60] : memref<1x16x2x256xf32, #tpu.memory_space<vmem>>, vector<1x1x2x256xf32>
    %118 = vector.shape_cast %117 : vector<1x1x2x256xf32> to vector<2x256xf32>
    %c0_61 = arith.constant 0 : index
    %119 = arith.index_cast %115 : i32 to index
    %c0_62 = arith.constant 0 : index
    %c0_63 = arith.constant 0 : index
    %120 = vector.load %arg4[%c0_61, %119, %c0_62, %c0_63] : memref<1x16x2x256xf32, #tpu.memory_space<vmem>>, vector<1x1x2x256xf32>
    %121 = vector.shape_cast %120 : vector<1x1x2x256xf32> to vector<2x256xf32>
    %122 = vector.extract_strided_slice %108 {offsets = [0, 0], sizes = [2, 240], strides = [1, 1]} : vector<2x256xf32> to vector<2x240xf32>
    %123 = tpu.concatenate %8, %122 in 1 : vector<2x16xf32>, vector<2x240xf32> -> vector<2x256xf32>
    %124 = vector.extract_strided_slice %108 {offsets = [0, 16], sizes = [2, 240], strides = [1, 1]} : vector<2x256xf32> to vector<2x240xf32>
    %125 = tpu.concatenate %124, %8 in 1 : vector<2x240xf32>, vector<2x16xf32> -> vector<2x256xf32>
    %c0_i32_64 = arith.constant 0 : i32
    %126 = arith.cmpi sgt, %3, %c0_i32_64 : i32
    %c0_i32_65 = arith.constant 0 : i32
    %127 = arith.cmpi slt, %3, %c0_i32_65 : i32
    %128 = arith.select %127, %125, %108 : vector<2x256xf32>
    %129 = arith.select %126, %123, %128 : vector<2x256xf32>
    %130 = arith.mulf %118, %121 : vector<2x256xf32>
    %cst_66 = arith.constant 1.000000e+00 : f32
    %131 = vector.broadcast %cst_66 : f32 to vector<2x256xf32>
    %132 = arith.subf %131, %118 : vector<2x256xf32>
    %133 = arith.mulf %132, %129 : vector<2x256xf32>
    %134 = arith.addf %130, %133 : vector<2x256xf32>
    %c0_67 = arith.constant 0 : index
    %135 = arith.index_cast %115 : i32 to index
    %c0_68 = arith.constant 0 : index
    %c0_69 = arith.constant 0 : index
    %136 = vector.load %arg6[%c0_67, %135, %c0_68, %c0_69] : memref<1x16x2x256xf32, #tpu.memory_space<vmem>>, vector<1x1x2x256xf32>
    %137 = vector.shape_cast %136 : vector<1x1x2x256xf32> to vector<2x256xf32>
    %138 = vector.shape_cast %134 : vector<2x256xf32> to vector<1x1x2x256xf32>
    tpu.vector_store %arg6[%c0_67, %135, %c0_68, %c0_69], %138 {strides = array<i32>} : memref<1x16x2x256xf32, #tpu.memory_space<vmem>>, vector<1x1x2x256xf32>,
    %c5_i32 = arith.constant 5 : i32
    %c0_i32_70 = arith.constant 0 : i32
    %139 = arith.cmpi sgt, %1, %c0_i32_70 : i32
    %c15_i32_71 = arith.constant 15 : i32
    %140 = arith.subi %c15_i32_71, %c5_i32 : i32
    %141 = arith.select %139, %140, %c5_i32 : i32
    %c0_72 = arith.constant 0 : index
    %142 = arith.index_cast %141 : i32 to index
    %c0_73 = arith.constant 0 : index
    %c0_74 = arith.constant 0 : index
    %143 = vector.load %arg3[%c0_72, %142, %c0_73, %c0_74] : memref<1x16x2x256xf32, #tpu.memory_space<vmem>>, vector<1x1x2x256xf32>
    %144 = vector.shape_cast %143 : vector<1x1x2x256xf32> to vector<2x256xf32>
    %c0_75 = arith.constant 0 : index
    %145 = arith.index_cast %141 : i32 to index
    %c0_76 = arith.constant 0 : index
    %c0_77 = arith.constant 0 : index
    %146 = vector.load %arg4[%c0_75, %145, %c0_76, %c0_77] : memref<1x16x2x256xf32, #tpu.memory_space<vmem>>, vector<1x1x2x256xf32>
    %147 = vector.shape_cast %146 : vector<1x1x2x256xf32> to vector<2x256xf32>
    %148 = vector.extract_strided_slice %134 {offsets = [0, 0], sizes = [2, 240], strides = [1, 1]} : vector<2x256xf32> to vector<2x240xf32>
    %149 = tpu.concatenate %8, %148 in 1 : vector<2x16xf32>, vector<2x240xf32> -> vector<2x256xf32>
    %150 = vector.extract_strided_slice %134 {offsets = [0, 16], sizes = [2, 240], strides = [1, 1]} : vector<2x256xf32> to vector<2x240xf32>
    %151 = tpu.concatenate %150, %8 in 1 : vector<2x240xf32>, vector<2x16xf32> -> vector<2x256xf32>
    %c0_i32_78 = arith.constant 0 : i32
    %152 = arith.cmpi sgt, %3, %c0_i32_78 : i32
    %c0_i32_79 = arith.constant 0 : i32
    %153 = arith.cmpi slt, %3, %c0_i32_79 : i32
    %154 = arith.select %153, %151, %134 : vector<2x256xf32>
    %155 = arith.select %152, %149, %154 : vector<2x256xf32>
    %156 = arith.mulf %144, %147 : vector<2x256xf32>
    %cst_80 = arith.constant 1.000000e+00 : f32
    %157 = vector.broadcast %cst_80 : f32 to vector<2x256xf32>
    %158 = arith.subf %157, %144 : vector<2x256xf32>
    %159 = arith.mulf %158, %155 : vector<2x256xf32>
    %160 = arith.addf %156, %159 : vector<2x256xf32>
    %c0_81 = arith.constant 0 : index
    %161 = arith.index_cast %141 : i32 to index
    %c0_82 = arith.constant 0 : index
    %c0_83 = arith.constant 0 : index
    %162 = vector.load %arg6[%c0_81, %161, %c0_82, %c0_83] : memref<1x16x2x256xf32, #tpu.memory_space<vmem>>, vector<1x1x2x256xf32>
    %163 = vector.shape_cast %162 : vector<1x1x2x256xf32> to vector<2x256xf32>
    %164 = vector.shape_cast %160 : vector<2x256xf32> to vector<1x1x2x256xf32>
    tpu.vector_store %arg6[%c0_81, %161, %c0_82, %c0_83], %164 {strides = array<i32>} : memref<1x16x2x256xf32, #tpu.memory_space<vmem>>, vector<1x1x2x256xf32>,
    %c6_i32 = arith.constant 6 : i32
    %c0_i32_84 = arith.constant 0 : i32
    %165 = arith.cmpi sgt, %1, %c0_i32_84 : i32
    %c15_i32_85 = arith.constant 15 : i32
    %166 = arith.subi %c15_i32_85, %c6_i32 : i32
    %167 = arith.select %165, %166, %c6_i32 : i32
    %c0_86 = arith.constant 0 : index
    %168 = arith.index_cast %167 : i32 to index
    %c0_87 = arith.constant 0 : index
    %c0_88 = arith.constant 0 : index
    %169 = vector.load %arg3[%c0_86, %168, %c0_87, %c0_88] : memref<1x16x2x256xf32, #tpu.memory_space<vmem>>, vector<1x1x2x256xf32>
    %170 = vector.shape_cast %169 : vector<1x1x2x256xf32> to vector<2x256xf32>
    %c0_89 = arith.constant 0 : index
    %171 = arith.index_cast %167 : i32 to index
    %c0_90 = arith.constant 0 : index
    %c0_91 = arith.constant 0 : index
    %172 = vector.load %arg4[%c0_89, %171, %c0_90, %c0_91] : memref<1x16x2x256xf32, #tpu.memory_space<vmem>>, vector<1x1x2x256xf32>
    %173 = vector.shape_cast %172 : vector<1x1x2x256xf32> to vector<2x256xf32>
    %174 = vector.extract_strided_slice %160 {offsets = [0, 0], sizes = [2, 240], strides = [1, 1]} : vector<2x256xf32> to vector<2x240xf32>
    %175 = tpu.concatenate %8, %174 in 1 : vector<2x16xf32>, vector<2x240xf32> -> vector<2x256xf32>
    %176 = vector.extract_strided_slice %160 {offsets = [0, 16], sizes = [2, 240], strides = [1, 1]} : vector<2x256xf32> to vector<2x240xf32>
    %177 = tpu.concatenate %176, %8 in 1 : vector<2x240xf32>, vector<2x16xf32> -> vector<2x256xf32>
    %c0_i32_92 = arith.constant 0 : i32
    %178 = arith.cmpi sgt, %3, %c0_i32_92 : i32
    %c0_i32_93 = arith.constant 0 : i32
    %179 = arith.cmpi slt, %3, %c0_i32_93 : i32
    %180 = arith.select %179, %177, %160 : vector<2x256xf32>
    %181 = arith.select %178, %175, %180 : vector<2x256xf32>
    %182 = arith.mulf %170, %173 : vector<2x256xf32>
    %cst_94 = arith.constant 1.000000e+00 : f32
    %183 = vector.broadcast %cst_94 : f32 to vector<2x256xf32>
    %184 = arith.subf %183, %170 : vector<2x256xf32>
    %185 = arith.mulf %184, %181 : vector<2x256xf32>
    %186 = arith.addf %182, %185 : vector<2x256xf32>
    %c0_95 = arith.constant 0 : index
    %187 = arith.index_cast %167 : i32 to index
    %c0_96 = arith.constant 0 : index
    %c0_97 = arith.constant 0 : index
    %188 = vector.load %arg6[%c0_95, %187, %c0_96, %c0_97] : memref<1x16x2x256xf32, #tpu.memory_space<vmem>>, vector<1x1x2x256xf32>
    %189 = vector.shape_cast %188 : vector<1x1x2x256xf32> to vector<2x256xf32>
    %190 = vector.shape_cast %186 : vector<2x256xf32> to vector<1x1x2x256xf32>
    tpu.vector_store %arg6[%c0_95, %187, %c0_96, %c0_97], %190 {strides = array<i32>} : memref<1x16x2x256xf32, #tpu.memory_space<vmem>>, vector<1x1x2x256xf32>,
    %c7_i32 = arith.constant 7 : i32
    %c0_i32_98 = arith.constant 0 : i32
    %191 = arith.cmpi sgt, %1, %c0_i32_98 : i32
    %c15_i32_99 = arith.constant 15 : i32
    %192 = arith.subi %c15_i32_99, %c7_i32 : i32
    %193 = arith.select %191, %192, %c7_i32 : i32
    %c0_100 = arith.constant 0 : index
    %194 = arith.index_cast %193 : i32 to index
    %c0_101 = arith.constant 0 : index
    %c0_102 = arith.constant 0 : index
    %195 = vector.load %arg3[%c0_100, %194, %c0_101, %c0_102] : memref<1x16x2x256xf32, #tpu.memory_space<vmem>>, vector<1x1x2x256xf32>
    %196 = vector.shape_cast %195 : vector<1x1x2x256xf32> to vector<2x256xf32>
    %c0_103 = arith.constant 0 : index
    %197 = arith.index_cast %193 : i32 to index
    %c0_104 = arith.constant 0 : index
    %c0_105 = arith.constant 0 : index
    %198 = vector.load %arg4[%c0_103, %197, %c0_104, %c0_105] : memref<1x16x2x256xf32, #tpu.memory_space<vmem>>, vector<1x1x2x256xf32>
    %199 = vector.shape_cast %198 : vector<1x1x2x256xf32> to vector<2x256xf32>
    %200 = vector.extract_strided_slice %186 {offsets = [0, 0], sizes = [2, 240], strides = [1, 1]} : vector<2x256xf32> to vector<2x240xf32>
    %201 = tpu.concatenate %8, %200 in 1 : vector<2x16xf32>, vector<2x240xf32> -> vector<2x256xf32>
    %202 = vector.extract_strided_slice %186 {offsets = [0, 16], sizes = [2, 240], strides = [1, 1]} : vector<2x256xf32> to vector<2x240xf32>
    %203 = tpu.concatenate %202, %8 in 1 : vector<2x240xf32>, vector<2x16xf32> -> vector<2x256xf32>
    %c0_i32_106 = arith.constant 0 : i32
    %204 = arith.cmpi sgt, %3, %c0_i32_106 : i32
    %c0_i32_107 = arith.constant 0 : i32
    %205 = arith.cmpi slt, %3, %c0_i32_107 : i32
    %206 = arith.select %205, %203, %186 : vector<2x256xf32>
    %207 = arith.select %204, %201, %206 : vector<2x256xf32>
    %208 = arith.mulf %196, %199 : vector<2x256xf32>
    %cst_108 = arith.constant 1.000000e+00 : f32
    %209 = vector.broadcast %cst_108 : f32 to vector<2x256xf32>
    %210 = arith.subf %209, %196 : vector<2x256xf32>
    %211 = arith.mulf %210, %207 : vector<2x256xf32>
    %212 = arith.addf %208, %211 : vector<2x256xf32>
    %c0_109 = arith.constant 0 : index
    %213 = arith.index_cast %193 : i32 to index
    %c0_110 = arith.constant 0 : index
    %c0_111 = arith.constant 0 : index
    %214 = vector.load %arg6[%c0_109, %213, %c0_110, %c0_111] : memref<1x16x2x256xf32, #tpu.memory_space<vmem>>, vector<1x1x2x256xf32>
    %215 = vector.shape_cast %214 : vector<1x1x2x256xf32> to vector<2x256xf32>
    %216 = vector.shape_cast %212 : vector<2x256xf32> to vector<1x1x2x256xf32>
    tpu.vector_store %arg6[%c0_109, %213, %c0_110, %c0_111], %216 {strides = array<i32>} : memref<1x16x2x256xf32, #tpu.memory_space<vmem>>, vector<1x1x2x256xf32>,
    %c8_i32 = arith.constant 8 : i32
    %c0_i32_112 = arith.constant 0 : i32
    %217 = arith.cmpi sgt, %1, %c0_i32_112 : i32
    %c15_i32_113 = arith.constant 15 : i32
    %218 = arith.subi %c15_i32_113, %c8_i32 : i32
    %219 = arith.select %217, %218, %c8_i32 : i32
    %c0_114 = arith.constant 0 : index
    %220 = arith.index_cast %219 : i32 to index
    %c0_115 = arith.constant 0 : index
    %c0_116 = arith.constant 0 : index
    %221 = vector.load %arg3[%c0_114, %220, %c0_115, %c0_116] : memref<1x16x2x256xf32, #tpu.memory_space<vmem>>, vector<1x1x2x256xf32>
    %222 = vector.shape_cast %221 : vector<1x1x2x256xf32> to vector<2x256xf32>
    %c0_117 = arith.constant 0 : index
    %223 = arith.index_cast %219 : i32 to index
    %c0_118 = arith.constant 0 : index
    %c0_119 = arith.constant 0 : index
    %224 = vector.load %arg4[%c0_117, %223, %c0_118, %c0_119] : memref<1x16x2x256xf32, #tpu.memory_space<vmem>>, vector<1x1x2x256xf32>
    %225 = vector.shape_cast %224 : vector<1x1x2x256xf32> to vector<2x256xf32>
    %226 = vector.extract_strided_slice %212 {offsets = [0, 0], sizes = [2, 240], strides = [1, 1]} : vector<2x256xf32> to vector<2x240xf32>
    %227 = tpu.concatenate %8, %226 in 1 : vector<2x16xf32>, vector<2x240xf32> -> vector<2x256xf32>
    %228 = vector.extract_strided_slice %212 {offsets = [0, 16], sizes = [2, 240], strides = [1, 1]} : vector<2x256xf32> to vector<2x240xf32>
    %229 = tpu.concatenate %228, %8 in 1 : vector<2x240xf32>, vector<2x16xf32> -> vector<2x256xf32>
    %c0_i32_120 = arith.constant 0 : i32
    %230 = arith.cmpi sgt, %3, %c0_i32_120 : i32
    %c0_i32_121 = arith.constant 0 : i32
    %231 = arith.cmpi slt, %3, %c0_i32_121 : i32
    %232 = arith.select %231, %229, %212 : vector<2x256xf32>
    %233 = arith.select %230, %227, %232 : vector<2x256xf32>
    %234 = arith.mulf %222, %225 : vector<2x256xf32>
    %cst_122 = arith.constant 1.000000e+00 : f32
    %235 = vector.broadcast %cst_122 : f32 to vector<2x256xf32>
    %236 = arith.subf %235, %222 : vector<2x256xf32>
    %237 = arith.mulf %236, %233 : vector<2x256xf32>
    %238 = arith.addf %234, %237 : vector<2x256xf32>
    %c0_123 = arith.constant 0 : index
    %239 = arith.index_cast %219 : i32 to index
    %c0_124 = arith.constant 0 : index
    %c0_125 = arith.constant 0 : index
    %240 = vector.load %arg6[%c0_123, %239, %c0_124, %c0_125] : memref<1x16x2x256xf32, #tpu.memory_space<vmem>>, vector<1x1x2x256xf32>
    %241 = vector.shape_cast %240 : vector<1x1x2x256xf32> to vector<2x256xf32>
    %242 = vector.shape_cast %238 : vector<2x256xf32> to vector<1x1x2x256xf32>
    tpu.vector_store %arg6[%c0_123, %239, %c0_124, %c0_125], %242 {strides = array<i32>} : memref<1x16x2x256xf32, #tpu.memory_space<vmem>>, vector<1x1x2x256xf32>,
    %c9_i32 = arith.constant 9 : i32
    %c0_i32_126 = arith.constant 0 : i32
    %243 = arith.cmpi sgt, %1, %c0_i32_126 : i32
    %c15_i32_127 = arith.constant 15 : i32
    %244 = arith.subi %c15_i32_127, %c9_i32 : i32
    %245 = arith.select %243, %244, %c9_i32 : i32
    %c0_128 = arith.constant 0 : index
    %246 = arith.index_cast %245 : i32 to index
    %c0_129 = arith.constant 0 : index
    %c0_130 = arith.constant 0 : index
    %247 = vector.load %arg3[%c0_128, %246, %c0_129, %c0_130] : memref<1x16x2x256xf32, #tpu.memory_space<vmem>>, vector<1x1x2x256xf32>
    %248 = vector.shape_cast %247 : vector<1x1x2x256xf32> to vector<2x256xf32>
    %c0_131 = arith.constant 0 : index
    %249 = arith.index_cast %245 : i32 to index
    %c0_132 = arith.constant 0 : index
    %c0_133 = arith.constant 0 : index
    %250 = vector.load %arg4[%c0_131, %249, %c0_132, %c0_133] : memref<1x16x2x256xf32, #tpu.memory_space<vmem>>, vector<1x1x2x256xf32>
    %251 = vector.shape_cast %250 : vector<1x1x2x256xf32> to vector<2x256xf32>
    %252 = vector.extract_strided_slice %238 {offsets = [0, 0], sizes = [2, 240], strides = [1, 1]} : vector<2x256xf32> to vector<2x240xf32>
    %253 = tpu.concatenate %8, %252 in 1 : vector<2x16xf32>, vector<2x240xf32> -> vector<2x256xf32>
    %254 = vector.extract_strided_slice %238 {offsets = [0, 16], sizes = [2, 240], strides = [1, 1]} : vector<2x256xf32> to vector<2x240xf32>
    %255 = tpu.concatenate %254, %8 in 1 : vector<2x240xf32>, vector<2x16xf32> -> vector<2x256xf32>
    %c0_i32_134 = arith.constant 0 : i32
    %256 = arith.cmpi sgt, %3, %c0_i32_134 : i32
    %c0_i32_135 = arith.constant 0 : i32
    %257 = arith.cmpi slt, %3, %c0_i32_135 : i32
    %258 = arith.select %257, %255, %238 : vector<2x256xf32>
    %259 = arith.select %256, %253, %258 : vector<2x256xf32>
    %260 = arith.mulf %248, %251 : vector<2x256xf32>
    %cst_136 = arith.constant 1.000000e+00 : f32
    %261 = vector.broadcast %cst_136 : f32 to vector<2x256xf32>
    %262 = arith.subf %261, %248 : vector<2x256xf32>
    %263 = arith.mulf %262, %259 : vector<2x256xf32>
    %264 = arith.addf %260, %263 : vector<2x256xf32>
    %c0_137 = arith.constant 0 : index
    %265 = arith.index_cast %245 : i32 to index
    %c0_138 = arith.constant 0 : index
    %c0_139 = arith.constant 0 : index
    %266 = vector.load %arg6[%c0_137, %265, %c0_138, %c0_139] : memref<1x16x2x256xf32, #tpu.memory_space<vmem>>, vector<1x1x2x256xf32>
    %267 = vector.shape_cast %266 : vector<1x1x2x256xf32> to vector<2x256xf32>
    %268 = vector.shape_cast %264 : vector<2x256xf32> to vector<1x1x2x256xf32>
    tpu.vector_store %arg6[%c0_137, %265, %c0_138, %c0_139], %268 {strides = array<i32>} : memref<1x16x2x256xf32, #tpu.memory_space<vmem>>, vector<1x1x2x256xf32>,
    %c10_i32 = arith.constant 10 : i32
    %c0_i32_140 = arith.constant 0 : i32
    %269 = arith.cmpi sgt, %1, %c0_i32_140 : i32
    %c15_i32_141 = arith.constant 15 : i32
    %270 = arith.subi %c15_i32_141, %c10_i32 : i32
    %271 = arith.select %269, %270, %c10_i32 : i32
    %c0_142 = arith.constant 0 : index
    %272 = arith.index_cast %271 : i32 to index
    %c0_143 = arith.constant 0 : index
    %c0_144 = arith.constant 0 : index
    %273 = vector.load %arg3[%c0_142, %272, %c0_143, %c0_144] : memref<1x16x2x256xf32, #tpu.memory_space<vmem>>, vector<1x1x2x256xf32>
    %274 = vector.shape_cast %273 : vector<1x1x2x256xf32> to vector<2x256xf32>
    %c0_145 = arith.constant 0 : index
    %275 = arith.index_cast %271 : i32 to index
    %c0_146 = arith.constant 0 : index
    %c0_147 = arith.constant 0 : index
    %276 = vector.load %arg4[%c0_145, %275, %c0_146, %c0_147] : memref<1x16x2x256xf32, #tpu.memory_space<vmem>>, vector<1x1x2x256xf32>
    %277 = vector.shape_cast %276 : vector<1x1x2x256xf32> to vector<2x256xf32>
    %278 = vector.extract_strided_slice %264 {offsets = [0, 0], sizes = [2, 240], strides = [1, 1]} : vector<2x256xf32> to vector<2x240xf32>
    %279 = tpu.concatenate %8, %278 in 1 : vector<2x16xf32>, vector<2x240xf32> -> vector<2x256xf32>
    %280 = vector.extract_strided_slice %264 {offsets = [0, 16], sizes = [2, 240], strides = [1, 1]} : vector<2x256xf32> to vector<2x240xf32>
    %281 = tpu.concatenate %280, %8 in 1 : vector<2x240xf32>, vector<2x16xf32> -> vector<2x256xf32>
    %c0_i32_148 = arith.constant 0 : i32
    %282 = arith.cmpi sgt, %3, %c0_i32_148 : i32
    %c0_i32_149 = arith.constant 0 : i32
    %283 = arith.cmpi slt, %3, %c0_i32_149 : i32
    %284 = arith.select %283, %281, %264 : vector<2x256xf32>
    %285 = arith.select %282, %279, %284 : vector<2x256xf32>
    %286 = arith.mulf %274, %277 : vector<2x256xf32>
    %cst_150 = arith.constant 1.000000e+00 : f32
    %287 = vector.broadcast %cst_150 : f32 to vector<2x256xf32>
    %288 = arith.subf %287, %274 : vector<2x256xf32>
    %289 = arith.mulf %288, %285 : vector<2x256xf32>
    %290 = arith.addf %286, %289 : vector<2x256xf32>
    %c0_151 = arith.constant 0 : index
    %291 = arith.index_cast %271 : i32 to index
    %c0_152 = arith.constant 0 : index
    %c0_153 = arith.constant 0 : index
    %292 = vector.load %arg6[%c0_151, %291, %c0_152, %c0_153] : memref<1x16x2x256xf32, #tpu.memory_space<vmem>>, vector<1x1x2x256xf32>
    %293 = vector.shape_cast %292 : vector<1x1x2x256xf32> to vector<2x256xf32>
    %294 = vector.shape_cast %290 : vector<2x256xf32> to vector<1x1x2x256xf32>
    tpu.vector_store %arg6[%c0_151, %291, %c0_152, %c0_153], %294 {strides = array<i32>} : memref<1x16x2x256xf32, #tpu.memory_space<vmem>>, vector<1x1x2x256xf32>,
    %c11_i32 = arith.constant 11 : i32
    %c0_i32_154 = arith.constant 0 : i32
    %295 = arith.cmpi sgt, %1, %c0_i32_154 : i32
    %c15_i32_155 = arith.constant 15 : i32
    %296 = arith.subi %c15_i32_155, %c11_i32 : i32
    %297 = arith.select %295, %296, %c11_i32 : i32
    %c0_156 = arith.constant 0 : index
    %298 = arith.index_cast %297 : i32 to index
    %c0_157 = arith.constant 0 : index
    %c0_158 = arith.constant 0 : index
    %299 = vector.load %arg3[%c0_156, %298, %c0_157, %c0_158] : memref<1x16x2x256xf32, #tpu.memory_space<vmem>>, vector<1x1x2x256xf32>
    %300 = vector.shape_cast %299 : vector<1x1x2x256xf32> to vector<2x256xf32>
    %c0_159 = arith.constant 0 : index
    %301 = arith.index_cast %297 : i32 to index
    %c0_160 = arith.constant 0 : index
    %c0_161 = arith.constant 0 : index
    %302 = vector.load %arg4[%c0_159, %301, %c0_160, %c0_161] : memref<1x16x2x256xf32, #tpu.memory_space<vmem>>, vector<1x1x2x256xf32>
    %303 = vector.shape_cast %302 : vector<1x1x2x256xf32> to vector<2x256xf32>
    %304 = vector.extract_strided_slice %290 {offsets = [0, 0], sizes = [2, 240], strides = [1, 1]} : vector<2x256xf32> to vector<2x240xf32>
    %305 = tpu.concatenate %8, %304 in 1 : vector<2x16xf32>, vector<2x240xf32> -> vector<2x256xf32>
    %306 = vector.extract_strided_slice %290 {offsets = [0, 16], sizes = [2, 240], strides = [1, 1]} : vector<2x256xf32> to vector<2x240xf32>
    %307 = tpu.concatenate %306, %8 in 1 : vector<2x240xf32>, vector<2x16xf32> -> vector<2x256xf32>
    %c0_i32_162 = arith.constant 0 : i32
    %308 = arith.cmpi sgt, %3, %c0_i32_162 : i32
    %c0_i32_163 = arith.constant 0 : i32
    %309 = arith.cmpi slt, %3, %c0_i32_163 : i32
    %310 = arith.select %309, %307, %290 : vector<2x256xf32>
    %311 = arith.select %308, %305, %310 : vector<2x256xf32>
    %312 = arith.mulf %300, %303 : vector<2x256xf32>
    %cst_164 = arith.constant 1.000000e+00 : f32
    %313 = vector.broadcast %cst_164 : f32 to vector<2x256xf32>
    %314 = arith.subf %313, %300 : vector<2x256xf32>
    %315 = arith.mulf %314, %311 : vector<2x256xf32>
    %316 = arith.addf %312, %315 : vector<2x256xf32>
    %c0_165 = arith.constant 0 : index
    %317 = arith.index_cast %297 : i32 to index
    %c0_166 = arith.constant 0 : index
    %c0_167 = arith.constant 0 : index
    %318 = vector.load %arg6[%c0_165, %317, %c0_166, %c0_167] : memref<1x16x2x256xf32, #tpu.memory_space<vmem>>, vector<1x1x2x256xf32>
    %319 = vector.shape_cast %318 : vector<1x1x2x256xf32> to vector<2x256xf32>
    %320 = vector.shape_cast %316 : vector<2x256xf32> to vector<1x1x2x256xf32>
    tpu.vector_store %arg6[%c0_165, %317, %c0_166, %c0_167], %320 {strides = array<i32>} : memref<1x16x2x256xf32, #tpu.memory_space<vmem>>, vector<1x1x2x256xf32>,
    %c12_i32 = arith.constant 12 : i32
    %c0_i32_168 = arith.constant 0 : i32
    %321 = arith.cmpi sgt, %1, %c0_i32_168 : i32
    %c15_i32_169 = arith.constant 15 : i32
    %322 = arith.subi %c15_i32_169, %c12_i32 : i32
    %323 = arith.select %321, %322, %c12_i32 : i32
    %c0_170 = arith.constant 0 : index
    %324 = arith.index_cast %323 : i32 to index
    %c0_171 = arith.constant 0 : index
    %c0_172 = arith.constant 0 : index
    %325 = vector.load %arg3[%c0_170, %324, %c0_171, %c0_172] : memref<1x16x2x256xf32, #tpu.memory_space<vmem>>, vector<1x1x2x256xf32>
    %326 = vector.shape_cast %325 : vector<1x1x2x256xf32> to vector<2x256xf32>
    %c0_173 = arith.constant 0 : index
    %327 = arith.index_cast %323 : i32 to index
    %c0_174 = arith.constant 0 : index
    %c0_175 = arith.constant 0 : index
    %328 = vector.load %arg4[%c0_173, %327, %c0_174, %c0_175] : memref<1x16x2x256xf32, #tpu.memory_space<vmem>>, vector<1x1x2x256xf32>
    %329 = vector.shape_cast %328 : vector<1x1x2x256xf32> to vector<2x256xf32>
    %330 = vector.extract_strided_slice %316 {offsets = [0, 0], sizes = [2, 240], strides = [1, 1]} : vector<2x256xf32> to vector<2x240xf32>
    %331 = tpu.concatenate %8, %330 in 1 : vector<2x16xf32>, vector<2x240xf32> -> vector<2x256xf32>
    %332 = vector.extract_strided_slice %316 {offsets = [0, 16], sizes = [2, 240], strides = [1, 1]} : vector<2x256xf32> to vector<2x240xf32>
    %333 = tpu.concatenate %332, %8 in 1 : vector<2x240xf32>, vector<2x16xf32> -> vector<2x256xf32>
    %c0_i32_176 = arith.constant 0 : i32
    %334 = arith.cmpi sgt, %3, %c0_i32_176 : i32
    %c0_i32_177 = arith.constant 0 : i32
    %335 = arith.cmpi slt, %3, %c0_i32_177 : i32
    %336 = arith.select %335, %333, %316 : vector<2x256xf32>
    %337 = arith.select %334, %331, %336 : vector<2x256xf32>
    %338 = arith.mulf %326, %329 : vector<2x256xf32>
    %cst_178 = arith.constant 1.000000e+00 : f32
    %339 = vector.broadcast %cst_178 : f32 to vector<2x256xf32>
    %340 = arith.subf %339, %326 : vector<2x256xf32>
    %341 = arith.mulf %340, %337 : vector<2x256xf32>
    %342 = arith.addf %338, %341 : vector<2x256xf32>
    %c0_179 = arith.constant 0 : index
    %343 = arith.index_cast %323 : i32 to index
    %c0_180 = arith.constant 0 : index
    %c0_181 = arith.constant 0 : index
    %344 = vector.load %arg6[%c0_179, %343, %c0_180, %c0_181] : memref<1x16x2x256xf32, #tpu.memory_space<vmem>>, vector<1x1x2x256xf32>
    %345 = vector.shape_cast %344 : vector<1x1x2x256xf32> to vector<2x256xf32>
    %346 = vector.shape_cast %342 : vector<2x256xf32> to vector<1x1x2x256xf32>
    tpu.vector_store %arg6[%c0_179, %343, %c0_180, %c0_181], %346 {strides = array<i32>} : memref<1x16x2x256xf32, #tpu.memory_space<vmem>>, vector<1x1x2x256xf32>,
    %c13_i32 = arith.constant 13 : i32
    %c0_i32_182 = arith.constant 0 : i32
    %347 = arith.cmpi sgt, %1, %c0_i32_182 : i32
    %c15_i32_183 = arith.constant 15 : i32
    %348 = arith.subi %c15_i32_183, %c13_i32 : i32
    %349 = arith.select %347, %348, %c13_i32 : i32
    %c0_184 = arith.constant 0 : index
    %350 = arith.index_cast %349 : i32 to index
    %c0_185 = arith.constant 0 : index
    %c0_186 = arith.constant 0 : index
    %351 = vector.load %arg3[%c0_184, %350, %c0_185, %c0_186] : memref<1x16x2x256xf32, #tpu.memory_space<vmem>>, vector<1x1x2x256xf32>
    %352 = vector.shape_cast %351 : vector<1x1x2x256xf32> to vector<2x256xf32>
    %c0_187 = arith.constant 0 : index
    %353 = arith.index_cast %349 : i32 to index
    %c0_188 = arith.constant 0 : index
    %c0_189 = arith.constant 0 : index
    %354 = vector.load %arg4[%c0_187, %353, %c0_188, %c0_189] : memref<1x16x2x256xf32, #tpu.memory_space<vmem>>, vector<1x1x2x256xf32>
    %355 = vector.shape_cast %354 : vector<1x1x2x256xf32> to vector<2x256xf32>
    %356 = vector.extract_strided_slice %342 {offsets = [0, 0], sizes = [2, 240], strides = [1, 1]} : vector<2x256xf32> to vector<2x240xf32>
    %357 = tpu.concatenate %8, %356 in 1 : vector<2x16xf32>, vector<2x240xf32> -> vector<2x256xf32>
    %358 = vector.extract_strided_slice %342 {offsets = [0, 16], sizes = [2, 240], strides = [1, 1]} : vector<2x256xf32> to vector<2x240xf32>
    %359 = tpu.concatenate %358, %8 in 1 : vector<2x240xf32>, vector<2x16xf32> -> vector<2x256xf32>
    %c0_i32_190 = arith.constant 0 : i32
    %360 = arith.cmpi sgt, %3, %c0_i32_190 : i32
    %c0_i32_191 = arith.constant 0 : i32
    %361 = arith.cmpi slt, %3, %c0_i32_191 : i32
    %362 = arith.select %361, %359, %342 : vector<2x256xf32>
    %363 = arith.select %360, %357, %362 : vector<2x256xf32>
    %364 = arith.mulf %352, %355 : vector<2x256xf32>
    %cst_192 = arith.constant 1.000000e+00 : f32
    %365 = vector.broadcast %cst_192 : f32 to vector<2x256xf32>
    %366 = arith.subf %365, %352 : vector<2x256xf32>
    %367 = arith.mulf %366, %363 : vector<2x256xf32>
    %368 = arith.addf %364, %367 : vector<2x256xf32>
    %c0_193 = arith.constant 0 : index
    %369 = arith.index_cast %349 : i32 to index
    %c0_194 = arith.constant 0 : index
    %c0_195 = arith.constant 0 : index
    %370 = vector.load %arg6[%c0_193, %369, %c0_194, %c0_195] : memref<1x16x2x256xf32, #tpu.memory_space<vmem>>, vector<1x1x2x256xf32>
    %371 = vector.shape_cast %370 : vector<1x1x2x256xf32> to vector<2x256xf32>
    %372 = vector.shape_cast %368 : vector<2x256xf32> to vector<1x1x2x256xf32>
    tpu.vector_store %arg6[%c0_193, %369, %c0_194, %c0_195], %372 {strides = array<i32>} : memref<1x16x2x256xf32, #tpu.memory_space<vmem>>, vector<1x1x2x256xf32>,
    %c14_i32 = arith.constant 14 : i32
    %c0_i32_196 = arith.constant 0 : i32
    %373 = arith.cmpi sgt, %1, %c0_i32_196 : i32
    %c15_i32_197 = arith.constant 15 : i32
    %374 = arith.subi %c15_i32_197, %c14_i32 : i32
    %375 = arith.select %373, %374, %c14_i32 : i32
    %c0_198 = arith.constant 0 : index
    %376 = arith.index_cast %375 : i32 to index
    %c0_199 = arith.constant 0 : index
    %c0_200 = arith.constant 0 : index
    %377 = vector.load %arg3[%c0_198, %376, %c0_199, %c0_200] : memref<1x16x2x256xf32, #tpu.memory_space<vmem>>, vector<1x1x2x256xf32>
    %378 = vector.shape_cast %377 : vector<1x1x2x256xf32> to vector<2x256xf32>
    %c0_201 = arith.constant 0 : index
    %379 = arith.index_cast %375 : i32 to index
    %c0_202 = arith.constant 0 : index
    %c0_203 = arith.constant 0 : index
    %380 = vector.load %arg4[%c0_201, %379, %c0_202, %c0_203] : memref<1x16x2x256xf32, #tpu.memory_space<vmem>>, vector<1x1x2x256xf32>
    %381 = vector.shape_cast %380 : vector<1x1x2x256xf32> to vector<2x256xf32>
    %382 = vector.extract_strided_slice %368 {offsets = [0, 0], sizes = [2, 240], strides = [1, 1]} : vector<2x256xf32> to vector<2x240xf32>
    %383 = tpu.concatenate %8, %382 in 1 : vector<2x16xf32>, vector<2x240xf32> -> vector<2x256xf32>
    %384 = vector.extract_strided_slice %368 {offsets = [0, 16], sizes = [2, 240], strides = [1, 1]} : vector<2x256xf32> to vector<2x240xf32>
    %385 = tpu.concatenate %384, %8 in 1 : vector<2x240xf32>, vector<2x16xf32> -> vector<2x256xf32>
    %c0_i32_204 = arith.constant 0 : i32
    %386 = arith.cmpi sgt, %3, %c0_i32_204 : i32
    %c0_i32_205 = arith.constant 0 : i32
    %387 = arith.cmpi slt, %3, %c0_i32_205 : i32
    %388 = arith.select %387, %385, %368 : vector<2x256xf32>
    %389 = arith.select %386, %383, %388 : vector<2x256xf32>
    %390 = arith.mulf %378, %381 : vector<2x256xf32>
    %cst_206 = arith.constant 1.000000e+00 : f32
    %391 = vector.broadcast %cst_206 : f32 to vector<2x256xf32>
    %392 = arith.subf %391, %378 : vector<2x256xf32>
    %393 = arith.mulf %392, %389 : vector<2x256xf32>
    %394 = arith.addf %390, %393 : vector<2x256xf32>
    %c0_207 = arith.constant 0 : index
    %395 = arith.index_cast %375 : i32 to index
    %c0_208 = arith.constant 0 : index
    %c0_209 = arith.constant 0 : index
    %396 = vector.load %arg6[%c0_207, %395, %c0_208, %c0_209] : memref<1x16x2x256xf32, #tpu.memory_space<vmem>>, vector<1x1x2x256xf32>
    %397 = vector.shape_cast %396 : vector<1x1x2x256xf32> to vector<2x256xf32>
    %398 = vector.shape_cast %394 : vector<2x256xf32> to vector<1x1x2x256xf32>
    tpu.vector_store %arg6[%c0_207, %395, %c0_208, %c0_209], %398 {strides = array<i32>} : memref<1x16x2x256xf32, #tpu.memory_space<vmem>>, vector<1x1x2x256xf32>,
    %c15_i32_210 = arith.constant 15 : i32
    %c0_i32_211 = arith.constant 0 : i32
    %399 = arith.cmpi sgt, %1, %c0_i32_211 : i32
    %c15_i32_212 = arith.constant 15 : i32
    %400 = arith.subi %c15_i32_212, %c15_i32_210 : i32
    %401 = arith.select %399, %400, %c15_i32_210 : i32
    %c0_213 = arith.constant 0 : index
    %402 = arith.index_cast %401 : i32 to index
    %c0_214 = arith.constant 0 : index
    %c0_215 = arith.constant 0 : index
    %403 = vector.load %arg3[%c0_213, %402, %c0_214, %c0_215] : memref<1x16x2x256xf32, #tpu.memory_space<vmem>>, vector<1x1x2x256xf32>
    %404 = vector.shape_cast %403 : vector<1x1x2x256xf32> to vector<2x256xf32>
    %c0_216 = arith.constant 0 : index
    %405 = arith.index_cast %401 : i32 to index
    %c0_217 = arith.constant 0 : index
    %c0_218 = arith.constant 0 : index
    %406 = vector.load %arg4[%c0_216, %405, %c0_217, %c0_218] : memref<1x16x2x256xf32, #tpu.memory_space<vmem>>, vector<1x1x2x256xf32>
    %407 = vector.shape_cast %406 : vector<1x1x2x256xf32> to vector<2x256xf32>
    %408 = vector.extract_strided_slice %394 {offsets = [0, 0], sizes = [2, 240], strides = [1, 1]} : vector<2x256xf32> to vector<2x240xf32>
    %409 = tpu.concatenate %8, %408 in 1 : vector<2x16xf32>, vector<2x240xf32> -> vector<2x256xf32>
    %410 = vector.extract_strided_slice %394 {offsets = [0, 16], sizes = [2, 240], strides = [1, 1]} : vector<2x256xf32> to vector<2x240xf32>
    %411 = tpu.concatenate %410, %8 in 1 : vector<2x240xf32>, vector<2x16xf32> -> vector<2x256xf32>
    %c0_i32_219 = arith.constant 0 : i32
    %412 = arith.cmpi sgt, %3, %c0_i32_219 : i32
    %c0_i32_220 = arith.constant 0 : i32
    %413 = arith.cmpi slt, %3, %c0_i32_220 : i32
    %414 = arith.select %413, %411, %394 : vector<2x256xf32>
    %415 = arith.select %412, %409, %414 : vector<2x256xf32>
    %416 = arith.mulf %404, %407 : vector<2x256xf32>
    %cst_221 = arith.constant 1.000000e+00 : f32
    %417 = vector.broadcast %cst_221 : f32 to vector<2x256xf32>
    %418 = arith.subf %417, %404 : vector<2x256xf32>
    %419 = arith.mulf %418, %415 : vector<2x256xf32>
    %420 = arith.addf %416, %419 : vector<2x256xf32>
    %c0_222 = arith.constant 0 : index
    %421 = arith.index_cast %401 : i32 to index
    %c0_223 = arith.constant 0 : index
    %c0_224 = arith.constant 0 : index
    %422 = vector.load %arg6[%c0_222, %421, %c0_223, %c0_224] : memref<1x16x2x256xf32, #tpu.memory_space<vmem>>, vector<1x1x2x256xf32>
    %423 = vector.shape_cast %422 : vector<1x1x2x256xf32> to vector<2x256xf32>
    %424 = vector.shape_cast %420 : vector<2x256xf32> to vector<1x1x2x256xf32>
    tpu.vector_store %arg6[%c0_222, %421, %c0_223, %c0_224], %424 {strides = array<i32>} : memref<1x16x2x256xf32, #tpu.memory_space<vmem>>, vector<1x1x2x256xf32>,
    %c16_i32 = arith.constant 16 : i32
    return
  }
  func.func @transform_0(%arg0: i32, %arg1: memref<6xi32, #tpu.memory_space<smem>>, %arg2: memref<6xi32, #tpu.memory_space<smem>>) -> (i32, i32, i32, i32) {
    %c0_i32 = arith.constant 0 : i32
    %c0_i32_0 = arith.constant 0 : i32
    %c0_i32_1 = arith.constant 0 : i32
    %c0_i32_2 = arith.constant 0 : i32
    return %arg0, %c0_i32, %c0_i32_0, %c0_i32_1 : i32, i32, i32, i32
  }
  func.func @transform_1(%arg0: i32, %arg1: memref<6xi32, #tpu.memory_space<smem>>, %arg2: memref<6xi32, #tpu.memory_space<smem>>) -> (i32, i32, i32, i32) {
    %c0_i32 = arith.constant 0 : i32
    %c0_i32_0 = arith.constant 0 : i32
    %c0_i32_1 = arith.constant 0 : i32
    %c0_i32_2 = arith.constant 0 : i32
    return %arg0, %c0_i32, %c0_i32_0, %c0_i32_1 : i32, i32, i32, i32
  }
  func.func @transform_2(%arg0: i32, %arg1: memref<6xi32, #tpu.memory_space<smem>>, %arg2: memref<6xi32, #tpu.memory_space<smem>>) -> (i32, i32, i32) {
    %c0_i32 = arith.constant 0 : i32
    %c0_i32_0 = arith.constant 0 : i32
    %c0_i32_1 = arith.constant 0 : i32
    return %arg0, %c0_i32, %c0_i32_0 : i32, i32, i32
  }
  func.func @transform_3(%arg0: i32, %arg1: memref<6xi32, #tpu.memory_space<smem>>, %arg2: memref<6xi32, #tpu.memory_space<smem>>) -> (i32, i32, i32, i32) {
    %c0_i32 = arith.constant 0 : i32
    %c0_i32_0 = arith.constant 0 : i32
    %c0_i32_1 = arith.constant 0 : i32
    %c0_i32_2 = arith.constant 0 : i32
    return %arg0, %c0_i32, %c0_i32_0, %c0_i32_1 : i32, i32, i32, i32
  }
}

module attributes {stable_mosaic.version = 11 : i64} {
  func.func @kernel(%arg0: i32, %arg1: memref<512x128xf32, #tpu.memory_space<vmem>>, %arg2: memref<512x128xf32, #tpu.memory_space<vmem>>, %arg3: memref<256x32xf32, #tpu.memory_space<vmem>>, %arg4: memref<32x128xf32, #tpu.memory_space<vmem>>, %arg5: memref<512x16xf32, #tpu.memory_space<vmem>>) attributes {dimension_semantics = [#tpu.dimension_semantics<parallel>], iteration_bounds = array<i64: 1>, scalar_prefetch = 0 : i64, scratch_operands = 0 : i64, tpu.core_type = #tpu.core_type<tc>, window_params = [{transform_indices = @transform_0, window_bounds = array<i64: 512, 128>}, {transform_indices = @transform_1, window_bounds = array<i64: 512, 128>}, {pipeline_mode = #tpu.pipeline_mode<synchronous>, transform_indices = @transform_2, window_bounds = array<i64: 256, 32>}, {pipeline_mode = #tpu.pipeline_mode<synchronous>, transform_indices = @transform_3, window_bounds = array<i64: 32, 128>}, {transform_indices = @transform_4, window_bounds = array<i64: 512, 16>}]} {
    %c0 = arith.constant 0 : index
    %c0_0 = arith.constant 0 : index
    %0 = vector.load %arg1[%c0, %c0_0] : memref<512x128xf32, #tpu.memory_space<vmem>>, vector<512x128xf32>
    %c0_1 = arith.constant 0 : index
    %c0_2 = arith.constant 0 : index
    %1 = vector.load %arg2[%c0_1, %c0_2] : memref<512x128xf32, #tpu.memory_space<vmem>>, vector<512x128xf32>
    %2 = tpu.concatenate %0, %1 in 1 : vector<512x128xf32>, vector<512x128xf32> -> vector<512x256xf32>
    %c0_3 = arith.constant 0 : index
    %c0_4 = arith.constant 0 : index
    %3 = vector.load %arg3[%c0_3, %c0_4] : memref<256x32xf32, #tpu.memory_space<vmem>>, vector<256x32xf32>
    %cst = arith.constant dense<0.000000e+00> : vector<512x32xf32>
    %4 = tpu.matmul %2, %3, %cst {dimension_numbers = #tpu.dot_dimension_numbers<[1], [0], [0], [1], [0, 0, 1, 1], [], []>} : vector<512x256xf32>, vector<256x32xf32>, vector<512x32xf32> -> vector<512x32xf32>
    %cst_5 = arith.constant 0.000000e+00 : f32
    %5 = vector.broadcast %cst_5 : f32 to vector<512x32xf32>
    %6 = arith.maximumf %4, %5 : vector<512x32xf32>
    %c0_6 = arith.constant 0 : index
    %c0_7 = arith.constant 0 : index
    %7 = vector.load %arg4[%c0_6, %c0_7] : memref<32x128xf32, #tpu.memory_space<vmem>>, vector<32x128xf32>
    %cst_8 = arith.constant dense<0.000000e+00> : vector<512x128xf32>
    %8 = tpu.matmul %6, %7, %cst_8 {dimension_numbers = #tpu.dot_dimension_numbers<[1], [0], [0], [1], [0, 0, 1, 1], [], []>} : vector<512x32xf32>, vector<32x128xf32>, vector<512x128xf32> -> vector<512x128xf32>
    %cst_9 = arith.constant 0.000000e+00 : f32
    %9 = vector.broadcast %cst_9 : f32 to vector<512x128xf32>
    %10 = arith.subf %9, %8 : vector<512x128xf32>
    %11 = math.exp %10 : vector<512x128xf32>
    %cst_10 = arith.constant 1.000000e+00 : f32
    %12 = vector.broadcast %cst_10 : f32 to vector<512x128xf32>
    %13 = arith.addf %12, %11 : vector<512x128xf32>
    %14 = tpu.reciprocal %13 {approx = true} : vector<512x128xf32> -> vector<512x128xf32>
    %15 = arith.mulf %0, %14 : vector<512x128xf32>
    %16 = vector.extract_strided_slice %15 {offsets = [0, 0], sizes = [512, 16], strides = [1, 1]} : vector<512x128xf32> to vector<512x16xf32>
    %17 = vector.extract_strided_slice %15 {offsets = [0, 16], sizes = [512, 16], strides = [1, 1]} : vector<512x128xf32> to vector<512x16xf32>
    %18 = arith.addf %16, %17 : vector<512x16xf32>
    %19 = vector.extract_strided_slice %15 {offsets = [0, 32], sizes = [512, 16], strides = [1, 1]} : vector<512x128xf32> to vector<512x16xf32>
    %20 = arith.addf %18, %19 : vector<512x16xf32>
    %21 = vector.extract_strided_slice %15 {offsets = [0, 48], sizes = [512, 16], strides = [1, 1]} : vector<512x128xf32> to vector<512x16xf32>
    %22 = arith.addf %20, %21 : vector<512x16xf32>
    %23 = vector.extract_strided_slice %15 {offsets = [0, 64], sizes = [512, 16], strides = [1, 1]} : vector<512x128xf32> to vector<512x16xf32>
    %24 = arith.addf %22, %23 : vector<512x16xf32>
    %25 = vector.extract_strided_slice %15 {offsets = [0, 80], sizes = [512, 16], strides = [1, 1]} : vector<512x128xf32> to vector<512x16xf32>
    %26 = arith.addf %24, %25 : vector<512x16xf32>
    %27 = vector.extract_strided_slice %15 {offsets = [0, 96], sizes = [512, 16], strides = [1, 1]} : vector<512x128xf32> to vector<512x16xf32>
    %28 = arith.addf %26, %27 : vector<512x16xf32>
    %29 = vector.extract_strided_slice %15 {offsets = [0, 112], sizes = [512, 16], strides = [1, 1]} : vector<512x128xf32> to vector<512x16xf32>
    %30 = arith.addf %28, %29 : vector<512x16xf32>
    %c0_11 = arith.constant 0 : index
    %c0_12 = arith.constant 0 : index
    %31 = vector.load %arg5[%c0_11, %c0_12] : memref<512x16xf32, #tpu.memory_space<vmem>>, vector<512x16xf32>
    tpu.vector_store %arg5[%c0_11, %c0_12], %30 {strides = array<i32>} : memref<512x16xf32, #tpu.memory_space<vmem>>, vector<512x16xf32>,
    return
  }
  func.func @transform_0(%arg0: i32) -> (i32, i32) {
    %c0_i32 = arith.constant 0 : i32
    %c0_i32_0 = arith.constant 0 : i32
    return %arg0, %c0_i32 : i32, i32
  }
  func.func @transform_1(%arg0: i32) -> (i32, i32) {
    %c0_i32 = arith.constant 0 : i32
    %c0_i32_0 = arith.constant 0 : i32
    return %arg0, %c0_i32 : i32, i32
  }
  func.func @transform_2(%arg0: i32) -> (i32, i32) {
    %c0_i32 = arith.constant 0 : i32
    %c0_i32_0 = arith.constant 0 : i32
    %c0_i32_1 = arith.constant 0 : i32
    return %c0_i32, %c0_i32_0 : i32, i32
  }
  func.func @transform_3(%arg0: i32) -> (i32, i32) {
    %c0_i32 = arith.constant 0 : i32
    %c0_i32_0 = arith.constant 0 : i32
    %c0_i32_1 = arith.constant 0 : i32
    return %c0_i32, %c0_i32_0 : i32, i32
  }
  func.func @transform_4(%arg0: i32) -> (i32, i32) {
    %c0_i32 = arith.constant 0 : i32
    %c0_i32_0 = arith.constant 0 : i32
    return %arg0, %c0_i32 : i32, i32
  }
}

</mosaic_0001>

<bundles_post_ra>
// kernel: tile.29
= control target key start
LH: loop header
LB: loop body
LE: loop exit
PB: predicated region body
PF: predicated region fallthrough
CT: control target
= control target key end

     0   :  { %s67_s8 = smov 112   ;;  %s68_s11 = smov 80   ;;  %vm3_vm0 = vcmask 130048   ;;  %vm9_vm1 = vcmask 1048448   ;;  %vm15_vm2 = vcmask 917248   ;;  %vm21_vm3 = vcmask 786048   ;;  %s111_s0 = inlined_call_operand.vmem [shape: f32[4,8,16], index: 0, kind: input, shape index: {}]   ;;  %s112_s1 = inlined_call_operand.vmem [shape: f32[4,128], index: 1, kind: output, shape index: {}]  }
   0x1   :  { %v53_v0 = vld [vmem:[%s111_s0 + $0x7] ss:$8 sm:$0xf]   ;;  %v55_v1 = vld [vmem:[%s111_s0 + $0x5] ss:$8 sm:$0xf]  }
   0x2   :  { %7 = vrot.lane.b32.xlu0 %v53_v0, %s67_s8  ;;  %19 = vrot.lane.b32.xlu1 %v55_v1, %s68_s11  ;;  %v54_v2 = vld [vmem:[%s111_s0 + $0x6] ss:$8 sm:$0xf]   ;;  %v56_v3 = vld [vmem:[%s111_s0 + $0x4] ss:$8 sm:$0xf]  }
   0x3   :  { %s69_s16 = smov 96   ;;  %v2_v4 = vld [vmem:[%s111_s0] ss:$8 sm:$0xf]   ;;  %s70_s19 = smov 64   ;;  %vm27_vm4 = vcmask 654848  }
   0x4   :  { %v57_v5 = vld [vmem:[%s111_s0 + $0x3] ss:$8 sm:$0xf]   ;;  %4 = vst.msk [vmem:[#allocation0] sm:$0xf] %vm3_vm0, %v2_v4   ;;  %s71_s24 = smov 48  }
   0x5   :  { %v58_v6 = vld [vmem:[%s111_s0 + $0x2] ss:$8 sm:$0xf]   ;;  %s72_s25 = smov 32   ;;  %vm33_vm5 = vcmask 523648   ;;  %vm39_vm6 = vcmask 392448  }
   0x6   :  { %13 = vrot.lane.b32.xlu0 %v54_v2, %s69_s16  ;;  %25 = vrot.lane.b32.xlu1 %v56_v3, %s70_s19  ;;  %v59_v7 = vld [vmem:[%s111_s0 + $0x1] ss:$8 sm:$0xf]   ;;  %s73_s0 = smov 16   ;;  %vm45_vm7 = vcmask 261248  }
   0xa   :  { %31 = vrot.lane.b32.xlu0 %v57_v5, %s71_s24  ;;  %37 = vrot.lane.b32.xlu1 %v58_v6, %s72_s25 }
   0xe   :  { %43 = vrot.lane.b32.xlu0 %v59_v7, %s73_s0 }
  0x74   :  { %v8_v8 = vpop.permute.xlu0 %7   ;;  %v20_v9 = vpop.permute.xlu1 %19  }
  0x75   :  { %10 = vst.msk [vmem:[#allocation0] sm:$0xf] %vm9_vm1, %v8_v8  }
  0x78   :  { %v14_v10 = vpop.permute.xlu0 %13   ;;  %v26_v11 = vpop.permute.xlu1 %25  }
  0x79   :  { %16 = vst.msk [vmem:[#allocation0] sm:$0xf] %vm15_vm2, %v14_v10  }
  0x7a   :  { %22 = vst.msk [vmem:[#allocation0] sm:$0xf] %vm21_vm3, %v20_v9  }
  0x7b   :  { %28 = vst.msk [vmem:[#allocation0] sm:$0xf] %vm27_vm4, %v26_v11  }
  0x7c   :  { %v32_v12 = vpop.permute.xlu0 %31   ;;  %v38_v13 = vpop.permute.xlu1 %37  }
  0x7d   :  { %34 = vst.msk [vmem:[#allocation0] sm:$0xf] %vm33_vm5, %v32_v12  }
  0x7e   :  { %40 = vst.msk [vmem:[#allocation0] sm:$0xf] %vm39_vm6, %v38_v13  }
  0x80   :  { %v44_v14 = vpop.permute.xlu0 %43  }
  0x81   :  { %46 = vst.msk [vmem:[#allocation0] sm:$0xf] %vm45_vm7, %v44_v14  }
  0x88   :  { %v50_v15 = vld [vmem:[#allocation0] sm:$0xf] }
  0x89   :  { %52 = vst [vmem:[%s112_s1] sm:$0xf] %v50_v15 }

// kernel: gru2d_forward.4
= control target key start
LH: loop header
LB: loop body
LE: loop exit
PB: predicated region body
PF: predicated region fallthrough
CT: control target
= control target key end

     0   :  { %15 = vsyncpa [#allocation3], 0  ;;  %s3492_s0 = inlined_call_operand.vmem [shape: f32[2,256,4], index: 0, kind: input, shape index: {}]   ;;  %s3493_s1 = inlined_call_operand.vmem [shape: f32[4,256], index: 1, kind: input, shape index: {}]   ;;  %s3494_s2 = inlined_call_operand.vmem [shape: f32[128,32], index: 2, kind: input, shape index: {}]   ;;  %s3495_s3 = inlined_call_operand.vmem [shape: f32[128,32], index: 3, kind: input, shape index: {}]   ;;  %s3496_s4 = inlined_call_operand.hbm [shape: f32[32,128], index: 4, kind: input, shape index: {}]   ;;  %s3497_s5 = inlined_call_operand.vmem [shape: f32[128,32], index: 5, kind: input, shape index: {}]   ;;  %s3498_s6 = inlined_call_operand.vmem [shape: f32[128,32], index: 6, kind: input, shape index: {}]   ;;  %s3499_s7 = inlined_call_operand.hbm [shape: f32[32,128], index: 7, kind: input, shape index: {}]   ;;  %s3500_s8 = inlined_call_operand.vmem [shape: f32[2,256,128], index: 8, kind: output, shape index: {0}]   ;;  %s3501_s9 = inlined_call_operand.vmem [shape: f32[2,256,128], index: 9, kind: output, shape index: {1}]  }
   0x1   :  { %16 = vsyncpa [#allocation5], 0  ;;  %s2546_s30 = smov 0  }
   0x2 LB: > { %s2552_s10 = sadd.s32 4294967295, %s2487_s30   ;;  %p1840_p0 = scmp.ge.s32.totalorder %s2487_s30, 1  ;;  %s2487_s30 = sphi %s2546_s30, %s22_s30  }
   0x3   : > { %p252_p1 = scmp.lt.s32.totalorder %s2487_s30, 3  ;;  %s2489_s11 = smov [#allocation2]  }
   0x4   : > { %s273_s12 = sshll.u32 %s2489_s11, 4  ;;  %p3502_p3 = scmp.eq.s32.totalorder %s2552_s10, 0  ;;  %s274_s12 = int_to_ptr.vmem [resolvable:$true] %s273_s12 }
   0x5   : > { %p2556_p2 = pnand %p1840_p0, %p252_p1  ;;  %s2490_s14 = smov [#allocation4]  }
   0x6   : > { %s292_s15 = sshll.u32 %s2490_s14, 4  ;;  %s2417_s19 = scalar_lea.hbm %s3496_s4, 512  ;;  %s2569_s15 = int_to_ptr.vmem [resolvable:$true] %s292_s15 }
   0x7   : > { %s3529_s13 = scalar_select %p2556_p2, 1, 0 }
   0x8   : > { %p2254_p4 = pneg %p2556_p2  ;;  %p2418_p6 = scmp.ne.s32.totalorder %s3496_s4, %s2417_s19 }
   0x9   : > { %p2424_p10 = scmp.lt.u32.totalorder %s2417_s19, %s3496_s4 }
   0xa   : > { %p2565_p5 = pnand %p3502_p3, %p2254_p4 }
   0xc   : > { %p2419_p7 = pneg %p2565_p5 }
   0xe   : > { %p2420_p8 = pnand %p2419_p7, %p2418_p6 }
  0x10   : > { %p2421_p9 = pneg %p2420_p8 }
  0x12   : > { %p2426_p11 = pnand %p2424_p10, %p2421_p9 }
  0x14   : > { %2429 = shalt.err (!%p2426_p11)
}
  0x15   : > { %s2430_s24 = scalar_lea.vmem %s274_s12, 512  ;;  %p2438_p1 = scmp.lt.s32.totalorder %s274_s12, %s274_s12 }
  0x16   : > { %p2431_p12 = scmp.ne.s32.totalorder %s274_s12, %s2430_s24  ;;  %p2439_p4 = scmp.lt.s32.totalorder %s2430_s24, %s2430_s24 }
  0x18   : > { %p2433_p13 = pnand %p2431_p12, %p2419_p7  ;;  %p2440_p3 = por %p2439_p4, %p2438_p1 }
  0x1a   : > { %p2434_p0 = pneg %p2433_p13 }
  0x1c   : > { %p2441_p2 = pnand %p2440_p3, %p2434_p0 }
  0x1e   : > { %2444 = shalt.err (!%p2441_p2)
}
  0x1f   : > { %s2491_s25 = smov 128   ;;  %s2492_s26 = smov 8  }
  0x20   : > { %2257 = dma.hbm_to_vmem [thread:$0]  (!%p2565_p5), %s3496_s4, 512, %s274_s12, [#allocation3], %s2491_s25, %s2491_s25, %s2492_s26  }
  0x21   : > { %s2445_s14 = scalar_lea.hbm %s3499_s7, 512 }
  0x22   : > { %p2446_p6 = scmp.ne.s32.totalorder %s3499_s7, %s2445_s14  ;;  %p2452_p8 = scmp.lt.u32.totalorder %s2445_s14, %s3499_s7 }
  0x24   : > { %p2448_p2 = pnand %p2446_p6, %p2419_p7 }
  0x26   : > { %p2449_p3 = pneg %p2448_p2 }
  0x28   : > { %p2454_p9 = pnand %p2452_p8, %p2449_p3 }
  0x2a   : > { %2457 = shalt.err (!%p2454_p9)
}
  0x2b   : > { %s2458_s12 = scalar_lea.vmem %s2569_s15, 512  ;;  %p2466_p13 = scmp.lt.s32.totalorder %s2569_s15, %s2569_s15 }
  0x2c   : > { %p2459_p10 = scmp.ne.s32.totalorder %s2569_s15, %s2458_s12  ;;  %p2467_p0 = scmp.lt.s32.totalorder %s2458_s12, %s2458_s12 }
  0x2e   : > { %p2461_p11 = pnand %p2459_p10, %p2419_p7  ;;  %p2468_p1 = por %p2467_p0, %p2466_p13 }
  0x30   : > { %p2462_p12 = pneg %p2461_p11 }
  0x32   : > { %p2469_p4 = pnand %p2468_p1, %p2462_p12 }
  0x34   : > { %2472 = shalt.err (!%p2469_p4)
}
  0x35   : > { %2260 = dma.hbm_to_vmem [thread:$0]  (!%p2565_p5), %s3499_s7, 512, %s2569_s15, [#allocation5], %s2491_s25, %s2491_s25, %s2492_s26  }
  0x36   : > { %p3531_p6 = scmp.ne.s32.totalorder %s3529_s13, 0 }
  0x38   : > { %316 = sbr.rel (%p3531_p6) target bundleno = 1282 (0x502), region = 52 }
  0x3f   : > { %p3532_p2 = scmp.eq.s32.totalorder %s2552_s10, 0 }
  0x41   : > { %2478 = dma.done.wait (%p3532_p2), [#allocation3], 512   ;;  %p3533_p7 = pmov %p3532_p2 }
  0x42   : > { %p3534_p3 = pmov %p3532_p2 }
  0x43   : > { %2480 = vsyncadd (%p3533_p7), [#allocation3], 4294966784 }
  0x44   : > { %2482 = dma.done.wait (%p3534_p3), [#allocation5], 512   ;;  %p3535_p8 = pmov %p3532_p2 }
  0x45   : > { %p361_p9 = scmp.lt.s32.totalorder %s2552_s10, 1  ;;  %v3506_v0 = vmov 0.0   ;;  %v408_v1 = vld [vmem:[%s3493_s1] sm:$0xff]  ;;  %vm508_vm0 = vcmask 1043456   ;;  %vm411_vm1 = vcmask 31744   ;;  %v787_v36 = vld [vmem:[%s3495_s3 + $0x8] sm:$0xff] }
  0x46   : > { %2484 = vsyncadd (%p3535_p8), [#allocation5], 4294966784  ;;  %577 = vmatprep.mubr.f32.mxu0 %v3506_v0  ;;  %v410_v2 = vcombine.high %v408_v1, %v408_v1  ;;  %v786_v35 = vld [vmem:[%s3495_s3] sm:$0xff]  ;;  %v3504_v38 = vmov 0.0|0.0   ;;  %v788_v39 = vld [vmem:[%s3495_s3 + $0x10] sm:$0xff]  ;;  %vm2495_vm2 = vmmov 0  }
  0x47   : > { %s3581_s10 = smov (!%p361_p9, %s2552_s10), 1  ;;  %v2135_v37 = vpack.c.bf16 %v787_v36, %v786_v35  ;;  %2134 = vmatprep.subr.bf16.mxu1 %v3504_v38  ;;  %v789_v40 = vld [vmem:[%s3495_s3 + $0x18] sm:$0xff]  ;;  %v790_v42 = vld [vmem:[%s3495_s3 + $0x20] sm:$0xff]  ;;  %v791_v43 = vld [vmem:[%s3495_s3 + $0x28] sm:$0xff]  ;;  %2004 = vmatprep.mubr.msk.f32.mxu1 %vm2495_vm2, %v3506_v0  ;;  %vm1023_vm3 = vcmask 261120  }
  0x48   : > { %s2631_s13 = sshll.u32 %s3581_s10, 8  ;;  %1853 = vmatprep.subr.msk.mxu0 %vm508_vm0, %v410_v2  ;;  %v2138_v41 = vpack.c.bf16 %v789_v40, %v788_v39  ;;  %v2141_v44 = vpack.c.bf16 %v791_v43, %v790_v42  ;;  %v792_v45 = vld [vmem:[%s3495_s3 + $0x30] sm:$0xff]  ;;  %v793_v46 = vld [vmem:[%s3495_s3 + $0x38] sm:$0xff]  ;;  %v794_v48 = vld [vmem:[%s3495_s3 + $0x40] sm:$0xff] }
  0x49   : > { %s2637_s23 = scalar_lea.vmem %s3492_s0, %s2631_s13  ;;  %1854 = vmatpush1.msk.msra.mxu0 %vm508_vm0, %v408_v1  ;;  %2136 = vmatpush3.bf16.msra.mxu1 %v2135_v37  ;;  %v2144_v47 = vpack.c.bf16 %v793_v46, %v792_v45  ;;  %v795_v49 = vld [vmem:[%s3495_s3 + $0x48] sm:$0xff]  ;;  %v796_v52 = vld [vmem:[%s3495_s3 + $0x50] sm:$0xff]  ;;  %v797_v53 = vld [vmem:[%s3495_s3 + $0x58] sm:$0xff]  ;;  %s3444_s10 = scalar_lea.vmem %s3501_s9, %s2631_s13 }
  0x4a   : > { %v376_v3 = vld [vmem:[%s2637_s23] sm:$0xff]  ;;  %v377_v4 = vld [vmem:[%s2637_s23 + $0x8] sm:$0xff]  ;;  %v378_v5 = vld [vmem:[%s2637_s23 + $0x10] sm:$0xff]  ;;  %2236 = vmatprep.subr.bf16.mxu0 %v3504_v38  ;;  %2137 = vmatprep.subr.bf16.mxu1 %v3504_v38  ;;  %v2147_v50 = vpack.c.bf16 %v795_v49, %v794_v48  ;;  %v2150_v55 = vpack.c.bf16 %v797_v53, %v796_v52 }
  0x4b   : > { %1855 = vmatmul.mubr.msk.f32.vlgmr.msra.gmra.mrb[0].mxu0 %vm411_vm1, %v376_v3  ;;  %v379_v6 = vld [vmem:[%s2637_s23 + $0x18] sm:$0xff]  ;;  %v380_v7 = vld [vmem:[%s2637_s23 + $0x20] sm:$0xff]  ;;  %v381_v8 = vld [vmem:[%s2637_s23 + $0x28] sm:$0xff] }
  0x4c   : > { %583 = vmatprep.mubr.f32.mxu0 %v3506_v0  ;;  %v382_v9 = vld [vmem:[%s2637_s23 + $0x30] sm:$0xff]  ;;  %v383_v10 = vld [vmem:[%s2637_s23 + $0x38] sm:$0xff]  ;;  %v384_v11 = vld [vmem:[%s2637_s23 + $0x40] sm:$0xff] }
  0x4d   : > { %v385_v12 = vld [vmem:[%s2637_s23 + $0x48] sm:$0xff]  ;;  %v386_v13 = vld [vmem:[%s2637_s23 + $0x50] sm:$0xff]  ;;  %v387_v14 = vld [vmem:[%s2637_s23 + $0x58] sm:$0xff]  ;;  %2139 = vmatpush3.bf16.msra.mxu1 %v2138_v41 }
  0x4e   : > { %v388_v15 = vld [vmem:[%s2637_s23 + $0x60] sm:$0xff]  ;;  %v389_v16 = vld [vmem:[%s2637_s23 + $0x68] sm:$0xff]  ;;  %v390_v17 = vld [vmem:[%s2637_s23 + $0x70] sm:$0xff]  ;;  %2140 = vmatprep.subr.bf16.mxu1 %v3504_v38 }
  0x4f   : > { %1856 = vmatmul.mubr.msk.f32.gmra.mrb[2].mxu0 %vm411_vm1, %v377_v4  ;;  %v391_v18 = vld [vmem:[%s2637_s23 + $0x78] sm:$0xff]  ;;  %v392_v19 = vld [vmem:[%s2637_s23 + $0x80] sm:$0xff]  ;;  %v393_v20 = vld [vmem:[%s2637_s23 + $0x88] sm:$0xff] }
  0x50   : > { %589 = vmatprep.mubr.f32.mxu0 %v3506_v0  ;;  %v394_v21 = vld [vmem:[%s2637_s23 + $0x90] sm:$0xff]  ;;  %v395_v22 = vld [vmem:[%s2637_s23 + $0x98] sm:$0xff]  ;;  %v396_v23 = vld [vmem:[%s2637_s23 + $0xa0] sm:$0xff] }
  0x51   : > { %v397_v24 = vld [vmem:[%s2637_s23 + $0xa8] sm:$0xff]  ;;  %v398_v25 = vld [vmem:[%s2637_s23 + $0xb0] sm:$0xff]  ;;  %v399_v26 = vld [vmem:[%s2637_s23 + $0xb8] sm:$0xff]  ;;  %2142 = vmatpush3.bf16.msra.mxu1 %v2141_v44 }
  0x52   : > { %v400_v27 = vld [vmem:[%s2637_s23 + $0xc0] sm:$0xff]  ;;  %v401_v28 = vld [vmem:[%s2637_s23 + $0xc8] sm:$0xff]  ;;  %v402_v29 = vld [vmem:[%s2637_s23 + $0xd0] sm:$0xff]  ;;  %2143 = vmatprep.subr.bf16.mxu1 %v3504_v38 }
  0x53   : > { %1857 = vmatmul.mubr.msk.f32.gmra.mrb[4].mxu0 %vm411_vm1, %v378_v5  ;;  %v403_v30 = vld [vmem:[%s2637_s23 + $0xd8] sm:$0xff]  ;;  %v404_v31 = vld [vmem:[%s2637_s23 + $0xe0] sm:$0xff]  ;;  %v405_v32 = vld [vmem:[%s2637_s23 + $0xe8] sm:$0xff] }
  0x54   : > { %595 = vmatprep.mubr.f32.mxu0 %v3506_v0  ;;  %v406_v33 = vld [vmem:[%s2637_s23 + $0xf0] sm:$0xff]  ;;  %v407_v34 = vld [vmem:[%s2637_s23 + $0xf8] sm:$0xff]  ;;  %v798_v57 = vld [vmem:[%s3495_s3 + $0x60] sm:$0xff]  ;;  %s3251_s23 = scalar_lea.vmem %s3500_s8, %s2631_s13 }
  0x55   : > { %2145 = vmatpush3.bf16.msra.mxu1 %v2144_v47  ;;  %v799_v58 = vld [vmem:[%s3495_s3 + $0x68] sm:$0xff]  ;;  %v800_v1 = vld [vmem:[%s3495_s3 + $0x70] sm:$0xff]  ;;  %v801_v2 = vld [vmem:[%s3495_s3 + $0x78] sm:$0xff] }
  0x56   : > { %2146 = vmatprep.subr.bf16.mxu1 %v3504_v38  ;;  %v2153_v61 = vpack.c.bf16 %v799_v58, %v798_v57  ;;  %v2156_v5 = vpack.c.bf16 %v801_v2, %v800_v1 }
  0x57   : > { %1858 = vmatmul.mubr.msk.f32.gmra.mrb[6].mxu0 %vm411_vm1, %v379_v6 }
  0x58   : > { %601 = vmatprep.mubr.f32.mxu0 %v3506_v0 }
  0x59   : > { %2148 = vmatpush3.bf16.msra.mxu1 %v2147_v50 }
  0x5a   : > { %2149 = vmatprep.subr.bf16.mxu1 %v3504_v38 }
  0x5b   : > { %1859 = vmatmul.mubr.msk.f32.gmra.mrb[8].mxu0 %vm411_vm1, %v380_v7 }
  0x5c   : > { %607 = vmatprep.mubr.f32.mxu0 %v3506_v0 }
  0x5d   : > { %2151 = vmatpush3.bf16.msra.mxu1 %v2150_v55 }
  0x5e   : > { %2152 = vmatprep.subr.bf16.mxu1 %v3504_v38 }
  0x5f   : > { %1860 = vmatmul.mubr.msk.f32.gmra.mrb[10].mxu0 %vm411_vm1, %v381_v8 }
  0x60   : > { %613 = vmatprep.mubr.f32.mxu0 %v3506_v0 }
  0x61   : > { %2154 = vmatpush3.bf16.msra.mxu1 %v2153_v61 }
  0x62   : > { %2155 = vmatprep.subr.bf16.mxu1 %v3504_v38 }
  0x63   : > { %1861 = vmatmul.mubr.msk.f32.gmra.mrb[12].mxu0 %vm411_vm1, %v382_v9 }
  0x64   : > { %619 = vmatprep.mubr.f32.mxu0 %v3506_v0 }
  0x65   : > { %2157 = vmatpush3.bf16.msra.mxu1 %v2156_v5 }
  0x66   : > { %2158 = vmatprep.subr.bf16.mxu1 %v3504_v38 }
  0x67   : > { %1862 = vmatmul.mubr.msk.f32.gmra.mrb[14].mxu0 %vm411_vm1, %v383_v10 }
  0x68   : > { %625 = vmatprep.mubr.f32.mxu0 %v3506_v0 }
  0x6b   : > { %1863 = vmatmul.mubr.msk.f32.gmra.mrb[16].mxu0 %vm411_vm1, %v384_v11 }
  0x6c   : > { %631 = vmatprep.mubr.f32.mxu0 %v3506_v0 }
  0x6f   : > { %1864 = vmatmul.mubr.msk.f32.gmra.mrb[18].mxu0 %vm411_vm1, %v385_v12 }
  0x70   : > { %637 = vmatprep.mubr.f32.mxu0 %v3506_v0 }
  0x73   : > { %1865 = vmatmul.mubr.msk.f32.gmra.mrb[20].mxu0 %vm411_vm1, %v386_v13 }
  0x74   : > { %643 = vmatprep.mubr.f32.mxu0 %v3506_v0 }
  0x77   : > { %1866 = vmatmul.mubr.msk.f32.gmra.mrb[22].mxu0 %vm411_vm1, %v387_v14 }
  0x78   : > { %649 = vmatprep.mubr.f32.mxu0 %v3506_v0 }
  0x7b   : > { %1867 = vmatmul.mubr.msk.f32.gmra.mrb[24].mxu0 %vm411_vm1, %v388_v15 }
  0x7c   : > { %655 = vmatprep.mubr.f32.mxu0 %v3506_v0 }
  0x7f   : > { %1868 = vmatmul.mubr.msk.f32.gmra.mrb[26].mxu0 %vm411_vm1, %v389_v16 }
  0x80   : > { %661 = vmatprep.mubr.f32.mxu0 %v3506_v0 }
  0x83   : > { %1869 = vmatmul.mubr.msk.f32.gmra.mrb[28].mxu0 %vm411_vm1, %v390_v17 }
  0x84   : > { %667 = vmatprep.mubr.f32.mxu0 %v3506_v0 }
  0x87   : > { %1870 = vmatmul.mubr.msk.f32.gmra.mrb[30].mxu0 %vm411_vm1, %v391_v18 }
  0x88   : > { %673 = vmatprep.mubr.f32.mxu0 %v3506_v0 }
  0x8b   : > { %1871 = vmatmul.mubr.msk.f32.gmra.mrb[32].mxu0 %vm411_vm1, %v392_v19 }
  0x8c   : > { %679 = vmatprep.mubr.f32.mxu0 %v3506_v0 }
  0x8f   : > { %1872 = vmatmul.mubr.msk.f32.gmra.mrb[34].mxu0 %vm411_vm1, %v393_v20 }
  0x90   : > { %685 = vmatprep.mubr.f32.mxu0 %v3506_v0 }
  0x93   : > { %1873 = vmatmul.mubr.msk.f32.gmra.mrb[36].mxu0 %vm411_vm1, %v394_v21 }
  0x94   : > { %691 = vmatprep.mubr.f32.mxu0 %v3506_v0 }
  0x97   : > { %1874 = vmatmul.mubr.msk.f32.gmra.mrb[38].mxu0 %vm411_vm1, %v395_v22 }
  0x98   : > { %697 = vmatprep.mubr.f32.mxu0 %v3506_v0 }
  0x9b   : > { %1875 = vmatmul.mubr.msk.f32.gmra.mrb[40].mxu0 %vm411_vm1, %v396_v23 }
  0x9c   : > { %703 = vmatprep.mubr.f32.mxu0 %v3506_v0 }
  0x9f   : > { %1876 = vmatmul.mubr.msk.f32.gmra.mrb[42].mxu0 %vm411_vm1, %v397_v24 }
  0xa0   : > { %709 = vmatprep.mubr.f32.mxu0 %v3506_v0 }
  0xa3   : > { %1877 = vmatmul.mubr.msk.f32.gmra.mrb[44].mxu0 %vm411_vm1, %v398_v25 }
  0xa4   : > { %715 = vmatprep.mubr.f32.mxu0 %v3506_v0 }
  0xa7   : > { %1878 = vmatmul.mubr.msk.f32.gmra.mrb[46].mxu0 %vm411_vm1, %v399_v26 }
  0xa8   : > { %721 = vmatprep.mubr.f32.mxu0 %v3506_v0 }
  0xab   : > { %1879 = vmatmul.mubr.msk.f32.gmra.mrb[48].mxu0 %vm411_vm1, %v400_v27 }
  0xac   : > { %727 = vmatprep.mubr.f32.mxu0 %v3506_v0 }
  0xaf   : > { %1880 = vmatmul.mubr.msk.f32.gmra.mrb[50].mxu0 %vm411_vm1, %v401_v28 }
  0xb0   : > { %733 = vmatprep.mubr.f32.mxu0 %v3506_v0 }
  0xb3   : > { %1881 = vmatmul.mubr.msk.f32.gmra.mrb[52].mxu0 %vm411_vm1, %v402_v29 }
  0xb4   : > { %739 = vmatprep.mubr.f32.mxu0 %v3506_v0 }
  0xb7   : > { %1882 = vmatmul.mubr.msk.f32.gmra.mrb[54].mxu0 %vm411_vm1, %v403_v30 }
  0xb8   : > { %745 = vmatprep.mubr.f32.mxu0 %v3506_v0 }
  0xbb   : > { %1883 = vmatmul.mubr.msk.f32.gmra.mrb[56].mxu0 %vm411_vm1, %v404_v31 }
  0xbc   : > { %751 = vmatprep.mubr.f32.mxu0 %v3506_v0 }
  0xbf   : > { %1884 = vmatmul.mubr.msk.f32.gmra.mrb[58].mxu0 %vm411_vm1, %v405_v32 }
  0xc0   : > { %757 = vmatprep.mubr.f32.mxu0 %v3506_v0 }
  0xc3   : > { %1885 = vmatmul.mubr.msk.f32.gmra.mrb[60].mxu0 %vm411_vm1, %v406_v33 }
  0xc4   : > { %763 = vmatprep.mubr.f32.mxu0 %v3506_v0 }
  0xc7   : > { %1886 = vmatmul.mubr.msk.f32.gmra.mrb[62].mxu0 %vm411_vm1, %v407_v34 }
  0xc8   : > { %2131 = vmatprep.mubr.msk.f32.mxu0 %vm2495_vm2, %v3506_v0 }
 0x11e   : > { %v2773_v51 = vpop.f32.mrb[0].mxu0 }
 0x11f   : > { %v2782_v54 = vpop.f32.mrb[1].mxu0 }
 0x122   : > { %v2784_v56 = vpop.f32.mrb[2].mxu0 }
 0x123   : > { %v806_v59 = vadd.f32 %v2784_v56, %v2773_v51  ;;  %v2795_v60 = vpop.f32.mrb[3].mxu0 }
 0x124   : > { %v1138_v62 = vadd.f32 %v2795_v60, %v2782_v54 }
 0x126   : > { %v2799_v63 = vpop.f32.mrb[4].mxu0 }
 0x127   : > { %v807_v3 = vadd.f32 %v806_v59, %v2799_v63  ;;  %v2809_v4 = vpop.f32.mrb[5].mxu0 }
 0x128   : > { %v1139_v6 = vadd.f32 %v1138_v62, %v2809_v4 }
 0x12a   : > { %v2816_v7 = vpop.f32.mrb[6].mxu0 }
 0x12b   : > { %v808_v8 = vadd.f32 %v807_v3, %v2816_v7  ;;  %v2820_v9 = vpop.f32.mrb[7].mxu0 }
 0x12c   : > { %v1140_v10 = vadd.f32 %v1139_v6, %v2820_v9 }
 0x12e   : > { %v2823_v11 = vpop.f32.mrb[8].mxu0 }
 0x12f   : > { %v809_v12 = vadd.f32 %v808_v8, %v2823_v11  ;;  %v845_v13 = vmax.f32 %v2773_v51, %v2823_v11  ;;  %v2828_v14 = vpop.f32.mrb[9].mxu0 }
 0x130   : > { %v1141_v15 = vadd.f32 %v1140_v10, %v2828_v14  ;;  %v1176_v16 = vmax.f32 %v2782_v54, %v2828_v14 }
 0x132   : > { %v2833_v17 = vpop.f32.mrb[10].mxu0 }
 0x133   : > { %v810_v18 = vadd.f32 %v809_v12, %v2833_v17  ;;  %v846_v19 = vmax.f32 %v2784_v56, %v2833_v17  ;;  %v2838_v20 = vpop.f32.mrb[11].mxu0 }
 0x134   : > { %v1142_v21 = vadd.f32 %v1141_v15, %v2838_v20  ;;  %v1177_v22 = vmax.f32 %v2795_v60, %v2838_v20 }
 0x136   : > { %v2843_v23 = vpop.f32.mrb[12].mxu0 }
 0x137   : > { %v811_v24 = vadd.f32 %v810_v18, %v2843_v23  ;;  %v847_v25 = vmax.f32 %v2799_v63, %v2843_v23  ;;  %v2848_v26 = vpop.f32.mrb[13].mxu0 }
 0x138   : > { %v1143_v27 = vadd.f32 %v1142_v21, %v2848_v26  ;;  %v1178_v28 = vmax.f32 %v2809_v4, %v2848_v26 }
 0x13a   : > { %v2853_v29 = vpop.f32.mrb[14].mxu0 }
 0x13b   : > { %v812_v30 = vadd.f32 %v811_v24, %v2853_v29  ;;  %v848_v31 = vmax.f32 %v2816_v7, %v2853_v29  ;;  %v2858_v32 = vpop.f32.mrb[15].mxu0 }
 0x13c   : > { %v1144_v33 = vadd.f32 %v1143_v27, %v2858_v32  ;;  %v1179_v34 = vmax.f32 %v2820_v9, %v2858_v32 }
 0x13e   : > { %v2863_v35 = vpop.f32.mrb[16].mxu0 }
 0x13f   : > { %v813_v36 = vadd.f32 %v812_v30, %v2863_v35  ;;  %v849_v37 = vmax.f32 %v845_v13, %v2863_v35  ;;  %v2867_v39 = vpop.f32.mrb[17].mxu0 }
 0x140   : > { %v1145_v40 = vadd.f32 %v1144_v33, %v2867_v39  ;;  %v1180_v41 = vmax.f32 %v1176_v16, %v2867_v39 }
 0x142   : > { %v2871_v42 = vpop.f32.mrb[18].mxu0 }
 0x143   : > { %v814_v43 = vadd.f32 %v813_v36, %v2871_v42  ;;  %v850_v44 = vmax.f32 %v846_v19, %v2871_v42  ;;  %v2875_v45 = vpop.f32.mrb[19].mxu0 }
 0x144   : > { %v1146_v46 = vadd.f32 %v1145_v40, %v2875_v45  ;;  %v1181_v47 = vmax.f32 %v1177_v22, %v2875_v45 }
 0x146   : > { %v2879_v48 = vpop.f32.mrb[20].mxu0 }
 0x147   : > { %v815_v49 = vadd.f32 %v814_v43, %v2879_v48  ;;  %v851_v50 = vmax.f32 %v847_v25, %v2879_v48  ;;  %v2883_v52 = vpop.f32.mrb[21].mxu0 }
 0x148   : > { %3536 = vst [vmem:[#allocation8_spill] sm:$0xff] %v2883_v52  ;;  %v1147_v53 = vadd.f32 %v1146_v46, %v2883_v52  ;;  %v1182_v55 = vmax.f32 %v1178_v28, %v2883_v52 }
 0x14a   : > { %v2887_v57 = vpop.f32.mrb[22].mxu0 }
 0x14b   : > { %v816_v58 = vadd.f32 %v815_v49, %v2887_v57  ;;  %v852_v59 = vmax.f32 %v848_v31, %v2887_v57  ;;  %v2891_v61 = vpop.f32.mrb[23].mxu0 }
 0x14c   : > { %3537 = vst [vmem:[#allocation9_spill] sm:$0xff] %v2891_v61  ;;  %v1148_v62 = vadd.f32 %v1147_v53, %v2891_v61  ;;  %v1183_v1 = vmax.f32 %v1179_v34, %v2891_v61 }
 0x14e   : > { %v2895_v2 = vpop.f32.mrb[24].mxu0 }
 0x14f   : > { %v817_v3 = vadd.f32 %v816_v58, %v2895_v2  ;;  %v853_v5 = vmax.f32 %v849_v37, %v2895_v2  ;;  %v2899_v6 = vpop.f32.mrb[25].mxu0 }
 0x150   : > { %3538 = vst [vmem:[#allocation10_spill] sm:$0xff] %v2899_v6  ;;  %v1149_v8 = vadd.f32 %v1148_v62, %v2899_v6  ;;  %v1184_v10 = vmax.f32 %v1180_v41, %v2899_v6 }
 0x152   : > { %v2903_v12 = vpop.f32.mrb[26].mxu0 }
 0x153   : > { %v818_v13 = vadd.f32 %v817_v3, %v2903_v12  ;;  %v854_v15 = vmax.f32 %v850_v44, %v2903_v12  ;;  %v2907_v16 = vpop.f32.mrb[27].mxu0 }
 0x154   : > { %3539 = vst [vmem:[#allocation11_spill] sm:$0xff] %v2907_v16  ;;  %v1150_v18 = vadd.f32 %v1149_v8, %v2907_v16  ;;  %v1185_v19 = vmax.f32 %v1181_v47, %v2907_v16 }
 0x156   : > { %v2911_v21 = vpop.f32.mrb[28].mxu0 }
 0x157   : > { %v819_v22 = vadd.f32 %v818_v13, %v2911_v21  ;;  %v855_v24 = vmax.f32 %v851_v50, %v2911_v21  ;;  %v2915_v25 = vpop.f32.mrb[29].mxu0 }
 0x158   : > { %3540 = vst [vmem:[#allocation12_spill] sm:$0xff] %v2915_v25  ;;  %v1151_v27 = vadd.f32 %v1150_v18, %v2915_v25  ;;  %v1186_v28 = vmax.f32 %v1182_v55, %v2915_v25 }
 0x15a   : > { %v2919_v30 = vpop.f32.mrb[30].mxu0 }
 0x15b   : > { %v820_v31 = vadd.f32 %v819_v22, %v2919_v30  ;;  %v856_v33 = vmax.f32 %v852_v59, %v2919_v30  ;;  %v2923_v34 = vpop.f32.mrb[31].mxu0 }
 0x15c   : > { %3541 = vst [vmem:[#allocation13_spill] sm:$0xff] %v2923_v34  ;;  %v1152_v36 = vadd.f32 %v1151_v27, %v2923_v34  ;;  %v1187_v37 = vmax.f32 %v1183_v1, %v2923_v34 }
 0x15e   : > { %v2927_v40 = vpop.f32.mrb[32].mxu0 }
 0x15f   : > { %v821_v41 = vadd.f32 %v820_v31, %v2927_v40  ;;  %v857_v43 = vmax.f32 %v853_v5, %v2927_v40  ;;  %v2931_v44 = vpop.f32.mrb[33].mxu0 }
 0x160   : > { %3542 = vst [vmem:[#allocation14_spill] sm:$0xff] %v2931_v44  ;;  %v1153_v46 = vadd.f32 %v1152_v36, %v2931_v44  ;;  %v1188_v47 = vmax.f32 %v1184_v10, %v2931_v44 }
 0x162   : > { %v2935_v49 = vpop.f32.mrb[34].mxu0 }
 0x163   : > { %v822_v50 = vadd.f32 %v821_v41, %v2935_v49  ;;  %v858_v53 = vmax.f32 %v854_v15, %v2935_v49  ;;  %v2939_v55 = vpop.f32.mrb[35].mxu0 }
 0x164   : > { %3543 = vst [vmem:[#allocation15_spill] sm:$0xff] %v2939_v55  ;;  %v1154_v58 = vadd.f32 %v1153_v46, %v2939_v55  ;;  %v1189_v59 = vmax.f32 %v1185_v19, %v2939_v55 }
 0x166   : > { %v2943_v62 = vpop.f32.mrb[36].mxu0 }
 0x167   : > { %v823_v1 = vadd.f32 %v822_v50, %v2943_v62  ;;  %v859_v3 = vmax.f32 %v855_v24, %v2943_v62  ;;  %v2947_v5 = vpop.f32.mrb[37].mxu0 }
 0x168   : > { %3544 = vst [vmem:[#allocation16_spill] sm:$0xff] %v2947_v5  ;;  %v1155_v8 = vadd.f32 %v1154_v58, %v2947_v5  ;;  %v1190_v10 = vmax.f32 %v1186_v28, %v2947_v5 }
 0x16a   : > { %v2951_v13 = vpop.f32.mrb[38].mxu0 }
 0x16b   : > { %v824_v15 = vadd.f32 %v823_v1, %v2951_v13  ;;  %v860_v18 = vmax.f32 %v856_v33, %v2951_v13  ;;  %v2955_v22 = vpop.f32.mrb[39].mxu0 }
 0x16c   : > { %3545 = vst [vmem:[#allocation17_spill] sm:$0xff] %v2955_v22  ;;  %v1156_v19 = vadd.f32 %v1155_v8, %v2955_v22  ;;  %v1191_v27 = vmax.f32 %v1187_v37, %v2955_v22 }
 0x16e   : > { %v2959_v31 = vpop.f32.mrb[40].mxu0 }
 0x16f   : > { %v825_v24 = vadd.f32 %v824_v15, %v2959_v31  ;;  %v861_v36 = vmax.f32 %v857_v43, %v2959_v31  ;;  %v2963_v41 = vpop.f32.mrb[41].mxu0 }
 0x170   : > { %3546 = vst [vmem:[#allocation18_spill] sm:$0xff] %v2963_v41  ;;  %v1157_v28 = vadd.f32 %v1156_v19, %v2963_v41  ;;  %v1192_v46 = vmax.f32 %v1188_v47, %v2963_v41 }
 0x172   : > { %v2967_v50 = vpop.f32.mrb[42].mxu0 }
 0x173   : > { %v826_v33 = vadd.f32 %v825_v24, %v2967_v50  ;;  %v862_v58 = vmax.f32 %v858_v53, %v2967_v50  ;;  %v2971_v1 = vpop.f32.mrb[43].mxu0 }
 0x174   : > { %3547 = vst [vmem:[#allocation19_spill] sm:$0xff] %v2971_v1  ;;  %v1158_v37 = vadd.f32 %v1157_v28, %v2971_v1  ;;  %v1193_v8 = vmax.f32 %v1189_v59, %v2971_v1 }
 0x176   : > { %v2975_v15 = vpop.f32.mrb[44].mxu0 }
 0x177   : > { %v827_v43 = vadd.f32 %v826_v33, %v2975_v15  ;;  %v863_v19 = vmax.f32 %v859_v3, %v2975_v15  ;;  %v2979_v38 = vpop.f32.mrb[45].mxu0 }
 0x178   : > { %3548 = vst [vmem:[#allocation20_spill] sm:$0xff] %v2979_v38  ;;  %v1159_v47 = vadd.f32 %v1158_v37, %v2979_v38  ;;  %v1194_v24 = vmax.f32 %v1190_v10, %v2979_v38 }
 0x17a   : > { %v2983_v0 = vpop.f32.mrb[46].mxu0 }
 0x17b   : > { %v828_v53 = vadd.f32 %v827_v43, %v2983_v0  ;;  %v864_v28 = vmax.f32 %v860_v18, %v2983_v0  ;;  %v2987_v41 = vpop.f32.mrb[47].mxu0 }
 0x17c   : > { %3549 = vst [vmem:[#allocation21_spill] sm:$0xff] %v2987_v41  ;;  %v1160_v59 = vadd.f32 %v1159_v47, %v2987_v41  ;;  %v1195_v33 = vmax.f32 %v1191_v27, %v2987_v41 }
 0x17e   : > { %v2991_v1 = vpop.f32.mrb[48].mxu0 }
 0x17f   : > { %v829_v3 = vadd.f32 %v828_v53, %v2991_v1  ;;  %v865_v37 = vmax.f32 %v861_v36, %v2991_v1  ;;  %v2995_v22 = vpop.f32.mrb[49].mxu0 }
 0x180   : > { %3550 = vst [vmem:[#allocation22_spill] sm:$0xff] %v2995_v22  ;;  %v1161_v10 = vadd.f32 %v1160_v59, %v2995_v22  ;;  %v1196_v43 = vmax.f32 %v1192_v46, %v2995_v22 }
 0x182   : > { %v2999_v38 = vpop.f32.mrb[50].mxu0 }
 0x183   : > { %v830_v18 = vadd.f32 %v829_v3, %v2999_v38  ;;  %v866_v47 = vmax.f32 %v862_v58, %v2999_v38  ;;  %v3003_v5 = vpop.f32.mrb[51].mxu0 }
 0x184   : > { %3551 = vst [vmem:[#allocation23_spill] sm:$0xff] %v3003_v5  ;;  %v1162_v27 = vadd.f32 %v1161_v10, %v3003_v5  ;;  %v1197_v53 = vmax.f32 %v1193_v8, %v3003_v5 }
 0x186   : > { %v3007_v41 = vpop.f32.mrb[52].mxu0 }
 0x187   : > { %v831_v36 = vadd.f32 %v830_v18, %v3007_v41  ;;  %v867_v59 = vmax.f32 %v863_v19, %v3007_v41  ;;  %v3011_v55 = vpop.f32.mrb[53].mxu0 }
 0x188   : > { %3552 = vst [vmem:[#allocation24_spill] sm:$0xff] %v3011_v55  ;;  %v1163_v46 = vadd.f32 %v1162_v27, %v3011_v55  ;;  %v1198_v3 = vmax.f32 %v1194_v24, %v3011_v55 }
 0x18a   : > { %v3015_v22 = vpop.f32.mrb[54].mxu0 }
 0x18b   : > { %v832_v58 = vadd.f32 %v831_v36, %v3015_v22  ;;  %v868_v10 = vmax.f32 %v864_v28, %v3015_v22  ;;  %v3019_v44 = vpop.f32.mrb[55].mxu0 }
 0x18c   : > { %3553 = vst [vmem:[#allocation25_spill] sm:$0xff] %v3019_v44  ;;  %v1164_v8 = vadd.f32 %v1163_v46, %v3019_v44  ;;  %v1199_v18 = vmax.f32 %v1195_v33, %v3019_v44 }
 0x18e   : > { %v3023_v5 = vpop.f32.mrb[56].mxu0 }
 0x18f   : > { %v833_v19 = vadd.f32 %v832_v58, %v3023_v5  ;;  %v869_v27 = vmax.f32 %v865_v37, %v3023_v5  ;;  %v3027_v34 = vpop.f32.mrb[57].mxu0 }
 0x190   : > { %3554 = vst [vmem:[#allocation26_spill] sm:$0xff] %v3027_v34  ;;  %v1165_v24 = vadd.f32 %v1164_v8, %v3027_v34  ;;  %v1200_v36 = vmax.f32 %v1196_v43, %v3027_v34 }
 0x192   : > { %v3031_v55 = vpop.f32.mrb[58].mxu0 }
 0x193   : > { %v834_v28 = vadd.f32 %v833_v19, %v3031_v55  ;;  %v870_v46 = vmax.f32 %v866_v47, %v3031_v55  ;;  %v3035_v25 = vpop.f32.mrb[59].mxu0 }
 0x194   : > { %3555 = vst [vmem:[#allocation27_spill] sm:$0xff] %v3035_v25  ;;  %v1166_v33 = vadd.f32 %v1165_v24, %v3035_v25  ;;  %v1201_v58 = vmax.f32 %v1197_v53, %v3035_v25 }
 0x195   : > { %v873_v44 = vmax.f32 %v869_v27, %v870_v46 }
 0x196   : > { %v1204_v37 = vmax.f32 %v1200_v36, %v1201_v58  ;;  %v3039_v16 = vpop.f32.mrb[60].mxu0 }
 0x197   : > { %v835_v8 = vadd.f32 %v834_v28, %v3039_v16  ;;  %v871_v43 = vmax.f32 %v867_v59, %v3039_v16  ;;  %v3043_v34 = vpop.f32.mrb[61].mxu0 }
 0x198   : > { %3556 = vst [vmem:[#allocation28_spill] sm:$0xff] %v3043_v34  ;;  %v1167_v19 = vadd.f32 %v1166_v33, %v3043_v34  ;;  %v1202_v47 = vmax.f32 %v1198_v3, %v3043_v34 }
 0x19a   : > { %v3047_v6 = vpop.f32.mrb[62].mxu0 }
 0x19b   : > { %v836_v24 = vadd.f32 %v835_v8, %v3047_v6  ;;  %v872_v53 = vmax.f32 %v868_v10, %v3047_v6  ;;  %v3051_v27 = vpop.f32.mrb[63].mxu0  ;;  %v770_v10 = vld [vmem:[%s3494_s2] sm:$0xff]  ;;  %v771_v8 = vld [vmem:[%s3494_s2 + $0x8] sm:$0xff] }
 0x19c   : > { %v3054_v36 = vadd.f32 %v1167_v19, %v3051_v27  ;;  %v1203_v28 = vmax.f32 %v1199_v18, %v3051_v27  ;;  %v2159_v52 = vpack.c.bf16 %v771_v8, %v770_v10  ;;  %v779_v10 = vld [vmem:[%s3494_s2 + $0x48] sm:$0xff] }
 0x19d   : > { %v874_v59 = vmax.f32 %v871_v43, %v872_v53  ;;  %v3557_v43 = vmov 0.0   ;;  %v775_v53 = vld [vmem:[%s3494_s2 + $0x28] sm:$0xff] }
 0x19e   : > { %v1205_v46 = vmax.f32 %v1202_v47, %v1203_v28  ;;  %v3558_v47 = vmov 0.0|0.0  }
 0x19f   : > { %v875_v58 = vmax.f32 %v873_v44, %v874_v59  ;;  %v772_v44 = vld [vmem:[%s3494_s2 + $0x10] sm:$0xff]  ;;  %v837_v59 = vrot.slane %v836_v24, 4 }
 0x1a0   : > { %v3057_v25 = vmax.f32 %v1204_v37, %v1205_v46  ;;  %v773_v37 = vld [vmem:[%s3494_s2 + $0x18] sm:$0xff] }
 0x1a1   : > { %v876_v33 = vrot.slane %v875_v58, 4  ;;  %v777_v46 = vld [vmem:[%s3494_s2 + $0x38] sm:$0xff] }
 0x1a3   : > { %v877_v3 = vmax.f32 %v875_v58, %v876_v33  ;;  %v838_v33 = vadd.f32 %v837_v59, %v836_v24  ;;  %v781_v24 = vld [vmem:[%s3494_s2 + $0x58] sm:$0xff]  ;;  %v784_v59 = vld [vmem:[%s3494_s2 + $0x70] sm:$0xff] }
 0x1a5   : > { %v878_v34 = vrot.slane %v877_v3, 2 }
 0x1a7   : > { %v879_v61 = vmax.f32 %v877_v3, %v878_v34  ;;  %v2162_v34 = vpack.c.bf16 %v773_v37, %v772_v44  ;;  %v778_v3 = vld [vmem:[%s3494_s2 + $0x40] sm:$0xff] }
 0x1a8   : > { %v2171_v8 = vpack.c.bf16 %v779_v10, %v778_v3  ;;  %v803_v3 = vld [vmem:[#allocation2 + $0x8] sm:$0xff] }
 0x1a9   : > { %v880_v19 = vrot.slane %v879_v61, 1 }
 0x1ab   : > { %v881_v18 = vmax.f32 %v879_v61, %v880_v19  ;;  %v774_v61 = vld [vmem:[%s3494_s2 + $0x20] sm:$0xff]  ;;  %v839_v19 = vrot.slane %v838_v33, 2 }
 0x1ac   : > { %v2165_v28 = vpack.c.bf16 %v775_v53, %v774_v61  ;;  %v783_v61 = vld [vmem:[%s3494_s2 + $0x68] sm:$0xff] }
 0x1ad   : > { %2005 = vmatmul.mubr.f32.vlgmr.msra.gmra.mrb[0].mxu1 %v881_v18  ;;  %v780_v18 = vld [vmem:[%s3494_s2 + $0x50] sm:$0xff]  ;;  %v840_v37 = vadd.f32 %v839_v19, %v838_v33  ;;  %v802_v33 = vld [vmem:[#allocation2] sm:$0xff] }
 0x1ae   : > { %2160 = vmatpush3.bf16.msra.mxu1 %v2159_v52  ;;  %2039 = vmatprep.mubr.msk.f32.mxu1 %vm2495_vm2, %v3557_v43  ;;  %v776_v52 = vld [vmem:[%s3494_s2 + $0x30] sm:$0xff]  ;;  %v2174_v44 = vpack.c.bf16 %v781_v24, %v780_v18  ;;  %v2183_v10 = vpack.c.bf16 %v803_v3, %v802_v33  ;;  %v805_v18 = vld [vmem:[#allocation2 + $0x18] sm:$0xff] }
 0x1af   : > { %2161 = vmatprep.subr.bf16.mxu1 %v3558_v47  ;;  %v2168_v58 = vpack.c.bf16 %v777_v46, %v776_v52  ;;  %v785_v52 = vld [vmem:[%s3494_s2 + $0x78] sm:$0xff]  ;;  %v804_v19 = vld [vmem:[#allocation2 + $0x10] sm:$0xff] }
 0x1b0   : > { %v2180_v46 = vpack.c.bf16 %v785_v52, %v784_v59  ;;  %v2186_v24 = vpack.c.bf16 %v805_v18, %v804_v19  ;;  %v1121_v33 = vld [vmem:[%s3498_s6 + $0x18] sm:$0xff]  ;;  %v1124_v18 = vld [vmem:[%s3498_s6 + $0x30] sm:$0xff] }
 0x1b2   : > { %2163 = vmatpush3.bf16.msra.mxu1 %v2162_v34  ;;  %v782_v34 = vld [vmem:[%s3494_s2 + $0x60] sm:$0xff] }
 0x1b3   : > { %2164 = vmatprep.subr.bf16.mxu1 %v3558_v47  ;;  %v2177_v53 = vpack.c.bf16 %v783_v61, %v782_v34  ;;  %v1118_v61 = vld [vmem:[%s3498_s6] sm:$0xff] }
 0x1b6   : > { %2166 = vmatpush3.bf16.msra.mxu1 %v2165_v28  ;;  %v841_v28 = vrot.slane %v840_v37, 1 }
 0x1b7   : > { %2167 = vmatprep.subr.bf16.mxu1 %v3558_v47 }
 0x1ba   : > { %2169 = vmatpush3.bf16.msra.mxu1 %v2168_v58  ;;  %v842_v58 = vadd.f32 %v841_v28, %v840_v37  ;;  %v1135_v37 = vld [vmem:[#allocation4 + $0x8] sm:$0xff] }
 0x1bb   : > { %2170 = vmatprep.subr.bf16.mxu1 %v3558_v47 }
 0x1be   : > { %2172 = vmatpush3.bf16.msra.mxu1 %v2171_v8  ;;  %v844_v8 = vmul.f32 0.00390625, %v842_v58  ;;  %v1120_v58 = vld [vmem:[%s3498_s6 + $0x10] sm:$0xff] }
 0x1bf   : > { %2173 = vmatprep.subr.bf16.mxu1 %v3558_v47  ;;  %v2192_v3 = vpack.c.bf16 %v1121_v33, %v1120_v58  ;;  %v1130_v58 = vld [vmem:[%s3498_s6 + $0x60] sm:$0xff] }
 0x1c2   : > { %2175 = vmatpush3.bf16.msra.mxu1 %v2174_v44  ;;  %v1134_v44 = vld [vmem:[#allocation4] sm:$0xff] }
 0x1c3   : > { %2176 = vmatprep.subr.bf16.mxu1 %v3558_v47  ;;  %v2237_v34 = vpack.c.bf16 %v1135_v37, %v1134_v44  ;;  %v1207_v37 = vrot.slane %v3057_v25, 4 }
 0x1c5   : > { %2238 = vmatpush3.bf16.msra.mxu0 %v2237_v34  ;;  %v1126_v34 = vld [vmem:[%s3498_s6 + $0x40] sm:$0xff] }
 0x1c6   : > { %2178 = vmatpush3.bf16.msra.mxu1 %v2177_v53  ;;  %2239 = vmatprep.subr.bf16.mxu0 %v3558_v47  ;;  %v1119_v53 = vld [vmem:[%s3498_s6 + $0x8] sm:$0xff] }
 0x1c7   : > { %2179 = vmatprep.subr.bf16.mxu1 %v3558_v47  ;;  %v2189_v59 = vpack.c.bf16 %v1119_v53, %v1118_v61  ;;  %v1127_v61 = vld [vmem:[%s3498_s6 + $0x48] sm:$0xff] }
 0x1c8   : > { %v2201_v53 = vpack.c.bf16 %v1127_v61, %v1126_v34 }
 0x1ca   : > { %2181 = vmatpush3.bf16.msra.mxu1 %v2180_v46 }
 0x1cb   : > { %2182 = vmatprep.subr.bf16.mxu1 %v3558_v47 }
 0x1cd   : > { %2040 = vmatmul.mubr.f32.vlgmr.msra.gmra.mrb[0].mxu1 %v844_v8  ;;  %v1123_v8 = vld [vmem:[%s3498_s6 + $0x28] sm:$0xff] }
 0x1ce   : > { %2184 = vmatpush3.bf16.msra.mxu1 %v2183_v10  ;;  %2050 = vmatprep.mubr.msk.f32.mxu1 %vm2495_vm2, %v3557_v43  ;;  %v1122_v10 = vld [vmem:[%s3498_s6 + $0x20] sm:$0xff] }
 0x1cf   : > { %2185 = vmatprep.subr.bf16.mxu1 %v3558_v47  ;;  %v2195_v19 = vpack.c.bf16 %v1123_v8, %v1122_v10  ;;  %v1132_v10 = vld [vmem:[%s3498_s6 + $0x70] sm:$0xff]  ;;  %v1133_v8 = vld [vmem:[%s3498_s6 + $0x78] sm:$0xff] }
 0x1d2   : > { %2187 = vmatpush3.bf16.msra.mxu1 %v2186_v24  ;;  %v1125_v24 = vld [vmem:[%s3498_s6 + $0x38] sm:$0xff] }
 0x1d3   : > { %2188 = vmatprep.subr.bf16.mxu1 %v3558_v47  ;;  %v2198_v44 = vpack.c.bf16 %v1125_v24, %v1124_v18  ;;  %v2210_v18 = vpack.c.bf16 %v1133_v8, %v1132_v10  ;;  %v1110_v8 = vld [vmem:[%s3497_s5 + $0x40] sm:$0xff] }
 0x2a0   : > { %v1018_v28 = vpop.f32.mrb[0].mxu1 }
 0x2a1   : > { %v1022_v52 = vmax.f32 %v1018_v28, 0.0  ;;  %v2041_v46 = vpop.f32.mrb[1].mxu1  ;;  %v1208_v28 = vmax.f32 %v3057_v25, %v1207_v37  ;;  %v1131_v25 = vld [vmem:[%s3498_s6 + $0x68] sm:$0xff] }
 0x2a2   : > { %v1103_v37 = vld [vmem:[%s3497_s5 + $0x8] sm:$0xff] }
 0x2a3   : > { %2051 = vmatmul.mubr.msk.f32.vlgmr.msra.gmra.mrb[2].mxu1 %vm1023_vm3, %v1022_v52  ;;  %v1129_v52 = vld [vmem:[%s3498_s6 + $0x58] sm:$0xff]  ;;  %v1209_v33 = vrot.slane %v1208_v28, 2 }
 0x2a4   : > { %2190 = vmatpush3.bf16.msra.mxu1 %v2189_v59  ;;  %2085 = vmatprep.mubr.msk.f32.mxu1 %vm2495_vm2, %v3557_v43  ;;  %v1128_v59 = vld [vmem:[%s3498_s6 + $0x50] sm:$0xff] }
 0x2a5   : > { %2191 = vmatprep.subr.bf16.mxu1 %v3558_v47  ;;  %v2204_v46 = vpack.c.bf16 %v1129_v52, %v1128_v59  ;;  %v1106_v52 = vld [vmem:[%s3497_s5 + $0x20] sm:$0xff] }
 0x2a8   : > { %2193 = vmatpush3.bf16.msra.mxu1 %v2192_v3  ;;  %v2207_v3 = vpack.c.bf16 %v1131_v25, %v1130_v58  ;;  %v1169_v25 = vrot.slane %v3054_v36, 4 }
 0x2a9   : > { %2194 = vmatprep.subr.bf16.mxu1 %v3558_v47 }
 0x2aa   : > { %v1170_v10 = vadd.f32 %v1169_v25, %v3054_v36  ;;  %v1113_v36 = vld [vmem:[%s3497_s5 + $0x58] sm:$0xff] }
 0x2ac   : > { %2196 = vmatpush3.bf16.msra.mxu1 %v2195_v19  ;;  %v1210_v19 = vmax.f32 %v1208_v28, %v1209_v33  ;;  %v1105_v28 = vld [vmem:[%s3497_s5 + $0x18] sm:$0xff] }
 0x2ad   : > { %2197 = vmatprep.subr.bf16.mxu1 %v3558_v47  ;;  %v1109_v33 = vld [vmem:[%s3497_s5 + $0x38] sm:$0xff] }
 0x2ae   : > { %v1211_v24 = vrot.slane %v1210_v19, 1 }
 0x2b0   : > { %2199 = vmatpush3.bf16.msra.mxu1 %v2198_v44  ;;  %v1102_v44 = vld [vmem:[%s3497_s5] sm:$0xff]  ;;  %v1212_v61 = vmax.f32 %v1210_v19, %v1211_v24  ;;  %v1111_v19 = vld [vmem:[%s3497_s5 + $0x48] sm:$0xff]  ;;  %v1171_v24 = vrot.slane %v1170_v10, 2 }
 0x2b1   : > { %2200 = vmatprep.subr.bf16.mxu1 %v3558_v47  ;;  %v2213_v34 = vpack.c.bf16 %v1103_v37, %v1102_v44  ;;  %v1112_v44 = vld [vmem:[%s3497_s5 + $0x50] sm:$0xff] }
 0x2b2   : > { %v2228_v37 = vpack.c.bf16 %v1113_v36, %v1112_v44 }
 0x2b4   : > { %2202 = vmatpush3.bf16.msra.mxu1 %v2201_v53  ;;  %v1104_v53 = vld [vmem:[%s3497_s5 + $0x10] sm:$0xff] }
 0x2b5   : > { %2203 = vmatprep.subr.bf16.mxu1 %v3558_v47  ;;  %v2216_v59 = vpack.c.bf16 %v1105_v28, %v1104_v53  ;;  %v1115_v53 = vld [vmem:[%s3497_s5 + $0x68] sm:$0xff] }
 0x2b8   : > { %2205 = vmatpush3.bf16.msra.mxu1 %v2204_v46  ;;  %v1107_v46 = vld [vmem:[%s3497_s5 + $0x28] sm:$0xff] }
 0x2b9   : > { %2206 = vmatprep.subr.bf16.mxu1 %v3558_v47  ;;  %v2219_v58 = vpack.c.bf16 %v1107_v46, %v1106_v52  ;;  %v1116_v52 = vld [vmem:[%s3497_s5 + $0x70] sm:$0xff]  ;;  %v1117_v46 = vld [vmem:[%s3497_s5 + $0x78] sm:$0xff] }
 0x2bc   : > { %2208 = vmatpush3.bf16.msra.mxu1 %v2207_v3 }
 0x2bd   : > { %2209 = vmatprep.subr.bf16.mxu1 %v3558_v47 }
 0x2c0   : > { %2211 = vmatpush3.bf16.msra.mxu1 %v2210_v18  ;;  %v2225_v18 = vpack.c.bf16 %v1111_v19, %v1110_v8 }
 0x2c1   : > { %2212 = vmatprep.subr.bf16.mxu1 %v3558_v47 }
 0x2c3   : > { %2086 = vmatmul.mubr.f32.vlgmr.msra.gmra.mrb[4].mxu1 %v1212_v61  ;;  %v1114_v61 = vld [vmem:[%s3497_s5 + $0x60] sm:$0xff] }
 0x2c4   : > { %2214 = vmatpush3.bf16.msra.mxu1 %v2213_v34  ;;  %2120 = vmatprep.mubr.msk.f32.mxu1 %vm2495_vm2, %v3557_v43  ;;  %v1108_v43 = vld [vmem:[%s3497_s5 + $0x30] sm:$0xff]  ;;  %v1172_v34 = vadd.f32 %v1171_v24, %v1170_v10  ;;  %v2231_v28 = vpack.c.bf16 %v1115_v53, %v1114_v61 }
 0x2c5   : > { %2215 = vmatprep.subr.bf16.mxu1 %v3558_v47  ;;  %v2222_v3 = vpack.c.bf16 %v1109_v33, %v1108_v43  ;;  %v1136_v33 = vld [vmem:[#allocation4 + $0x10] sm:$0xff] }
 0x2c8   : > { %2217 = vmatpush3.bf16.msra.mxu1 %v2216_v59  ;;  %v1173_v59 = vrot.slane %v1172_v34, 1 }
 0x2c9   : > { %2218 = vmatprep.subr.bf16.mxu1 %v3558_v47 }
 0x2ca   : > { %v1174_v25 = vadd.f32 %v1173_v59, %v1172_v34 }
 0x2cc   : > { %2220 = vmatpush3.bf16.msra.mxu1 %v2219_v58  ;;  %v2234_v58 = vpack.c.bf16 %v1117_v46, %v1116_v52  ;;  %v1175_v43 = vmul.f32 0.00390625, %v1174_v25 }
 0x2cd   : > { %2221 = vmatprep.subr.bf16.mxu1 %v3558_v47 }
 0x2d0   : > { %2223 = vmatpush3.bf16.msra.mxu1 %v2222_v3  ;;  %v1137_v3 = vld [vmem:[#allocation4 + $0x18] sm:$0xff] }
 0x2d1   : > { %2224 = vmatprep.subr.bf16.mxu1 %v3558_v47  ;;  %v2240_v10 = vpack.c.bf16 %v1137_v3, %v1136_v33 }
 0x2d3   : > { %2241 = vmatpush3.bf16.msra.mxu0 %v2240_v10 }
 0x2d4   : > { %2226 = vmatpush3.bf16.msra.mxu1 %v2225_v18 }
 0x2d5   : > { %2227 = vmatprep.subr.bf16.mxu1 %v3558_v47 }
 0x2d8   : > { %2229 = vmatpush3.bf16.msra.mxu1 %v2228_v37  ;;  %v1432_v37 = vlaneseq }
 0x2d9   : > { %2230 = vmatprep.subr.bf16.mxu1 %v3558_v47 }
 0x2da   : > { %v3242_v61 = vshrl.u32 %v1432_v37, 7 }
 0x2dc   : > { %2232 = vmatpush3.bf16.msra.mxu1 %v2231_v28 }
 0x2dd   : > { %2233 = vmatprep.subr.bf16.mxu1 %v3558_v47  ;;  %v1434_v47 = vsub.s32 0, %v3242_v61 }
 0x2e0   : > { %2235 = vmatpush3.bf16.msra.mxu1 %v2234_v58 }
 0x2e3   : > { %2121 = vmatmul.mubr.f32.vlgmr.msra.gmra.mrb[4].mxu1 %v1175_v43 }
 0x376   : > { %v1093_v8 = vpop.f32.mrb[2].mxu1 }
 0x377   : > { %v1097_v19 = vsub.f32 0.0, %v1093_v8  ;;  %v2052_v18 = vpop.f32.mrb[3].mxu1 }
 0x379   : > { %v1098_v24 = vmul.f32 1.442695, %v1097_v19 }
 0x37b   : > { %2281 = vpow2.f32 %v1098_v24 }
 0x385   : > { %v2282_v44 = vpop.eup %2281 }
 0x386   : > { %v1100_v36 = vadd.f32 1.0, %v2282_v44 }
 0x388   : > { %2283 = vrcp.f32 %v1100_v36 }
 0x392   : > { %v2284_v34 = vpop.eup %2283 }
 0x393   : > { %v1435_v53 = vrot.slane %v2284_v34, %v1434_v47 }
 0x395   : > { %v1436_v28 = vmul.f32 %v1435_v53, %v2773_v51  ;;  %v1437_v59 = vmul.f32 %v1435_v53, %v2784_v56  ;;  %v1438_v52 = vmul.f32 %v1435_v53, %v2799_v63  ;;  %v1439_v46 = vmul.f32 %v1435_v53, %v2816_v7 }
 0x396   : > { %v1440_v58 = vmul.f32 %v1435_v53, %v2823_v11  ;;  %v1441_v25 = vmul.f32 %v1435_v53, %v2833_v17  ;;  %v1442_v43 = vmul.f32 %v1435_v53, %v2843_v23  ;;  %v1443_v33 = vmul.f32 %v1435_v53, %v2853_v29 }
 0x397   : > { %v1444_v51 = vmul.f32 %v1435_v53, %v2863_v35  ;;  %v1445_v56 = vmul.f32 %v1435_v53, %v2871_v42  ;;  %v1446_v63 = vmul.f32 %v1435_v53, %v2879_v48  ;;  %v1447_v7 = vmul.f32 %v1435_v53, %v2887_v57  ;;  %1468 = vst [vmem:[%s3251_s23] sm:$0xff] %v1436_v28 }
 0x398   : > { %1469 = vst [vmem:[%s3251_s23 + $0x8] sm:$0xff] %v1437_v59  ;;  %1470 = vst [vmem:[%s3251_s23 + $0x10] sm:$0xff] %v1438_v52  ;;  %v1448_v11 = vmul.f32 %v1435_v53, %v2895_v2  ;;  %v1449_v17 = vmul.f32 %v1435_v53, %v2903_v12  ;;  %v1450_v23 = vmul.f32 %v1435_v53, %v2911_v21  ;;  %v3560_v59 = vld [vmem:[#allocation9_spill] sm:$0xff]  ;;  %v3561_v52 = vld [vmem:[#allocation10_spill] sm:$0xff] }
 0x399   : > { %1471 = vst [vmem:[%s3251_s23 + $0x18] sm:$0xff] %v1439_v46  ;;  %v1451_v29 = vmul.f32 %v1435_v53, %v2919_v30  ;;  %1472 = vst [vmem:[%s3251_s23 + $0x20] sm:$0xff] %v1440_v58  ;;  %v1452_v35 = vmul.f32 %v1435_v53, %v2927_v40  ;;  %v1453_v42 = vmul.f32 %v1435_v53, %v2935_v49  ;;  %v3562_v46 = vld [vmem:[#allocation11_spill] sm:$0xff]  ;;  %v3563_v58 = vld [vmem:[#allocation12_spill] sm:$0xff] }
 0x39a   : > { %1473 = vst [vmem:[%s3251_s23 + $0x28] sm:$0xff] %v1441_v25  ;;  %1474 = vst [vmem:[%s3251_s23 + $0x30] sm:$0xff] %v1442_v43  ;;  %v1454_v48 = vmul.f32 %v1435_v53, %v2943_v62  ;;  %v1455_v57 = vmul.f32 %v1435_v53, %v2951_v13  ;;  %v1456_v2 = vmul.f32 %v1435_v53, %v2959_v31 }
 0x39b   : > { %1475 = vst [vmem:[%s3251_s23 + $0x38] sm:$0xff] %v1443_v33  ;;  %1476 = vst [vmem:[%s3251_s23 + $0x40] sm:$0xff] %v1444_v51  ;;  %v1457_v12 = vmul.f32 %v1435_v53, %v2967_v50  ;;  %v1458_v21 = vmul.f32 %v1435_v53, %v2975_v15  ;;  %v1459_v30 = vmul.f32 %v1435_v53, %v2983_v0  ;;  %v3568_v51 = vld [vmem:[#allocation17_spill] sm:$0xff] }
 0x39c   : > { %1477 = vst [vmem:[%s3251_s23 + $0x48] sm:$0xff] %v1445_v56  ;;  %1478 = vst [vmem:[%s3251_s23 + $0x50] sm:$0xff] %v1446_v63  ;;  %v1460_v40 = vmul.f32 %v1435_v53, %v2991_v1  ;;  %v1461_v49 = vmul.f32 %v1435_v53, %v2999_v38  ;;  %v1462_v62 = vmul.f32 %v1435_v53, %v3007_v41  ;;  %v3569_v63 = vld [vmem:[#allocation18_spill] sm:$0xff] }
 0x39d   : > { %1479 = vst [vmem:[%s3251_s23 + $0x58] sm:$0xff] %v1447_v7  ;;  %1480 = vst [vmem:[%s3251_s23 + $0x60] sm:$0xff] %v1448_v11  ;;  %v1463_v13 = vmul.f32 %v1435_v53, %v3015_v22  ;;  %v1464_v0 = vmul.f32 %v1435_v53, %v3023_v5  ;;  %v1465_v31 = vmul.f32 %v1435_v53, %v3031_v55  ;;  %v3570_v11 = vld [vmem:[#allocation19_spill] sm:$0xff] }
 0x39e   : > { %1481 = vst [vmem:[%s3251_s23 + $0x68] sm:$0xff] %v1449_v17  ;;  %1482 = vst [vmem:[%s3251_s23 + $0x70] sm:$0xff] %v1450_v23  ;;  %v1466_v38 = vmul.f32 %v1435_v53, %v3039_v16  ;;  %v1467_v41 = vmul.f32 %v1435_v53, %v3047_v6  ;;  %v3571_v23 = vld [vmem:[#allocation20_spill] sm:$0xff] }
 0x39f   : > { %1483 = vst [vmem:[%s3251_s23 + $0x78] sm:$0xff] %v1451_v29  ;;  %1484 = vst [vmem:[%s3251_s23 + $0x80] sm:$0xff] %v1452_v35  ;;  %v3572_v35 = vld [vmem:[#allocation21_spill] sm:$0xff] }
 0x3a0   : > { %1485 = vst [vmem:[%s3251_s23 + $0x88] sm:$0xff] %v1453_v42  ;;  %1486 = vst [vmem:[%s3251_s23 + $0x90] sm:$0xff] %v1454_v48  ;;  %v3573_v48 = vld [vmem:[#allocation22_spill] sm:$0xff] }
 0x3a1   : > { %1487 = vst [vmem:[%s3251_s23 + $0x98] sm:$0xff] %v1455_v57  ;;  %1488 = vst [vmem:[%s3251_s23 + $0xa0] sm:$0xff] %v1456_v2  ;;  %v3574_v2 = vld [vmem:[#allocation23_spill] sm:$0xff] }
 0x3a2   : > { %1489 = vst [vmem:[%s3251_s23 + $0xa8] sm:$0xff] %v1457_v12  ;;  %1490 = vst [vmem:[%s3251_s23 + $0xb0] sm:$0xff] %v1458_v21  ;;  %v3575_v21 = vld [vmem:[#allocation24_spill] sm:$0xff] }
 0x3a3   : > { %1491 = vst [vmem:[%s3251_s23 + $0xb8] sm:$0xff] %v1459_v30  ;;  %1492 = vst [vmem:[%s3251_s23 + $0xc0] sm:$0xff] %v1460_v40  ;;  %v3576_v40 = vld [vmem:[#allocation25_spill] sm:$0xff] }
 0x3a4   : > { %1493 = vst [vmem:[%s3251_s23 + $0xc8] sm:$0xff] %v1461_v49  ;;  %1494 = vst [vmem:[%s3251_s23 + $0xd0] sm:$0xff] %v1462_v62  ;;  %v3577_v62 = vld [vmem:[#allocation26_spill] sm:$0xff] }
 0x3a5   : > { %1495 = vst [vmem:[%s3251_s23 + $0xd8] sm:$0xff] %v1463_v13  ;;  %1496 = vst [vmem:[%s3251_s23 + $0xe0] sm:$0xff] %v1464_v0  ;;  %v3578_v0 = vld [vmem:[#allocation27_spill] sm:$0xff] }
 0x3a6   : > { %1497 = vst [vmem:[%s3251_s23 + $0xe8] sm:$0xff] %v1465_v31  ;;  %1498 = vst [vmem:[%s3251_s23 + $0xf0] sm:$0xff] %v1466_v38  ;;  %v3579_v38 = vld [vmem:[#allocation28_spill] sm:$0xff] }
 0x3a7   : > { %1499 = vst [vmem:[%s3251_s23 + $0xf8] sm:$0xff] %v1467_v41 }
 0x3b6   : > { %v1349_v22 = vpop.f32.mrb[4].mxu1 }
 0x3b7   : > { %v1353_v5 = vmax.f32 %v1349_v22, 0.0  ;;  %v2122_v50 = vpop.f32.mrb[5].mxu1 }
 0x3b9   : > { %2132 = vmatmul.mubr.msk.f32.vlgmr.msra.gmra.mrb[64].mxu0 %vm1023_vm3, %v1353_v5 }
 0x48c   : > { %v1423_v16 = vpop.f32.mrb[64].mxu0 }
 0x48d   : > { %v1427_v55 = vsub.f32 0.0, %v1423_v16  ;;  %v2133_v6 = vpop.f32.mrb[65].mxu0 }
 0x48f   : > { %v1428_v1 = vmul.f32 1.442695, %v1427_v55 }
 0x491   : > { %2285 = vpow2.f32 %v1428_v1 }
 0x49b   : > { %v2286_v15 = vpop.eup %2285 }
 0x49c   : > { %v1430_v3 = vadd.f32 1.0, %v2286_v15 }
 0x49e   : > { %2287 = vrcp.f32 %v1430_v3 }
 0x4a8   : > { %v2288_v10 = vpop.eup %2287 }
 0x4a9   : > { %v1503_v8 = vrot.slane %v2288_v10, %v1434_v47  ;;  %v3559_v47 = vld [vmem:[#allocation8_spill] sm:$0xff] }
 0x4ab   : > { %v1504_v19 = vmul.f32 %v1503_v8, %v2782_v54  ;;  %v1505_v18 = vmul.f32 %v1503_v8, %v2795_v60  ;;  %v1506_v24 = vmul.f32 %v1503_v8, %v2809_v4  ;;  %v1507_v44 = vmul.f32 %v1503_v8, %v2820_v9 }
 0x4ac   : > { %v1508_v36 = vmul.f32 %v1503_v8, %v2828_v14  ;;  %v1509_v37 = vmul.f32 %v1503_v8, %v2838_v20  ;;  %v1510_v34 = vmul.f32 %v1503_v8, %v2848_v26  ;;  %v1511_v53 = vmul.f32 %v1503_v8, %v2858_v32  ;;  %v3564_v20 = vld [vmem:[#allocation13_spill] sm:$0xff]  ;;  %v3565_v26 = vld [vmem:[#allocation14_spill] sm:$0xff] }
 0x4ad   : > { %v1512_v28 = vmul.f32 %v1503_v8, %v2867_v39  ;;  %v1513_v61 = vmul.f32 %v1503_v8, %v2875_v45  ;;  %v1514_v54 = vmul.f32 %v1503_v8, %v3559_v47  ;;  %v1515_v60 = vmul.f32 %v1503_v8, %v3560_v59  ;;  %v3566_v39 = vld [vmem:[#allocation15_spill] sm:$0xff]  ;;  %v3567_v45 = vld [vmem:[#allocation16_spill] sm:$0xff] }
 0x4ae   : > { %v1516_v4 = vmul.f32 %v1503_v8, %v3561_v52  ;;  %v1517_v9 = vmul.f32 %v1503_v8, %v3562_v46  ;;  %v3335_v14 = vmul.f32 %v1503_v8, %v3563_v58  ;;  %v3338_v25 = vmul.f32 %v1503_v8, %v3564_v20 }
 0x4af   : > { %v3341_v32 = vmul.f32 %v1503_v8, %v3565_v26  ;;  %v3344_v43 = vmul.f32 %v1503_v8, %v3566_v39  ;;  %v3347_v33 = vmul.f32 %v1503_v8, %v3567_v45  ;;  %v3350_v56 = vmul.f32 %v1503_v8, %v3568_v51 }
 0x4b0   : > { %v3353_v7 = vmul.f32 %v1503_v8, %v3569_v63  ;;  %v3356_v17 = vmul.f32 %v1503_v8, %v3570_v11  ;;  %v3359_v29 = vmul.f32 %v1503_v8, %v3571_v23  ;;  %v3362_v42 = vmul.f32 %v1503_v8, %v3572_v35 }
 0x4b1   : > { %v3365_v57 = vmul.f32 %v1503_v8, %v3573_v48  ;;  %v3368_v12 = vmul.f32 %v1503_v8, %v3574_v2  ;;  %v3371_v30 = vmul.f32 %v1503_v8, %v3575_v21  ;;  %v3374_v49 = vmul.f32 %v1503_v8, %v3576_v40 }
 0x4b2   : > { %v3377_v13 = vmul.f32 %v1503_v8, %v3577_v62  ;;  %v3380_v31 = vmul.f32 %v1503_v8, %v3578_v0  ;;  %v3383_v41 = vmul.f32 %v1503_v8, %v3579_v38  ;;  %v3386_v22 = vmul.f32 %v1503_v8, %v3051_v27 }
 0x4b3   : > { %v1536_v5 = vsub.f32 0.0, %v1504_v19  ;;  %v1537_v50 = vsub.f32 0.0, %v1505_v18  ;;  %v1538_v16 = vsub.f32 0.0, %v1506_v24  ;;  %v1539_v55 = vsub.f32 0.0, %v1507_v44 }
 0x4b4   : > { %v1540_v6 = vsub.f32 0.0, %v1508_v36  ;;  %v1541_v1 = vsub.f32 0.0, %v1509_v37  ;;  %v1542_v15 = vsub.f32 0.0, %v1510_v34  ;;  %v1543_v59 = vsub.f32 0.0, %v1511_v53 }
 0x4b5   : > { %v1568_v3 = vmul.f32 1.442695, %v1536_v5  ;;  %v1570_v10 = vmul.f32 1.442695, %v1537_v50  ;;  %v1572_v47 = vmul.f32 1.442695, %v1538_v16 }
 0x4b6   : > { %v1574_v52 = vmul.f32 1.442695, %v1539_v55  ;;  %v1544_v46 = vsub.f32 0.0, %v1512_v28  ;;  %v1576_v58 = vmul.f32 1.442695, %v1540_v6  ;;  %v1545_v20 = vsub.f32 0.0, %v1513_v61 }
 0x4b7   : > { %2289 = vpow2.f32 %v1568_v3  ;;  %v1578_v26 = vmul.f32 1.442695, %v1541_v1  ;;  %v1546_v27 = vsub.f32 0.0, %v1514_v54  ;;  %v1580_v8 = vmul.f32 1.442695, %v1542_v15 }
 0x4b8   : > { %2291 = vpow2.f32 %v1570_v10  ;;  %v1547_v19 = vsub.f32 0.0, %v1515_v60  ;;  %v1582_v18 = vmul.f32 1.442695, %v1543_v59  ;;  %v1548_v24 = vsub.f32 0.0, %v1516_v4 }
 0x4b9   : > { %2293 = vpow2.f32 %v1572_v47  ;;  %v1584_v44 = vmul.f32 1.442695, %v1544_v46  ;;  %v1549_v36 = vsub.f32 0.0, %v1517_v9  ;;  %v1586_v37 = vmul.f32 1.442695, %v1545_v20 }
 0x4ba   : > { %2295 = vpow2.f32 %v1574_v52  ;;  %v1550_v34 = vsub.f32 0.0, %v3335_v14  ;;  %v1588_v53 = vmul.f32 1.442695, %v1546_v27  ;;  %v1551_v28 = vsub.f32 0.0, %v3338_v25 }
 0x4bb   : > { %2297 = vpow2.f32 %v1576_v58  ;;  %v1590_v61 = vmul.f32 1.442695, %v1547_v19  ;;  %v1552_v54 = vsub.f32 0.0, %v3341_v32  ;;  %v1592_v60 = vmul.f32 1.442695, %v1548_v24 }
 0x4bc   : > { %2299 = vpow2.f32 %v1578_v26  ;;  %v1553_v39 = vsub.f32 0.0, %v3344_v43  ;;  %v1594_v4 = vmul.f32 1.442695, %v1549_v36  ;;  %v1554_v9 = vsub.f32 0.0, %v3347_v33 }
 0x4bd   : > { %2301 = vpow2.f32 %v1580_v8  ;;  %v1596_v14 = vmul.f32 1.442695, %v1550_v34  ;;  %v1555_v25 = vsub.f32 0.0, %v3350_v56  ;;  %v1598_v63 = vmul.f32 1.442695, %v1551_v28 }
 0x4be   : > { %2303 = vpow2.f32 %v1582_v18  ;;  %v1556_v32 = vsub.f32 0.0, %v3353_v7  ;;  %v1600_v43 = vmul.f32 1.442695, %v1552_v54  ;;  %v1557_v35 = vsub.f32 0.0, %v3356_v17 }
 0x4bf   : > { %2305 = vpow2.f32 %v1584_v44  ;;  %v1602_v33 = vmul.f32 1.442695, %v1553_v39  ;;  %v1558_v2 = vsub.f32 0.0, %v3359_v29  ;;  %v1604_v56 = vmul.f32 1.442695, %v1554_v9 }
 0x4c0   : > { %2307 = vpow2.f32 %v1586_v37  ;;  %v1559_v40 = vsub.f32 0.0, %v3362_v42  ;;  %v1606_v7 = vmul.f32 1.442695, %v1555_v25  ;;  %v1560_v0 = vsub.f32 0.0, %v3365_v57 }
 0x4c1   : > { %v3392_v45 = vpop.eup %2289  ;;  %2309 = vpow2.f32 %v1588_v53  ;;  %v1608_v38 = vmul.f32 1.442695, %v1556_v32  ;;  %v1561_v5 = vsub.f32 0.0, %v3368_v12  ;;  %v1610_v50 = vmul.f32 1.442695, %v1557_v35 }
 0x4c2   : > { %v3395_v51 = vpop.eup %2291  ;;  %2311 = vpow2.f32 %v1590_v61  ;;  %v1562_v29 = vsub.f32 0.0, %v3371_v30  ;;  %v1612_v55 = vmul.f32 1.442695, %v1558_v2  ;;  %v1563_v42 = vsub.f32 0.0, %v3374_v49 }
 0x4c3   : > { %v3398_v11 = vpop.eup %2293  ;;  %2313 = vpow2.f32 %v1592_v60  ;;  %v1614_v1 = vmul.f32 1.442695, %v1559_v40  ;;  %v1564_v57 = vsub.f32 0.0, %v3377_v13  ;;  %v1616_v3 = vmul.f32 1.442695, %v1560_v0 }
 0x4c4   : > { %v3401_v23 = vpop.eup %2295  ;;  %2315 = vpow2.f32 %v1594_v4  ;;  %v1565_v12 = vsub.f32 0.0, %v3380_v31  ;;  %v1618_v47 = vmul.f32 1.442695, %v1561_v5  ;;  %v1566_v30 = vsub.f32 0.0, %v3383_v41 }
 0x4c5   : > { %v3404_v48 = vpop.eup %2297  ;;  %2317 = vpow2.f32 %v1596_v14  ;;  %v1620_v52 = vmul.f32 1.442695, %v1562_v29  ;;  %v1567_v49 = vsub.f32 0.0, %v3386_v22  ;;  %v1622_v58 = vmul.f32 1.442695, %v1563_v42 }
 0x4c6   : > { %v3407_v21 = vpop.eup %2299  ;;  %2319 = vpow2.f32 %v1598_v63  ;;  %v1624_v13 = vmul.f32 1.442695, %v1564_v57  ;;  %v1626_v27 = vmul.f32 1.442695, %v1565_v12  ;;  %v1628_v31 = vmul.f32 1.442695, %v1566_v30 }
 0x4c7   : > { %v2302_v62 = vpop.eup %2301  ;;  %2321 = vpow2.f32 %v1600_v43  ;;  %v1630_v18 = vmul.f32 1.442695, %v1567_v49  ;;  %v1632_v24 = vadd.f32 1.0, %v3392_v45  ;;  %v1633_v22 = vadd.f32 1.0, %v3395_v51 }
 0x4c8   : > { %v2304_v17 = vpop.eup %2303  ;;  %2323 = vpow2.f32 %v1602_v33  ;;  %v1634_v37 = vadd.f32 1.0, %v3398_v11  ;;  %v1635_v53 = vadd.f32 1.0, %v3401_v23  ;;  %v1636_v61 = vadd.f32 1.0, %v3404_v48 }
 0x4c9   : > { %v2306_v16 = vpop.eup %2305  ;;  %2325 = vpow2.f32 %v1604_v56  ;;  %v1637_v60 = vadd.f32 1.0, %v3407_v21  ;;  %v1638_v4 = vadd.f32 1.0, %v2302_v62  ;;  %v1639_v9 = vadd.f32 1.0, %v2304_v17 }
 0x4ca   : > { %v2308_v6 = vpop.eup %2307  ;;  %2327 = vpow2.f32 %v1606_v7  ;;  %v1640_v51 = vadd.f32 1.0, %v2306_v16 }
 0x4cb   : > { %v2310_v15 = vpop.eup %2309  ;;  %2329 = vpow2.f32 %v1608_v38  ;;  %v1641_v63 = vadd.f32 1.0, %v2308_v6 }
 0x4cc   : > { %v2312_v10 = vpop.eup %2311  ;;  %2331 = vpow2.f32 %v1610_v50  ;;  %v1642_v32 = vadd.f32 1.0, %v2310_v15 }
 0x4cd   : > { %v2314_v59 = vpop.eup %2313  ;;  %2333 = vpow2.f32 %v1612_v55  ;;  %v1643_v23 = vadd.f32 1.0, %v2312_v10 }
 0x4ce   : > { %v2316_v46 = vpop.eup %2315  ;;  %2335 = vpow2.f32 %v1614_v1  ;;  %v1644_v33 = vadd.f32 1.0, %v2314_v59 }
 0x4cf   : > { %v2318_v20 = vpop.eup %2317  ;;  %2337 = vpow2.f32 %v1616_v3  ;;  %v1645_v2 = vadd.f32 1.0, %v2316_v46 }
 0x4d0   : > { %v2320_v26 = vpop.eup %2319  ;;  %2339 = vpow2.f32 %v1618_v47  ;;  %v1646_v21 = vadd.f32 1.0, %v2318_v20 }
 0x4d1   : > { %v2322_v8 = vpop.eup %2321  ;;  %2341 = vpow2.f32 %v1620_v52  ;;  %v1647_v7 = vadd.f32 1.0, %v2320_v26 }
 0x4d2   : > { %v2324_v19 = vpop.eup %2323  ;;  %2343 = vpow2.f32 %v1622_v58  ;;  %v1648_v0 = vadd.f32 1.0, %v2322_v8 }
 0x4d3   : > { %v2326_v41 = vpop.eup %2325  ;;  %2345 = vpow2.f32 %v1624_v13  ;;  %v1649_v17 = vadd.f32 1.0, %v2324_v19 }
 0x4d4   : > { %v2328_v44 = vpop.eup %2327  ;;  %2347 = vpow2.f32 %v1626_v27  ;;  %v1650_v50 = vadd.f32 1.0, %v2326_v41 }
 0x4d5   : > { %v2330_v36 = vpop.eup %2329  ;;  %2349 = vpow2.f32 %v1628_v31  ;;  %v1651_v29 = vadd.f32 1.0, %v2328_v44 }
 0x4d6   : > { %v2332_v34 = vpop.eup %2331  ;;  %2351 = vpow2.f32 %v1630_v18  ;;  %v1652_v6 = vadd.f32 1.0, %v2330_v36 }
 0x4d7   : > { %v2334_v28 = vpop.eup %2333  ;;  %2353 = vrcp.f32 %v1632_v24  ;;  %v1653_v1 = vadd.f32 1.0, %v2332_v34 }
 0x4d8   : > { %v3423_v54 = vpop.eup %2335  ;;  %2355 = vrcp.f32 %v1633_v22  ;;  %v1654_v57 = vadd.f32 1.0, %v2334_v28 }
 0x4d9   : > { %v3426_v39 = vpop.eup %2337  ;;  %2357 = vrcp.f32 %v1634_v37  ;;  %v1655_v10 = vadd.f32 1.0, %v3423_v54 }
 0x4da   : > { %v3428_v45 = vpop.eup %2339  ;;  %2359 = vrcp.f32 %v1635_v53  ;;  %v1656_v47 = vadd.f32 1.0, %v3426_v39 }
 0x4db   : > { %v3430_v14 = vpop.eup %2341  ;;  %2361 = vrcp.f32 %v1636_v61  ;;  %v1657_v30 = vadd.f32 1.0, %v3428_v45 }
 0x4dc   : > { %v3432_v25 = vpop.eup %2343  ;;  %2363 = vrcp.f32 %v1637_v60  ;;  %v1658_v46 = vadd.f32 1.0, %v3430_v14 }
 0x4dd   : > { %v3434_v11 = vpop.eup %2345  ;;  %2365 = vrcp.f32 %v1638_v4  ;;  %v1659_v58 = vadd.f32 1.0, %v3432_v25 }
 0x4de   : > { %v3436_v43 = vpop.eup %2347  ;;  %2367 = vrcp.f32 %v1639_v9  ;;  %v1660_v13 = vadd.f32 1.0, %v3434_v11 }
 0x4df   : > { %v3438_v35 = vpop.eup %2349  ;;  %2369 = vrcp.f32 %v1640_v51  ;;  %v1661_v27 = vadd.f32 1.0, %v3436_v43 }
 0x4e0   : > { %v3446_v48 = vpop.eup %2351  ;;  %2371 = vrcp.f32 %v1641_v63  ;;  %v1662_v31 = vadd.f32 1.0, %v3438_v35 }
 0x4e1   : > { %v2354_v56 = vpop.eup %2353  ;;  %2373 = vrcp.f32 %v1642_v32  ;;  %v1663_v18 = vadd.f32 1.0, %v3446_v48 }
 0x4e2   : > { %v2356_v40 = vpop.eup %2355  ;;  %2375 = vrcp.f32 %v1643_v23  ;;  %1696 = vst [vmem:[%s3444_s10] sm:$0xff] %v2354_v56 }
 0x4e3   : > { %v2358_v62 = vpop.eup %2357  ;;  %2377 = vrcp.f32 %v1644_v33  ;;  %1697 = vst [vmem:[%s3444_s10 + $0x8] sm:$0xff] %v2356_v40 }
 0x4e4   : > { %v2360_v38 = vpop.eup %2359  ;;  %2379 = vrcp.f32 %v1645_v2  ;;  %1698 = vst [vmem:[%s3444_s10 + $0x10] sm:$0xff] %v2358_v62 }
 0x4e5   : > { %v2362_v5 = vpop.eup %2361  ;;  %2381 = vrcp.f32 %v1646_v21  ;;  %1699 = vst [vmem:[%s3444_s10 + $0x18] sm:$0xff] %v2360_v38 }
 0x4e6   : > { %v2364_v16 = vpop.eup %2363  ;;  %2383 = vrcp.f32 %v1647_v7  ;;  %1700 = vst [vmem:[%s3444_s10 + $0x20] sm:$0xff] %v2362_v5 }
 0x4e7   : > { %v2366_v55 = vpop.eup %2365  ;;  %2385 = vrcp.f32 %v1648_v0  ;;  %1701 = vst [vmem:[%s3444_s10 + $0x28] sm:$0xff] %v2364_v16 }
 0x4e8   : > { %v2368_v42 = vpop.eup %2367  ;;  %2387 = vrcp.f32 %v1649_v17  ;;  %1702 = vst [vmem:[%s3444_s10 + $0x30] sm:$0xff] %v2366_v55 }
 0x4e9   : > { %v2370_v15 = vpop.eup %2369  ;;  %2389 = vrcp.f32 %v1650_v50  ;;  %1703 = vst [vmem:[%s3444_s10 + $0x38] sm:$0xff] %v2368_v42 }
 0x4ea   : > { %v2372_v3 = vpop.eup %2371  ;;  %2391 = vrcp.f32 %v1651_v29  ;;  %1704 = vst [vmem:[%s3444_s10 + $0x40] sm:$0xff] %v2370_v15 }
 0x4eb   : > { %v2374_v12 = vpop.eup %2373  ;;  %2393 = vrcp.f32 %v1652_v6  ;;  %1705 = vst [vmem:[%s3444_s10 + $0x48] sm:$0xff] %v2372_v3 }
 0x4ec   : > { %v2376_v59 = vpop.eup %2375  ;;  %2395 = vrcp.f32 %v1653_v1  ;;  %1706 = vst [vmem:[%s3444_s10 + $0x50] sm:$0xff] %v2374_v12 }
 0x4ed   : > { %v2378_v52 = vpop.eup %2377  ;;  %2397 = vrcp.f32 %v1654_v57  ;;  %1707 = vst [vmem:[%s3444_s10 + $0x58] sm:$0xff] %v2376_v59 }
 0x4ee   : > { %v2380_v49 = vpop.eup %2379  ;;  %2399 = vrcp.f32 %v1655_v10  ;;  %1708 = vst [vmem:[%s3444_s10 + $0x60] sm:$0xff] %v2378_v52 }
 0x4ef   : > { %v2382_v20 = vpop.eup %2381  ;;  %2401 = vrcp.f32 %v1656_v47  ;;  %1709 = vst [vmem:[%s3444_s10 + $0x68] sm:$0xff] %v2380_v49 }
 0x4f0   : > { %v2384_v26 = vpop.eup %2383  ;;  %2403 = vrcp.f32 %v1657_v30  ;;  %1710 = vst [vmem:[%s3444_s10 + $0x70] sm:$0xff] %v2382_v20 }
 0x4f1   : > { %v2386_v8 = vpop.eup %2385  ;;  %2405 = vrcp.f32 %v1658_v46  ;;  %1711 = vst [vmem:[%s3444_s10 + $0x78] sm:$0xff] %v2384_v26 }
 0x4f2   : > { %v2388_v19 = vpop.eup %2387  ;;  %2407 = vrcp.f32 %v1659_v58  ;;  %1712 = vst [vmem:[%s3444_s10 + $0x80] sm:$0xff] %v2386_v8 }
 0x4f3   : > { %v2390_v41 = vpop.eup %2389  ;;  %2409 = vrcp.f32 %v1660_v13  ;;  %1713 = vst [vmem:[%s3444_s10 + $0x88] sm:$0xff] %v2388_v19 }
 0x4f4   : > { %v2392_v24 = vpop.eup %2391  ;;  %2411 = vrcp.f32 %v1661_v27  ;;  %1714 = vst [vmem:[%s3444_s10 + $0x90] sm:$0xff] %v2390_v41 }
 0x4f5   : > { %v2394_v44 = vpop.eup %2393  ;;  %2413 = vrcp.f32 %v1662_v31  ;;  %1715 = vst [vmem:[%s3444_s10 + $0x98] sm:$0xff] %v2392_v24 }
 0x4f6   : > { %v2396_v22 = vpop.eup %2395  ;;  %2415 = vrcp.f32 %v1663_v18  ;;  %1716 = vst [vmem:[%s3444_s10 + $0xa0] sm:$0xff] %v2394_v44 }
 0x4f7   : > { %v2398_v36 = vpop.eup %2397  ;;  %1717 = vst [vmem:[%s3444_s10 + $0xa8] sm:$0xff] %v2396_v22 }
 0x4f8   : > { %v2400_v37 = vpop.eup %2399  ;;  %1718 = vst [vmem:[%s3444_s10 + $0xb0] sm:$0xff] %v2398_v36 }
 0x4f9   : > { %v2402_v34 = vpop.eup %2401  ;;  %1719 = vst [vmem:[%s3444_s10 + $0xb8] sm:$0xff] %v2400_v37 }
 0x4fa   : > { %v2404_v53 = vpop.eup %2403  ;;  %1720 = vst [vmem:[%s3444_s10 + $0xc0] sm:$0xff] %v2402_v34 }
 0x4fb   : > { %v2406_v28 = vpop.eup %2405  ;;  %1721 = vst [vmem:[%s3444_s10 + $0xc8] sm:$0xff] %v2404_v53 }
 0x4fc   : > { %v2408_v61 = vpop.eup %2407  ;;  %1722 = vst [vmem:[%s3444_s10 + $0xd0] sm:$0xff] %v2406_v28 }
 0x4fd   : > { %v2410_v54 = vpop.eup %2409  ;;  %1723 = vst [vmem:[%s3444_s10 + $0xd8] sm:$0xff] %v2408_v61 }
 0x4fe   : > { %v2412_v60 = vpop.eup %2411  ;;  %1724 = vst [vmem:[%s3444_s10 + $0xe0] sm:$0xff] %v2410_v54 }
 0x4ff   : > { %v2414_v39 = vpop.eup %2413  ;;  %1725 = vst [vmem:[%s3444_s10 + $0xe8] sm:$0xff] %v2412_v60 }
 0x500   : > { %v2416_v4 = vpop.eup %2415  ;;  %1726 = vst [vmem:[%s3444_s10 + $0xf0] sm:$0xff] %v2414_v39 }
 0x501   : > { %1727 = vst [vmem:[%s3444_s10 + $0xf8] sm:$0xff] %v2416_v4 }
 0x502 PF: > { %s22_s30 = sadd.s32 1, %s2487_s30  }
 0x503   : > { %p19_p5 = scmp.ge.s32.totalorder %s22_s30, 4  }
 0x505   :  { %21 = sbr.rel (!%p19_p5) target bundleno = 2 (0x2), region = 103 }
 0x50c   :  { %1765 = vsyncpa [#allocation3], 1 }
 0x50d   :  { %1767 = vsyncpa [#allocation3 + $0x1], 1 }
 0x50e   :  { %1768 = vsyncpa [#allocation5], 1 }

// kernel: gru2d_forward.6
= control target key start
LH: loop header
LB: loop body
LE: loop exit
PB: predicated region body
PF: predicated region fallthrough
CT: control target
= control target key end

     0   :  { %s1998_s0 = inlined_call_operand.vmem [shape: s32[2], index: 0, kind: input, shape index: {}]   ;;  %s1999_s2 = inlined_call_operand.vmem [shape: f32[2,16,2,256], index: 2, kind: input, shape index: {}]   ;;  %s2000_s3 = inlined_call_operand.vmem [shape: f32[2,16,2,256], index: 3, kind: input, shape index: {}]   ;;  %s2001_s4 = inlined_call_operand.vmem [shape: f32[2,1,256], index: 4, kind: input, shape index: {}]   ;;  %s2002_s5 = inlined_call_operand.vmem [shape: f32[2,16,2,256], index: 5, kind: output, shape index: {}]   ;;  %s2003_s1 = inlined_call_operand.vmem [shape: s32[2], index: 1, kind: input, shape index: {}]  }
   0x1   :  { %s10_s20 = sshll.u32 %s1998_s0, 4  ;;  %s14_s23 = sshll.u32 %s2003_s1, 4  ;;  %s11_s20 = int_to_ptr.vmem [resolvable:$true] %s10_s20  ;;  %s15_s23 = int_to_ptr.vmem [resolvable:$true] %s14_s23 }
   0x2   :  { %s1464_s24 = scalar_lea.vmem %s11_s20, 16  ;;  %p1469_p1 = scmp.lt.s32.totalorder %s11_s20, %s11_s20 }
   0x3   :  { %p1465_p0 = scmp.ne.s32.totalorder %s11_s20, %s1464_s24  ;;  %p1470_p2 = scmp.lt.s32.totalorder %s1464_s24, %s1464_s24 }
   0x5   :  { %p1471_p3 = por %p1470_p2, %p1469_p1 }
   0x7   :  { %p1472_p4 = pnand %p1471_p3, %p1465_p0 }
   0x9   :  { %1475 = shalt.err (!%p1472_p4)  }
   0xa   :  { %s1498_s25 = smov [#allocation3]   ;;  %s1476_s26 = scalar_lea.vmem %s15_s23, 16 }
   0xb   :  { %13 = dma.vmem_to_smem %s11_s20, 16, %s1498_s25, [#allocation2] }
   0xc   :  { %p1477_p5 = scmp.ne.s32.totalorder %s15_s23, %s1476_s26  ;;  %p1481_p6 = scmp.lt.s32.totalorder %s15_s23, %s15_s23 }
   0xd   :  { %p1482_p7 = scmp.lt.s32.totalorder %s1476_s26, %s1476_s26 }
   0xf   :  { %p1483_p8 = por %p1482_p7, %p1481_p6 }
  0x11   :  { %p1484_p9 = pnand %p1483_p8, %p1477_p5 }
  0x13   :  { %1487 = shalt.err (!%p1484_p9)  }
  0x14   :  { %s1499_s0 = smov [#allocation4]  }
  0x15   :  { %17 = dma.vmem_to_smem %s15_s23, 16, %s1499_s0, [#allocation2] }
  0x16   :  { %1492 = dma.done.wait [#allocation2], 32 }
  0x17   :  { %1493 = vsyncadd [#allocation2], 4294967264 }
  0x18   :  { %19 = sfence }
  0x19   :  { %s1539_s1 = smov 0  }
  0x1a LB: > { %s1322_s27 = sadd.s32 4294967295, %s1496_s1   ;;  %p1326_p10 = scmp.ge.s32.totalorder %s1496_s1, 1  ;;  %s1496_s1 = sphi %s1539_s1, %s25_s1  }
  0x1b   : > { %p168_p11 = scmp.lt.s32.totalorder %s1496_s1, 3 }
  0x1d   : > { %p169_p12 = pnand %p1326_p10, %p168_p11 }
  0x1e   : > { %p201_p13 = scmp.lt.s32.totalorder (!%p169_p12), %s1322_s27, 1  ;;  %v224_v0 = vlaneseq (!%p169_p12)  ;;  %s1500_s8 = smov (!%p169_p12), 16   ;;  %v1502_v7 = vmov (!%p169_p12), 1983009808   ;;  %vm256_vm0 = vcmask (!%p169_p12), 916480   ;;  %vm247_vm1 = vcmask (!%p169_p12), 130048  }
  0x1f   : > { %172 = sbr.rel (%p169_p12) target bundleno = 2171 (0x87b), region = 32  ;;  %s1501_s9 = smov (!%p169_p12), 112   ;;  %v280_v8 = vunpack.c.l.s4 (!%p169_p12), %v1502_v7 }
  0x20   : > { %v225_v1 = vshrl.u32 (!%p169_p12), %v224_v0, 7  ;;  %s1558_s10 = sld [smem:[#allocation3 + %s1322_s27]] (!%p169_p12) }
  0x21   : > { %s221_s11 = sld [smem:[#allocation4 + %s1322_s27]] (!%p169_p12)  ;;  %v281_v13 = vunpack.c.0.s8 (!%p169_p12), %v280_v8 }
  0x22   : > { %v226_v2 = vsub.s32 (!%p169_p12), 0, %v225_v1  ;;  %v230_v3 = vsub.s32 (!%p169_p12), 1, %v225_v1 }
  0x23   : > { %v1598_v22 = vsub.s32 (!%p169_p12), %v281_v13, %v225_v1 }
  0x26   : > { %s202_s28 = scalar_select %p201_p13, %s1322_s27, 1 }
  0x27   : > { %p234_p0 = scmp.gt.s32.totalorder %s1558_s10, 0  ;;  %p263_p1 = scmp.lt.s32.totalorder %s221_s11, 0 }
  0x28   : > { %s1331_s29 = sshll.u32 %s202_s28, 1  ;;  %p262_p2 = scmp.gt.s32.totalorder %s221_s11, 0 }
  0x29   : > { %s214_s7 = scalar_lea.vmem %s2001_s4, %s1331_s29  ;;  %s1561_s12 = sshll.u32 %s202_s28, 6 }
  0x2a   : > { %v222_v4 = vld [vmem:[%s214_s7] sm:$0x3]  ;;  %s235_s13 = scalar_select %p234_p0, 15, 0 }
  0x2b   : > { %v1550_v5 = vrot.slane %v222_v4, %v226_v2  ;;  %v231_v6 = vrot.slane %v222_v4, %v230_v3  ;;  %s264_s14 = scalar_select %p263_p1, 1, 0 }
  0x2c   : > { %s269_s15 = scalar_select %p262_p2, 1, 0 }
  0x2d   : > { %243 = vrot.lane.b32.xlu1 %v1550_v5, %s1500_s8  ;;  %252 = vrot.lane.b32.xlu0 %v1550_v5, %s1501_s9  ;;  %s1565_s16 = sshll.u32 %s235_s13, 2  ;;  %s1571_s19 = scalar_lea.vmem %s1999_s2, %s1561_s12  ;;  %v265_v11 = vstv %s264_s14 }
  0x2e   : > { %v270_v12 = vstv %s269_s15  ;;  %s1579_s22 = scalar_lea.vmem %s2000_s3, %s1561_s12  ;;  %s238_s23 = scalar_lea.vmem %s1571_s19, %s1565_s16  ;;  %vm1583_vm2 = vcmp.eq.s32.totalorder %v265_v11, 1 }
  0x2f   : > { %vm1587_vm3 = vcmp.eq.s32.totalorder %v270_v12, 1  ;;  %s241_s24 = scalar_lea.vmem %s1579_s22, %s1565_s16  ;;  %v239_v19 = vld [vmem:[%s238_s23] sm:$0xf]  ;;  %s1616_s0 = scalar_lea.vmem %s2002_s5, %s1561_s12 }
  0x30   : > { %v242_v28 = vld [vmem:[%s241_s24] sm:$0xf]  ;;  %v275_v29 = vsub.f32 1.0, %v239_v19  ;;  %s290_s27 = scalar_lea.vmem %s1616_s0, %s1565_s16 }
  0x31   : > { %245 = vrot.lane.b32.xlu1 %v231_v6, %s1500_s8  ;;  %254 = vrot.lane.b32.xlu0 %v231_v6, %s1501_s9  ;;  %v274_v32 = vmul.f32 %v242_v28, %v239_v19  ;;  %s292_s28 = scalar_select %p234_p0, 14, 1 }
  0x32   : > { %s349_s11 = scalar_select %p234_p0, 13, 2 }
  0x33   : > { %s1406_s29 = sshll.u32 %s292_s28, 2 }
  0x34   : > { %s295_s30 = scalar_lea.vmem %s1571_s19, %s1406_s29  ;;  %s298_s6 = scalar_lea.vmem %s1579_s22, %s1406_s29 }
  0x35   : > { %v296_v44 = vld [vmem:[%s295_s30] sm:$0xf]  ;;  %s347_s7 = scalar_lea.vmem %s1616_s0, %s1406_s29  ;;  %s1409_s12 = sshll.u32 %s349_s11, 2 }
  0x36   : > { %v299_v50 = vld [vmem:[%s298_s6] sm:$0xf]  ;;  %v332_v51 = vsub.f32 1.0, %v296_v44  ;;  %s352_s13 = scalar_lea.vmem %s1571_s19, %s1409_s12  ;;  %s355_s14 = scalar_lea.vmem %s1579_s22, %s1409_s12 }
  0x37   : > { %v331_v54 = vmul.f32 %v299_v50, %v296_v44  ;;  %v353_v2 = vld [vmem:[%s352_s13] sm:$0xf]  ;;  %s404_s15 = scalar_lea.vmem %s1616_s0, %s1409_s12 }
  0x38   : > { %v389_v11 = vsub.f32 1.0, %v353_v2  ;;  %s406_s16 = scalar_select %p234_p0, 12, 3 }
  0x39   : > { %s463_s23 = scalar_select %p234_p0, 11, 4 }
  0x3a   : > { %s1412_s17 = sshll.u32 %s406_s16, 2 }
  0x3b   : > { %s409_s18 = scalar_lea.vmem %s1571_s19, %s1412_s17  ;;  %s412_s20 = scalar_lea.vmem %s1579_s22, %s1412_s17 }
  0x3c   : > { %s461_s21 = scalar_lea.vmem %s1616_s0, %s1412_s17  ;;  %s1415_s24 = sshll.u32 %s463_s23, 2 }
  0x3d   : > { %s466_s25 = scalar_lea.vmem %s1571_s19, %s1415_s24  ;;  %s469_s26 = scalar_lea.vmem %s1579_s22, %s1415_s24 }
  0x3e   : > { %s520_s28 = scalar_select %p234_p0, 10, 5 }
  0x3f   : > { %s577_s11 = scalar_select %p234_p0, 9, 6 }
  0x40   : > { %s1418_s29 = sshll.u32 %s520_s28, 2 }
  0x41   : > { %s523_s30 = scalar_lea.vmem %s1571_s19, %s1418_s29  ;;  %s526_s6 = scalar_lea.vmem %s1579_s22, %s1418_s29 }
  0x42   : > { %s1421_s12 = sshll.u32 %s577_s11, 2 }
  0x43   : > { %s580_s13 = scalar_lea.vmem %s1571_s19, %s1421_s12 }
  0x44   : > { %s634_s16 = scalar_select %p234_p0, 8, 7 }
  0x45   : > { %s691_s23 = scalar_select %p234_p0, 7, 8 }
  0x46   : > { %s1424_s17 = sshll.u32 %s634_s16, 2 }
  0x47   : > { %s748_s28 = scalar_select %p234_p0, 6, 9 }
  0x48   : > { %s805_s11 = scalar_select %p234_p0, 5, 10 }
  0x49   : > { %s862_s16 = scalar_select %p234_p0, 4, 11 }
  0x9f   : > { %v244_v9 = vpop.permute.xlu1 %243  ;;  %v1573_v10 = vpop.permute.xlu0 %252 }
  0xa0   : > { %v251_v23 = vsel %vm247_vm1, %v1550_v5, %v244_v9 }
  0xa3   : > { %v246_v15 = vpop.permute.xlu1 %245  ;;  %v255_v17 = vpop.permute.xlu0 %254 }
  0xa4   : > { %v248_v18 = vsel %vm247_vm1, %v244_v9, %v246_v15  ;;  %v257_v20 = vsel %vm256_vm0, %v1573_v10, %v255_v17  ;;  %v261_v21 = vsel %vm256_vm0, %v255_v17, %v1573_v10  ;;  %v356_v9 = vld [vmem:[%s355_s14] sm:$0xf]  ;;  %s583_s14 = scalar_lea.vmem %s1579_s22, %s1421_s12 }
  0xa5   : > { %v267_v24 = vsel %vm1583_vm2, %v257_v20, %v1550_v5  ;;  %v268_v25 = vsel %vm1583_vm2, %v261_v21, %v231_v6  ;;  %v388_v15 = vmul.f32 %v356_v9, %v353_v2 }
  0xa6   : > { %v272_v26 = vsel %vm1587_vm3, %v251_v23, %v267_v24  ;;  %v273_v27 = vsel %vm1587_vm3, %v248_v18, %v268_v25 }
  0xa7   : > { %v278_v30 = vcombine.low %v272_v26, %v273_v27 }
  0xa9   : > { %v285_v31 = vrot.slane %v278_v30, %v1598_v22 }
  0xab   : > { %v287_v33 = vmul.f32 %v285_v31, %v275_v29  ;;  %v410_v29 = vld [vmem:[%s409_s18] sm:$0xf]  ;;  %s637_s18 = scalar_lea.vmem %s1571_s19, %s1424_s17 }
  0xad   : > { %v288_v34 = vadd.f32 %v287_v33, %v274_v32 }
  0xaf   : > { %v307_v35 = vrot.slane %v288_v34, %v1598_v22  ;;  %291 = vst [vmem:[%s290_s27] sm:$0xf] %v288_v34  ;;  %s518_s27 = scalar_lea.vmem %s1616_s0, %s1415_s24  ;;  %s1427_s24 = sshll.u32 %s691_s23, 2 }
  0xb0   : > { %s919_s23 = scalar_select %p234_p0, 3, 12 }
  0xb1   : > { %317 = vrot.lane.b32.xlu0 %v307_v35, %s1501_s9  ;;  %v308_v36 = vcombine.high %v307_v35, %v307_v35 }
  0xb3   : > { %319 = vrot.lane.b32.xlu1 %v308_v36, %s1501_s9 }
  0xb5   : > { %309 = vrot.lane.b32.xlu0 %v307_v35, %s1500_s8 }
  0xb7   : > { %311 = vrot.lane.b32.xlu1 %v308_v36, %s1500_s8 }
 0x123   : > { %v318_v37 = vpop.permute.xlu0 %317 }
 0x125   : > { %v320_v38 = vpop.permute.xlu1 %319 }
 0x126   : > { %v321_v39 = vsel %vm256_vm0, %v318_v37, %v320_v38  ;;  %v324_v40 = vsel %vm256_vm0, %v320_v38, %v1573_v10 }
 0x127   : > { %v310_v41 = vpop.permute.xlu0 %309  ;;  %v327_v42 = vsel %vm1583_vm2, %v321_v39, %v307_v35  ;;  %v328_v46 = vsel %vm1583_vm2, %v324_v40, %v308_v36  ;;  %v413_v35 = vld [vmem:[%s412_s20] sm:$0xf]  ;;  %v446_v36 = vsub.f32 1.0, %v410_v29  ;;  %s640_s20 = scalar_lea.vmem %s1579_s22, %s1424_s17 }
 0x128   : > { %v316_v43 = vsel %vm247_vm1, %v1550_v5, %v310_v41  ;;  %v445_v39 = vmul.f32 %v413_v35, %v410_v29 }
 0x129   : > { %v312_v45 = vpop.permute.xlu1 %311  ;;  %v329_v48 = vsel %vm1587_vm3, %v316_v43, %v327_v42 }
 0x12a   : > { %v313_v47 = vsel %vm247_vm1, %v310_v41, %v312_v45 }
 0x12b   : > { %v330_v49 = vsel %vm1587_vm3, %v313_v47, %v328_v46 }
 0x12c   : > { %v335_v52 = vcombine.low %v329_v48, %v330_v49 }
 0x12e   : > { %v342_v53 = vrot.slane %v335_v52, %v1598_v22 }
 0x130   : > { %v344_v55 = vmul.f32 %v342_v53, %v332_v51  ;;  %v467_v51 = vld [vmem:[%s466_s25] sm:$0xf]  ;;  %s694_s25 = scalar_lea.vmem %s1571_s19, %s1427_s24 }
 0x132   : > { %v345_v56 = vadd.f32 %v344_v55, %v331_v54 }
 0x134   : > { %v364_v57 = vrot.slane %v345_v56, %v1598_v22  ;;  %348 = vst [vmem:[%s347_s7] sm:$0xf] %v345_v56  ;;  %s575_s7 = scalar_lea.vmem %s1616_s0, %s1418_s29  ;;  %s1430_s29 = sshll.u32 %s748_s28, 2 }
 0x135   : > { %s976_s28 = scalar_select %p234_p0, 2, 13 }
 0x136   : > { %374 = vrot.lane.b32.xlu0 %v364_v57, %s1501_s9  ;;  %v365_v58 = vcombine.high %v364_v57, %v364_v57 }
 0x138   : > { %376 = vrot.lane.b32.xlu1 %v365_v58, %s1501_s9 }
 0x13a   : > { %366 = vrot.lane.b32.xlu0 %v364_v57, %s1500_s8 }
 0x13c   : > { %368 = vrot.lane.b32.xlu1 %v365_v58, %s1500_s8 }
 0x1a8   : > { %v375_v59 = vpop.permute.xlu0 %374 }
 0x1aa   : > { %v377_v60 = vpop.permute.xlu1 %376 }
 0x1ab   : > { %v378_v61 = vsel %vm256_vm0, %v375_v59, %v377_v60  ;;  %v381_v62 = vsel %vm256_vm0, %v377_v60, %v1573_v10 }
 0x1ac   : > { %v367_v63 = vpop.permute.xlu0 %366  ;;  %v384_v0 = vsel %vm1583_vm2, %v378_v61, %v364_v57  ;;  %v385_v4 = vsel %vm1583_vm2, %v381_v62, %v365_v58  ;;  %v470_v57 = vld [vmem:[%s469_s26] sm:$0xf]  ;;  %v503_v58 = vsub.f32 1.0, %v467_v51  ;;  %s697_s26 = scalar_lea.vmem %s1579_s22, %s1427_s24 }
 0x1ad   : > { %v373_v1 = vsel %vm247_vm1, %v1550_v5, %v367_v63  ;;  %v502_v61 = vmul.f32 %v470_v57, %v467_v51 }
 0x1ae   : > { %v369_v3 = vpop.permute.xlu1 %368  ;;  %v386_v7 = vsel %vm1587_vm3, %v373_v1, %v384_v0 }
 0x1af   : > { %v370_v6 = vsel %vm247_vm1, %v367_v63, %v369_v3 }
 0x1b0   : > { %v387_v8 = vsel %vm1587_vm3, %v370_v6, %v385_v4 }
 0x1b1   : > { %v392_v12 = vcombine.low %v386_v7, %v387_v8 }
 0x1b3   : > { %v399_v13 = vrot.slane %v392_v12, %v1598_v22 }
 0x1b5   : > { %v401_v17 = vmul.f32 %v399_v13, %v389_v11  ;;  %v524_v11 = vld [vmem:[%s523_s30] sm:$0xf]  ;;  %s751_s30 = scalar_lea.vmem %s1571_s19, %s1430_s29 }
 0x1b7   : > { %v402_v18 = vadd.f32 %v401_v17, %v388_v15 }
 0x1b9   : > { %v421_v19 = vrot.slane %v402_v18, %v1598_v22  ;;  %405 = vst [vmem:[%s404_s15] sm:$0xf] %v402_v18  ;;  %s632_s15 = scalar_lea.vmem %s1616_s0, %s1421_s12  ;;  %s1433_s12 = sshll.u32 %s805_s11, 2 }
 0x1ba   : > { %s1033_s11 = scalar_select %p234_p0, 1, 14 }
 0x1bb   : > { %431 = vrot.lane.b32.xlu0 %v421_v19, %s1501_s9  ;;  %v422_v20 = vcombine.high %v421_v19, %v421_v19 }
 0x1bd   : > { %433 = vrot.lane.b32.xlu1 %v422_v20, %s1501_s9 }
 0x1bf   : > { %423 = vrot.lane.b32.xlu0 %v421_v19, %s1500_s8 }
 0x1c1   : > { %425 = vrot.lane.b32.xlu1 %v422_v20, %s1500_s8 }
 0x22d   : > { %v432_v21 = vpop.permute.xlu0 %431 }
 0x22f   : > { %v434_v23 = vpop.permute.xlu1 %433 }
 0x230   : > { %v435_v24 = vsel %vm256_vm0, %v432_v21, %v434_v23  ;;  %v438_v25 = vsel %vm256_vm0, %v434_v23, %v1573_v10 }
 0x231   : > { %v424_v26 = vpop.permute.xlu0 %423  ;;  %v441_v27 = vsel %vm1583_vm2, %v435_v24, %v421_v19  ;;  %v442_v31 = vsel %vm1583_vm2, %v438_v25, %v422_v20  ;;  %v527_v19 = vld [vmem:[%s526_s6] sm:$0xf]  ;;  %v560_v20 = vsub.f32 1.0, %v524_v11  ;;  %s754_s6 = scalar_lea.vmem %s1579_s22, %s1430_s29 }
 0x232   : > { %v430_v28 = vsel %vm247_vm1, %v1550_v5, %v424_v26  ;;  %v559_v24 = vmul.f32 %v527_v19, %v524_v11 }
 0x233   : > { %v426_v30 = vpop.permute.xlu1 %425  ;;  %v443_v33 = vsel %vm1587_vm3, %v430_v28, %v441_v27 }
 0x234   : > { %v427_v32 = vsel %vm247_vm1, %v424_v26, %v426_v30 }
 0x235   : > { %v444_v34 = vsel %vm1587_vm3, %v427_v32, %v442_v31 }
 0x236   : > { %v449_v37 = vcombine.low %v443_v33, %v444_v34 }
 0x238   : > { %v456_v38 = vrot.slane %v449_v37, %v1598_v22 }
 0x23a   : > { %v458_v40 = vmul.f32 %v456_v38, %v446_v36  ;;  %v581_v36 = vld [vmem:[%s580_s13] sm:$0xf]  ;;  %s808_s13 = scalar_lea.vmem %s1571_s19, %s1433_s12 }
 0x23c   : > { %v459_v41 = vadd.f32 %v458_v40, %v445_v39 }
 0x23e   : > { %v478_v42 = vrot.slane %v459_v41, %v1598_v22  ;;  %462 = vst [vmem:[%s461_s21] sm:$0xf] %v459_v41  ;;  %s689_s21 = scalar_lea.vmem %s1616_s0, %s1424_s17  ;;  %s1436_s17 = sshll.u32 %s862_s16, 2 }
 0x23f   : > { %s1090_s16 = scalar_select %p234_p0, 0, 15 }
 0x240   : > { %488 = vrot.lane.b32.xlu0 %v478_v42, %s1501_s9  ;;  %v479_v43 = vcombine.high %v478_v42, %v478_v42 }
 0x242   : > { %490 = vrot.lane.b32.xlu1 %v479_v43, %s1501_s9 }
 0x244   : > { %480 = vrot.lane.b32.xlu0 %v478_v42, %s1500_s8 }
 0x246   : > { %482 = vrot.lane.b32.xlu1 %v479_v43, %s1500_s8 }
 0x2b2   : > { %v489_v44 = vpop.permute.xlu0 %488 }
 0x2b4   : > { %v491_v45 = vpop.permute.xlu1 %490 }
 0x2b5   : > { %v492_v46 = vsel %vm256_vm0, %v489_v44, %v491_v45  ;;  %v495_v47 = vsel %vm256_vm0, %v491_v45, %v1573_v10 }
 0x2b6   : > { %v481_v48 = vpop.permute.xlu0 %480  ;;  %v498_v49 = vsel %vm1583_vm2, %v492_v46, %v478_v42  ;;  %v499_v53 = vsel %vm1583_vm2, %v495_v47, %v479_v43  ;;  %v584_v42 = vld [vmem:[%s583_s14] sm:$0xf]  ;;  %v617_v43 = vsub.f32 1.0, %v581_v36  ;;  %s811_s14 = scalar_lea.vmem %s1579_s22, %s1433_s12 }
 0x2b7   : > { %v487_v50 = vsel %vm247_vm1, %v1550_v5, %v481_v48  ;;  %v616_v46 = vmul.f32 %v584_v42, %v581_v36 }
 0x2b8   : > { %v483_v52 = vpop.permute.xlu1 %482  ;;  %v500_v55 = vsel %vm1587_vm3, %v487_v50, %v498_v49 }
 0x2b9   : > { %v484_v54 = vsel %vm247_vm1, %v481_v48, %v483_v52 }
 0x2ba   : > { %v501_v56 = vsel %vm1587_vm3, %v484_v54, %v499_v53 }
 0x2bb   : > { %v506_v59 = vcombine.low %v500_v55, %v501_v56 }
 0x2bd   : > { %v513_v60 = vrot.slane %v506_v59, %v1598_v22 }
 0x2bf   : > { %v515_v62 = vmul.f32 %v513_v60, %v503_v58  ;;  %v638_v58 = vld [vmem:[%s637_s18] sm:$0xf]  ;;  %s865_s18 = scalar_lea.vmem %s1571_s19, %s1436_s17 }
 0x2c1   : > { %v516_v63 = vadd.f32 %v515_v62, %v502_v61 }
 0x2c3   : > { %v535_v0 = vrot.slane %v516_v63, %v1598_v22  ;;  %519 = vst [vmem:[%s518_s27] sm:$0xf] %v516_v63  ;;  %s746_s27 = scalar_lea.vmem %s1616_s0, %s1427_s24  ;;  %s1439_s24 = sshll.u32 %s919_s23, 2 }
 0x2c5   : > { %545 = vrot.lane.b32.xlu0 %v535_v0, %s1501_s9  ;;  %v536_v1 = vcombine.high %v535_v0, %v535_v0 }
 0x2c7   : > { %547 = vrot.lane.b32.xlu1 %v536_v1, %s1501_s9 }
 0x2c9   : > { %537 = vrot.lane.b32.xlu0 %v535_v0, %s1500_s8 }
 0x2cb   : > { %539 = vrot.lane.b32.xlu1 %v536_v1, %s1500_s8 }
 0x337   : > { %v546_v2 = vpop.permute.xlu0 %545 }
 0x339   : > { %v548_v3 = vpop.permute.xlu1 %547 }
 0x33a   : > { %v549_v4 = vsel %vm256_vm0, %v546_v2, %v548_v3  ;;  %v552_v6 = vsel %vm256_vm0, %v548_v3, %v1573_v10 }
 0x33b   : > { %v538_v7 = vpop.permute.xlu0 %537  ;;  %v555_v8 = vsel %vm1583_vm2, %v549_v4, %v535_v0  ;;  %v556_v13 = vsel %vm1583_vm2, %v552_v6, %v536_v1  ;;  %v641_v0 = vld [vmem:[%s640_s20] sm:$0xf]  ;;  %v674_v1 = vsub.f32 1.0, %v638_v58  ;;  %s868_s20 = scalar_lea.vmem %s1579_s22, %s1436_s17 }
 0x33c   : > { %v544_v9 = vsel %vm247_vm1, %v1550_v5, %v538_v7  ;;  %v673_v4 = vmul.f32 %v641_v0, %v638_v58 }
 0x33d   : > { %v540_v12 = vpop.permute.xlu1 %539  ;;  %v557_v17 = vsel %vm1587_vm3, %v544_v9, %v555_v8 }
 0x33e   : > { %v541_v15 = vsel %vm247_vm1, %v538_v7, %v540_v12 }
 0x33f   : > { %v558_v18 = vsel %vm1587_vm3, %v541_v15, %v556_v13 }
 0x340   : > { %v563_v21 = vcombine.low %v557_v17, %v558_v18 }
 0x342   : > { %v570_v23 = vrot.slane %v563_v21, %v1598_v22 }
 0x344   : > { %v572_v25 = vmul.f32 %v570_v23, %v560_v20  ;;  %v695_v20 = vld [vmem:[%s694_s25] sm:$0xf]  ;;  %s922_s25 = scalar_lea.vmem %s1571_s19, %s1439_s24 }
 0x346   : > { %v573_v26 = vadd.f32 %v572_v25, %v559_v24 }
 0x348   : > { %v592_v27 = vrot.slane %v573_v26, %v1598_v22  ;;  %576 = vst [vmem:[%s575_s7] sm:$0xf] %v573_v26  ;;  %s803_s7 = scalar_lea.vmem %s1616_s0, %s1430_s29  ;;  %s1442_s29 = sshll.u32 %s976_s28, 2 }
 0x34a   : > { %602 = vrot.lane.b32.xlu0 %v592_v27, %s1501_s9  ;;  %v593_v28 = vcombine.high %v592_v27, %v592_v27 }
 0x34c   : > { %604 = vrot.lane.b32.xlu1 %v593_v28, %s1501_s9 }
 0x34e   : > { %594 = vrot.lane.b32.xlu0 %v592_v27, %s1500_s8 }
 0x350   : > { %596 = vrot.lane.b32.xlu1 %v593_v28, %s1500_s8 }
 0x3bc   : > { %v603_v29 = vpop.permute.xlu0 %602 }
 0x3be   : > { %v605_v30 = vpop.permute.xlu1 %604 }
 0x3bf   : > { %v606_v31 = vsel %vm256_vm0, %v603_v29, %v605_v30  ;;  %v609_v32 = vsel %vm256_vm0, %v605_v30, %v1573_v10 }
 0x3c0   : > { %v595_v33 = vpop.permute.xlu0 %594  ;;  %v612_v34 = vsel %vm1583_vm2, %v606_v31, %v592_v27  ;;  %v613_v38 = vsel %vm1583_vm2, %v609_v32, %v593_v28  ;;  %v698_v27 = vld [vmem:[%s697_s26] sm:$0xf]  ;;  %v731_v28 = vsub.f32 1.0, %v695_v20  ;;  %s925_s26 = scalar_lea.vmem %s1579_s22, %s1439_s24 }
 0x3c1   : > { %v601_v35 = vsel %vm247_vm1, %v1550_v5, %v595_v33  ;;  %v730_v31 = vmul.f32 %v698_v27, %v695_v20 }
 0x3c2   : > { %v597_v37 = vpop.permute.xlu1 %596  ;;  %v614_v40 = vsel %vm1587_vm3, %v601_v35, %v612_v34 }
 0x3c3   : > { %v598_v39 = vsel %vm247_vm1, %v595_v33, %v597_v37 }
 0x3c4   : > { %v615_v41 = vsel %vm1587_vm3, %v598_v39, %v613_v38 }
 0x3c5   : > { %v620_v44 = vcombine.low %v614_v40, %v615_v41 }
 0x3c7   : > { %v627_v45 = vrot.slane %v620_v44, %v1598_v22 }
 0x3c9   : > { %v629_v47 = vmul.f32 %v627_v45, %v617_v43  ;;  %v752_v43 = vld [vmem:[%s751_s30] sm:$0xf]  ;;  %s979_s30 = scalar_lea.vmem %s1571_s19, %s1442_s29 }
 0x3cb   : > { %v630_v48 = vadd.f32 %v629_v47, %v616_v46 }
 0x3cd   : > { %v649_v49 = vrot.slane %v630_v48, %v1598_v22  ;;  %633 = vst [vmem:[%s632_s15] sm:$0xf] %v630_v48  ;;  %s860_s15 = scalar_lea.vmem %s1616_s0, %s1433_s12  ;;  %s1445_s12 = sshll.u32 %s1033_s11, 2 }
 0x3cf   : > { %659 = vrot.lane.b32.xlu0 %v649_v49, %s1501_s9  ;;  %v650_v50 = vcombine.high %v649_v49, %v649_v49 }
 0x3d1   : > { %661 = vrot.lane.b32.xlu1 %v650_v50, %s1501_s9 }
 0x3d3   : > { %651 = vrot.lane.b32.xlu0 %v649_v49, %s1500_s8 }
 0x3d5   : > { %653 = vrot.lane.b32.xlu1 %v650_v50, %s1500_s8 }
 0x441   : > { %v660_v51 = vpop.permute.xlu0 %659 }
 0x443   : > { %v662_v52 = vpop.permute.xlu1 %661 }
 0x444   : > { %v663_v53 = vsel %vm256_vm0, %v660_v51, %v662_v52  ;;  %v666_v54 = vsel %vm256_vm0, %v662_v52, %v1573_v10 }
 0x445   : > { %v652_v55 = vpop.permute.xlu0 %651  ;;  %v669_v56 = vsel %vm1583_vm2, %v663_v53, %v649_v49  ;;  %v670_v60 = vsel %vm1583_vm2, %v666_v54, %v650_v50  ;;  %v755_v49 = vld [vmem:[%s754_s6] sm:$0xf]  ;;  %v788_v50 = vsub.f32 1.0, %v752_v43  ;;  %s982_s6 = scalar_lea.vmem %s1579_s22, %s1442_s29 }
 0x446   : > { %v658_v57 = vsel %vm247_vm1, %v1550_v5, %v652_v55  ;;  %v787_v53 = vmul.f32 %v755_v49, %v752_v43 }
 0x447   : > { %v654_v59 = vpop.permute.xlu1 %653  ;;  %v671_v62 = vsel %vm1587_vm3, %v658_v57, %v669_v56 }
 0x448   : > { %v655_v61 = vsel %vm247_vm1, %v652_v55, %v654_v59 }
 0x449   : > { %v672_v63 = vsel %vm1587_vm3, %v655_v61, %v670_v60 }
 0x44a   : > { %v677_v2 = vcombine.low %v671_v62, %v672_v63 }
 0x44c   : > { %v684_v3 = vrot.slane %v677_v2, %v1598_v22 }
 0x44e   : > { %v686_v6 = vmul.f32 %v684_v3, %v674_v1  ;;  %v809_v1 = vld [vmem:[%s808_s13] sm:$0xf]  ;;  %s1036_s13 = scalar_lea.vmem %s1571_s19, %s1445_s12 }
 0x450   : > { %v687_v7 = vadd.f32 %v686_v6, %v673_v4 }
 0x452   : > { %v706_v8 = vrot.slane %v687_v7, %v1598_v22  ;;  %690 = vst [vmem:[%s689_s21] sm:$0xf] %v687_v7  ;;  %s917_s21 = scalar_lea.vmem %s1616_s0, %s1436_s17  ;;  %s1448_s17 = sshll.u32 %s1090_s16, 2 }
 0x454   : > { %716 = vrot.lane.b32.xlu0 %v706_v8, %s1501_s9  ;;  %v707_v9 = vcombine.high %v706_v8, %v706_v8 }
 0x456   : > { %718 = vrot.lane.b32.xlu1 %v707_v9, %s1501_s9 }
 0x458   : > { %708 = vrot.lane.b32.xlu0 %v706_v8, %s1500_s8 }
 0x45a   : > { %710 = vrot.lane.b32.xlu1 %v707_v9, %s1500_s8 }
 0x4c6   : > { %v717_v11 = vpop.permute.xlu0 %716 }
 0x4c8   : > { %v719_v12 = vpop.permute.xlu1 %718 }
 0x4c9   : > { %v720_v13 = vsel %vm256_vm0, %v717_v11, %v719_v12  ;;  %v723_v15 = vsel %vm256_vm0, %v719_v12, %v1573_v10 }
 0x4ca   : > { %v709_v17 = vpop.permute.xlu0 %708  ;;  %v726_v18 = vsel %vm1583_vm2, %v720_v13, %v706_v8  ;;  %v727_v23 = vsel %vm1583_vm2, %v723_v15, %v707_v9  ;;  %v812_v8 = vld [vmem:[%s811_s14] sm:$0xf]  ;;  %v845_v9 = vsub.f32 1.0, %v809_v1  ;;  %s1039_s14 = scalar_lea.vmem %s1579_s22, %s1445_s12 }
 0x4cb   : > { %v715_v19 = vsel %vm247_vm1, %v1550_v5, %v709_v17  ;;  %v844_v13 = vmul.f32 %v812_v8, %v809_v1 }
 0x4cc   : > { %v711_v21 = vpop.permute.xlu1 %710  ;;  %v728_v25 = vsel %vm1587_vm3, %v715_v19, %v726_v18 }
 0x4cd   : > { %v712_v24 = vsel %vm247_vm1, %v709_v17, %v711_v21 }
 0x4ce   : > { %v729_v26 = vsel %vm1587_vm3, %v712_v24, %v727_v23 }
 0x4cf   : > { %v734_v29 = vcombine.low %v728_v25, %v729_v26 }
 0x4d1   : > { %v741_v30 = vrot.slane %v734_v29, %v1598_v22 }
 0x4d3   : > { %v743_v32 = vmul.f32 %v741_v30, %v731_v28  ;;  %v866_v28 = vld [vmem:[%s865_s18] sm:$0xf]  ;;  %s1093_s18 = scalar_lea.vmem %s1571_s19, %s1448_s17 }
 0x4d5   : > { %v744_v33 = vadd.f32 %v743_v32, %v730_v31 }
 0x4d7   : > { %v763_v34 = vrot.slane %v744_v33, %v1598_v22  ;;  %747 = vst [vmem:[%s746_s27] sm:$0xf] %v744_v33  ;;  %s974_s27 = scalar_lea.vmem %s1616_s0, %s1439_s24 }
 0x4d9   : > { %773 = vrot.lane.b32.xlu0 %v763_v34, %s1501_s9  ;;  %v764_v35 = vcombine.high %v763_v34, %v763_v34 }
 0x4db   : > { %775 = vrot.lane.b32.xlu1 %v764_v35, %s1501_s9 }
 0x4dd   : > { %765 = vrot.lane.b32.xlu0 %v763_v34, %s1500_s8 }
 0x4df   : > { %767 = vrot.lane.b32.xlu1 %v764_v35, %s1500_s8 }
 0x54b   : > { %v774_v36 = vpop.permute.xlu0 %773 }
 0x54d   : > { %v776_v37 = vpop.permute.xlu1 %775 }
 0x54e   : > { %v777_v38 = vsel %vm256_vm0, %v774_v36, %v776_v37  ;;  %v780_v39 = vsel %vm256_vm0, %v776_v37, %v1573_v10 }
 0x54f   : > { %v766_v40 = vpop.permute.xlu0 %765  ;;  %v783_v41 = vsel %vm1583_vm2, %v777_v38, %v763_v34  ;;  %v784_v45 = vsel %vm1583_vm2, %v780_v39, %v764_v35  ;;  %v869_v34 = vld [vmem:[%s868_s20] sm:$0xf]  ;;  %v902_v35 = vsub.f32 1.0, %v866_v28 }
 0x550   : > { %v772_v42 = vsel %vm247_vm1, %v1550_v5, %v766_v40  ;;  %v901_v38 = vmul.f32 %v869_v34, %v866_v28 }
 0x551   : > { %v768_v44 = vpop.permute.xlu1 %767  ;;  %v785_v47 = vsel %vm1587_vm3, %v772_v42, %v783_v41 }
 0x552   : > { %v769_v46 = vsel %vm247_vm1, %v766_v40, %v768_v44 }
 0x553   : > { %v786_v48 = vsel %vm1587_vm3, %v769_v46, %v784_v45 }
 0x554   : > { %v791_v51 = vcombine.low %v785_v47, %v786_v48 }
 0x556   : > { %v798_v52 = vrot.slane %v791_v51, %v1598_v22 }
 0x558   : > { %v800_v54 = vmul.f32 %v798_v52, %v788_v50  ;;  %v923_v50 = vld [vmem:[%s922_s25] sm:$0xf] }
 0x55a   : > { %v801_v55 = vadd.f32 %v800_v54, %v787_v53 }
 0x55c   : > { %v820_v56 = vrot.slane %v801_v55, %v1598_v22  ;;  %804 = vst [vmem:[%s803_s7] sm:$0xf] %v801_v55  ;;  %s1031_s7 = scalar_lea.vmem %s1616_s0, %s1442_s29 }
 0x55e   : > { %830 = vrot.lane.b32.xlu0 %v820_v56, %s1501_s9  ;;  %v821_v57 = vcombine.high %v820_v56, %v820_v56 }
 0x560   : > { %832 = vrot.lane.b32.xlu1 %v821_v57, %s1501_s9 }
 0x562   : > { %822 = vrot.lane.b32.xlu0 %v820_v56, %s1500_s8 }
 0x564   : > { %824 = vrot.lane.b32.xlu1 %v821_v57, %s1500_s8 }
 0x5d0   : > { %v831_v58 = vpop.permute.xlu0 %830 }
 0x5d2   : > { %v833_v59 = vpop.permute.xlu1 %832 }
 0x5d3   : > { %v834_v60 = vsel %vm256_vm0, %v831_v58, %v833_v59  ;;  %v837_v61 = vsel %vm256_vm0, %v833_v59, %v1573_v10 }
 0x5d4   : > { %v823_v62 = vpop.permute.xlu0 %822  ;;  %v840_v63 = vsel %vm1583_vm2, %v834_v60, %v820_v56  ;;  %v841_v3 = vsel %vm1583_vm2, %v837_v61, %v821_v57  ;;  %v926_v56 = vld [vmem:[%s925_s26] sm:$0xf]  ;;  %v959_v57 = vsub.f32 1.0, %v923_v50 }
 0x5d5   : > { %v829_v0 = vsel %vm247_vm1, %v1550_v5, %v823_v62  ;;  %v958_v60 = vmul.f32 %v926_v56, %v923_v50 }
 0x5d6   : > { %v825_v2 = vpop.permute.xlu1 %824  ;;  %v842_v6 = vsel %vm1587_vm3, %v829_v0, %v840_v63 }
 0x5d7   : > { %v826_v4 = vsel %vm247_vm1, %v823_v62, %v825_v2 }
 0x5d8   : > { %v843_v7 = vsel %vm1587_vm3, %v826_v4, %v841_v3 }
 0x5d9   : > { %v848_v11 = vcombine.low %v842_v6, %v843_v7 }
 0x5db   : > { %v855_v12 = vrot.slane %v848_v11, %v1598_v22 }
 0x5dd   : > { %v857_v15 = vmul.f32 %v855_v12, %v845_v9  ;;  %v980_v9 = vld [vmem:[%s979_s30] sm:$0xf] }
 0x5df   : > { %v858_v17 = vadd.f32 %v857_v15, %v844_v13 }
 0x5e1   : > { %v877_v18 = vrot.slane %v858_v17, %v1598_v22  ;;  %861 = vst [vmem:[%s860_s15] sm:$0xf] %v858_v17  ;;  %s1088_s15 = scalar_lea.vmem %s1616_s0, %s1445_s12 }
 0x5e3   : > { %887 = vrot.lane.b32.xlu0 %v877_v18, %s1501_s9  ;;  %v878_v19 = vcombine.high %v877_v18, %v877_v18 }
 0x5e5   : > { %889 = vrot.lane.b32.xlu1 %v878_v19, %s1501_s9 }
 0x5e7   : > { %879 = vrot.lane.b32.xlu0 %v877_v18, %s1500_s8 }
 0x5e9   : > { %881 = vrot.lane.b32.xlu1 %v878_v19, %s1500_s8 }
 0x655   : > { %v888_v20 = vpop.permute.xlu0 %887 }
 0x657   : > { %v890_v21 = vpop.permute.xlu1 %889 }
 0x658   : > { %v891_v23 = vsel %vm256_vm0, %v888_v20, %v890_v21  ;;  %v894_v24 = vsel %vm256_vm0, %v890_v21, %v1573_v10 }
 0x659   : > { %v880_v25 = vpop.permute.xlu0 %879  ;;  %v897_v26 = vsel %vm1583_vm2, %v891_v23, %v877_v18  ;;  %v898_v30 = vsel %vm1583_vm2, %v894_v24, %v878_v19  ;;  %v983_v18 = vld [vmem:[%s982_s6] sm:$0xf]  ;;  %v1016_v19 = vsub.f32 1.0, %v980_v9 }
 0x65a   : > { %v886_v27 = vsel %vm247_vm1, %v1550_v5, %v880_v25  ;;  %v1015_v23 = vmul.f32 %v983_v18, %v980_v9 }
 0x65b   : > { %v882_v29 = vpop.permute.xlu1 %881  ;;  %v899_v32 = vsel %vm1587_vm3, %v886_v27, %v897_v26 }
 0x65c   : > { %v883_v31 = vsel %vm247_vm1, %v880_v25, %v882_v29 }
 0x65d   : > { %v900_v33 = vsel %vm1587_vm3, %v883_v31, %v898_v30 }
 0x65e   : > { %v905_v36 = vcombine.low %v899_v32, %v900_v33 }
 0x660   : > { %v912_v37 = vrot.slane %v905_v36, %v1598_v22 }
 0x662   : > { %v914_v39 = vmul.f32 %v912_v37, %v902_v35  ;;  %v1037_v35 = vld [vmem:[%s1036_s13] sm:$0xf] }
 0x664   : > { %v915_v40 = vadd.f32 %v914_v39, %v901_v38 }
 0x666   : > { %v934_v41 = vrot.slane %v915_v40, %v1598_v22  ;;  %918 = vst [vmem:[%s917_s21] sm:$0xf] %v915_v40 }
 0x668   : > { %944 = vrot.lane.b32.xlu0 %v934_v41, %s1501_s9  ;;  %v935_v42 = vcombine.high %v934_v41, %v934_v41 }
 0x66a   : > { %946 = vrot.lane.b32.xlu1 %v935_v42, %s1501_s9 }
 0x66c   : > { %936 = vrot.lane.b32.xlu0 %v934_v41, %s1500_s8 }
 0x66e   : > { %938 = vrot.lane.b32.xlu1 %v935_v42, %s1500_s8 }
 0x6da   : > { %v945_v43 = vpop.permute.xlu0 %944 }
 0x6dc   : > { %v947_v44 = vpop.permute.xlu1 %946 }
 0x6dd   : > { %v948_v45 = vsel %vm256_vm0, %v945_v43, %v947_v44  ;;  %v951_v46 = vsel %vm256_vm0, %v947_v44, %v1573_v10 }
 0x6de   : > { %v937_v47 = vpop.permute.xlu0 %936  ;;  %v954_v48 = vsel %vm1583_vm2, %v948_v45, %v934_v41  ;;  %v955_v52 = vsel %vm1583_vm2, %v951_v46, %v935_v42  ;;  %v1040_v41 = vld [vmem:[%s1039_s14] sm:$0xf]  ;;  %v1073_v42 = vsub.f32 1.0, %v1037_v35 }
 0x6df   : > { %v943_v49 = vsel %vm247_vm1, %v1550_v5, %v937_v47  ;;  %v1072_v45 = vmul.f32 %v1040_v41, %v1037_v35 }
 0x6e0   : > { %v939_v51 = vpop.permute.xlu1 %938  ;;  %v956_v54 = vsel %vm1587_vm3, %v943_v49, %v954_v48 }
 0x6e1   : > { %v940_v53 = vsel %vm247_vm1, %v937_v47, %v939_v51 }
 0x6e2   : > { %v957_v55 = vsel %vm1587_vm3, %v940_v53, %v955_v52 }
 0x6e3   : > { %v962_v58 = vcombine.low %v956_v54, %v957_v55 }
 0x6e5   : > { %v969_v59 = vrot.slane %v962_v58, %v1598_v22 }
 0x6e7   : > { %v971_v61 = vmul.f32 %v969_v59, %v959_v57  ;;  %v1094_v57 = vld [vmem:[%s1093_s18] sm:$0xf] }
 0x6e9   : > { %v972_v62 = vadd.f32 %v971_v61, %v958_v60 }
 0x6eb   : > { %v991_v63 = vrot.slane %v972_v62, %v1598_v22  ;;  %975 = vst [vmem:[%s974_s27] sm:$0xf] %v972_v62 }
 0x6ed   : > { %1001 = vrot.lane.b32.xlu0 %v991_v63, %s1501_s9  ;;  %v992_v0 = vcombine.high %v991_v63, %v991_v63 }
 0x6ef   : > { %1003 = vrot.lane.b32.xlu1 %v992_v0, %s1501_s9 }
 0x6f1   : > { %993 = vrot.lane.b32.xlu0 %v991_v63, %s1500_s8 }
 0x6f3   : > { %995 = vrot.lane.b32.xlu1 %v992_v0, %s1500_s8 }
 0x75f   : > { %v1002_v1 = vpop.permute.xlu0 %1001 }
 0x761   : > { %v1004_v2 = vpop.permute.xlu1 %1003 }
 0x762   : > { %v1005_v3 = vsel %vm256_vm0, %v1002_v1, %v1004_v2  ;;  %v1008_v4 = vsel %vm256_vm0, %v1004_v2, %v1573_v10 }
 0x763   : > { %v994_v6 = vpop.permute.xlu0 %993  ;;  %v1011_v7 = vsel %vm1583_vm2, %v1005_v3, %v991_v63  ;;  %v1012_v12 = vsel %vm1583_vm2, %v1008_v4, %v992_v0  ;;  %v1130_v63 = vsub.f32 1.0, %v1094_v57 }
 0x764   : > { %v1000_v8 = vsel %vm247_vm1, %v1550_v5, %v994_v6 }
 0x765   : > { %v996_v11 = vpop.permute.xlu1 %995  ;;  %v1013_v15 = vsel %vm1587_vm3, %v1000_v8, %v1011_v7 }
 0x766   : > { %v997_v13 = vsel %vm247_vm1, %v994_v6, %v996_v11 }
 0x767   : > { %v1014_v17 = vsel %vm1587_vm3, %v997_v13, %v1012_v12 }
 0x768   : > { %v1019_v20 = vcombine.low %v1013_v15, %v1014_v17 }
 0x76a   : > { %v1026_v21 = vrot.slane %v1019_v20, %v1598_v22 }
 0x76c   : > { %v1028_v24 = vmul.f32 %v1026_v21, %v1016_v19 }
 0x76e   : > { %v1029_v25 = vadd.f32 %v1028_v24, %v1015_v23 }
 0x770   : > { %v1048_v26 = vrot.slane %v1029_v25, %v1598_v22  ;;  %1032 = vst [vmem:[%s1031_s7] sm:$0xf] %v1029_v25 }
 0x772   : > { %1058 = vrot.lane.b32.xlu0 %v1048_v26, %s1501_s9  ;;  %v1049_v27 = vcombine.high %v1048_v26, %v1048_v26 }
 0x774   : > { %1060 = vrot.lane.b32.xlu1 %v1049_v27, %s1501_s9 }
 0x776   : > { %1050 = vrot.lane.b32.xlu0 %v1048_v26, %s1500_s8 }
 0x778   : > { %1052 = vrot.lane.b32.xlu1 %v1049_v27, %s1500_s8 }
 0x7e4   : > { %v1059_v28 = vpop.permute.xlu0 %1058 }
 0x7e6   : > { %v1061_v29 = vpop.permute.xlu1 %1060 }
 0x7e7   : > { %v1062_v30 = vsel %vm256_vm0, %v1059_v28, %v1061_v29  ;;  %v1065_v31 = vsel %vm256_vm0, %v1061_v29, %v1573_v10 }
 0x7e8   : > { %v1051_v32 = vpop.permute.xlu0 %1050  ;;  %v1068_v33 = vsel %vm1583_vm2, %v1062_v30, %v1048_v26  ;;  %v1069_v37 = vsel %vm1583_vm2, %v1065_v31, %v1049_v27 }
 0x7e9   : > { %v1057_v34 = vsel %vm247_vm1, %v1550_v5, %v1051_v32 }
 0x7ea   : > { %v1053_v36 = vpop.permute.xlu1 %1052  ;;  %v1070_v39 = vsel %vm1587_vm3, %v1057_v34, %v1068_v33 }
 0x7eb   : > { %v1054_v38 = vsel %vm247_vm1, %v1051_v32, %v1053_v36 }
 0x7ec   : > { %v1071_v40 = vsel %vm1587_vm3, %v1054_v38, %v1069_v37 }
 0x7ed   : > { %v1076_v43 = vcombine.low %v1070_v39, %v1071_v40 }
 0x7ef   : > { %v1083_v44 = vrot.slane %v1076_v43, %v1598_v22 }
 0x7f1   : > { %v1085_v46 = vmul.f32 %v1083_v44, %v1073_v42 }
 0x7f3   : > { %v1086_v47 = vadd.f32 %v1085_v46, %v1072_v45 }
 0x7f5   : > { %v1105_v48 = vrot.slane %v1086_v47, %v1598_v22  ;;  %1089 = vst [vmem:[%s1088_s15] sm:$0xf] %v1086_v47 }
 0x7f7   : > { %1115 = vrot.lane.b32.xlu0 %v1105_v48, %s1501_s9  ;;  %v1106_v49 = vcombine.high %v1105_v48, %v1105_v48 }
 0x7f9   : > { %1117 = vrot.lane.b32.xlu1 %v1106_v49, %s1501_s9  ;;  %s1145_s9 = scalar_lea.vmem %s1616_s0, %s1448_s17 }
 0x7fb   : > { %1107 = vrot.lane.b32.xlu0 %v1105_v48, %s1500_s8 }
 0x7fd   : > { %1109 = vrot.lane.b32.xlu1 %v1106_v49, %s1500_s8  ;;  %s1096_s8 = scalar_lea.vmem %s1579_s22, %s1448_s17 }
 0x869   : > { %v1116_v50 = vpop.permute.xlu0 %1115 }
 0x86b   : > { %v1118_v51 = vpop.permute.xlu1 %1117 }
 0x86c   : > { %v1119_v52 = vsel %vm256_vm0, %v1116_v50, %v1118_v51  ;;  %v1122_v53 = vsel %vm256_vm0, %v1118_v51, %v1573_v10  ;;  %v1097_v10 = vld [vmem:[%s1096_s8] sm:$0xf] }
 0x86d   : > { %v1108_v54 = vpop.permute.xlu0 %1107  ;;  %v1125_v55 = vsel %vm1583_vm2, %v1119_v52, %v1105_v48  ;;  %v1126_v59 = vsel %vm1583_vm2, %v1122_v53, %v1106_v49  ;;  %v1129_v1 = vmul.f32 %v1097_v10, %v1094_v57 }
 0x86e   : > { %v1114_v56 = vsel %vm247_vm1, %v1550_v5, %v1108_v54 }
 0x86f   : > { %v1110_v58 = vpop.permute.xlu1 %1109  ;;  %v1127_v61 = vsel %vm1587_vm3, %v1114_v56, %v1125_v55 }
 0x870   : > { %v1111_v60 = vsel %vm247_vm1, %v1108_v54, %v1110_v58 }
 0x871   : > { %v1128_v62 = vsel %vm1587_vm3, %v1111_v60, %v1126_v59 }
 0x872   : > { %v1133_v0 = vcombine.low %v1127_v61, %v1128_v62 }
 0x874   : > { %v1140_v5 = vrot.slane %v1133_v0, %v1598_v22 }
 0x876   : > { %v1142_v2 = vmul.f32 %v1140_v5, %v1130_v63 }
 0x878   : > { %v1143_v3 = vadd.f32 %v1142_v2, %v1129_v1 }
 0x87a   : > { %1146 = vst [vmem:[%s1145_s9] sm:$0xf] %v1143_v3 }
 0x87b PF: > { %s25_s1 = sadd.s32 1, %s1496_s1  }
 0x87c   : > { %p22_p3 = scmp.ge.s32.totalorder %s25_s1, 4  }
 0x87e   :  { %24 = sbr.rel (!%p22_p3) target bundleno = 26 (0x1a), region = 116 }

// kernel: gru2d_forward.5
= control target key start
LH: loop header
LB: loop body
LE: loop exit
PB: predicated region body
PF: predicated region fallthrough
CT: control target
= control target key end

     0   :  { %s1998_s0 = inlined_call_operand.vmem [shape: s32[6], index: 0, kind: input, shape index: {}]   ;;  %s1999_s2 = inlined_call_operand.vmem [shape: f32[6,16,2,256], index: 2, kind: input, shape index: {}]   ;;  %s2000_s3 = inlined_call_operand.vmem [shape: f32[6,16,2,256], index: 3, kind: input, shape index: {}]   ;;  %s2001_s4 = inlined_call_operand.vmem [shape: f32[6,1,256], index: 4, kind: input, shape index: {}]   ;;  %s2002_s5 = inlined_call_operand.vmem [shape: f32[6,16,2,256], index: 5, kind: output, shape index: {}]   ;;  %s2003_s1 = inlined_call_operand.vmem [shape: s32[6], index: 1, kind: input, shape index: {}]  }
   0x1   :  { %s10_s20 = sshll.u32 %s1998_s0, 4  ;;  %s14_s23 = sshll.u32 %s2003_s1, 4  ;;  %s11_s20 = int_to_ptr.vmem [resolvable:$true] %s10_s20  ;;  %s15_s23 = int_to_ptr.vmem [resolvable:$true] %s14_s23 }
   0x2   :  { %s1464_s24 = scalar_lea.vmem %s11_s20, 16  ;;  %p1469_p1 = scmp.lt.s32.totalorder %s11_s20, %s11_s20 }
   0x3   :  { %p1465_p0 = scmp.ne.s32.totalorder %s11_s20, %s1464_s24  ;;  %p1470_p2 = scmp.lt.s32.totalorder %s1464_s24, %s1464_s24 }
   0x5   :  { %p1471_p3 = por %p1470_p2, %p1469_p1 }
   0x7   :  { %p1472_p4 = pnand %p1471_p3, %p1465_p0 }
   0x9   :  { %1475 = shalt.err (!%p1472_p4)  }
   0xa   :  { %s1498_s25 = smov [#allocation3]   ;;  %s1476_s26 = scalar_lea.vmem %s15_s23, 16 }
   0xb   :  { %13 = dma.vmem_to_smem %s11_s20, 16, %s1498_s25, [#allocation2] }
   0xc   :  { %p1477_p5 = scmp.ne.s32.totalorder %s15_s23, %s1476_s26  ;;  %p1481_p6 = scmp.lt.s32.totalorder %s15_s23, %s15_s23 }
   0xd   :  { %p1482_p7 = scmp.lt.s32.totalorder %s1476_s26, %s1476_s26 }
   0xf   :  { %p1483_p8 = por %p1482_p7, %p1481_p6 }
  0x11   :  { %p1484_p9 = pnand %p1483_p8, %p1477_p5 }
  0x13   :  { %1487 = shalt.err (!%p1484_p9)  }
  0x14   :  { %s1499_s0 = smov [#allocation4]  }
  0x15   :  { %17 = dma.vmem_to_smem %s15_s23, 16, %s1499_s0, [#allocation2] }
  0x16   :  { %1492 = dma.done.wait [#allocation2], 32 }
  0x17   :  { %1493 = vsyncadd [#allocation2], 4294967264 }
  0x18   :  { %19 = sfence }
  0x19   :  { %s1539_s1 = smov 0  }
  0x1a LB: > { %s1322_s27 = sadd.s32 4294967295, %s1496_s1   ;;  %p1326_p10 = scmp.ge.s32.totalorder %s1496_s1, 1  ;;  %s1496_s1 = sphi %s1539_s1, %s25_s1  }
  0x1b   : > { %p168_p11 = scmp.lt.s32.totalorder %s1496_s1, 7 }
  0x1d   : > { %p169_p12 = pnand %p1326_p10, %p168_p11 }
  0x1e   : > { %p201_p13 = scmp.lt.s32.totalorder (!%p169_p12), %s1322_s27, 5  ;;  %v224_v0 = vlaneseq (!%p169_p12)  ;;  %s1500_s8 = smov (!%p169_p12), 16   ;;  %v1502_v7 = vmov (!%p169_p12), 1983009808   ;;  %vm256_vm0 = vcmask (!%p169_p12), 916480   ;;  %vm247_vm1 = vcmask (!%p169_p12), 130048  }
  0x1f   : > { %172 = sbr.rel (%p169_p12) target bundleno = 2171 (0x87b), region = 32  ;;  %s1501_s9 = smov (!%p169_p12), 112   ;;  %v280_v8 = vunpack.c.l.s4 (!%p169_p12), %v1502_v7 }
  0x20   : > { %v225_v1 = vshrl.u32 (!%p169_p12), %v224_v0, 7  ;;  %s1558_s10 = sld [smem:[#allocation3 + %s1322_s27]] (!%p169_p12) }
  0x21   : > { %s221_s11 = sld [smem:[#allocation4 + %s1322_s27]] (!%p169_p12)  ;;  %v281_v13 = vunpack.c.0.s8 (!%p169_p12), %v280_v8 }
  0x22   : > { %v226_v2 = vsub.s32 (!%p169_p12), 0, %v225_v1  ;;  %v230_v3 = vsub.s32 (!%p169_p12), 1, %v225_v1 }
  0x23   : > { %v1598_v22 = vsub.s32 (!%p169_p12), %v281_v13, %v225_v1 }
  0x26   : > { %s202_s28 = scalar_select %p201_p13, %s1322_s27, 5 }
  0x27   : > { %p234_p0 = scmp.gt.s32.totalorder %s1558_s10, 0  ;;  %p263_p1 = scmp.lt.s32.totalorder %s221_s11, 0 }
  0x28   : > { %s1331_s29 = sshll.u32 %s202_s28, 1  ;;  %p262_p2 = scmp.gt.s32.totalorder %s221_s11, 0 }
  0x29   : > { %s214_s7 = scalar_lea.vmem %s2001_s4, %s1331_s29  ;;  %s1561_s12 = sshll.u32 %s202_s28, 6 }
  0x2a   : > { %v222_v4 = vld [vmem:[%s214_s7] sm:$0x3]  ;;  %s235_s13 = scalar_select %p234_p0, 15, 0 }
  0x2b   : > { %v1550_v5 = vrot.slane %v222_v4, %v226_v2  ;;  %v231_v6 = vrot.slane %v222_v4, %v230_v3  ;;  %s264_s14 = scalar_select %p263_p1, 1, 0 }
  0x2c   : > { %s269_s15 = scalar_select %p262_p2, 1, 0 }
  0x2d   : > { %243 = vrot.lane.b32.xlu1 %v1550_v5, %s1500_s8  ;;  %252 = vrot.lane.b32.xlu0 %v1550_v5, %s1501_s9  ;;  %s1565_s16 = sshll.u32 %s235_s13, 2  ;;  %s1571_s19 = scalar_lea.vmem %s1999_s2, %s1561_s12  ;;  %v265_v11 = vstv %s264_s14 }
  0x2e   : > { %v270_v12 = vstv %s269_s15  ;;  %s1579_s22 = scalar_lea.vmem %s2000_s3, %s1561_s12  ;;  %s238_s23 = scalar_lea.vmem %s1571_s19, %s1565_s16  ;;  %vm1583_vm2 = vcmp.eq.s32.totalorder %v265_v11, 1 }
  0x2f   : > { %vm1587_vm3 = vcmp.eq.s32.totalorder %v270_v12, 1  ;;  %s241_s24 = scalar_lea.vmem %s1579_s22, %s1565_s16  ;;  %v239_v19 = vld [vmem:[%s238_s23] sm:$0xf]  ;;  %s1616_s0 = scalar_lea.vmem %s2002_s5, %s1561_s12 }
  0x30   : > { %v242_v28 = vld [vmem:[%s241_s24] sm:$0xf]  ;;  %v275_v29 = vsub.f32 1.0, %v239_v19  ;;  %s290_s27 = scalar_lea.vmem %s1616_s0, %s1565_s16 }
  0x31   : > { %245 = vrot.lane.b32.xlu1 %v231_v6, %s1500_s8  ;;  %254 = vrot.lane.b32.xlu0 %v231_v6, %s1501_s9  ;;  %v274_v32 = vmul.f32 %v242_v28, %v239_v19  ;;  %s292_s28 = scalar_select %p234_p0, 14, 1 }
  0x32   : > { %s349_s11 = scalar_select %p234_p0, 13, 2 }
  0x33   : > { %s1406_s29 = sshll.u32 %s292_s28, 2 }
  0x34   : > { %s295_s30 = scalar_lea.vmem %s1571_s19, %s1406_s29  ;;  %s298_s6 = scalar_lea.vmem %s1579_s22, %s1406_s29 }
  0x35   : > { %v296_v44 = vld [vmem:[%s295_s30] sm:$0xf]  ;;  %s347_s7 = scalar_lea.vmem %s1616_s0, %s1406_s29  ;;  %s1409_s12 = sshll.u32 %s349_s11, 2 }
  0x36   : > { %v299_v50 = vld [vmem:[%s298_s6] sm:$0xf]  ;;  %v332_v51 = vsub.f32 1.0, %v296_v44  ;;  %s352_s13 = scalar_lea.vmem %s1571_s19, %s1409_s12  ;;  %s355_s14 = scalar_lea.vmem %s1579_s22, %s1409_s12 }
  0x37   : > { %v331_v54 = vmul.f32 %v299_v50, %v296_v44  ;;  %v353_v2 = vld [vmem:[%s352_s13] sm:$0xf]  ;;  %s404_s15 = scalar_lea.vmem %s1616_s0, %s1409_s12 }
  0x38   : > { %v389_v11 = vsub.f32 1.0, %v353_v2  ;;  %s406_s16 = scalar_select %p234_p0, 12, 3 }
  0x39   : > { %s463_s23 = scalar_select %p234_p0, 11, 4 }
  0x3a   : > { %s1412_s17 = sshll.u32 %s406_s16, 2 }
  0x3b   : > { %s409_s18 = scalar_lea.vmem %s1571_s19, %s1412_s17  ;;  %s412_s20 = scalar_lea.vmem %s1579_s22, %s1412_s17 }
  0x3c   : > { %s461_s21 = scalar_lea.vmem %s1616_s0, %s1412_s17  ;;  %s1415_s24 = sshll.u32 %s463_s23, 2 }
  0x3d   : > { %s466_s25 = scalar_lea.vmem %s1571_s19, %s1415_s24  ;;  %s469_s26 = scalar_lea.vmem %s1579_s22, %s1415_s24 }
  0x3e   : > { %s520_s28 = scalar_select %p234_p0, 10, 5 }
  0x3f   : > { %s577_s11 = scalar_select %p234_p0, 9, 6 }
  0x40   : > { %s1418_s29 = sshll.u32 %s520_s28, 2 }
  0x41   : > { %s523_s30 = scalar_lea.vmem %s1571_s19, %s1418_s29  ;;  %s526_s6 = scalar_lea.vmem %s1579_s22, %s1418_s29 }
  0x42   : > { %s1421_s12 = sshll.u32 %s577_s11, 2 }
  0x43   : > { %s580_s13 = scalar_lea.vmem %s1571_s19, %s1421_s12 }
  0x44   : > { %s634_s16 = scalar_select %p234_p0, 8, 7 }
  0x45   : > { %s691_s23 = scalar_select %p234_p0, 7, 8 }
  0x46   : > { %s1424_s17 = sshll.u32 %s634_s16, 2 }
  0x47   : > { %s748_s28 = scalar_select %p234_p0, 6, 9 }
  0x48   : > { %s805_s11 = scalar_select %p234_p0, 5, 10 }
  0x49   : > { %s862_s16 = scalar_select %p234_p0, 4, 11 }
  0x9f   : > { %v244_v9 = vpop.permute.xlu1 %243  ;;  %v1573_v10 = vpop.permute.xlu0 %252 }
  0xa0   : > { %v251_v23 = vsel %vm247_vm1, %v1550_v5, %v244_v9 }
  0xa3   : > { %v246_v15 = vpop.permute.xlu1 %245  ;;  %v255_v17 = vpop.permute.xlu0 %254 }
  0xa4   : > { %v248_v18 = vsel %vm247_vm1, %v244_v9, %v246_v15  ;;  %v257_v20 = vsel %vm256_vm0, %v1573_v10, %v255_v17  ;;  %v261_v21 = vsel %vm256_vm0, %v255_v17, %v1573_v10  ;;  %v356_v9 = vld [vmem:[%s355_s14] sm:$0xf]  ;;  %s583_s14 = scalar_lea.vmem %s1579_s22, %s1421_s12 }
  0xa5   : > { %v267_v24 = vsel %vm1583_vm2, %v257_v20, %v1550_v5  ;;  %v268_v25 = vsel %vm1583_vm2, %v261_v21, %v231_v6  ;;  %v388_v15 = vmul.f32 %v356_v9, %v353_v2 }
  0xa6   : > { %v272_v26 = vsel %vm1587_vm3, %v251_v23, %v267_v24  ;;  %v273_v27 = vsel %vm1587_vm3, %v248_v18, %v268_v25 }
  0xa7   : > { %v278_v30 = vcombine.low %v272_v26, %v273_v27 }
  0xa9   : > { %v285_v31 = vrot.slane %v278_v30, %v1598_v22 }
  0xab   : > { %v287_v33 = vmul.f32 %v285_v31, %v275_v29  ;;  %v410_v29 = vld [vmem:[%s409_s18] sm:$0xf]  ;;  %s637_s18 = scalar_lea.vmem %s1571_s19, %s1424_s17 }
  0xad   : > { %v288_v34 = vadd.f32 %v287_v33, %v274_v32 }
  0xaf   : > { %v307_v35 = vrot.slane %v288_v34, %v1598_v22  ;;  %291 = vst [vmem:[%s290_s27] sm:$0xf] %v288_v34  ;;  %s518_s27 = scalar_lea.vmem %s1616_s0, %s1415_s24  ;;  %s1427_s24 = sshll.u32 %s691_s23, 2 }
  0xb0   : > { %s919_s23 = scalar_select %p234_p0, 3, 12 }
  0xb1   : > { %317 = vrot.lane.b32.xlu0 %v307_v35, %s1501_s9  ;;  %v308_v36 = vcombine.high %v307_v35, %v307_v35 }
  0xb3   : > { %319 = vrot.lane.b32.xlu1 %v308_v36, %s1501_s9 }
  0xb5   : > { %309 = vrot.lane.b32.xlu0 %v307_v35, %s1500_s8 }
  0xb7   : > { %311 = vrot.lane.b32.xlu1 %v308_v36, %s1500_s8 }
 0x123   : > { %v318_v37 = vpop.permute.xlu0 %317 }
 0x125   : > { %v320_v38 = vpop.permute.xlu1 %319 }
 0x126   : > { %v321_v39 = vsel %vm256_vm0, %v318_v37, %v320_v38  ;;  %v324_v40 = vsel %vm256_vm0, %v320_v38, %v1573_v10 }
 0x127   : > { %v310_v41 = vpop.permute.xlu0 %309  ;;  %v327_v42 = vsel %vm1583_vm2, %v321_v39, %v307_v35  ;;  %v328_v46 = vsel %vm1583_vm2, %v324_v40, %v308_v36  ;;  %v413_v35 = vld [vmem:[%s412_s20] sm:$0xf]  ;;  %v446_v36 = vsub.f32 1.0, %v410_v29  ;;  %s640_s20 = scalar_lea.vmem %s1579_s22, %s1424_s17 }
 0x128   : > { %v316_v43 = vsel %vm247_vm1, %v1550_v5, %v310_v41  ;;  %v445_v39 = vmul.f32 %v413_v35, %v410_v29 }
 0x129   : > { %v312_v45 = vpop.permute.xlu1 %311  ;;  %v329_v48 = vsel %vm1587_vm3, %v316_v43, %v327_v42 }
 0x12a   : > { %v313_v47 = vsel %vm247_vm1, %v310_v41, %v312_v45 }
 0x12b   : > { %v330_v49 = vsel %vm1587_vm3, %v313_v47, %v328_v46 }
 0x12c   : > { %v335_v52 = vcombine.low %v329_v48, %v330_v49 }
 0x12e   : > { %v342_v53 = vrot.slane %v335_v52, %v1598_v22 }
 0x130   : > { %v344_v55 = vmul.f32 %v342_v53, %v332_v51  ;;  %v467_v51 = vld [vmem:[%s466_s25] sm:$0xf]  ;;  %s694_s25 = scalar_lea.vmem %s1571_s19, %s1427_s24 }
 0x132   : > { %v345_v56 = vadd.f32 %v344_v55, %v331_v54 }
 0x134   : > { %v364_v57 = vrot.slane %v345_v56, %v1598_v22  ;;  %348 = vst [vmem:[%s347_s7] sm:$0xf] %v345_v56  ;;  %s575_s7 = scalar_lea.vmem %s1616_s0, %s1418_s29  ;;  %s1430_s29 = sshll.u32 %s748_s28, 2 }
 0x135   : > { %s976_s28 = scalar_select %p234_p0, 2, 13 }
 0x136   : > { %374 = vrot.lane.b32.xlu0 %v364_v57, %s1501_s9  ;;  %v365_v58 = vcombine.high %v364_v57, %v364_v57 }
 0x138   : > { %376 = vrot.lane.b32.xlu1 %v365_v58, %s1501_s9 }
 0x13a   : > { %366 = vrot.lane.b32.xlu0 %v364_v57, %s1500_s8 }
 0x13c   : > { %368 = vrot.lane.b32.xlu1 %v365_v58, %s1500_s8 }
 0x1a8   : > { %v375_v59 = vpop.permute.xlu0 %374 }
 0x1aa   : > { %v377_v60 = vpop.permute.xlu1 %376 }
 0x1ab   : > { %v378_v61 = vsel %vm256_vm0, %v375_v59, %v377_v60  ;;  %v381_v62 = vsel %vm256_vm0, %v377_v60, %v1573_v10 }
 0x1ac   : > { %v367_v63 = vpop.permute.xlu0 %366  ;;  %v384_v0 = vsel %vm1583_vm2, %v378_v61, %v364_v57  ;;  %v385_v4 = vsel %vm1583_vm2, %v381_v62, %v365_v58  ;;  %v470_v57 = vld [vmem:[%s469_s26] sm:$0xf]  ;;  %v503_v58 = vsub.f32 1.0, %v467_v51  ;;  %s697_s26 = scalar_lea.vmem %s1579_s22, %s1427_s24 }
 0x1ad   : > { %v373_v1 = vsel %vm247_vm1, %v1550_v5, %v367_v63  ;;  %v502_v61 = vmul.f32 %v470_v57, %v467_v51 }
 0x1ae   : > { %v369_v3 = vpop.permute.xlu1 %368  ;;  %v386_v7 = vsel %vm1587_vm3, %v373_v1, %v384_v0 }
 0x1af   : > { %v370_v6 = vsel %vm247_vm1, %v367_v63, %v369_v3 }
 0x1b0   : > { %v387_v8 = vsel %vm1587_vm3, %v370_v6, %v385_v4 }
 0x1b1   : > { %v392_v12 = vcombine.low %v386_v7, %v387_v8 }
 0x1b3   : > { %v399_v13 = vrot.slane %v392_v12, %v1598_v22 }
 0x1b5   : > { %v401_v17 = vmul.f32 %v399_v13, %v389_v11  ;;  %v524_v11 = vld [vmem:[%s523_s30] sm:$0xf]  ;;  %s751_s30 = scalar_lea.vmem %s1571_s19, %s1430_s29 }
 0x1b7   : > { %v402_v18 = vadd.f32 %v401_v17, %v388_v15 }
 0x1b9   : > { %v421_v19 = vrot.slane %v402_v18, %v1598_v22  ;;  %405 = vst [vmem:[%s404_s15] sm:$0xf] %v402_v18  ;;  %s632_s15 = scalar_lea.vmem %s1616_s0, %s1421_s12  ;;  %s1433_s12 = sshll.u32 %s805_s11, 2 }
 0x1ba   : > { %s1033_s11 = scalar_select %p234_p0, 1, 14 }
 0x1bb   : > { %431 = vrot.lane.b32.xlu0 %v421_v19, %s1501_s9  ;;  %v422_v20 = vcombine.high %v421_v19, %v421_v19 }
 0x1bd   : > { %433 = vrot.lane.b32.xlu1 %v422_v20, %s1501_s9 }
 0x1bf   : > { %423 = vrot.lane.b32.xlu0 %v421_v19, %s1500_s8 }
 0x1c1   : > { %425 = vrot.lane.b32.xlu1 %v422_v20, %s1500_s8 }
 0x22d   : > { %v432_v21 = vpop.permute.xlu0 %431 }
 0x22f   : > { %v434_v23 = vpop.permute.xlu1 %433 }
 0x230   : > { %v435_v24 = vsel %vm256_vm0, %v432_v21, %v434_v23  ;;  %v438_v25 = vsel %vm256_vm0, %v434_v23, %v1573_v10 }
 0x231   : > { %v424_v26 = vpop.permute.xlu0 %423  ;;  %v441_v27 = vsel %vm1583_vm2, %v435_v24, %v421_v19  ;;  %v442_v31 = vsel %vm1583_vm2, %v438_v25, %v422_v20  ;;  %v527_v19 = vld [vmem:[%s526_s6] sm:$0xf]  ;;  %v560_v20 = vsub.f32 1.0, %v524_v11  ;;  %s754_s6 = scalar_lea.vmem %s1579_s22, %s1430_s29 }
 0x232   : > { %v430_v28 = vsel %vm247_vm1, %v1550_v5, %v424_v26  ;;  %v559_v24 = vmul.f32 %v527_v19, %v524_v11 }
 0x233   : > { %v426_v30 = vpop.permute.xlu1 %425  ;;  %v443_v33 = vsel %vm1587_vm3, %v430_v28, %v441_v27 }
 0x234   : > { %v427_v32 = vsel %vm247_vm1, %v424_v26, %v426_v30 }
 0x235   : > { %v444_v34 = vsel %vm1587_vm3, %v427_v32, %v442_v31 }
 0x236   : > { %v449_v37 = vcombine.low %v443_v33, %v444_v34 }
 0x238   : > { %v456_v38 = vrot.slane %v449_v37, %v1598_v22 }
 0x23a   : > { %v458_v40 = vmul.f32 %v456_v38, %v446_v36  ;;  %v581_v36 = vld [vmem:[%s580_s13] sm:$0xf]  ;;  %s808_s13 = scalar_lea.vmem %s1571_s19, %s1433_s12 }
 0x23c   : > { %v459_v41 = vadd.f32 %v458_v40, %v445_v39 }
 0x23e   : > { %v478_v42 = vrot.slane %v459_v41, %v1598_v22  ;;  %462 = vst [vmem:[%s461_s21] sm:$0xf] %v459_v41  ;;  %s689_s21 = scalar_lea.vmem %s1616_s0, %s1424_s17  ;;  %s1436_s17 = sshll.u32 %s862_s16, 2 }
 0x23f   : > { %s1090_s16 = scalar_select %p234_p0, 0, 15 }
 0x240   : > { %488 = vrot.lane.b32.xlu0 %v478_v42, %s1501_s9  ;;  %v479_v43 = vcombine.high %v478_v42, %v478_v42 }
 0x242   : > { %490 = vrot.lane.b32.xlu1 %v479_v43, %s1501_s9 }
 0x244   : > { %480 = vrot.lane.b32.xlu0 %v478_v42, %s1500_s8 }
 0x246   : > { %482 = vrot.lane.b32.xlu1 %v479_v43, %s1500_s8 }
 0x2b2   : > { %v489_v44 = vpop.permute.xlu0 %488 }
 0x2b4   : > { %v491_v45 = vpop.permute.xlu1 %490 }
 0x2b5   : > { %v492_v46 = vsel %vm256_vm0, %v489_v44, %v491_v45  ;;  %v495_v47 = vsel %vm256_vm0, %v491_v45, %v1573_v10 }
 0x2b6   : > { %v481_v48 = vpop.permute.xlu0 %480  ;;  %v498_v49 = vsel %vm1583_vm2, %v492_v46, %v478_v42  ;;  %v499_v53 = vsel %vm1583_vm2, %v495_v47, %v479_v43  ;;  %v584_v42 = vld [vmem:[%s583_s14] sm:$0xf]  ;;  %v617_v43 = vsub.f32 1.0, %v581_v36  ;;  %s811_s14 = scalar_lea.vmem %s1579_s22, %s1433_s12 }
 0x2b7   : > { %v487_v50 = vsel %vm247_vm1, %v1550_v5, %v481_v48  ;;  %v616_v46 = vmul.f32 %v584_v42, %v581_v36 }
 0x2b8   : > { %v483_v52 = vpop.permute.xlu1 %482  ;;  %v500_v55 = vsel %vm1587_vm3, %v487_v50, %v498_v49 }
 0x2b9   : > { %v484_v54 = vsel %vm247_vm1, %v481_v48, %v483_v52 }
 0x2ba   : > { %v501_v56 = vsel %vm1587_vm3, %v484_v54, %v499_v53 }
 0x2bb   : > { %v506_v59 = vcombine.low %v500_v55, %v501_v56 }
 0x2bd   : > { %v513_v60 = vrot.slane %v506_v59, %v1598_v22 }
 0x2bf   : > { %v515_v62 = vmul.f32 %v513_v60, %v503_v58  ;;  %v638_v58 = vld [vmem:[%s637_s18] sm:$0xf]  ;;  %s865_s18 = scalar_lea.vmem %s1571_s19, %s1436_s17 }
 0x2c1   : > { %v516_v63 = vadd.f32 %v515_v62, %v502_v61 }
 0x2c3   : > { %v535_v0 = vrot.slane %v516_v63, %v1598_v22  ;;  %519 = vst [vmem:[%s518_s27] sm:$0xf] %v516_v63  ;;  %s746_s27 = scalar_lea.vmem %s1616_s0, %s1427_s24  ;;  %s1439_s24 = sshll.u32 %s919_s23, 2 }
 0x2c5   : > { %545 = vrot.lane.b32.xlu0 %v535_v0, %s1501_s9  ;;  %v536_v1 = vcombine.high %v535_v0, %v535_v0 }
 0x2c7   : > { %547 = vrot.lane.b32.xlu1 %v536_v1, %s1501_s9 }
 0x2c9   : > { %537 = vrot.lane.b32.xlu0 %v535_v0, %s1500_s8 }
 0x2cb   : > { %539 = vrot.lane.b32.xlu1 %v536_v1, %s1500_s8 }
 0x337   : > { %v546_v2 = vpop.permute.xlu0 %545 }
 0x339   : > { %v548_v3 = vpop.permute.xlu1 %547 }
 0x33a   : > { %v549_v4 = vsel %vm256_vm0, %v546_v2, %v548_v3  ;;  %v552_v6 = vsel %vm256_vm0, %v548_v3, %v1573_v10 }
 0x33b   : > { %v538_v7 = vpop.permute.xlu0 %537  ;;  %v555_v8 = vsel %vm1583_vm2, %v549_v4, %v535_v0  ;;  %v556_v13 = vsel %vm1583_vm2, %v552_v6, %v536_v1  ;;  %v641_v0 = vld [vmem:[%s640_s20] sm:$0xf]  ;;  %v674_v1 = vsub.f32 1.0, %v638_v58  ;;  %s868_s20 = scalar_lea.vmem %s1579_s22, %s1436_s17 }
 0x33c   : > { %v544_v9 = vsel %vm247_vm1, %v1550_v5, %v538_v7  ;;  %v673_v4 = vmul.f32 %v641_v0, %v638_v58 }
 0x33d   : > { %v540_v12 = vpop.permute.xlu1 %539  ;;  %v557_v17 = vsel %vm1587_vm3, %v544_v9, %v555_v8 }
 0x33e   : > { %v541_v15 = vsel %vm247_vm1, %v538_v7, %v540_v12 }
 0x33f   : > { %v558_v18 = vsel %vm1587_vm3, %v541_v15, %v556_v13 }
 0x340   : > { %v563_v21 = vcombine.low %v557_v17, %v558_v18 }
 0x342   : > { %v570_v23 = vrot.slane %v563_v21, %v1598_v22 }
 0x344   : > { %v572_v25 = vmul.f32 %v570_v23, %v560_v20  ;;  %v695_v20 = vld [vmem:[%s694_s25] sm:$0xf]  ;;  %s922_s25 = scalar_lea.vmem %s1571_s19, %s1439_s24 }
 0x346   : > { %v573_v26 = vadd.f32 %v572_v25, %v559_v24 }
 0x348   : > { %v592_v27 = vrot.slane %v573_v26, %v1598_v22  ;;  %576 = vst [vmem:[%s575_s7] sm:$0xf] %v573_v26  ;;  %s803_s7 = scalar_lea.vmem %s1616_s0, %s1430_s29  ;;  %s1442_s29 = sshll.u32 %s976_s28, 2 }
 0x34a   : > { %602 = vrot.lane.b32.xlu0 %v592_v27, %s1501_s9  ;;  %v593_v28 = vcombine.high %v592_v27, %v592_v27 }
 0x34c   : > { %604 = vrot.lane.b32.xlu1 %v593_v28, %s1501_s9 }
 0x34e   : > { %594 = vrot.lane.b32.xlu0 %v592_v27, %s1500_s8 }
 0x350   : > { %596 = vrot.lane.b32.xlu1 %v593_v28, %s1500_s8 }
 0x3bc   : > { %v603_v29 = vpop.permute.xlu0 %602 }
 0x3be   : > { %v605_v30 = vpop.permute.xlu1 %604 }
 0x3bf   : > { %v606_v31 = vsel %vm256_vm0, %v603_v29, %v605_v30  ;;  %v609_v32 = vsel %vm256_vm0, %v605_v30, %v1573_v10 }
 0x3c0   : > { %v595_v33 = vpop.permute.xlu0 %594  ;;  %v612_v34 = vsel %vm1583_vm2, %v606_v31, %v592_v27  ;;  %v613_v38 = vsel %vm1583_vm2, %v609_v32, %v593_v28  ;;  %v698_v27 = vld [vmem:[%s697_s26] sm:$0xf]  ;;  %v731_v28 = vsub.f32 1.0, %v695_v20  ;;  %s925_s26 = scalar_lea.vmem %s1579_s22, %s1439_s24 }
 0x3c1   : > { %v601_v35 = vsel %vm247_vm1, %v1550_v5, %v595_v33  ;;  %v730_v31 = vmul.f32 %v698_v27, %v695_v20 }
 0x3c2   : > { %v597_v37 = vpop.permute.xlu1 %596  ;;  %v614_v40 = vsel %vm1587_vm3, %v601_v35, %v612_v34 }
 0x3c3   : > { %v598_v39 = vsel %vm247_vm1, %v595_v33, %v597_v37 }
 0x3c4   : > { %v615_v41 = vsel %vm1587_vm3, %v598_v39, %v613_v38 }
 0x3c5   : > { %v620_v44 = vcombine.low %v614_v40, %v615_v41 }
 0x3c7   : > { %v627_v45 = vrot.slane %v620_v44, %v1598_v22 }
 0x3c9   : > { %v629_v47 = vmul.f32 %v627_v45, %v617_v43  ;;  %v752_v43 = vld [vmem:[%s751_s30] sm:$0xf]  ;;  %s979_s30 = scalar_lea.vmem %s1571_s19, %s1442_s29 }
 0x3cb   : > { %v630_v48 = vadd.f32 %v629_v47, %v616_v46 }
 0x3cd   : > { %v649_v49 = vrot.slane %v630_v48, %v1598_v22  ;;  %633 = vst [vmem:[%s632_s15] sm:$0xf] %v630_v48  ;;  %s860_s15 = scalar_lea.vmem %s1616_s0, %s1433_s12  ;;  %s1445_s12 = sshll.u32 %s1033_s11, 2 }
 0x3cf   : > { %659 = vrot.lane.b32.xlu0 %v649_v49, %s1501_s9  ;;  %v650_v50 = vcombine.high %v649_v49, %v649_v49 }
 0x3d1   : > { %661 = vrot.lane.b32.xlu1 %v650_v50, %s1501_s9 }
 0x3d3   : > { %651 = vrot.lane.b32.xlu0 %v649_v49, %s1500_s8 }
 0x3d5   : > { %653 = vrot.lane.b32.xlu1 %v650_v50, %s1500_s8 }
 0x441   : > { %v660_v51 = vpop.permute.xlu0 %659 }
 0x443   : > { %v662_v52 = vpop.permute.xlu1 %661 }
 0x444   : > { %v663_v53 = vsel %vm256_vm0, %v660_v51, %v662_v52  ;;  %v666_v54 = vsel %vm256_vm0, %v662_v52, %v1573_v10 }
 0x445   : > { %v652_v55 = vpop.permute.xlu0 %651  ;;  %v669_v56 = vsel %vm1583_vm2, %v663_v53, %v649_v49  ;;  %v670_v60 = vsel %vm1583_vm2, %v666_v54, %v650_v50  ;;  %v755_v49 = vld [vmem:[%s754_s6] sm:$0xf]  ;;  %v788_v50 = vsub.f32 1.0, %v752_v43  ;;  %s982_s6 = scalar_lea.vmem %s1579_s22, %s1442_s29 }
 0x446   : > { %v658_v57 = vsel %vm247_vm1, %v1550_v5, %v652_v55  ;;  %v787_v53 = vmul.f32 %v755_v49, %v752_v43 }
 0x447   : > { %v654_v59 = vpop.permute.xlu1 %653  ;;  %v671_v62 = vsel %vm1587_vm3, %v658_v57, %v669_v56 }
 0x448   : > { %v655_v61 = vsel %vm247_vm1, %v652_v55, %v654_v59 }
 0x449   : > { %v672_v63 = vsel %vm1587_vm3, %v655_v61, %v670_v60 }
 0x44a   : > { %v677_v2 = vcombine.low %v671_v62, %v672_v63 }
 0x44c   : > { %v684_v3 = vrot.slane %v677_v2, %v1598_v22 }
 0x44e   : > { %v686_v6 = vmul.f32 %v684_v3, %v674_v1  ;;  %v809_v1 = vld [vmem:[%s808_s13] sm:$0xf]  ;;  %s1036_s13 = scalar_lea.vmem %s1571_s19, %s1445_s12 }
 0x450   : > { %v687_v7 = vadd.f32 %v686_v6, %v673_v4 }
 0x452   : > { %v706_v8 = vrot.slane %v687_v7, %v1598_v22  ;;  %690 = vst [vmem:[%s689_s21] sm:$0xf] %v687_v7  ;;  %s917_s21 = scalar_lea.vmem %s1616_s0, %s1436_s17  ;;  %s1448_s17 = sshll.u32 %s1090_s16, 2 }
 0x454   : > { %716 = vrot.lane.b32.xlu0 %v706_v8, %s1501_s9  ;;  %v707_v9 = vcombine.high %v706_v8, %v706_v8 }
 0x456   : > { %718 = vrot.lane.b32.xlu1 %v707_v9, %s1501_s9 }
 0x458   : > { %708 = vrot.lane.b32.xlu0 %v706_v8, %s1500_s8 }
 0x45a   : > { %710 = vrot.lane.b32.xlu1 %v707_v9, %s1500_s8 }
 0x4c6   : > { %v717_v11 = vpop.permute.xlu0 %716 }
 0x4c8   : > { %v719_v12 = vpop.permute.xlu1 %718 }
 0x4c9   : > { %v720_v13 = vsel %vm256_vm0, %v717_v11, %v719_v12  ;;  %v723_v15 = vsel %vm256_vm0, %v719_v12, %v1573_v10 }
 0x4ca   : > { %v709_v17 = vpop.permute.xlu0 %708  ;;  %v726_v18 = vsel %vm1583_vm2, %v720_v13, %v706_v8  ;;  %v727_v23 = vsel %vm1583_vm2, %v723_v15, %v707_v9  ;;  %v812_v8 = vld [vmem:[%s811_s14] sm:$0xf]  ;;  %v845_v9 = vsub.f32 1.0, %v809_v1  ;;  %s1039_s14 = scalar_lea.vmem %s1579_s22, %s1445_s12 }
 0x4cb   : > { %v715_v19 = vsel %vm247_vm1, %v1550_v5, %v709_v17  ;;  %v844_v13 = vmul.f32 %v812_v8, %v809_v1 }
 0x4cc   : > { %v711_v21 = vpop.permute.xlu1 %710  ;;  %v728_v25 = vsel %vm1587_vm3, %v715_v19, %v726_v18 }
 0x4cd   : > { %v712_v24 = vsel %vm247_vm1, %v709_v17, %v711_v21 }
 0x4ce   : > { %v729_v26 = vsel %vm1587_vm3, %v712_v24, %v727_v23 }
 0x4cf   : > { %v734_v29 = vcombine.low %v728_v25, %v729_v26 }
 0x4d1   : > { %v741_v30 = vrot.slane %v734_v29, %v1598_v22 }
 0x4d3   : > { %v743_v32 = vmul.f32 %v741_v30, %v731_v28  ;;  %v866_v28 = vld [vmem:[%s865_s18] sm:$0xf]  ;;  %s1093_s18 = scalar_lea.vmem %s1571_s19, %s1448_s17 }
 0x4d5   : > { %v744_v33 = vadd.f32 %v743_v32, %v730_v31 }
 0x4d7   : > { %v763_v34 = vrot.slane %v744_v33, %v1598_v22  ;;  %747 = vst [vmem:[%s746_s27] sm:$0xf] %v744_v33  ;;  %s974_s27 = scalar_lea.vmem %s1616_s0, %s1439_s24 }
 0x4d9   : > { %773 = vrot.lane.b32.xlu0 %v763_v34, %s1501_s9  ;;  %v764_v35 = vcombine.high %v763_v34, %v763_v34 }
 0x4db   : > { %775 = vrot.lane.b32.xlu1 %v764_v35, %s1501_s9 }
 0x4dd   : > { %765 = vrot.lane.b32.xlu0 %v763_v34, %s1500_s8 }
 0x4df   : > { %767 = vrot.lane.b32.xlu1 %v764_v35, %s1500_s8 }
 0x54b   : > { %v774_v36 = vpop.permute.xlu0 %773 }
 0x54d   : > { %v776_v37 = vpop.permute.xlu1 %775 }
 0x54e   : > { %v777_v38 = vsel %vm256_vm0, %v774_v36, %v776_v37  ;;  %v780_v39 = vsel %vm256_vm0, %v776_v37, %v1573_v10 }
 0x54f   : > { %v766_v40 = vpop.permute.xlu0 %765  ;;  %v783_v41 = vsel %vm1583_vm2, %v777_v38, %v763_v34  ;;  %v784_v45 = vsel %vm1583_vm2, %v780_v39, %v764_v35  ;;  %v869_v34 = vld [vmem:[%s868_s20] sm:$0xf]  ;;  %v902_v35 = vsub.f32 1.0, %v866_v28 }
 0x550   : > { %v772_v42 = vsel %vm247_vm1, %v1550_v5, %v766_v40  ;;  %v901_v38 = vmul.f32 %v869_v34, %v866_v28 }
 0x551   : > { %v768_v44 = vpop.permute.xlu1 %767  ;;  %v785_v47 = vsel %vm1587_vm3, %v772_v42, %v783_v41 }
 0x552   : > { %v769_v46 = vsel %vm247_vm1, %v766_v40, %v768_v44 }
 0x553   : > { %v786_v48 = vsel %vm1587_vm3, %v769_v46, %v784_v45 }
 0x554   : > { %v791_v51 = vcombine.low %v785_v47, %v786_v48 }
 0x556   : > { %v798_v52 = vrot.slane %v791_v51, %v1598_v22 }
 0x558   : > { %v800_v54 = vmul.f32 %v798_v52, %v788_v50  ;;  %v923_v50 = vld [vmem:[%s922_s25] sm:$0xf] }
 0x55a   : > { %v801_v55 = vadd.f32 %v800_v54, %v787_v53 }
 0x55c   : > { %v820_v56 = vrot.slane %v801_v55, %v1598_v22  ;;  %804 = vst [vmem:[%s803_s7] sm:$0xf] %v801_v55  ;;  %s1031_s7 = scalar_lea.vmem %s1616_s0, %s1442_s29 }
 0x55e   : > { %830 = vrot.lane.b32.xlu0 %v820_v56, %s1501_s9  ;;  %v821_v57 = vcombine.high %v820_v56, %v820_v56 }
 0x560   : > { %832 = vrot.lane.b32.xlu1 %v821_v57, %s1501_s9 }
 0x562   : > { %822 = vrot.lane.b32.xlu0 %v820_v56, %s1500_s8 }
 0x564   : > { %824 = vrot.lane.b32.xlu1 %v821_v57, %s1500_s8 }
 0x5d0   : > { %v831_v58 = vpop.permute.xlu0 %830 }
 0x5d2   : > { %v833_v59 = vpop.permute.xlu1 %832 }
 0x5d3   : > { %v834_v60 = vsel %vm256_vm0, %v831_v58, %v833_v59  ;;  %v837_v61 = vsel %vm256_vm0, %v833_v59, %v1573_v10 }
 0x5d4   : > { %v823_v62 = vpop.permute.xlu0 %822  ;;  %v840_v63 = vsel %vm1583_vm2, %v834_v60, %v820_v56  ;;  %v841_v3 = vsel %vm1583_vm2, %v837_v61, %v821_v57  ;;  %v926_v56 = vld [vmem:[%s925_s26] sm:$0xf]  ;;  %v959_v57 = vsub.f32 1.0, %v923_v50 }
 0x5d5   : > { %v829_v0 = vsel %vm247_vm1, %v1550_v5, %v823_v62  ;;  %v958_v60 = vmul.f32 %v926_v56, %v923_v50 }
 0x5d6   : > { %v825_v2 = vpop.permute.xlu1 %824  ;;  %v842_v6 = vsel %vm1587_vm3, %v829_v0, %v840_v63 }
 0x5d7   : > { %v826_v4 = vsel %vm247_vm1, %v823_v62, %v825_v2 }
 0x5d8   : > { %v843_v7 = vsel %vm1587_vm3, %v826_v4, %v841_v3 }
 0x5d9   : > { %v848_v11 = vcombine.low %v842_v6, %v843_v7 }
 0x5db   : > { %v855_v12 = vrot.slane %v848_v11, %v1598_v22 }
 0x5dd   : > { %v857_v15 = vmul.f32 %v855_v12, %v845_v9  ;;  %v980_v9 = vld [vmem:[%s979_s30] sm:$0xf] }
 0x5df   : > { %v858_v17 = vadd.f32 %v857_v15, %v844_v13 }
 0x5e1   : > { %v877_v18 = vrot.slane %v858_v17, %v1598_v22  ;;  %861 = vst [vmem:[%s860_s15] sm:$0xf] %v858_v17  ;;  %s1088_s15 = scalar_lea.vmem %s1616_s0, %s1445_s12 }
 0x5e3   : > { %887 = vrot.lane.b32.xlu0 %v877_v18, %s1501_s9  ;;  %v878_v19 = vcombine.high %v877_v18, %v877_v18 }
 0x5e5   : > { %889 = vrot.lane.b32.xlu1 %v878_v19, %s1501_s9 }
 0x5e7   : > { %879 = vrot.lane.b32.xlu0 %v877_v18, %s1500_s8 }
 0x5e9   : > { %881 = vrot.lane.b32.xlu1 %v878_v19, %s1500_s8 }
 0x655   : > { %v888_v20 = vpop.permute.xlu0 %887 }
 0x657   : > { %v890_v21 = vpop.permute.xlu1 %889 }
 0x658   : > { %v891_v23 = vsel %vm256_vm0, %v888_v20, %v890_v21  ;;  %v894_v24 = vsel %vm256_vm0, %v890_v21, %v1573_v10 }
 0x659   : > { %v880_v25 = vpop.permute.xlu0 %879  ;;  %v897_v26 = vsel %vm1583_vm2, %v891_v23, %v877_v18  ;;  %v898_v30 = vsel %vm1583_vm2, %v894_v24, %v878_v19  ;;  %v983_v18 = vld [vmem:[%s982_s6] sm:$0xf]  ;;  %v1016_v19 = vsub.f32 1.0, %v980_v9 }
 0x65a   : > { %v886_v27 = vsel %vm247_vm1, %v1550_v5, %v880_v25  ;;  %v1015_v23 = vmul.f32 %v983_v18, %v980_v9 }
 0x65b   : > { %v882_v29 = vpop.permute.xlu1 %881  ;;  %v899_v32 = vsel %vm1587_vm3, %v886_v27, %v897_v26 }
 0x65c   : > { %v883_v31 = vsel %vm247_vm1, %v880_v25, %v882_v29 }
 0x65d   : > { %v900_v33 = vsel %vm1587_vm3, %v883_v31, %v898_v30 }
 0x65e   : > { %v905_v36 = vcombine.low %v899_v32, %v900_v33 }
 0x660   : > { %v912_v37 = vrot.slane %v905_v36, %v1598_v22 }
 0x662   : > { %v914_v39 = vmul.f32 %v912_v37, %v902_v35  ;;  %v1037_v35 = vld [vmem:[%s1036_s13] sm:$0xf] }
 0x664   : > { %v915_v40 = vadd.f32 %v914_v39, %v901_v38 }
 0x666   : > { %v934_v41 = vrot.slane %v915_v40, %v1598_v22  ;;  %918 = vst [vmem:[%s917_s21] sm:$0xf] %v915_v40 }
 0x668   : > { %944 = vrot.lane.b32.xlu0 %v934_v41, %s1501_s9  ;;  %v935_v42 = vcombine.high %v934_v41, %v934_v41 }
 0x66a   : > { %946 = vrot.lane.b32.xlu1 %v935_v42, %s1501_s9 }
 0x66c   : > { %936 = vrot.lane.b32.xlu0 %v934_v41, %s1500_s8 }
 0x66e   : > { %938 = vrot.lane.b32.xlu1 %v935_v42, %s1500_s8 }
 0x6da   : > { %v945_v43 = vpop.permute.xlu0 %944 }
 0x6dc   : > { %v947_v44 = vpop.permute.xlu1 %946 }
 0x6dd   : > { %v948_v45 = vsel %vm256_vm0, %v945_v43, %v947_v44  ;;  %v951_v46 = vsel %vm256_vm0, %v947_v44, %v1573_v10 }
 0x6de   : > { %v937_v47 = vpop.permute.xlu0 %936  ;;  %v954_v48 = vsel %vm1583_vm2, %v948_v45, %v934_v41  ;;  %v955_v52 = vsel %vm1583_vm2, %v951_v46, %v935_v42  ;;  %v1040_v41 = vld [vmem:[%s1039_s14] sm:$0xf]  ;;  %v1073_v42 = vsub.f32 1.0, %v1037_v35 }
 0x6df   : > { %v943_v49 = vsel %vm247_vm1, %v1550_v5, %v937_v47  ;;  %v1072_v45 = vmul.f32 %v1040_v41, %v1037_v35 }
 0x6e0   : > { %v939_v51 = vpop.permute.xlu1 %938  ;;  %v956_v54 = vsel %vm1587_vm3, %v943_v49, %v954_v48 }
 0x6e1   : > { %v940_v53 = vsel %vm247_vm1, %v937_v47, %v939_v51 }
 0x6e2   : > { %v957_v55 = vsel %vm1587_vm3, %v940_v53, %v955_v52 }
 0x6e3   : > { %v962_v58 = vcombine.low %v956_v54, %v957_v55 }
 0x6e5   : > { %v969_v59 = vrot.slane %v962_v58, %v1598_v22 }
 0x6e7   : > { %v971_v61 = vmul.f32 %v969_v59, %v959_v57  ;;  %v1094_v57 = vld [vmem:[%s1093_s18] sm:$0xf] }
 0x6e9   : > { %v972_v62 = vadd.f32 %v971_v61, %v958_v60 }
 0x6eb   : > { %v991_v63 = vrot.slane %v972_v62, %v1598_v22  ;;  %975 = vst [vmem:[%s974_s27] sm:$0xf] %v972_v62 }
 0x6ed   : > { %1001 = vrot.lane.b32.xlu0 %v991_v63, %s1501_s9  ;;  %v992_v0 = vcombine.high %v991_v63, %v991_v63 }
 0x6ef   : > { %1003 = vrot.lane.b32.xlu1 %v992_v0, %s1501_s9 }
 0x6f1   : > { %993 = vrot.lane.b32.xlu0 %v991_v63, %s1500_s8 }
 0x6f3   : > { %995 = vrot.lane.b32.xlu1 %v992_v0, %s1500_s8 }
 0x75f   : > { %v1002_v1 = vpop.permute.xlu0 %1001 }
 0x761   : > { %v1004_v2 = vpop.permute.xlu1 %1003 }
 0x762   : > { %v1005_v3 = vsel %vm256_vm0, %v1002_v1, %v1004_v2  ;;  %v1008_v4 = vsel %vm256_vm0, %v1004_v2, %v1573_v10 }
 0x763   : > { %v994_v6 = vpop.permute.xlu0 %993  ;;  %v1011_v7 = vsel %vm1583_vm2, %v1005_v3, %v991_v63  ;;  %v1012_v12 = vsel %vm1583_vm2, %v1008_v4, %v992_v0  ;;  %v1130_v63 = vsub.f32 1.0, %v1094_v57 }
 0x764   : > { %v1000_v8 = vsel %vm247_vm1, %v1550_v5, %v994_v6 }
 0x765   : > { %v996_v11 = vpop.permute.xlu1 %995  ;;  %v1013_v15 = vsel %vm1587_vm3, %v1000_v8, %v1011_v7 }
 0x766   : > { %v997_v13 = vsel %vm247_vm1, %v994_v6, %v996_v11 }
 0x767   : > { %v1014_v17 = vsel %vm1587_vm3, %v997_v13, %v1012_v12 }
 0x768   : > { %v1019_v20 = vcombine.low %v1013_v15, %v1014_v17 }
 0x76a   : > { %v1026_v21 = vrot.slane %v1019_v20, %v1598_v22 }
 0x76c   : > { %v1028_v24 = vmul.f32 %v1026_v21, %v1016_v19 }
 0x76e   : > { %v1029_v25 = vadd.f32 %v1028_v24, %v1015_v23 }
 0x770   : > { %v1048_v26 = vrot.slane %v1029_v25, %v1598_v22  ;;  %1032 = vst [vmem:[%s1031_s7] sm:$0xf] %v1029_v25 }
 0x772   : > { %1058 = vrot.lane.b32.xlu0 %v1048_v26, %s1501_s9  ;;  %v1049_v27 = vcombine.high %v1048_v26, %v1048_v26 }
 0x774   : > { %1060 = vrot.lane.b32.xlu1 %v1049_v27, %s1501_s9 }
 0x776   : > { %1050 = vrot.lane.b32.xlu0 %v1048_v26, %s1500_s8 }
 0x778   : > { %1052 = vrot.lane.b32.xlu1 %v1049_v27, %s1500_s8 }
 0x7e4   : > { %v1059_v28 = vpop.permute.xlu0 %1058 }
 0x7e6   : > { %v1061_v29 = vpop.permute.xlu1 %1060 }
 0x7e7   : > { %v1062_v30 = vsel %vm256_vm0, %v1059_v28, %v1061_v29  ;;  %v1065_v31 = vsel %vm256_vm0, %v1061_v29, %v1573_v10 }
 0x7e8   : > { %v1051_v32 = vpop.permute.xlu0 %1050  ;;  %v1068_v33 = vsel %vm1583_vm2, %v1062_v30, %v1048_v26  ;;  %v1069_v37 = vsel %vm1583_vm2, %v1065_v31, %v1049_v27 }
 0x7e9   : > { %v1057_v34 = vsel %vm247_vm1, %v1550_v5, %v1051_v32 }
 0x7ea   : > { %v1053_v36 = vpop.permute.xlu1 %1052  ;;  %v1070_v39 = vsel %vm1587_vm3, %v1057_v34, %v1068_v33 }
 0x7eb   : > { %v1054_v38 = vsel %vm247_vm1, %v1051_v32, %v1053_v36 }
 0x7ec   : > { %v1071_v40 = vsel %vm1587_vm3, %v1054_v38, %v1069_v37 }
 0x7ed   : > { %v1076_v43 = vcombine.low %v1070_v39, %v1071_v40 }
 0x7ef   : > { %v1083_v44 = vrot.slane %v1076_v43, %v1598_v22 }
 0x7f1   : > { %v1085_v46 = vmul.f32 %v1083_v44, %v1073_v42 }
 0x7f3   : > { %v1086_v47 = vadd.f32 %v1085_v46, %v1072_v45 }
 0x7f5   : > { %v1105_v48 = vrot.slane %v1086_v47, %v1598_v22  ;;  %1089 = vst [vmem:[%s1088_s15] sm:$0xf] %v1086_v47 }
 0x7f7   : > { %1115 = vrot.lane.b32.xlu0 %v1105_v48, %s1501_s9  ;;  %v1106_v49 = vcombine.high %v1105_v48, %v1105_v48 }
 0x7f9   : > { %1117 = vrot.lane.b32.xlu1 %v1106_v49, %s1501_s9  ;;  %s1145_s9 = scalar_lea.vmem %s1616_s0, %s1448_s17 }
 0x7fb   : > { %1107 = vrot.lane.b32.xlu0 %v1105_v48, %s1500_s8 }
 0x7fd   : > { %1109 = vrot.lane.b32.xlu1 %v1106_v49, %s1500_s8  ;;  %s1096_s8 = scalar_lea.vmem %s1579_s22, %s1448_s17 }
 0x869   : > { %v1116_v50 = vpop.permute.xlu0 %1115 }
 0x86b   : > { %v1118_v51 = vpop.permute.xlu1 %1117 }
 0x86c   : > { %v1119_v52 = vsel %vm256_vm0, %v1116_v50, %v1118_v51  ;;  %v1122_v53 = vsel %vm256_vm0, %v1118_v51, %v1573_v10  ;;  %v1097_v10 = vld [vmem:[%s1096_s8] sm:$0xf] }
 0x86d   : > { %v1108_v54 = vpop.permute.xlu0 %1107  ;;  %v1125_v55 = vsel %vm1583_vm2, %v1119_v52, %v1105_v48  ;;  %v1126_v59 = vsel %vm1583_vm2, %v1122_v53, %v1106_v49  ;;  %v1129_v1 = vmul.f32 %v1097_v10, %v1094_v57 }
 0x86e   : > { %v1114_v56 = vsel %vm247_vm1, %v1550_v5, %v1108_v54 }
 0x86f   : > { %v1110_v58 = vpop.permute.xlu1 %1109  ;;  %v1127_v61 = vsel %vm1587_vm3, %v1114_v56, %v1125_v55 }
 0x870   : > { %v1111_v60 = vsel %vm247_vm1, %v1108_v54, %v1110_v58 }
 0x871   : > { %v1128_v62 = vsel %vm1587_vm3, %v1111_v60, %v1126_v59 }
 0x872   : > { %v1133_v0 = vcombine.low %v1127_v61, %v1128_v62 }
 0x874   : > { %v1140_v5 = vrot.slane %v1133_v0, %v1598_v22 }
 0x876   : > { %v1142_v2 = vmul.f32 %v1140_v5, %v1130_v63 }
 0x878   : > { %v1143_v3 = vadd.f32 %v1142_v2, %v1129_v1 }
 0x87a   : > { %1146 = vst [vmem:[%s1145_s9] sm:$0xf] %v1143_v3 }
 0x87b PF: > { %s25_s1 = sadd.s32 1, %s1496_s1  }
 0x87c   : > { %p22_p3 = scmp.ge.s32.totalorder %s25_s1, 8  }
 0x87e   :  { %24 = sbr.rel (!%p22_p3) target bundleno = 26 (0x1a), region = 116 }

// kernel: gru2d_forward.7
= control target key start
LH: loop header
LB: loop body
LE: loop exit
PB: predicated region body
PF: predicated region fallthrough
CT: control target
= control target key end

     0   :  { %v4169_v0 = vmov 0.0|0.0   ;;  %vm630_vm0 = vcmask 261120   ;;  %s4170_s16 = smov 96   ;;  %s4171_s17 = smov 112   ;;  %vm3448_vm1 = vcmask 130048   ;;  %s7634_s2 = inlined_call_operand.vmem [shape: f32[256,32], index: 2, kind: input, shape index: {}]   ;;  %s7635_s1 = inlined_call_operand.vmem [shape: f32[512,128], index: 1, kind: input, shape index: {}]   ;;  %s7636_s0 = inlined_call_operand.vmem [shape: f32[512,128], index: 0, kind: input, shape index: {}]   ;;  %s7637_s3 = inlined_call_operand.vmem [shape: f32[32,128], index: 3, kind: input, shape index: {}]   ;;  %s7638_s4 = inlined_call_operand.vmem [shape: f32[512,16], index: 4, kind: output, shape index: {}]  }
   0x1   :  { %3753 = vmatprep.subr.bf16.mxu0 %v4169_v0  ;;  %v145_v1 = vld [vmem:[%s7634_s2] sm:$0xff]  ;;  %v146_v2 = vld [vmem:[%s7634_s2 + $0x8] sm:$0xff]  ;;  %v147_v3 = vld [vmem:[%s7634_s2 + $0x10] sm:$0xff]  ;;  %3809 = vmatprep.subr.bf16.mxu1 %v4169_v0  ;;  %s4172_s20 = smov 80   ;;  %s4173_s21 = smov 64  }
   0x2   :  { %v3754_v4 = vpack.c.bf16 %v146_v2, %v145_v1  ;;  %v148_v5 = vld [vmem:[%s7634_s2 + $0x18] sm:$0xff]  ;;  %v149_v7 = vld [vmem:[%s7634_s2 + $0x20] sm:$0xff]  ;;  %v150_v8 = vld [vmem:[%s7634_s2 + $0x28] sm:$0xff]  ;;  %s4174_s22 = smov 48   ;;  %s4175_s25 = smov 32  }
   0x3   :  { %v3757_v6 = vpack.c.bf16 %v148_v5, %v147_v3  ;;  %v3760_v9 = vpack.c.bf16 %v150_v8, %v149_v7  ;;  %v151_v10 = vld [vmem:[%s7634_s2 + $0x30] sm:$0xff]  ;;  %v152_v11 = vld [vmem:[%s7634_s2 + $0x38] sm:$0xff]  ;;  %v81_v12 = vld [vmem:[%s7635_s1] sm:$0xff] }
   0x4   :  { %3755 = vmatpush1.bf16.msra.mxu0 %v3754_v4  ;;  %3825 = vmatpush1.bf16.msra.mxu1 %v3754_v4  ;;  %v3763_v13 = vpack.c.bf16 %v152_v11, %v151_v10  ;;  %v153_v14 = vld [vmem:[%s7634_s2 + $0x40] sm:$0xff]  ;;  %v154_v15 = vld [vmem:[%s7634_s2 + $0x48] sm:$0xff]  ;;  %v155_v17 = vld [vmem:[%s7634_s2 + $0x50] sm:$0xff] }
   0x5   :  { %3756 = vmatprep.subr.bf16.mxu0 %v4169_v0  ;;  %3810 = vmatprep.subr.bf16.mxu1 %v4169_v0  ;;  %v3766_v16 = vpack.c.bf16 %v154_v15, %v153_v14  ;;  %v156_v18 = vld [vmem:[%s7634_s2 + $0x58] sm:$0xff]  ;;  %v157_v20 = vld [vmem:[%s7634_s2 + $0x60] sm:$0xff]  ;;  %v158_v21 = vld [vmem:[%s7634_s2 + $0x68] sm:$0xff] }
   0x6   :  { %241 = vmatprep.mubr.f32.mxu0 %v81_v12  ;;  %v3769_v19 = vpack.c.bf16 %v156_v18, %v155_v17  ;;  %v3772_v22 = vpack.c.bf16 %v158_v21, %v157_v20  ;;  %v159_v23 = vld [vmem:[%s7634_s2 + $0x70] sm:$0xff]  ;;  %v160_v24 = vld [vmem:[%s7634_s2 + $0x78] sm:$0xff]  ;;  %v161_v26 = vld [vmem:[%s7634_s2 + $0x80] sm:$0xff] }
   0x7   :  { %v3775_v25 = vpack.c.bf16 %v160_v24, %v159_v23  ;;  %v162_v27 = vld [vmem:[%s7634_s2 + $0x88] sm:$0xff]  ;;  %v163_v29 = vld [vmem:[%s7634_s2 + $0x90] sm:$0xff]  ;;  %v164_v30 = vld [vmem:[%s7634_s2 + $0x98] sm:$0xff] }
   0x8   :  { %3758 = vmatpush1.bf16.msra.mxu0 %v3757_v6  ;;  %3826 = vmatpush1.bf16.msra.mxu1 %v3757_v6  ;;  %v3778_v28 = vpack.c.bf16 %v162_v27, %v161_v26  ;;  %v3781_v31 = vpack.c.bf16 %v164_v30, %v163_v29  ;;  %v165_v32 = vld [vmem:[%s7634_s2 + $0xa0] sm:$0xff]  ;;  %v166_v33 = vld [vmem:[%s7634_s2 + $0xa8] sm:$0xff]  ;;  %v167_v35 = vld [vmem:[%s7634_s2 + $0xb0] sm:$0xff] }
   0x9   :  { %3759 = vmatprep.subr.bf16.mxu0 %v4169_v0  ;;  %3811 = vmatprep.subr.bf16.mxu1 %v4169_v0  ;;  %v3784_v34 = vpack.c.bf16 %v166_v33, %v165_v32  ;;  %v168_v36 = vld [vmem:[%s7634_s2 + $0xb8] sm:$0xff]  ;;  %v169_v38 = vld [vmem:[%s7634_s2 + $0xc0] sm:$0xff]  ;;  %v170_v39 = vld [vmem:[%s7634_s2 + $0xc8] sm:$0xff] }
   0xa   :  { %v3787_v37 = vpack.c.bf16 %v168_v36, %v167_v35  ;;  %v3790_v40 = vpack.c.bf16 %v170_v39, %v169_v38  ;;  %v171_v41 = vld [vmem:[%s7634_s2 + $0xd0] sm:$0xff]  ;;  %v172_v42 = vld [vmem:[%s7634_s2 + $0xd8] sm:$0xff]  ;;  %v173_v44 = vld [vmem:[%s7634_s2 + $0xe0] sm:$0xff] }
   0xb   :  { %v3793_v43 = vpack.c.bf16 %v172_v42, %v171_v41  ;;  %v174_v45 = vld [vmem:[%s7634_s2 + $0xe8] sm:$0xff]  ;;  %v175_v47 = vld [vmem:[%s7634_s2 + $0xf0] sm:$0xff]  ;;  %v176_v48 = vld [vmem:[%s7634_s2 + $0xf8] sm:$0xff] }
   0xc   :  { %3761 = vmatpush1.bf16.msra.mxu0 %v3760_v9  ;;  %3827 = vmatpush1.bf16.msra.mxu1 %v3760_v9  ;;  %v3796_v46 = vpack.c.bf16 %v174_v45, %v173_v44  ;;  %v3799_v49 = vpack.c.bf16 %v176_v48, %v175_v47  ;;  %v17_v50 = vld [vmem:[%s7636_s0] sm:$0xff]  ;;  %v82_v51 = vld [vmem:[%s7635_s1 + $0x8] sm:$0xff]  ;;  %v83_v53 = vld [vmem:[%s7635_s1 + $0x10] sm:$0xff] }
   0xd   :  { %3762 = vmatprep.subr.bf16.mxu0 %v4169_v0  ;;  %3812 = vmatprep.subr.bf16.mxu1 %v4169_v0  ;;  %v18_v52 = vld [vmem:[%s7636_s0 + $0x8] sm:$0xff]  ;;  %v19_v54 = vld [vmem:[%s7636_s0 + $0x10] sm:$0xff]  ;;  %v84_v55 = vld [vmem:[%s7635_s1 + $0x18] sm:$0xff] }
   0xe   :  { %v20_v56 = vld [vmem:[%s7636_s0 + $0x18] sm:$0xff]  ;;  %v85_v57 = vld [vmem:[%s7635_s1 + $0x20] sm:$0xff]  ;;  %v86_v59 = vld [vmem:[%s7635_s1 + $0x28] sm:$0xff] }
   0xf   :  { %v21_v58 = vld [vmem:[%s7636_s0 + $0x20] sm:$0xff]  ;;  %v22_v60 = vld [vmem:[%s7636_s0 + $0x28] sm:$0xff]  ;;  %v87_v61 = vld [vmem:[%s7635_s1 + $0x30] sm:$0xff] }
  0x10   :  { %3764 = vmatpush1.bf16.msra.mxu0 %v3763_v13  ;;  %3828 = vmatpush1.bf16.msra.mxu1 %v3763_v13  ;;  %v23_v62 = vld [vmem:[%s7636_s0 + $0x30] sm:$0xff]  ;;  %v88_v63 = vld [vmem:[%s7635_s1 + $0x38] sm:$0xff]  ;;  %v65_v1 = vld [vmem:[%s7636_s0 + $0x180] sm:$0xff] }
  0x11   :  { %3765 = vmatprep.subr.bf16.mxu0 %v4169_v0  ;;  %3813 = vmatprep.subr.bf16.mxu1 %v4169_v0  ;;  %v24_v2 = vld [vmem:[%s7636_s0 + $0x38] sm:$0xff]  ;;  %v626_v3 = vld [vmem:[%s7637_s3] sm:$0xff]  ;;  %v627_v4 = vld [vmem:[%s7637_s3 + $0x8] sm:$0xff] }
  0x12   :  { %v89_v5 = vld [vmem:[%s7635_s1 + $0x40] sm:$0xff]  ;;  %v3801_v6 = vpack.c.bf16 %v627_v4, %v626_v3  ;;  %v130_v7 = vld [vmem:[%s7635_s1 + $0x188] sm:$0xff]  ;;  %v131_v11 = vld [vmem:[%s7635_s1 + $0x190] sm:$0xff] }
  0x13   :  { %v66_v8 = vld [vmem:[%s7636_s0 + $0x188] sm:$0xff]  ;;  %v25_v9 = vld [vmem:[%s7636_s0 + $0x40] sm:$0xff]  ;;  %v67_v12 = vld [vmem:[%s7636_s0 + $0x190] sm:$0xff] }
  0x14   :  { %3767 = vmatpush1.bf16.msra.mxu0 %v3766_v16  ;;  %3829 = vmatpush1.bf16.msra.mxu1 %v3766_v16  ;;  %v90_v10 = vld [vmem:[%s7635_s1 + $0x48] sm:$0xff]  ;;  %v91_v14 = vld [vmem:[%s7635_s1 + $0x50] sm:$0xff]  ;;  %v132_v15 = vld [vmem:[%s7635_s1 + $0x198] sm:$0xff] }
  0x15   :  { %3768 = vmatprep.subr.bf16.mxu0 %v4169_v0  ;;  %3814 = vmatprep.subr.bf16.mxu1 %v4169_v0  ;;  %v26_v13 = vld [vmem:[%s7636_s0 + $0x48] sm:$0xff]  ;;  %v68_v16 = vld [vmem:[%s7636_s0 + $0x198] sm:$0xff]  ;;  %v27_v17 = vld [vmem:[%s7636_s0 + $0x50] sm:$0xff] }
  0x16   :  { %v92_v18 = vld [vmem:[%s7635_s1 + $0x58] sm:$0xff]  ;;  %v69_v20 = vld [vmem:[%s7636_s0 + $0x1a0] sm:$0xff]  ;;  %v134_v23 = vld [vmem:[%s7635_s1 + $0x1a8] sm:$0xff] }
  0x17   :  { %v28_v21 = vld [vmem:[%s7636_s0 + $0x58] sm:$0xff]  ;;  %v70_v24 = vld [vmem:[%s7636_s0 + $0x1a8] sm:$0xff]  ;;  %v135_v27 = vld [vmem:[%s7635_s1 + $0x1b0] sm:$0xff] }
  0x18   :  { %3770 = vmatpush1.bf16.msra.mxu0 %v3769_v19  ;;  %3830 = vmatpush1.bf16.msra.mxu1 %v3769_v19  ;;  %v133_v19 = vld [vmem:[%s7635_s1 + $0x1a0] sm:$0xff]  ;;  %v94_v26 = vld [vmem:[%s7635_s1 + $0x68] sm:$0xff]  ;;  %v95_v30 = vld [vmem:[%s7635_s1 + $0x70] sm:$0xff] }
  0x19   :  { %3771 = vmatprep.subr.bf16.mxu0 %v4169_v0  ;;  %3815 = vmatprep.subr.bf16.mxu1 %v4169_v0  ;;  %v30_v29 = vld [vmem:[%s7636_s0 + $0x68] sm:$0xff]  ;;  %v72_v32 = vld [vmem:[%s7636_s0 + $0x1b8] sm:$0xff]  ;;  %v31_v33 = vld [vmem:[%s7636_s0 + $0x70] sm:$0xff] }
  0x1a   :  { %v137_v35 = vld [vmem:[%s7635_s1 + $0x1c0] sm:$0xff]  ;;  %v629_v38 = vld [vmem:[%s7637_s3 + $0x18] sm:$0xff]  ;;  %v138_v42 = vld [vmem:[%s7635_s1 + $0x1c8] sm:$0xff] }
  0x1b   :  { %v73_v36 = vld [vmem:[%s7636_s0 + $0x1c0] sm:$0xff]  ;;  %v32_v39 = vld [vmem:[%s7636_s0 + $0x78] sm:$0xff]  ;;  %v139_v45 = vld [vmem:[%s7635_s1 + $0x1d0] sm:$0xff] }
  0x1c   :  { %3773 = vmatpush1.bf16.msra.mxu0 %v3772_v22  ;;  %3831 = vmatpush1.bf16.msra.mxu1 %v3772_v22  ;;  %v93_v22 = vld [vmem:[%s7635_s1 + $0x60] sm:$0xff]  ;;  %v75_v47 = vld [vmem:[%s7636_s0 + $0x1d0] sm:$0xff]  ;;  %v34_v48 = vld [vmem:[%s7636_s0 + $0x88] sm:$0xff] }
  0x1d   :  { %3774 = vmatprep.subr.bf16.mxu0 %v4169_v0  ;;  %3816 = vmatprep.subr.bf16.mxu1 %v4169_v0  ;;  %v97_v41 = vld [vmem:[%s7635_s1 + $0x80] sm:$0xff]  ;;  %v80_v3 = vld [vmem:[%s7636_s0 + $0x1f8] sm:$0xff]  ;;  %v39_v4 = vld [vmem:[%s7636_s0 + $0xb0] sm:$0xff] }
  0x1e   :  { %v33_v44 = vld [vmem:[%s7636_s0 + $0x80] sm:$0xff] }
  0x20   :  { %3776 = vmatpush1.bf16.msra.mxu0 %v3775_v25  ;;  %3832 = vmatpush1.bf16.msra.mxu1 %v3775_v25  ;;  %v29_v25 = vld [vmem:[%s7636_s0 + $0x60] sm:$0xff] }
  0x21   :  { %3777 = vmatprep.subr.bf16.mxu0 %v4169_v0  ;;  %3817 = vmatprep.subr.bf16.mxu1 %v4169_v0 }
  0x24   :  { %3779 = vmatpush1.bf16.msra.mxu0 %v3778_v28  ;;  %3833 = vmatpush1.bf16.msra.mxu1 %v3778_v28  ;;  %v71_v28 = vld [vmem:[%s7636_s0 + $0x1b0] sm:$0xff] }
  0x25   :  { %3780 = vmatprep.subr.bf16.mxu0 %v4169_v0  ;;  %3818 = vmatprep.subr.bf16.mxu1 %v4169_v0 }
  0x28   :  { %3782 = vmatpush1.bf16.msra.mxu0 %v3781_v31  ;;  %3834 = vmatpush1.bf16.msra.mxu1 %v3781_v31  ;;  %v136_v31 = vld [vmem:[%s7635_s1 + $0x1b8] sm:$0xff] }
  0x29   :  { %3783 = vmatprep.subr.bf16.mxu0 %v4169_v0  ;;  %3819 = vmatprep.subr.bf16.mxu1 %v4169_v0 }
  0x2c   :  { %3785 = vmatpush1.bf16.msra.mxu0 %v3784_v34  ;;  %3835 = vmatpush1.bf16.msra.mxu1 %v3784_v34  ;;  %v96_v34 = vld [vmem:[%s7635_s1 + $0x78] sm:$0xff] }
  0x2d   :  { %3786 = vmatprep.subr.bf16.mxu0 %v4169_v0  ;;  %3820 = vmatprep.subr.bf16.mxu1 %v4169_v0 }
  0x30   :  { %3788 = vmatpush1.bf16.msra.mxu0 %v3787_v37  ;;  %3836 = vmatpush1.bf16.msra.mxu1 %v3787_v37  ;;  %v628_v37 = vld [vmem:[%s7637_s3 + $0x10] sm:$0xff] }
  0x31   :  { %3789 = vmatprep.subr.bf16.mxu0 %v4169_v0  ;;  %3821 = vmatprep.subr.bf16.mxu1 %v4169_v0 }
  0x34   :  { %3791 = vmatpush1.bf16.msra.mxu0 %v3790_v40  ;;  %3837 = vmatpush1.bf16.msra.mxu1 %v3790_v40  ;;  %v3805_v40 = vpack.c.bf16 %v629_v38, %v628_v37  ;;  %v120_v37 = vld [vmem:[%s7635_s1 + $0x138] sm:$0xff] }
  0x35   :  { %3792 = vmatprep.subr.bf16.mxu0 %v4169_v0  ;;  %3822 = vmatprep.subr.bf16.mxu1 %v4169_v0  ;;  %v56_v38 = vld [vmem:[%s7636_s0 + $0x138] sm:$0xff] }
  0x38   :  { %3794 = vmatpush1.bf16.msra.mxu0 %v3793_v43  ;;  %3838 = vmatpush1.bf16.msra.mxu1 %v3793_v43  ;;  %v74_v43 = vld [vmem:[%s7636_s0 + $0x1c8] sm:$0xff] }
  0x39   :  { %3795 = vmatprep.subr.bf16.mxu0 %v4169_v0  ;;  %3823 = vmatprep.subr.bf16.mxu1 %v4169_v0 }
  0x3c   :  { %3797 = vmatpush1.bf16.msra.mxu0 %v3796_v46  ;;  %3839 = vmatpush1.bf16.msra.mxu1 %v3796_v46  ;;  %v98_v46 = vld [vmem:[%s7635_s1 + $0x88] sm:$0xff] }
  0x3d   :  { %3798 = vmatprep.subr.bf16.mxu0 %v4169_v0  ;;  %3824 = vmatprep.subr.bf16.mxu1 %v4169_v0  ;;  %v129_v0 = vld [vmem:[%s7635_s1 + $0x180] sm:$0xff] }
  0x3e   :  { %481 = vmatprep.mubr.f32.mxu1 %v129_v0  ;;  %v38_v0 = vld [vmem:[%s7636_s0 + $0xa8] sm:$0xff] }
  0x40   :  { %3800 = vmatpush1.bf16.msra.mxu0 %v3799_v49  ;;  %3840 = vmatpush1.bf16.msra.mxu1 %v3799_v49  ;;  %v140_v49 = vld [vmem:[%s7635_s1 + $0x1d8] sm:$0xff] }
  0x41   :  { %3802 = vmatprep.subr.bf16.mxu1 %v3801_v6 }
  0x43   :  { %242 = vmatmul.mubr.f32.vlgmr.msra.gmra.mrb[0].mxu0 %v17_v50  ;;  %482 = vmatmul.mubr.f32.vlgmr.msra.gmra.mrb[0].mxu1 %v65_v1  ;;  %v99_v50 = vld [vmem:[%s7635_s1 + $0x90] sm:$0xff] }
  0x44   :  { %246 = vmatprep.mubr.f32.mxu0 %v82_v51  ;;  %3804 = vmatpush3.bf16.msra.mxu1 %v3801_v6  ;;  %v76_v51 = vld [vmem:[%s7636_s0 + $0x1d8] sm:$0xff]  ;;  %v103_v1 = vld [vmem:[%s7635_s1 + $0xb0] sm:$0xff] }
  0x45   :  { %486 = vmatprep.mubr.f32.mxu1 %v130_v7  ;;  %3806 = vmatprep.subr.bf16.mxu1 %v3805_v40  ;;  %v40_v6 = vld [vmem:[%s7636_s0 + $0xb8] sm:$0xff]  ;;  %v105_v7 = vld [vmem:[%s7635_s1 + $0xc0] sm:$0xff] }
  0x47   :  { %247 = vmatmul.mubr.f32.gmra.mrb[2].mxu0 %v18_v52  ;;  %487 = vmatmul.mubr.f32.gmra.mrb[2].mxu1 %v66_v8  ;;  %v35_v52 = vld [vmem:[%s7636_s0 + $0x90] sm:$0xff]  ;;  %v41_v8 = vld [vmem:[%s7636_s0 + $0xc0] sm:$0xff] }
  0x48   :  { %251 = vmatprep.mubr.f32.mxu0 %v83_v53  ;;  %491 = vmatprep.mubr.f32.mxu1 %v131_v11  ;;  %v141_v53 = vld [vmem:[%s7635_s1 + $0x1e0] sm:$0xff]  ;;  %v107_v11 = vld [vmem:[%s7635_s1 + $0xd0] sm:$0xff] }
  0x49   :  { %3808 = vmatpush3.bf16.msra.mxu1 %v3805_v40  ;;  %v57_v40 = vld [vmem:[%s7636_s0 + $0x140] sm:$0xff] }
  0x4b   :  { %252 = vmatmul.mubr.f32.gmra.mrb[4].mxu0 %v19_v54  ;;  %492 = vmatmul.mubr.f32.gmra.mrb[4].mxu1 %v67_v12  ;;  %v100_v54 = vld [vmem:[%s7635_s1 + $0x98] sm:$0xff]  ;;  %v43_v12 = vld [vmem:[%s7636_s0 + $0xd0] sm:$0xff] }
  0x4c   :  { %256 = vmatprep.mubr.f32.mxu0 %v84_v55  ;;  %496 = vmatprep.mubr.f32.mxu1 %v132_v15  ;;  %v77_v55 = vld [vmem:[%s7636_s0 + $0x1e0] sm:$0xff] }
  0x4d   :  { %v109_v15 = vld [vmem:[%s7635_s1 + $0xe0] sm:$0xff] }
  0x4f   :  { %257 = vmatmul.mubr.f32.gmra.mrb[6].mxu0 %v20_v56  ;;  %497 = vmatmul.mubr.f32.gmra.mrb[6].mxu1 %v68_v16  ;;  %v36_v56 = vld [vmem:[%s7636_s0 + $0x98] sm:$0xff]  ;;  %v45_v16 = vld [vmem:[%s7636_s0 + $0xe0] sm:$0xff] }
  0x50   :  { %261 = vmatprep.mubr.f32.mxu0 %v85_v57  ;;  %501 = vmatprep.mubr.f32.mxu1 %v133_v19  ;;  %v142_v57 = vld [vmem:[%s7635_s1 + $0x1e8] sm:$0xff]  ;;  %v111_v19 = vld [vmem:[%s7635_s1 + $0xf0] sm:$0xff] }
  0x53   :  { %262 = vmatmul.mubr.f32.gmra.mrb[8].mxu0 %v21_v58  ;;  %502 = vmatmul.mubr.f32.gmra.mrb[8].mxu1 %v69_v20  ;;  %v101_v58 = vld [vmem:[%s7635_s1 + $0xa0] sm:$0xff]  ;;  %v47_v20 = vld [vmem:[%s7636_s0 + $0xf0] sm:$0xff] }
  0x54   :  { %266 = vmatprep.mubr.f32.mxu0 %v86_v59  ;;  %506 = vmatprep.mubr.f32.mxu1 %v134_v23  ;;  %v78_v59 = vld [vmem:[%s7636_s0 + $0x1e8] sm:$0xff]  ;;  %v113_v23 = vld [vmem:[%s7635_s1 + $0x100] sm:$0xff] }
  0x57   :  { %267 = vmatmul.mubr.f32.gmra.mrb[10].mxu0 %v22_v60  ;;  %507 = vmatmul.mubr.f32.gmra.mrb[10].mxu1 %v70_v24  ;;  %v37_v60 = vld [vmem:[%s7636_s0 + $0xa0] sm:$0xff] }
  0x58   :  { %271 = vmatprep.mubr.f32.mxu0 %v87_v61  ;;  %511 = vmatprep.mubr.f32.mxu1 %v135_v27  ;;  %v143_v61 = vld [vmem:[%s7635_s1 + $0x1f0] sm:$0xff]  ;;  %v49_v24 = vld [vmem:[%s7636_s0 + $0x100] sm:$0xff] }
  0x59   :  { %v115_v27 = vld [vmem:[%s7635_s1 + $0x110] sm:$0xff] }
  0x5b   :  { %272 = vmatmul.mubr.f32.gmra.mrb[12].mxu0 %v23_v62  ;;  %512 = vmatmul.mubr.f32.gmra.mrb[12].mxu1 %v71_v28  ;;  %v102_v62 = vld [vmem:[%s7635_s1 + $0xa8] sm:$0xff]  ;;  %v51_v28 = vld [vmem:[%s7636_s0 + $0x110] sm:$0xff] }
  0x5c   :  { %276 = vmatprep.mubr.f32.mxu0 %v88_v63  ;;  %516 = vmatprep.mubr.f32.mxu1 %v136_v31  ;;  %v79_v63 = vld [vmem:[%s7636_s0 + $0x1f0] sm:$0xff]  ;;  %v117_v31 = vld [vmem:[%s7635_s1 + $0x120] sm:$0xff] }
  0x5f   :  { %277 = vmatmul.mubr.f32.gmra.mrb[14].mxu0 %v24_v2  ;;  %517 = vmatmul.mubr.f32.gmra.mrb[14].mxu1 %v72_v32  ;;  %v144_v2 = vld [vmem:[%s7635_s1 + $0x1f8] sm:$0xff]  ;;  %v53_v32 = vld [vmem:[%s7636_s0 + $0x120] sm:$0xff] }
  0x60   :  { %281 = vmatprep.mubr.f32.mxu0 %v89_v5  ;;  %521 = vmatprep.mubr.f32.mxu1 %v137_v35  ;;  %v104_v5 = vld [vmem:[%s7635_s1 + $0xb8] sm:$0xff]  ;;  %v119_v35 = vld [vmem:[%s7635_s1 + $0x130] sm:$0xff] }
  0x63   :  { %282 = vmatmul.mubr.f32.gmra.mrb[16].mxu0 %v25_v9  ;;  %522 = vmatmul.mubr.f32.gmra.mrb[16].mxu1 %v73_v36  ;;  %v106_v9 = vld [vmem:[%s7635_s1 + $0xc8] sm:$0xff]  ;;  %v55_v36 = vld [vmem:[%s7636_s0 + $0x130] sm:$0xff] }
  0x64   :  { %286 = vmatprep.mubr.f32.mxu0 %v90_v10  ;;  %526 = vmatprep.mubr.f32.mxu1 %v138_v42  ;;  %v42_v10 = vld [vmem:[%s7636_s0 + $0xc8] sm:$0xff] }
  0x65   :  { %v58_v42 = vld [vmem:[%s7636_s0 + $0x148] sm:$0xff] }
  0x67   :  { %287 = vmatmul.mubr.f32.gmra.mrb[18].mxu0 %v26_v13  ;;  %527 = vmatmul.mubr.f32.gmra.mrb[18].mxu1 %v74_v43  ;;  %v108_v13 = vld [vmem:[%s7635_s1 + $0xd8] sm:$0xff]  ;;  %v123_v43 = vld [vmem:[%s7635_s1 + $0x150] sm:$0xff] }
  0x68   :  { %291 = vmatprep.mubr.f32.mxu0 %v91_v14  ;;  %531 = vmatprep.mubr.f32.mxu1 %v139_v45  ;;  %v44_v14 = vld [vmem:[%s7636_s0 + $0xd8] sm:$0xff] }
  0x69   :  { %v124_v45 = vld [vmem:[%s7635_s1 + $0x158] sm:$0xff] }
  0x6b   :  { %292 = vmatmul.mubr.f32.gmra.mrb[20].mxu0 %v27_v17  ;;  %532 = vmatmul.mubr.f32.gmra.mrb[20].mxu1 %v75_v47  ;;  %v110_v17 = vld [vmem:[%s7635_s1 + $0xe8] sm:$0xff]  ;;  %v125_v47 = vld [vmem:[%s7635_s1 + $0x160] sm:$0xff] }
  0x6c   :  { %296 = vmatprep.mubr.f32.mxu0 %v92_v18  ;;  %536 = vmatprep.mubr.f32.mxu1 %v140_v49  ;;  %v46_v18 = vld [vmem:[%s7636_s0 + $0xe8] sm:$0xff] }
  0x6d   :  { %v126_v49 = vld [vmem:[%s7635_s1 + $0x168] sm:$0xff] }
  0x6f   :  { %297 = vmatmul.mubr.f32.gmra.mrb[22].mxu0 %v28_v21  ;;  %537 = vmatmul.mubr.f32.gmra.mrb[22].mxu1 %v76_v51  ;;  %v112_v21 = vld [vmem:[%s7635_s1 + $0xf8] sm:$0xff]  ;;  %v127_v51 = vld [vmem:[%s7635_s1 + $0x170] sm:$0xff] }
  0x70   :  { %301 = vmatprep.mubr.f32.mxu0 %v93_v22  ;;  %541 = vmatprep.mubr.f32.mxu1 %v141_v53  ;;  %v48_v22 = vld [vmem:[%s7636_s0 + $0xf8] sm:$0xff] }
  0x71   :  { %v128_v53 = vld [vmem:[%s7635_s1 + $0x178] sm:$0xff] }
  0x73   :  { %302 = vmatmul.mubr.f32.gmra.mrb[24].mxu0 %v29_v25  ;;  %542 = vmatmul.mubr.f32.gmra.mrb[24].mxu1 %v77_v55  ;;  %v114_v25 = vld [vmem:[%s7635_s1 + $0x108] sm:$0xff] }
  0x74   :  { %306 = vmatprep.mubr.f32.mxu0 %v94_v26  ;;  %546 = vmatprep.mubr.f32.mxu1 %v142_v57  ;;  %v50_v26 = vld [vmem:[%s7636_s0 + $0x108] sm:$0xff] }
  0x77   :  { %307 = vmatmul.mubr.f32.gmra.mrb[26].mxu0 %v30_v29  ;;  %547 = vmatmul.mubr.f32.gmra.mrb[26].mxu1 %v78_v59  ;;  %v116_v29 = vld [vmem:[%s7635_s1 + $0x118] sm:$0xff] }
  0x78   :  { %311 = vmatprep.mubr.f32.mxu0 %v95_v30  ;;  %551 = vmatprep.mubr.f32.mxu1 %v143_v61  ;;  %v52_v30 = vld [vmem:[%s7636_s0 + $0x118] sm:$0xff] }
  0x7b   :  { %312 = vmatmul.mubr.f32.gmra.mrb[28].mxu0 %v31_v33  ;;  %552 = vmatmul.mubr.f32.gmra.mrb[28].mxu1 %v79_v63  ;;  %v118_v33 = vld [vmem:[%s7635_s1 + $0x128] sm:$0xff] }
  0x7c   :  { %316 = vmatprep.mubr.f32.mxu0 %v96_v34  ;;  %556 = vmatprep.mubr.f32.mxu1 %v144_v2  ;;  %v54_v34 = vld [vmem:[%s7636_s0 + $0x128] sm:$0xff] }
  0x7f   :  { %317 = vmatmul.mubr.f32.gmra.mrb[30].mxu0 %v32_v39  ;;  %557 = vmatmul.mubr.f32.gmra.mrb[30].mxu1 %v80_v3  ;;  %v121_v39 = vld [vmem:[%s7635_s1 + $0x140] sm:$0xff] }
  0x80   :  { %321 = vmatprep.mubr.f32.mxu0 %v97_v41  ;;  %v122_v41 = vld [vmem:[%s7635_s1 + $0x148] sm:$0xff] }
  0x83   :  { %322 = vmatmul.mubr.f32.gmra.mrb[32].mxu0 %v33_v44  ;;  %v59_v44 = vld [vmem:[%s7636_s0 + $0x150] sm:$0xff] }
  0x84   :  { %326 = vmatprep.mubr.f32.mxu0 %v98_v46  ;;  %v60_v46 = vld [vmem:[%s7636_s0 + $0x158] sm:$0xff] }
  0x87   :  { %327 = vmatmul.mubr.f32.gmra.mrb[34].mxu0 %v34_v48  ;;  %v61_v48 = vld [vmem:[%s7636_s0 + $0x160] sm:$0xff] }
  0x88   :  { %331 = vmatprep.mubr.f32.mxu0 %v99_v50  ;;  %v62_v50 = vld [vmem:[%s7636_s0 + $0x168] sm:$0xff] }
  0x8b   :  { %332 = vmatmul.mubr.f32.gmra.mrb[36].mxu0 %v35_v52  ;;  %v63_v52 = vld [vmem:[%s7636_s0 + $0x170] sm:$0xff] }
  0x8c   :  { %336 = vmatprep.mubr.f32.mxu0 %v100_v54  ;;  %v64_v54 = vld [vmem:[%s7636_s0 + $0x178] sm:$0xff] }
  0x8f   :  { %337 = vmatmul.mubr.f32.gmra.mrb[38].mxu0 %v36_v56 }
  0x90   :  { %341 = vmatprep.mubr.f32.mxu0 %v101_v58 }
  0x93   :  { %342 = vmatmul.mubr.f32.gmra.mrb[40].mxu0 %v37_v60 }
  0x94   :  { %346 = vmatprep.mubr.f32.mxu0 %v102_v62 }
  0x97   :  { %347 = vmatmul.mubr.f32.gmra.mrb[42].mxu0 %v38_v0 }
  0x98   :  { %351 = vmatprep.mubr.f32.mxu0 %v103_v1 }
  0x9b   :  { %352 = vmatmul.mubr.f32.gmra.mrb[44].mxu0 %v39_v4 }
  0x9c   :  { %356 = vmatprep.mubr.f32.mxu0 %v104_v5 }
  0x9f   :  { %357 = vmatmul.mubr.f32.gmra.mrb[46].mxu0 %v40_v6 }
  0xa0   :  { %361 = vmatprep.mubr.f32.mxu0 %v105_v7 }
  0xa3   :  { %362 = vmatmul.mubr.f32.gmra.mrb[48].mxu0 %v41_v8 }
  0xa4   :  { %366 = vmatprep.mubr.f32.mxu0 %v106_v9 }
  0xa7   :  { %367 = vmatmul.mubr.f32.gmra.mrb[50].mxu0 %v42_v10 }
  0xa8   :  { %371 = vmatprep.mubr.f32.mxu0 %v107_v11 }
  0xab   :  { %372 = vmatmul.mubr.f32.gmra.mrb[52].mxu0 %v43_v12 }
  0xac   :  { %376 = vmatprep.mubr.f32.mxu0 %v108_v13 }
  0xaf   :  { %377 = vmatmul.mubr.f32.gmra.mrb[54].mxu0 %v44_v14 }
  0xb0   :  { %381 = vmatprep.mubr.f32.mxu0 %v109_v15 }
  0xb3   :  { %382 = vmatmul.mubr.f32.gmra.mrb[56].mxu0 %v45_v16 }
  0xb4   :  { %386 = vmatprep.mubr.f32.mxu0 %v110_v17 }
  0xb7   :  { %387 = vmatmul.mubr.f32.gmra.mrb[58].mxu0 %v46_v18 }
  0xb8   :  { %391 = vmatprep.mubr.f32.mxu0 %v111_v19 }
  0xbb   :  { %392 = vmatmul.mubr.f32.gmra.mrb[60].mxu0 %v47_v20 }
  0xbc   :  { %396 = vmatprep.mubr.f32.mxu0 %v112_v21 }
  0xbf   :  { %397 = vmatmul.mubr.f32.gmra.mrb[62].mxu0 %v48_v22 }
  0xc0   :  { %401 = vmatprep.mubr.f32.mxu0 %v113_v23 }
  0xc3   :  { %402 = vmatmul.mubr.f32.gmra.mrb[64].mxu0 %v49_v24 }
  0xc4   :  { %406 = vmatprep.mubr.f32.mxu0 %v114_v25 }
  0xc7   :  { %407 = vmatmul.mubr.f32.gmra.mrb[66].mxu0 %v50_v26 }
  0xc8   :  { %411 = vmatprep.mubr.f32.mxu0 %v115_v27 }
  0xcb   :  { %412 = vmatmul.mubr.f32.gmra.mrb[68].mxu0 %v51_v28 }
  0xcc   :  { %416 = vmatprep.mubr.f32.mxu0 %v116_v29 }
  0xcf   :  { %417 = vmatmul.mubr.f32.gmra.mrb[70].mxu0 %v52_v30 }
  0xd0   :  { %421 = vmatprep.mubr.f32.mxu0 %v117_v31 }
  0xd3   :  { %422 = vmatmul.mubr.f32.gmra.mrb[72].mxu0 %v53_v32 }
  0xd4   :  { %426 = vmatprep.mubr.f32.mxu0 %v118_v33 }
  0xd7   :  { %427 = vmatmul.mubr.f32.gmra.mrb[74].mxu0 %v54_v34 }
  0xd8   :  { %431 = vmatprep.mubr.f32.mxu0 %v119_v35 }
  0xdb   :  { %432 = vmatmul.mubr.f32.gmra.mrb[76].mxu0 %v55_v36 }
  0xdc   :  { %436 = vmatprep.mubr.f32.mxu0 %v120_v37 }
  0xdf   :  { %437 = vmatmul.mubr.f32.gmra.mrb[78].mxu0 %v56_v38 }
  0xe0   :  { %441 = vmatprep.mubr.f32.mxu0 %v121_v39 }
  0xe3   :  { %442 = vmatmul.mubr.f32.gmra.mrb[80].mxu0 %v57_v40 }
  0xe4   :  { %446 = vmatprep.mubr.f32.mxu0 %v122_v41 }
  0xe7   :  { %447 = vmatmul.mubr.f32.gmra.mrb[82].mxu0 %v58_v42 }
  0xe8   :  { %451 = vmatprep.mubr.f32.mxu0 %v123_v43 }
  0xeb   :  { %452 = vmatmul.mubr.f32.gmra.mrb[84].mxu0 %v59_v44 }
  0xec   :  { %456 = vmatprep.mubr.f32.mxu0 %v124_v45 }
  0xef   :  { %457 = vmatmul.mubr.f32.gmra.mrb[86].mxu0 %v60_v46 }
  0xf0   :  { %461 = vmatprep.mubr.f32.mxu0 %v125_v47 }
  0xf3   :  { %462 = vmatmul.mubr.f32.gmra.mrb[88].mxu0 %v61_v48 }
  0xf4   :  { %466 = vmatprep.mubr.f32.mxu0 %v126_v49 }
  0xf7   :  { %467 = vmatmul.mubr.f32.gmra.mrb[90].mxu0 %v62_v50 }
  0xf8   :  { %471 = vmatprep.mubr.f32.mxu0 %v127_v51 }
  0xfb   :  { %472 = vmatmul.mubr.f32.gmra.mrb[92].mxu0 %v63_v52 }
  0xfc   :  { %476 = vmatprep.mubr.f32.mxu0 %v128_v53 }
  0xff   :  { %477 = vmatmul.mubr.f32.gmra.mrb[94].mxu0 %v64_v54 }
 0x116   :  { %v243_v55 = vpop.f32.mrb[0].mxu0  ;;  %v4732_v12 = vpop.f32.mrb[0].mxu1 }
 0x117   :  { %v562_v56 = vmax.f32 %v243_v55, 0.0  ;;  %v245_v57 = vpop.f32.mrb[1].mxu0  ;;  %v485_v13 = vpop.f32.mrb[1].mxu1 }
 0x119   :  { %3657 = vmatprep.mubr.msk.f32.mxu1 %vm630_vm0, %v562_v56 }
 0x11a   :  { %v248_v58 = vpop.f32.mrb[2].mxu0  ;;  %v4736_v17 = vpop.f32.mrb[2].mxu1 }
 0x11b   :  { %v563_v59 = vmax.f32 %v248_v58, 0.0  ;;  %v250_v60 = vpop.f32.mrb[3].mxu0  ;;  %v490_v19 = vpop.f32.mrb[3].mxu1 }
 0x11d   :  { %3658 = vmatmul.mubr.msk.f32.vlgmr.msra.gmra.mrb[32].mxu1 %vm630_vm0, %v563_v59 }
 0x11e   :  { %v253_v61 = vpop.f32.mrb[4].mxu0  ;;  %v4739_v22 = vpop.f32.mrb[4].mxu1 }
 0x11f   :  { %v564_v62 = vmax.f32 %v253_v61, 0.0  ;;  %v255_v63 = vpop.f32.mrb[5].mxu0  ;;  %v495_v24 = vpop.f32.mrb[5].mxu1 }
 0x121   :  { %3660 = vmatprep.mubr.msk.f32.mxu1 %vm630_vm0, %v564_v62 }
 0x122   :  { %v258_v0 = vpop.f32.mrb[6].mxu0  ;;  %v4742_v27 = vpop.f32.mrb[6].mxu1 }
 0x123   :  { %v565_v1 = vmax.f32 %v258_v0, 0.0  ;;  %v260_v2 = vpop.f32.mrb[7].mxu0  ;;  %v500_v29 = vpop.f32.mrb[7].mxu1 }
 0x125   :  { %3661 = vmatmul.mubr.msk.f32.gmra.mrb[34].mxu1 %vm630_vm0, %v565_v1 }
 0x126   :  { %v263_v3 = vpop.f32.mrb[8].mxu0  ;;  %v4745_v32 = vpop.f32.mrb[8].mxu1 }
 0x127   :  { %v566_v4 = vmax.f32 %v263_v3, 0.0  ;;  %v265_v5 = vpop.f32.mrb[9].mxu0  ;;  %v505_v34 = vpop.f32.mrb[9].mxu1 }
 0x129   :  { %3663 = vmatprep.mubr.msk.f32.mxu1 %vm630_vm0, %v566_v4 }
 0x12a   :  { %v268_v6 = vpop.f32.mrb[10].mxu0  ;;  %v4748_v37 = vpop.f32.mrb[10].mxu1 }
 0x12b   :  { %v567_v7 = vmax.f32 %v268_v6, 0.0  ;;  %v270_v8 = vpop.f32.mrb[11].mxu0  ;;  %v510_v39 = vpop.f32.mrb[11].mxu1 }
 0x12d   :  { %3664 = vmatmul.mubr.msk.f32.gmra.mrb[36].mxu1 %vm630_vm0, %v567_v7 }
 0x12e   :  { %v273_v9 = vpop.f32.mrb[12].mxu0  ;;  %v4751_v42 = vpop.f32.mrb[12].mxu1 }
 0x12f   :  { %v568_v10 = vmax.f32 %v273_v9, 0.0  ;;  %v275_v11 = vpop.f32.mrb[13].mxu0  ;;  %v515_v44 = vpop.f32.mrb[13].mxu1 }
 0x131   :  { %3666 = vmatprep.mubr.msk.f32.mxu1 %vm630_vm0, %v568_v10 }
 0x132   :  { %v278_v14 = vpop.f32.mrb[14].mxu0  ;;  %v4754_v47 = vpop.f32.mrb[14].mxu1 }
 0x133   :  { %v569_v15 = vmax.f32 %v278_v14, 0.0  ;;  %v280_v16 = vpop.f32.mrb[15].mxu0  ;;  %v520_v49 = vpop.f32.mrb[15].mxu1 }
 0x135   :  { %3667 = vmatmul.mubr.msk.f32.gmra.mrb[38].mxu1 %vm630_vm0, %v569_v15 }
 0x136   :  { %v283_v18 = vpop.f32.mrb[16].mxu0  ;;  %v4757_v52 = vpop.f32.mrb[16].mxu1 }
 0x137   :  { %v570_v20 = vmax.f32 %v283_v18, 0.0  ;;  %v285_v21 = vpop.f32.mrb[17].mxu0  ;;  %v525_v54 = vpop.f32.mrb[17].mxu1 }
 0x139   :  { %3669 = vmatprep.mubr.msk.f32.mxu1 %vm630_vm0, %v570_v20 }
 0x13a   :  { %v288_v23 = vpop.f32.mrb[18].mxu0  ;;  %v4760_v57 = vpop.f32.mrb[18].mxu1 }
 0x13b   :  { %v571_v25 = vmax.f32 %v288_v23, 0.0  ;;  %v290_v26 = vpop.f32.mrb[19].mxu0  ;;  %v530_v59 = vpop.f32.mrb[19].mxu1 }
 0x13d   :  { %3670 = vmatmul.mubr.msk.f32.gmra.mrb[40].mxu1 %vm630_vm0, %v571_v25 }
 0x13e   :  { %v293_v28 = vpop.f32.mrb[20].mxu0  ;;  %v4763_v62 = vpop.f32.mrb[20].mxu1 }
 0x13f   :  { %v572_v30 = vmax.f32 %v293_v28, 0.0  ;;  %v295_v31 = vpop.f32.mrb[21].mxu0  ;;  %v535_v0 = vpop.f32.mrb[21].mxu1 }
 0x141   :  { %3672 = vmatprep.mubr.msk.f32.mxu1 %vm630_vm0, %v572_v30 }
 0x142   :  { %v298_v33 = vpop.f32.mrb[22].mxu0  ;;  %v4766_v3 = vpop.f32.mrb[22].mxu1 }
 0x143   :  { %v573_v35 = vmax.f32 %v298_v33, 0.0  ;;  %v300_v36 = vpop.f32.mrb[23].mxu0  ;;  %v540_v5 = vpop.f32.mrb[23].mxu1 }
 0x145   :  { %3673 = vmatmul.mubr.msk.f32.gmra.mrb[42].mxu1 %vm630_vm0, %v573_v35 }
 0x146   :  { %v303_v38 = vpop.f32.mrb[24].mxu0  ;;  %v4769_v8 = vpop.f32.mrb[24].mxu1 }
 0x147   :  { %v574_v40 = vmax.f32 %v303_v38, 0.0  ;;  %v305_v41 = vpop.f32.mrb[25].mxu0  ;;  %v545_v10 = vpop.f32.mrb[25].mxu1 }
 0x149   :  { %3675 = vmatprep.mubr.msk.f32.mxu1 %vm630_vm0, %v574_v40 }
 0x14a   :  { %v308_v43 = vpop.f32.mrb[26].mxu0  ;;  %v4772_v14 = vpop.f32.mrb[26].mxu1 }
 0x14b   :  { %v575_v45 = vmax.f32 %v308_v43, 0.0  ;;  %v310_v46 = vpop.f32.mrb[27].mxu0  ;;  %v550_v16 = vpop.f32.mrb[27].mxu1 }
 0x14d   :  { %3676 = vmatmul.mubr.msk.f32.gmra.mrb[44].mxu1 %vm630_vm0, %v575_v45 }
 0x14e   :  { %v313_v48 = vpop.f32.mrb[28].mxu0  ;;  %v4775_v20 = vpop.f32.mrb[28].mxu1 }
 0x14f   :  { %v576_v50 = vmax.f32 %v313_v48, 0.0  ;;  %v315_v51 = vpop.f32.mrb[29].mxu0  ;;  %v555_v23 = vpop.f32.mrb[29].mxu1 }
 0x151   :  { %3678 = vmatprep.mubr.msk.f32.mxu1 %vm630_vm0, %v576_v50 }
 0x152   :  { %v318_v53 = vpop.f32.mrb[30].mxu0  ;;  %v4778_v26 = vpop.f32.mrb[30].mxu1 }
 0x153   :  { %v577_v55 = vmax.f32 %v318_v53, 0.0  ;;  %v320_v56 = vpop.f32.mrb[31].mxu0  ;;  %v560_v29 = vpop.f32.mrb[31].mxu1 }
 0x155   :  { %3679 = vmatmul.mubr.msk.f32.gmra.mrb[46].mxu1 %vm630_vm0, %v577_v55 }
 0x156   :  { %v323_v58 = vpop.f32.mrb[32].mxu0 }
 0x157   :  { %v578_v60 = vmax.f32 %v323_v58, 0.0  ;;  %v325_v61 = vpop.f32.mrb[33].mxu0 }
 0x159   :  { %3681 = vmatprep.mubr.msk.f32.mxu1 %vm630_vm0, %v578_v60 }
 0x15a   :  { %v328_v63 = vpop.f32.mrb[34].mxu0 }
 0x15b   :  { %v579_v1 = vmax.f32 %v328_v63, 0.0  ;;  %v330_v2 = vpop.f32.mrb[35].mxu0 }
 0x15d   :  { %3682 = vmatmul.mubr.msk.f32.gmra.mrb[48].mxu1 %vm630_vm0, %v579_v1 }
 0x15e   :  { %v333_v4 = vpop.f32.mrb[36].mxu0 }
 0x15f   :  { %v580_v6 = vmax.f32 %v333_v4, 0.0  ;;  %v335_v7 = vpop.f32.mrb[37].mxu0 }
 0x161   :  { %3684 = vmatprep.mubr.msk.f32.mxu1 %vm630_vm0, %v580_v6 }
 0x162   :  { %v338_v9 = vpop.f32.mrb[38].mxu0 }
 0x163   :  { %v581_v11 = vmax.f32 %v338_v9, 0.0  ;;  %v340_v13 = vpop.f32.mrb[39].mxu0 }
 0x165   :  { %3685 = vmatmul.mubr.msk.f32.gmra.mrb[50].mxu1 %vm630_vm0, %v581_v11 }
 0x166   :  { %v343_v15 = vpop.f32.mrb[40].mxu0 }
 0x167   :  { %v582_v18 = vmax.f32 %v343_v15, 0.0  ;;  %v345_v19 = vpop.f32.mrb[41].mxu0 }
 0x169   :  { %3687 = vmatprep.mubr.msk.f32.mxu1 %vm630_vm0, %v582_v18 }
 0x16a   :  { %v348_v21 = vpop.f32.mrb[42].mxu0 }
 0x16b   :  { %v583_v24 = vmax.f32 %v348_v21, 0.0  ;;  %v350_v25 = vpop.f32.mrb[43].mxu0 }
 0x16d   :  { %3688 = vmatmul.mubr.msk.f32.gmra.mrb[52].mxu1 %vm630_vm0, %v583_v24 }
 0x16e   :  { %v353_v28 = vpop.f32.mrb[44].mxu0 }
 0x16f   :  { %v584_v30 = vmax.f32 %v353_v28, 0.0  ;;  %v355_v31 = vpop.f32.mrb[45].mxu0 }
 0x171   :  { %3690 = vmatprep.mubr.msk.f32.mxu1 %vm630_vm0, %v584_v30 }
 0x172   :  { %v358_v33 = vpop.f32.mrb[46].mxu0 }
 0x173   :  { %v585_v34 = vmax.f32 %v358_v33, 0.0  ;;  %v360_v35 = vpop.f32.mrb[47].mxu0 }
 0x175   :  { %3691 = vmatmul.mubr.msk.f32.gmra.mrb[54].mxu1 %vm630_vm0, %v585_v34 }
 0x176   :  { %v363_v36 = vpop.f32.mrb[48].mxu0 }
 0x177   :  { %v586_v38 = vmax.f32 %v363_v36, 0.0  ;;  %v365_v39 = vpop.f32.mrb[49].mxu0 }
 0x179   :  { %3693 = vmatprep.mubr.msk.f32.mxu1 %vm630_vm0, %v586_v38 }
 0x17a   :  { %v368_v40 = vpop.f32.mrb[50].mxu0 }
 0x17b   :  { %v587_v41 = vmax.f32 %v368_v40, 0.0  ;;  %v370_v43 = vpop.f32.mrb[51].mxu0 }
 0x17d   :  { %3694 = vmatmul.mubr.msk.f32.gmra.mrb[56].mxu1 %vm630_vm0, %v587_v41 }
 0x17e   :  { %v373_v44 = vpop.f32.mrb[52].mxu0 }
 0x17f   :  { %v588_v45 = vmax.f32 %v373_v44, 0.0  ;;  %v375_v46 = vpop.f32.mrb[53].mxu0 }
 0x181   :  { %3696 = vmatprep.mubr.msk.f32.mxu1 %vm630_vm0, %v588_v45 }
 0x182   :  { %v378_v48 = vpop.f32.mrb[54].mxu0 }
 0x183   :  { %v589_v49 = vmax.f32 %v378_v48, 0.0  ;;  %v380_v50 = vpop.f32.mrb[55].mxu0 }
 0x185   :  { %3697 = vmatmul.mubr.msk.f32.gmra.mrb[58].mxu1 %vm630_vm0, %v589_v49 }
 0x186   :  { %v383_v51 = vpop.f32.mrb[56].mxu0 }
 0x187   :  { %v590_v53 = vmax.f32 %v383_v51, 0.0  ;;  %v385_v54 = vpop.f32.mrb[57].mxu0 }
 0x189   :  { %3699 = vmatprep.mubr.msk.f32.mxu1 %vm630_vm0, %v590_v53 }
 0x18a   :  { %v388_v55 = vpop.f32.mrb[58].mxu0 }
 0x18b   :  { %v591_v56 = vmax.f32 %v388_v55, 0.0  ;;  %v390_v58 = vpop.f32.mrb[59].mxu0 }
 0x18d   :  { %3700 = vmatmul.mubr.msk.f32.gmra.mrb[60].mxu1 %vm630_vm0, %v591_v56 }
 0x18e   :  { %v393_v59 = vpop.f32.mrb[60].mxu0 }
 0x18f   :  { %v592_v60 = vmax.f32 %v393_v59, 0.0  ;;  %v395_v61 = vpop.f32.mrb[61].mxu0 }
 0x191   :  { %3702 = vmatprep.mubr.msk.f32.mxu1 %vm630_vm0, %v592_v60 }
 0x192   :  { %v398_v63 = vpop.f32.mrb[62].mxu0 }
 0x193   :  { %v593_v0 = vmax.f32 %v398_v63, 0.0  ;;  %v400_v1 = vpop.f32.mrb[63].mxu0 }
 0x195   :  { %3703 = vmatmul.mubr.msk.f32.gmra.mrb[62].mxu1 %vm630_vm0, %v593_v0 }
 0x196   :  { %v403_v2 = vpop.f32.mrb[64].mxu0 }
 0x197   :  { %v594_v4 = vmax.f32 %v403_v2, 0.0  ;;  %v405_v5 = vpop.f32.mrb[65].mxu0  ;;  %v610_v2 = vmax.f32 %v4732_v12, 0.0  ;;  %v615_v12 = vmax.f32 %v4748_v37, 0.0  ;;  %v621_v37 = vmax.f32 %v4766_v3, 0.0 }
 0x198   :  { %v612_v5 = vmax.f32 %v4739_v22, 0.0  ;;  %v618_v22 = vmax.f32 %v4757_v52, 0.0  ;;  %v624_v52 = vmax.f32 %v4775_v20, 0.0  ;;  %v625_v3 = vmax.f32 %v4778_v26, 0.0 }
 0x199   :  { %3705 = vmatprep.mubr.msk.f32.mxu1 %vm630_vm0, %v594_v4  ;;  %v611_v4 = vmax.f32 %v4736_v17, 0.0  ;;  %v617_v17 = vmax.f32 %v4754_v47, 0.0  ;;  %v623_v47 = vmax.f32 %v4772_v14, 0.0 }
 0x19a   :  { %v408_v6 = vpop.f32.mrb[66].mxu0 }
 0x19b   :  { %v595_v7 = vmax.f32 %v408_v6, 0.0  ;;  %v410_v9 = vpop.f32.mrb[67].mxu0  ;;  %v613_v6 = vmax.f32 %v4742_v27, 0.0  ;;  %v619_v27 = vmax.f32 %v4760_v57, 0.0 }
 0x19c   :  { %v616_v9 = vmax.f32 %v4751_v42, 0.0  ;;  %v622_v42 = vmax.f32 %v4769_v8, 0.0 }
 0x19d   :  { %3706 = vmatmul.mubr.msk.f32.gmra.mrb[64].mxu1 %vm630_vm0, %v595_v7  ;;  %v614_v7 = vmax.f32 %v4745_v32, 0.0  ;;  %v620_v32 = vmax.f32 %v4763_v62, 0.0 }
 0x19e   :  { %v413_v10 = vpop.f32.mrb[68].mxu0 }
 0x19f   :  { %v596_v11 = vmax.f32 %v413_v10, 0.0  ;;  %v415_v13 = vpop.f32.mrb[69].mxu0 }
 0x1a1   :  { %3708 = vmatprep.mubr.msk.f32.mxu1 %vm630_vm0, %v596_v11 }
 0x1a2   :  { %v418_v15 = vpop.f32.mrb[70].mxu0 }
 0x1a3   :  { %v597_v16 = vmax.f32 %v418_v15, 0.0  ;;  %v420_v18 = vpop.f32.mrb[71].mxu0 }
 0x1a5   :  { %3709 = vmatmul.mubr.msk.f32.gmra.mrb[66].mxu1 %vm630_vm0, %v597_v16 }
 0x1a6   :  { %v423_v19 = vpop.f32.mrb[72].mxu0 }
 0x1a7   :  { %v598_v21 = vmax.f32 %v423_v19, 0.0  ;;  %v425_v23 = vpop.f32.mrb[73].mxu0 }
 0x1a9   :  { %3711 = vmatprep.mubr.msk.f32.mxu1 %vm630_vm0, %v598_v21 }
 0x1aa   :  { %v428_v24 = vpop.f32.mrb[74].mxu0 }
 0x1ab   :  { %v599_v25 = vmax.f32 %v428_v24, 0.0  ;;  %v430_v28 = vpop.f32.mrb[75].mxu0 }
 0x1ad   :  { %3712 = vmatmul.mubr.msk.f32.gmra.mrb[68].mxu1 %vm630_vm0, %v599_v25 }
 0x1ae   :  { %v433_v29 = vpop.f32.mrb[76].mxu0 }
 0x1af   :  { %v600_v30 = vmax.f32 %v433_v29, 0.0  ;;  %v435_v31 = vpop.f32.mrb[77].mxu0 }
 0x1b1   :  { %3714 = vmatprep.mubr.msk.f32.mxu1 %vm630_vm0, %v600_v30 }
 0x1b2   :  { %v438_v33 = vpop.f32.mrb[78].mxu0 }
 0x1b3   :  { %v601_v34 = vmax.f32 %v438_v33, 0.0  ;;  %v440_v35 = vpop.f32.mrb[79].mxu0 }
 0x1b5   :  { %3715 = vmatmul.mubr.msk.f32.gmra.mrb[70].mxu1 %vm630_vm0, %v601_v34  ;;  %v4105_v34 = vld [vmem:[%s7636_s0 + $0x8] sm:$0xff] }
 0x1b6   :  { %v443_v36 = vpop.f32.mrb[80].mxu0 }
 0x1b7   :  { %v602_v38 = vmax.f32 %v443_v36, 0.0  ;;  %v445_v39 = vpop.f32.mrb[81].mxu0 }
 0x1b9   :  { %3717 = vmatprep.mubr.msk.f32.mxu1 %vm630_vm0, %v602_v38 }
 0x1ba   :  { %v448_v40 = vpop.f32.mrb[82].mxu0 }
 0x1bb   :  { %v603_v41 = vmax.f32 %v448_v40, 0.0  ;;  %v450_v43 = vpop.f32.mrb[83].mxu0  ;;  %v4106_v40 = vld [vmem:[%s7636_s0] sm:$0xff] }
 0x1bd   :  { %3718 = vmatmul.mubr.msk.f32.gmra.mrb[72].mxu1 %vm630_vm0, %v603_v41 }
 0x1be   :  { %v453_v44 = vpop.f32.mrb[84].mxu0 }
 0x1bf   :  { %v604_v45 = vmax.f32 %v453_v44, 0.0  ;;  %v455_v46 = vpop.f32.mrb[85].mxu0 }
 0x1c1   :  { %3720 = vmatprep.mubr.msk.f32.mxu1 %vm630_vm0, %v604_v45 }
 0x1c2   :  { %v458_v48 = vpop.f32.mrb[86].mxu0 }
 0x1c3   :  { %v605_v49 = vmax.f32 %v458_v48, 0.0  ;;  %v460_v50 = vpop.f32.mrb[87].mxu0 }
 0x1c5   :  { %3721 = vmatmul.mubr.msk.f32.gmra.mrb[74].mxu1 %vm630_vm0, %v605_v49 }
 0x1c6   :  { %v463_v51 = vpop.f32.mrb[88].mxu0 }
 0x1c7   :  { %v606_v53 = vmax.f32 %v463_v51, 0.0  ;;  %v465_v54 = vpop.f32.mrb[89].mxu0 }
 0x1c9   :  { %3723 = vmatprep.mubr.msk.f32.mxu1 %vm630_vm0, %v606_v53 }
 0x1ca   :  { %v468_v55 = vpop.f32.mrb[90].mxu0 }
 0x1cb   :  { %v607_v56 = vmax.f32 %v468_v55, 0.0  ;;  %v470_v58 = vpop.f32.mrb[91].mxu0  ;;  %v4107_v55 = vld [vmem:[%s7636_s0 + $0x18] sm:$0xff] }
 0x1cd   :  { %3724 = vmatmul.mubr.msk.f32.gmra.mrb[76].mxu1 %vm630_vm0, %v607_v56 }
 0x1ce   :  { %v473_v59 = vpop.f32.mrb[92].mxu0 }
 0x1cf   :  { %v608_v60 = vmax.f32 %v473_v59, 0.0  ;;  %v475_v61 = vpop.f32.mrb[93].mxu0 }
 0x1d1   :  { %3726 = vmatprep.mubr.msk.f32.mxu1 %vm630_vm0, %v608_v60 }
 0x1d2   :  { %v478_v63 = vpop.f32.mrb[94].mxu0 }
 0x1d3   :  { %v609_v0 = vmax.f32 %v478_v63, 0.0  ;;  %v480_v1 = vpop.f32.mrb[95].mxu0 }
 0x1d4   :  { %v4108_v1 = vld [vmem:[%s7636_s0 + $0x10] sm:$0xff] }
 0x1d5   :  { %3727 = vmatmul.mubr.msk.f32.gmra.mrb[78].mxu1 %vm630_vm0, %v609_v0 }
 0x1d6   :  { %3729 = vmatprep.mubr.msk.f32.mxu1 %vm630_vm0, %v610_v2 }
 0x1d9   :  { %3730 = vmatmul.mubr.msk.f32.gmra.mrb[80].mxu1 %vm630_vm0, %v611_v4 }
 0x1da   :  { %3732 = vmatprep.mubr.msk.f32.mxu1 %vm630_vm0, %v612_v5 }
 0x1dd   :  { %3733 = vmatmul.mubr.msk.f32.gmra.mrb[82].mxu1 %vm630_vm0, %v613_v6 }
 0x1de   :  { %3735 = vmatprep.mubr.msk.f32.mxu1 %vm630_vm0, %v614_v7 }
 0x1e1   :  { %3736 = vmatmul.mubr.msk.f32.gmra.mrb[84].mxu1 %vm630_vm0, %v615_v12 }
 0x1e2   :  { %3738 = vmatprep.mubr.msk.f32.mxu1 %vm630_vm0, %v616_v9 }
 0x1e5   :  { %3739 = vmatmul.mubr.msk.f32.gmra.mrb[86].mxu1 %vm630_vm0, %v617_v17 }
 0x1e6   :  { %3741 = vmatprep.mubr.msk.f32.mxu1 %vm630_vm0, %v618_v22 }
 0x1e9   :  { %3742 = vmatmul.mubr.msk.f32.gmra.mrb[88].mxu1 %vm630_vm0, %v619_v27 }
 0x1ea   :  { %3744 = vmatprep.mubr.msk.f32.mxu1 %vm630_vm0, %v620_v32 }
 0x1ed   :  { %3745 = vmatmul.mubr.msk.f32.gmra.mrb[90].mxu1 %vm630_vm0, %v621_v37 }
 0x1ee   :  { %3747 = vmatprep.mubr.msk.f32.mxu1 %vm630_vm0, %v622_v42 }
 0x1f0   :  { %v3659_v10 = vpop.f32.mrb[32].mxu1 }
 0x1f1   :  { %v1209_v57 = vsub.f32 0.0, %v3659_v10  ;;  %v889_v11 = vpop.f32.mrb[33].mxu1  ;;  %3748 = vmatmul.mubr.msk.f32.gmra.mrb[92].mxu1 %vm630_vm0, %v623_v47 }
 0x1f2   :  { %v1208_v62 = vsub.f32 0.0, %v889_v11  ;;  %3750 = vmatprep.mubr.msk.f32.mxu1 %vm630_vm0, %v624_v52  ;;  %v4109_v52 = vld [vmem:[%s7636_s0 + $0x28] sm:$0xff] }
 0x1f3   :  { %v1274_v13 = vmul.f32 1.442695, %v1209_v57  ;;  %v4110_v57 = vld [vmem:[%s7636_s0 + $0x20] sm:$0xff] }
 0x1f4   :  { %v1272_v8 = vmul.f32 1.442695, %v1208_v62 }
 0x1f5   :  { %3849 = vpow2.f32 %v1274_v13  ;;  %3751 = vmatmul.mubr.msk.f32.gmra.mrb[94].mxu1 %vm630_vm0, %v625_v3 }
 0x1f6   :  { %3851 = vpow2.f32 %v1272_v8 }
 0x1f8   :  { %v3662_v15 = vpop.f32.mrb[34].mxu1 }
 0x1f9   :  { %v1211_v14 = vsub.f32 0.0, %v3662_v15  ;;  %v899_v16 = vpop.f32.mrb[35].mxu1 }
 0x1fa   :  { %v1210_v28 = vsub.f32 0.0, %v899_v16 }
 0x1fb   :  { %v1278_v20 = vmul.f32 1.442695, %v1211_v14 }
 0x1fc   :  { %v1276_v26 = vmul.f32 1.442695, %v1210_v28 }
 0x1fd   :  { %3853 = vpow2.f32 %v1278_v20 }
 0x1ff   :  { %v3850_v18 = vpop.eup %3849 }
 0x200   :  { %v3852_v19 = vpop.eup %3851  ;;  %v1401_v21 = vadd.f32 1.0, %v3850_v18  ;;  %v3665_v23 = vpop.f32.mrb[36].mxu1 }
 0x201   :  { %v1400_v24 = vadd.f32 1.0, %v3852_v19  ;;  %v909_v25 = vpop.f32.mrb[37].mxu1  ;;  %v1213_v44 = vsub.f32 0.0, %v3665_v23 }
 0x202   :  { %3855 = vrcp.f32 %v1401_v21  ;;  %v1212_v46 = vsub.f32 0.0, %v909_v25 }
 0x203   :  { %3857 = vrcp.f32 %v1400_v24  ;;  %v1282_v48 = vmul.f32 1.442695, %v1213_v44 }
 0x204   :  { %3859 = vpow2.f32 %v1276_v26  ;;  %v1280_v51 = vmul.f32 1.442695, %v1212_v46 }
 0x207   :  { %v3854_v31 = vpop.eup %3853 }
 0x208   :  { %v4838_v29 = vpop.f32.mrb[38].mxu1  ;;  %v1403_v38 = vadd.f32 1.0, %v3854_v31  ;;  %v4112_v31 = vld [vmem:[%s7636_s0 + $0x30] sm:$0xff] }
 0x209   :  { %v4840_v30 = vpop.f32.mrb[39].mxu1  ;;  %v1215_v7 = vsub.f32 0.0, %v4838_v29  ;;  %v4111_v29 = vld [vmem:[%s7636_s0 + $0x38] sm:$0xff] }
 0x20a   :  { %3861 = vrcp.f32 %v1403_v38  ;;  %v1214_v12 = vsub.f32 0.0, %v4840_v30 }
 0x20b   :  { %3863 = vpow2.f32 %v1282_v48  ;;  %v1286_v9 = vmul.f32 1.442695, %v1215_v7 }
 0x20c   :  { %v3856_v33 = vpop.eup %3855  ;;  %v1284_v22 = vmul.f32 1.442695, %v1214_v12 }
 0x20d   :  { %v4845_v35 = vmul.f32 %v4105_v34, %v3856_v33  ;;  %v3858_v36 = vpop.eup %3857 }
 0x20e   :  { %v4856_v41 = vmul.f32 %v4106_v40, %v3858_v36  ;;  %v3860_v45 = vpop.eup %3859 }
 0x20f   :  { %1914 = vrot.lane.b32.xlu1 %v4845_v35, %s4170_s16  ;;  %1658 = vrot.lane.b32.xlu0 %v4845_v35, %s4171_s17  ;;  %v1402_v49 = vadd.f32 1.0, %v3860_v45 }
 0x210   :  { %v4851_v39 = vpop.f32.mrb[40].mxu1 }
 0x211   :  { %v4858_v43 = vpop.f32.mrb[41].mxu1  ;;  %3865 = vrcp.f32 %v1402_v49  ;;  %v1217_v16 = vsub.f32 0.0, %v4851_v39 }
 0x212   :  { %3867 = vpow2.f32 %v1280_v51  ;;  %v1216_v20 = vsub.f32 0.0, %v4858_v43 }
 0x213   :  { %2170 = vrot.lane.b32.xlu1 %v4845_v35, %s4172_s20  ;;  %1656 = vrot.lane.b32.xlu0 %v4856_v41, %s4171_s17  ;;  %v1290_v18 = vmul.f32 1.442695, %v1217_v16 }
 0x214   :  { %v3862_v54 = vpop.eup %3861  ;;  %v1288_v21 = vmul.f32 1.442695, %v1216_v20 }
 0x215   :  { %v4879_v56 = vmul.f32 %v4107_v55, %v3862_v54  ;;  %v3864_v60 = vpop.eup %3863 }
 0x216   :  { %v1405_v4 = vadd.f32 1.0, %v3864_v60  ;;  %v4113_v60 = vld [vmem:[%s7636_s0 + $0x48] sm:$0xff] }
 0x217   :  { %2426 = vrot.lane.b32.xlu1 %v4845_v35, %s4173_s21  ;;  %1912 = vrot.lane.b32.xlu0 %v4856_v41, %s4170_s16 }
 0x218   :  { %v4868_v50 = vpop.f32.mrb[42].mxu1  ;;  %3869 = vrcp.f32 %v1405_v4 }
 0x219   :  { %v4870_v53 = vpop.f32.mrb[43].mxu1  ;;  %v1219_v44 = vsub.f32 0.0, %v4868_v50 }
 0x21a   :  { %v1218_v45 = vsub.f32 0.0, %v4870_v53 }
 0x21b   :  { %2682 = vrot.lane.b32.xlu1 %v4845_v35, %s4174_s22  ;;  %2168 = vrot.lane.b32.xlu0 %v4856_v41, %s4172_s20  ;;  %v3866_v61 = vpop.eup %3865  ;;  %v1294_v46 = vmul.f32 1.442695, %v1219_v44 }
 0x21c   :  { %v3868_v63 = vpop.eup %3867  ;;  %v4902_v2 = vmul.f32 %v4108_v1, %v3866_v61  ;;  %v1292_v49 = vmul.f32 1.442695, %v1218_v45 }
 0x21d   :  { %v1404_v6 = vadd.f32 1.0, %v3868_v63  ;;  %v4114_v63 = vld [vmem:[%s7636_s0 + $0x40] sm:$0xff] }
 0x21f   :  { %2938 = vrot.lane.b32.xlu1 %v4845_v35, %s4175_s25  ;;  %2424 = vrot.lane.b32.xlu0 %v4856_v41, %s4173_s21  ;;  %3871 = vrcp.f32 %v1404_v6 }
 0x220   :  { %v4885_v58 = vpop.f32.mrb[44].mxu1  ;;  %3873 = vpow2.f32 %v1286_v9 }
 0x221   :  { %v4887_v59 = vpop.f32.mrb[45].mxu1  ;;  %3875 = vpow2.f32 %v1284_v22 }
 0x222   :  { %v3870_v32 = vpop.eup %3869 }
 0x223   :  { %2680 = vrot.lane.b32.xlu0 %v4856_v41, %s4174_s22  ;;  %1662 = vrot.lane.b32.xlu1 %v4879_v56, %s4171_s17  ;;  %v4935_v10 = vmul.f32 %v4109_v52, %v3870_v32  ;;  %v1221_v32 = vsub.f32 0.0, %v4885_v58 }
 0x225   :  { %v1298_v52 = vmul.f32 1.442695, %v1221_v32 }
 0x227   :  { %2936 = vrot.lane.b32.xlu0 %v4856_v41, %s4175_s25  ;;  %1918 = vrot.lane.b32.xlu1 %v4879_v56, %s4170_s16 }
 0x228   :  { %v4897_v0 = vpop.f32.mrb[46].mxu1 }
 0x229   :  { %v4904_v5 = vpop.f32.mrb[47].mxu1  ;;  %v3872_v37 = vpop.eup %3871 }
 0x22a   :  { %v4940_v11 = vmul.f32 %v4110_v57, %v3872_v37  ;;  %v3874_v62 = vpop.eup %3873  ;;  %v1220_v37 = vsub.f32 0.0, %v4887_v59 }
 0x22b   :  { %2174 = vrot.lane.b32.xlu1 %v4879_v56, %s4172_s20  ;;  %1916 = vrot.lane.b32.xlu0 %v4902_v2, %s4170_s16  ;;  %v3876_v3 = vpop.eup %3875  ;;  %v1407_v8 = vadd.f32 1.0, %v3874_v62 }
 0x22c   :  { %v1406_v14 = vadd.f32 1.0, %v3876_v3  ;;  %v1296_v62 = vmul.f32 1.442695, %v1220_v37 }
 0x22d   :  { %3877 = vrcp.f32 %v1407_v8 }
 0x22e   :  { %3879 = vrcp.f32 %v1406_v14 }
 0x22f   :  { %2430 = vrot.lane.b32.xlu1 %v4879_v56, %s4173_s21  ;;  %2172 = vrot.lane.b32.xlu0 %v4902_v2, %s4172_s20  ;;  %3881 = vpow2.f32 %v1290_v18  ;;  %v4115_v18 = vld [vmem:[%s7636_s0 + $0x58] sm:$0xff] }
 0x230   :  { %v4916_v17 = vpop.f32.mrb[48].mxu1  ;;  %3883 = vpow2.f32 %v1288_v21 }
 0x231   :  { %v4918_v27 = vpop.f32.mrb[49].mxu1 }
 0x233   :  { %2686 = vrot.lane.b32.xlu1 %v4879_v56, %s4174_s22  ;;  %2428 = vrot.lane.b32.xlu0 %v4902_v2, %s4173_s21 }
 0x237   :  { %2942 = vrot.lane.b32.xlu1 %v4879_v56, %s4175_s25  ;;  %2684 = vrot.lane.b32.xlu0 %v4902_v2, %s4174_s22  ;;  %v3878_v24 = vpop.eup %3877 }
 0x238   :  { %v4928_v42 = vpop.f32.mrb[50].mxu1  ;;  %v3880_v25 = vpop.eup %3879  ;;  %v4983_v30 = vmul.f32 %v4111_v29, %v3878_v24  ;;  %v4116_v24 = vld [vmem:[%s7636_s0 + $0x50] sm:$0xff] }
 0x239   :  { %v4930_v47 = vpop.f32.mrb[51].mxu1  ;;  %v4988_v33 = vmul.f32 %v4112_v31, %v3880_v25  ;;  %v3882_v34 = vpop.eup %3881 }
 0x23a   :  { %v3884_v36 = vpop.eup %3883  ;;  %v1409_v39 = vadd.f32 1.0, %v3882_v34 }
 0x23b   :  { %2940 = vrot.lane.b32.xlu0 %v4902_v2, %s4175_s25  ;;  %1660 = vrot.lane.b32.xlu1 %v4902_v2, %s4171_s17  ;;  %v1408_v43 = vadd.f32 1.0, %v3884_v36 }
 0x23c   :  { %3885 = vrcp.f32 %v1409_v39 }
 0x23d   :  { %3887 = vrcp.f32 %v1408_v43 }
 0x23e   :  { %3889 = vpow2.f32 %v1294_v46 }
 0x23f   :  { %1666 = vrot.lane.b32.xlu1 %v4935_v10, %s4171_s17  ;;  %1664 = vrot.lane.b32.xlu0 %v4940_v11, %s4171_s17  ;;  %3891 = vpow2.f32 %v1292_v49 }
 0x240   :  { %v4950_v13 = vpop.f32.mrb[52].mxu1 }
 0x241   :  { %v4952_v15 = vpop.f32.mrb[53].mxu1 }
 0x243   :  { %1922 = vrot.lane.b32.xlu1 %v4935_v10, %s4170_s16  ;;  %1920 = vrot.lane.b32.xlu0 %v4940_v11, %s4170_s16 }
 0x246   :  { %v3886_v50 = vpop.eup %3885 }
 0x247   :  { %2178 = vrot.lane.b32.xlu1 %v4935_v10, %s4172_s20  ;;  %2176 = vrot.lane.b32.xlu0 %v4940_v11, %s4172_s20  ;;  %v3888_v53 = vpop.eup %3887  ;;  %v5031_v61 = vmul.f32 %v4113_v60, %v3886_v50  ;;  %v1223_v50 = vsub.f32 0.0, %v4897_v0 }
 0x248   :  { %v4964_v19 = vpop.f32.mrb[54].mxu1  ;;  %v5036_v1 = vmul.f32 %v4114_v63, %v3888_v53  ;;  %v3890_v4 = vpop.eup %3889  ;;  %v1222_v53 = vsub.f32 0.0, %v4904_v5 }
 0x249   :  { %v4966_v23 = vpop.f32.mrb[55].mxu1  ;;  %7669 = vst [vmem:[#allocation2_spill] sm:$0xff] %v5031_v61  ;;  %v3892_v6 = vpop.eup %3891  ;;  %v1411_v12 = vadd.f32 1.0, %v3890_v4  ;;  %v1302_v4 = vmul.f32 1.442695, %v1223_v50 }
 0x24a   :  { %7670 = vst [vmem:[#allocation3_spill] sm:$0xff] %v5036_v1  ;;  %v1410_v22 = vadd.f32 1.0, %v3892_v6 }
 0x24b   :  { %2434 = vrot.lane.b32.xlu1 %v4935_v10, %s4173_s21  ;;  %2432 = vrot.lane.b32.xlu0 %v4940_v11, %s4173_s21  ;;  %3893 = vrcp.f32 %v1411_v12  ;;  %v1300_v12 = vmul.f32 1.442695, %v1222_v53 }
 0x24c   :  { %3895 = vrcp.f32 %v1410_v22 }
 0x24d   :  { %3897 = vpow2.f32 %v1298_v52 }
 0x24e   :  { %3899 = vpow2.f32 %v1296_v62 }
 0x24f   :  { %2690 = vrot.lane.b32.xlu1 %v4935_v10, %s4174_s22  ;;  %2688 = vrot.lane.b32.xlu0 %v4940_v11, %s4174_s22 }
 0x250   :  { %v4976_v28 = vpop.f32.mrb[56].mxu1 }
 0x251   :  { %v4978_v26 = vpop.f32.mrb[57].mxu1 }
 0x253   :  { %2946 = vrot.lane.b32.xlu1 %v4935_v10, %s4175_s25  ;;  %2944 = vrot.lane.b32.xlu0 %v4940_v11, %s4175_s25 }
 0x255   :  { %v3894_v58 = vpop.eup %3893 }
 0x256   :  { %v3896_v59 = vpop.eup %3895  ;;  %v5083_v21 = vmul.f32 %v4115_v18, %v3894_v58 }
 0x257   :  { %1670 = vrot.lane.b32.xlu1 %v4983_v30, %s4171_s17  ;;  %1668 = vrot.lane.b32.xlu0 %v4988_v33, %s4171_s17  ;;  %v5088_v25 = vmul.f32 %v4116_v24, %v3896_v59  ;;  %v3898_v34 = vpop.eup %3897 }
 0x258   :  { %v4998_v38 = vpop.f32.mrb[58].mxu1  ;;  %7673 = vst [vmem:[#allocation6_spill] sm:$0xff] %v5083_v21  ;;  %v3900_v36 = vpop.eup %3899  ;;  %v1413_v43 = vadd.f32 1.0, %v3898_v34  ;;  %v4117_v34 = vld [vmem:[%s7636_s0 + $0x68] sm:$0xff] }
 0x259   :  { %v5000_v40 = vpop.f32.mrb[59].mxu1  ;;  %7674 = vst [vmem:[#allocation7_spill] sm:$0xff] %v5088_v25  ;;  %v1412_v46 = vadd.f32 1.0, %v3900_v36 }
 0x25a   :  { %3901 = vrcp.f32 %v1413_v43  ;;  %v4118_v43 = vld [vmem:[%s7636_s0 + $0x60] sm:$0xff] }
 0x25b   :  { %1926 = vrot.lane.b32.xlu1 %v4983_v30, %s4170_s16  ;;  %1924 = vrot.lane.b32.xlu0 %v4988_v33, %s4170_s16  ;;  %3903 = vrcp.f32 %v1412_v46 }
 0x25c   :  { %3905 = vpow2.f32 %v1302_v4 }
 0x25d   :  { %3907 = vpow2.f32 %v1300_v12 }
 0x25f   :  { %2182 = vrot.lane.b32.xlu1 %v4983_v30, %s4172_s20  ;;  %2180 = vrot.lane.b32.xlu0 %v4988_v33, %s4172_s20 }
 0x260   :  { %v5012_v48 = vpop.f32.mrb[60].mxu1 }
 0x261   :  { %v5014_v51 = vpop.f32.mrb[61].mxu1 }
 0x263   :  { %2438 = vrot.lane.b32.xlu1 %v4983_v30, %s4173_s21  ;;  %2436 = vrot.lane.b32.xlu0 %v4988_v33, %s4173_s21 }
 0x264   :  { %v3902_v52 = vpop.eup %3901 }
 0x265   :  { %v3904_v62 = vpop.eup %3903  ;;  %v5155_v36 = vmul.f32 %v4117_v34, %v3902_v52 }
 0x266   :  { %v5160_v46 = vmul.f32 %v4118_v43, %v3904_v62  ;;  %v3906_v4 = vpop.eup %3905 }
 0x267   :  { %2694 = vrot.lane.b32.xlu1 %v4983_v30, %s4174_s22  ;;  %2692 = vrot.lane.b32.xlu0 %v4988_v33, %s4174_s22  ;;  %7687 = vst [vmem:[#allocation20_spill] sm:$0xff] %v5155_v36  ;;  %v3908_v12 = vpop.eup %3907  ;;  %v1415_v62 = vadd.f32 1.0, %v3906_v4 }
 0x268   :  { %v5024_v54 = vpop.f32.mrb[62].mxu1  ;;  %7688 = vst [vmem:[#allocation21_spill] sm:$0xff] %v5160_v46 }
 0x269   :  { %v5026_v55 = vpop.f32.mrb[63].mxu1  ;;  %3909 = vrcp.f32 %v1415_v62 }
 0x26b   :  { %2950 = vrot.lane.b32.xlu1 %v4983_v30, %s4175_s25  ;;  %2948 = vrot.lane.b32.xlu0 %v4988_v33, %s4175_s25 }
 0x26f   :  { %1674 = vrot.lane.b32.xlu1 %v5031_v61, %s4171_s17  ;;  %1672 = vrot.lane.b32.xlu0 %v5036_v1, %s4171_s17 }
 0x270   :  { %v5046_v7 = vpop.f32.mrb[64].mxu1 }
 0x271   :  { %v5048_v9 = vpop.f32.mrb[65].mxu1 }
 0x273   :  { %1930 = vrot.lane.b32.xlu1 %v5031_v61, %s4170_s16  ;;  %1928 = vrot.lane.b32.xlu0 %v5036_v1, %s4170_s16 }
 0x277   :  { %2186 = vrot.lane.b32.xlu1 %v5031_v61, %s4172_s20  ;;  %2184 = vrot.lane.b32.xlu0 %v5036_v1, %s4172_s20 }
 0x278   :  { %v5060_v57 = vpop.f32.mrb[66].mxu1 }
 0x279   :  { %v5062_v3 = vpop.f32.mrb[67].mxu1 }
 0x27b   :  { %2442 = vrot.lane.b32.xlu1 %v5031_v61, %s4173_s21  ;;  %2440 = vrot.lane.b32.xlu0 %v5036_v1, %s4173_s21 }
 0x27f   :  { %2698 = vrot.lane.b32.xlu1 %v5031_v61, %s4174_s22  ;;  %2696 = vrot.lane.b32.xlu0 %v5036_v1, %s4174_s22 }
 0x280   :  { %v5072_v8 = vpop.f32.mrb[68].mxu1 }
 0x281   :  { %v5074_v14 = vpop.permute.xlu1 %1914  ;;  %v5076_v16 = vpop.permute.xlu0 %1658 }
 0x282   :  { %7671 = vst [vmem:[#allocation4_spill] sm:$0xff] %v5074_v14  ;;  %7672 = vst [vmem:[#allocation5_spill] sm:$0xff] %v5076_v16  ;;  %v5078_v20 = vpop.f32.mrb[69].mxu1 }
 0x283   :  { %2954 = vrot.lane.b32.xlu1 %v5031_v61, %s4175_s25  ;;  %2952 = vrot.lane.b32.xlu0 %v5036_v1, %s4175_s25 }
 0x285   :  { %v5094_v29 = vpop.permute.xlu1 %2170  ;;  %v5096_v31 = vpop.permute.xlu0 %1656 }
 0x286   :  { %7675 = vst [vmem:[#allocation8_spill] sm:$0xff] %v5094_v29  ;;  %7676 = vst [vmem:[#allocation9_spill] sm:$0xff] %v5096_v31 }
 0x287   :  { %1678 = vrot.lane.b32.xlu1 %v5083_v21, %s4171_s17  ;;  %1676 = vrot.lane.b32.xlu0 %v5088_v25, %s4171_s17 }
 0x288   :  { %v5102_v39 = vpop.f32.mrb[70].mxu1 }
 0x289   :  { %v5104_v44 = vpop.permute.xlu1 %2426  ;;  %v5106_v45 = vpop.permute.xlu0 %1912 }
 0x28a   :  { %7677 = vst [vmem:[#allocation10_spill] sm:$0xff] %v5104_v44  ;;  %7678 = vst [vmem:[#allocation11_spill] sm:$0xff] %v5106_v45  ;;  %v5108_v49 = vpop.f32.mrb[71].mxu1 }
 0x28b   :  { %1934 = vrot.lane.b32.xlu1 %v5083_v21, %s4170_s16  ;;  %1932 = vrot.lane.b32.xlu0 %v5088_v25, %s4170_s16 }
 0x28d   :  { %v5116_v60 = vpop.permute.xlu1 %2682  ;;  %v5118_v63 = vpop.permute.xlu0 %2168 }
 0x28e   :  { %7679 = vst [vmem:[#allocation12_spill] sm:$0xff] %v5116_v60  ;;  %7680 = vst [vmem:[#allocation13_spill] sm:$0xff] %v5118_v63 }
 0x28f   :  { %2190 = vrot.lane.b32.xlu1 %v5083_v21, %s4172_s20  ;;  %2188 = vrot.lane.b32.xlu0 %v5088_v25, %s4172_s20 }
 0x290   :  { %v5124_v6 = vpop.f32.mrb[72].mxu1 }
 0x291   :  { %v5126_v22 = vpop.permute.xlu1 %2938  ;;  %v5128_v0 = vpop.permute.xlu0 %2424 }
 0x292   :  { %7681 = vst [vmem:[#allocation14_spill] sm:$0xff] %v5126_v22  ;;  %7682 = vst [vmem:[#allocation15_spill] sm:$0xff] %v5128_v0  ;;  %v5130_v5 = vpop.f32.mrb[73].mxu1 }
 0x293   :  { %2446 = vrot.lane.b32.xlu1 %v5083_v21, %s4173_s21  ;;  %2444 = vrot.lane.b32.xlu0 %v5088_v25, %s4173_s21 }
 0x295   :  { %v5136_v32 = vpop.permute.xlu0 %2680  ;;  %v5138_v37 = vpop.permute.xlu1 %1662 }
 0x296   :  { %7683 = vst [vmem:[#allocation16_spill] sm:$0xff] %v5136_v32  ;;  %7684 = vst [vmem:[#allocation17_spill] sm:$0xff] %v5138_v37  ;;  %v1224_v32 = vsub.f32 0.0, %v4918_v27  ;;  %v4120_v37 = vld [vmem:[%s7636_s0 + $0x70] sm:$0xff] }
 0x297   :  { %2702 = vrot.lane.b32.xlu1 %v5083_v21, %s4174_s22  ;;  %2700 = vrot.lane.b32.xlu0 %v5088_v25, %s4174_s22 }
 0x298   :  { %v5144_v58 = vpop.f32.mrb[74].mxu1 }
 0x299   :  { %v5146_v59 = vpop.permute.xlu0 %2936  ;;  %v5148_v18 = vpop.permute.xlu1 %1918 }
 0x29a   :  { %7685 = vst [vmem:[#allocation18_spill] sm:$0xff] %v5146_v59  ;;  %7686 = vst [vmem:[#allocation19_spill] sm:$0xff] %v5148_v18  ;;  %v5150_v24 = vpop.f32.mrb[75].mxu1  ;;  %v1414_v59 = vadd.f32 1.0, %v3908_v12  ;;  %v1304_v18 = vmul.f32 1.442695, %v1224_v32 }
 0x29b   :  { %2958 = vrot.lane.b32.xlu1 %v5083_v21, %s4175_s25  ;;  %2956 = vrot.lane.b32.xlu0 %v5088_v25, %s4175_s25  ;;  %v4122_v25 = vld [vmem:[%s7636_s0 + $0x80] sm:$0xff] }
 0x29c   :  { %3911 = vrcp.f32 %v1414_v59 }
 0x29d   :  { %v5166_v50 = vpop.permute.xlu1 %2174  ;;  %v5168_v53 = vpop.permute.xlu0 %1916 }
 0x29e   :  { %7689 = vst [vmem:[#allocation22_spill] sm:$0xff] %v5166_v50  ;;  %7690 = vst [vmem:[#allocation23_spill] sm:$0xff] %v5168_v53  ;;  %v1225_v50 = vsub.f32 0.0, %v4916_v17 }
 0x29f   :  { %1682 = vrot.lane.b32.xlu1 %v5155_v36, %s4171_s17  ;;  %1680 = vrot.lane.b32.xlu0 %v5160_v46, %s4171_s17 }
 0x2a0   :  { %v5174_v52 = vpop.f32.mrb[76].mxu1  ;;  %v1306_v12 = vmul.f32 1.442695, %v1225_v50 }
 0x2a1   :  { %v5176_v34 = vpop.permute.xlu1 %2430  ;;  %v5178_v43 = vpop.permute.xlu0 %2172 }
 0x2a2   :  { %7691 = vst [vmem:[#allocation24_spill] sm:$0xff] %v5176_v34  ;;  %7692 = vst [vmem:[#allocation25_spill] sm:$0xff] %v5178_v43  ;;  %v5180_v22 = vpop.f32.mrb[77].mxu1  ;;  %3913 = vpow2.f32 %v1306_v12 }
 0x2a3   :  { %1938 = vrot.lane.b32.xlu1 %v5155_v36, %s4170_s16  ;;  %1936 = vrot.lane.b32.xlu0 %v5160_v46, %s4170_s16  ;;  %3915 = vpow2.f32 %v1304_v18 }
 0x2a5   :  { %v5188_v60 = vpop.permute.xlu1 %2686  ;;  %v5190_v4 = vpop.permute.xlu0 %2428 }
 0x2a6   :  { %7693 = vst [vmem:[#allocation26_spill] sm:$0xff] %v5188_v60  ;;  %7694 = vst [vmem:[#allocation27_spill] sm:$0xff] %v5190_v4 }
 0x2a7   :  { %2194 = vrot.lane.b32.xlu1 %v5155_v36, %s4172_s20  ;;  %2192 = vrot.lane.b32.xlu0 %v5160_v46, %s4172_s20 }
 0x2a8   :  { %v5196_v34 = vpop.f32.mrb[78].mxu1 }
 0x2a9   :  { %v5198_v0 = vpop.permute.xlu1 %2942  ;;  %v5200_v17 = vpop.permute.xlu0 %2684 }
 0x2aa   :  { %7695 = vst [vmem:[#allocation28_spill] sm:$0xff] %v5198_v0  ;;  %7696 = vst [vmem:[#allocation29_spill] sm:$0xff] %v5200_v17  ;;  %v5202_v27 = vpop.f32.mrb[79].mxu1  ;;  %v3910_v0 = vpop.eup %3909 }
 0x2ab   :  { %2450 = vrot.lane.b32.xlu1 %v5155_v36, %s4173_s21  ;;  %2448 = vrot.lane.b32.xlu0 %v5160_v46, %s4173_s21  ;;  %v3912_v60 = vpop.eup %3911 }
 0x2ac   :  { %v5208_v59 = vpop.f32.mrb[80].mxu1  ;;  %v5236_v63 = vmul.f32 %v4120_v37, %v3912_v60 }
 0x2ad   :  { %v5210_v50 = vpop.permute.xlu0 %2940  ;;  %v5212_v62 = vpop.permute.xlu1 %1660 }
 0x2ae   :  { %7697 = vst [vmem:[#allocation30_spill] sm:$0xff] %v5210_v50  ;;  %7698 = vst [vmem:[#allocation31_spill] sm:$0xff] %v5212_v62  ;;  %v5214_v32 = vpop.f32.mrb[81].mxu1  ;;  %v4119_v50 = vld [vmem:[%s7636_s0 + $0x78] sm:$0xff] }
 0x2af   :  { %2706 = vrot.lane.b32.xlu1 %v5155_v36, %s4174_s22  ;;  %2704 = vrot.lane.b32.xlu0 %v5160_v46, %s4174_s22  ;;  %v5231_v44 = vmul.f32 %v4119_v50, %v3910_v0  ;;  %7702 = vst [vmem:[#allocation35_spill] sm:$0xff] %v5236_v63  ;;  %v3914_v0 = vpop.eup %3913 }
 0x2b0   :  { %v5220_v17 = vpop.f32.mrb[82].mxu1  ;;  %v3916_v43 = vpop.eup %3915  ;;  %v1417_v37 = vadd.f32 1.0, %v3914_v0  ;;  %v1226_v0 = vsub.f32 0.0, %v4930_v47 }
 0x2b1   :  { %v5222_v12 = vpop.permute.xlu1 %1666  ;;  %v5224_v4 = vpop.permute.xlu0 %1664  ;;  %7701 = vst [vmem:[#allocation34_spill] sm:$0xff] %v5231_v44 }
 0x2b2   :  { %7699 = vst [vmem:[#allocation32_spill] sm:$0xff] %v5222_v12  ;;  %7700 = vst [vmem:[#allocation33_spill] sm:$0xff] %v5224_v4  ;;  %v5226_v18 = vpop.f32.mrb[83].mxu1  ;;  %3917 = vrcp.f32 %v1417_v37  ;;  %v1308_v62 = vmul.f32 1.442695, %v1226_v0 }
 0x2b3   :  { %2962 = vrot.lane.b32.xlu1 %v5155_v36, %s4175_s25  ;;  %2960 = vrot.lane.b32.xlu0 %v5160_v46, %s4175_s25 }
 0x2b4   :  { %v5242_v4 = vpop.f32.mrb[84].mxu1 }
 0x2b5   :  { %v5244_v12 = vpop.permute.xlu1 %1922  ;;  %v5246_v29 = vpop.permute.xlu0 %1920 }
 0x2b6   :  { %7703 = vst [vmem:[#allocation36_spill] sm:$0xff] %v5244_v12  ;;  %7704 = vst [vmem:[#allocation37_spill] sm:$0xff] %v5246_v29  ;;  %v5248_v50 = vpop.f32.mrb[85].mxu1  ;;  %v1416_v12 = vadd.f32 1.0, %v3916_v43  ;;  %v1227_v29 = vsub.f32 0.0, %v4928_v42 }
 0x2b7   :  { %1686 = vrot.lane.b32.xlu1 %v5231_v44, %s4171_s17  ;;  %1684 = vrot.lane.b32.xlu0 %v5236_v63, %s4171_s17 }
 0x2b8   :  { %v5254_v60 = vpop.f32.mrb[86].mxu1  ;;  %3919 = vrcp.f32 %v1416_v12 }
 0x2b9   :  { %v5256_v45 = vpop.permute.xlu1 %2178  ;;  %v5258_v31 = vpop.permute.xlu0 %2176 }
 0x2ba   :  { %7705 = vst [vmem:[#allocation38_spill] sm:$0xff] %v5256_v45  ;;  %7706 = vst [vmem:[#allocation39_spill] sm:$0xff] %v5258_v31  ;;  %v5260_v14 = vpop.f32.mrb[87].mxu1  ;;  %v1310_v31 = vmul.f32 1.442695, %v1227_v29 }
 0x2bb   :  { %1942 = vrot.lane.b32.xlu1 %v5231_v44, %s4170_s16  ;;  %1940 = vrot.lane.b32.xlu0 %v5236_v63, %s4170_s16 }
 0x2bc   :  { %v5267_v53 = vpop.f32.mrb[88].mxu1  ;;  %3921 = vpow2.f32 %v1310_v31 }
 0x2bd   :  { %v5270_v16 = vpop.permute.xlu1 %2434  ;;  %v5272_v45 = vpop.permute.xlu0 %2432  ;;  %3923 = vpow2.f32 %v1308_v62 }
 0x2be   :  { %7707 = vst [vmem:[#allocation40_spill] sm:$0xff] %v5270_v16  ;;  %7708 = vst [vmem:[#allocation41_spill] sm:$0xff] %v5272_v45  ;;  %v5274_v43 = vpop.f32.mrb[89].mxu1 }
 0x2bf   :  { %2198 = vrot.lane.b32.xlu1 %v5231_v44, %s4172_s20  ;;  %2196 = vrot.lane.b32.xlu0 %v5236_v63, %s4172_s20 }
 0x2c0   :  { %v5280_v42 = vpop.f32.mrb[90].mxu1 }
 0x2c1   :  { %v5282_v37 = vpop.permute.xlu1 %2690  ;;  %v5284_v47 = vpop.permute.xlu0 %2688 }
 0x2c2   :  { %7709 = vst [vmem:[#allocation42_spill] sm:$0xff] %v5282_v37  ;;  %7710 = vst [vmem:[#allocation43_spill] sm:$0xff] %v5284_v47  ;;  %v5286_v16 = vpop.f32.mrb[91].mxu1  ;;  %v3918_v37 = vpop.eup %3917 }
 0x2c3   :  { %2454 = vrot.lane.b32.xlu1 %v5231_v44, %s4173_s21  ;;  %2452 = vrot.lane.b32.xlu0 %v5236_v63, %s4173_s21  ;;  %v3920_v47 = vpop.eup %3919 }
 0x2c4   :  { %v5292_v12 = vpop.f32.mrb[92].mxu1  ;;  %v5320_v21 = vmul.f32 %v4122_v25, %v3920_v47 }
 0x2c5   :  { %v5294_v29 = vpop.permute.xlu1 %2946  ;;  %v5296_v45 = vpop.permute.xlu0 %2944 }
 0x2c6   :  { %7711 = vst [vmem:[#allocation44_spill] sm:$0xff] %v5294_v29  ;;  %7712 = vst [vmem:[#allocation45_spill] sm:$0xff] %v5296_v45  ;;  %v5298_v0 = vpop.f32.mrb[93].mxu1  ;;  %v4121_v45 = vld [vmem:[%s7636_s0 + $0x88] sm:$0xff]  ;;  %v3922_v1 = vpop.eup %3921 }
 0x2c7   :  { %2710 = vrot.lane.b32.xlu1 %v5231_v44, %s4174_s22  ;;  %2708 = vrot.lane.b32.xlu0 %v5236_v63, %s4174_s22  ;;  %v5315_v29 = vmul.f32 %v4121_v45, %v3918_v37  ;;  %7716 = vst [vmem:[#allocation49_spill] sm:$0xff] %v5320_v21  ;;  %v3924_v61 = vpop.eup %3923  ;;  %v1419_v25 = vadd.f32 1.0, %v3922_v1 }
 0x2c8   :  { %v5304_v46 = vpop.f32.mrb[94].mxu1  ;;  %v1418_v47 = vadd.f32 1.0, %v3924_v61 }
 0x2c9   :  { %v5306_v31 = vpop.permute.xlu1 %1670  ;;  %v5308_v36 = vpop.permute.xlu0 %1668  ;;  %7715 = vst [vmem:[#allocation48_spill] sm:$0xff] %v5315_v29  ;;  %3925 = vrcp.f32 %v1419_v25 }
 0x2ca   :  { %7713 = vst [vmem:[#allocation46_spill] sm:$0xff] %v5306_v31  ;;  %7714 = vst [vmem:[#allocation47_spill] sm:$0xff] %v5308_v36  ;;  %v5310_v62 = vpop.f32.mrb[95].mxu1  ;;  %3927 = vrcp.f32 %v1418_v47 }
 0x2cb   :  { %2966 = vrot.lane.b32.xlu1 %v5231_v44, %s4175_s25  ;;  %2964 = vrot.lane.b32.xlu0 %v5236_v63, %s4175_s25 }
 0x2cd   :  { %v5326_v36 = vpop.permute.xlu1 %1926  ;;  %v5328_v31 = vpop.permute.xlu0 %1924 }
 0x2ce   :  { %7717 = vst [vmem:[#allocation50_spill] sm:$0xff] %v5326_v36  ;;  %7718 = vst [vmem:[#allocation51_spill] sm:$0xff] %v5328_v31  ;;  %v1229_v31 = vsub.f32 0.0, %v4950_v13  ;;  %v1228_v36 = vsub.f32 0.0, %v4952_v15 }
 0x2cf   :  { %1690 = vrot.lane.b32.xlu1 %v5315_v29, %s4171_s17  ;;  %1688 = vrot.lane.b32.xlu0 %v5320_v21, %s4171_s17 }
 0x2d0   :  { %v1314_v61 = vmul.f32 1.442695, %v1229_v31  ;;  %v1312_v1 = vmul.f32 1.442695, %v1228_v36 }
 0x2d1   :  { %v5334_v45 = vpop.permute.xlu1 %2182  ;;  %v5336_v37 = vpop.permute.xlu0 %2180 }
 0x2d2   :  { %7719 = vst [vmem:[#allocation52_spill] sm:$0xff] %v5334_v45  ;;  %7720 = vst [vmem:[#allocation53_spill] sm:$0xff] %v5336_v37  ;;  %3929 = vpow2.f32 %v1314_v61  ;;  %v4123_v61 = vld [vmem:[%s7636_s0 + $0x98] sm:$0xff] }
 0x2d3   :  { %1946 = vrot.lane.b32.xlu1 %v5315_v29, %s4170_s16  ;;  %1944 = vrot.lane.b32.xlu0 %v5320_v21, %s4170_s16  ;;  %3931 = vpow2.f32 %v1312_v1  ;;  %v3926_v25 = vpop.eup %3925 }
 0x2d4   :  { %v3928_v36 = vpop.eup %3927  ;;  %v5375_v1 = vmul.f32 %v4123_v61, %v3926_v25 }
 0x2d5   :  { %v5344_v63 = vpop.permute.xlu1 %2438  ;;  %v5346_v44 = vpop.permute.xlu0 %2436 }
 0x2d6   :  { %7721 = vst [vmem:[#allocation54_spill] sm:$0xff] %v5344_v63  ;;  %7722 = vst [vmem:[#allocation55_spill] sm:$0xff] %v5346_v44 }
 0x2d7   :  { %2202 = vrot.lane.b32.xlu1 %v5315_v29, %s4172_s20  ;;  %2200 = vrot.lane.b32.xlu0 %v5320_v21, %s4172_s20  ;;  %7729 = vst [vmem:[#allocation62_spill] sm:$0xff] %v5375_v1 }
 0x2d9   :  { %v5352_v37 = vpop.permute.xlu1 %2694  ;;  %v5354_v45 = vpop.permute.xlu0 %2692 }
 0x2da   :  { %7723 = vst [vmem:[#allocation56_spill] sm:$0xff] %v5352_v37  ;;  %7724 = vst [vmem:[#allocation57_spill] sm:$0xff] %v5354_v45 }
 0x2db   :  { %2458 = vrot.lane.b32.xlu1 %v5315_v29, %s4173_s21  ;;  %2456 = vrot.lane.b32.xlu0 %v5320_v21, %s4173_s21 }
 0x2dc   :  { %v3930_v44 = vpop.eup %3929 }
 0x2dd   :  { %v5360_v13 = vpop.permute.xlu1 %2950  ;;  %v5362_v15 = vpop.permute.xlu0 %2948 }
 0x2de   :  { %7725 = vst [vmem:[#allocation58_spill] sm:$0xff] %v5360_v13  ;;  %7726 = vst [vmem:[#allocation59_spill] sm:$0xff] %v5362_v15  ;;  %v4124_v15 = vld [vmem:[%s7636_s0 + $0x90] sm:$0xff]  ;;  %v3932_v63 = vpop.eup %3931 }
 0x2df   :  { %2714 = vrot.lane.b32.xlu1 %v5315_v29, %s4174_s22  ;;  %2712 = vrot.lane.b32.xlu0 %v5320_v21, %s4174_s22  ;;  %v5380_v13 = vmul.f32 %v4124_v15, %v3928_v36  ;;  %v1421_v15 = vadd.f32 1.0, %v3930_v44  ;;  %v1420_v61 = vadd.f32 1.0, %v3932_v63 }
 0x2e1   :  { %v5368_v31 = vpop.permute.xlu1 %1674  ;;  %v5370_v47 = vpop.permute.xlu0 %1672  ;;  %7730 = vst [vmem:[#allocation63_spill] sm:$0xff] %v5380_v13  ;;  %3933 = vrcp.f32 %v1421_v15 }
 0x2e2   :  { %7727 = vst [vmem:[#allocation60_spill] sm:$0xff] %v5368_v31  ;;  %7728 = vst [vmem:[#allocation61_spill] sm:$0xff] %v5370_v47  ;;  %3935 = vrcp.f32 %v1420_v61 }
 0x2e3   :  { %2970 = vrot.lane.b32.xlu1 %v5315_v29, %s4175_s25  ;;  %2968 = vrot.lane.b32.xlu0 %v5320_v21, %s4175_s25 }
 0x2e5   :  { %v5386_v45 = vpop.permute.xlu1 %1930  ;;  %v5388_v37 = vpop.permute.xlu0 %1928 }
 0x2e6   :  { %7731 = vst [vmem:[#allocation64_spill] sm:$0xff] %v5386_v45  ;;  %7732 = vst [vmem:[#allocation65_spill] sm:$0xff] %v5388_v37  ;;  %v1231_v37 = vsub.f32 0.0, %v4964_v19  ;;  %v1230_v45 = vsub.f32 0.0, %v4966_v23 }
 0x2e7   :  { %1694 = vrot.lane.b32.xlu1 %v5375_v1, %s4171_s17  ;;  %1692 = vrot.lane.b32.xlu0 %v5380_v13, %s4171_s17 }
 0x2e8   :  { %v1318_v44 = vmul.f32 1.442695, %v1231_v37  ;;  %v1316_v63 = vmul.f32 1.442695, %v1230_v45 }
 0x2e9   :  { %v5394_v25 = vpop.permute.xlu1 %2186  ;;  %v5396_v36 = vpop.permute.xlu0 %2184 }
 0x2ea   :  { %7733 = vst [vmem:[#allocation66_spill] sm:$0xff] %v5394_v25  ;;  %7734 = vst [vmem:[#allocation67_spill] sm:$0xff] %v5396_v36  ;;  %3937 = vpow2.f32 %v1318_v44  ;;  %v4125_v44 = vld [vmem:[%s7636_s0 + $0xa8] sm:$0xff] }
 0x2eb   :  { %1950 = vrot.lane.b32.xlu1 %v5375_v1, %s4170_s16  ;;  %1948 = vrot.lane.b32.xlu0 %v5380_v13, %s4170_s16  ;;  %3939 = vpow2.f32 %v1316_v63  ;;  %v3934_v15 = vpop.eup %3933 }
 0x2ec   :  { %v3936_v45 = vpop.eup %3935  ;;  %v5435_v63 = vmul.f32 %v4125_v44, %v3934_v15 }
 0x2ed   :  { %v5404_v47 = vpop.permute.xlu1 %2442  ;;  %v5406_v31 = vpop.permute.xlu0 %2440 }
 0x2ee   :  { %7735 = vst [vmem:[#allocation68_spill] sm:$0xff] %v5404_v47  ;;  %7736 = vst [vmem:[#allocation69_spill] sm:$0xff] %v5406_v31 }
 0x2ef   :  { %2206 = vrot.lane.b32.xlu1 %v5375_v1, %s4172_s20  ;;  %2204 = vrot.lane.b32.xlu0 %v5380_v13, %s4172_s20  ;;  %7743 = vst [vmem:[#allocation76_spill] sm:$0xff] %v5435_v63 }
 0x2f1   :  { %v5412_v36 = vpop.permute.xlu1 %2698  ;;  %v5414_v25 = vpop.permute.xlu0 %2696 }
 0x2f2   :  { %7737 = vst [vmem:[#allocation70_spill] sm:$0xff] %v5412_v36  ;;  %7738 = vst [vmem:[#allocation71_spill] sm:$0xff] %v5414_v25 }
 0x2f3   :  { %2462 = vrot.lane.b32.xlu1 %v5375_v1, %s4173_s21  ;;  %2460 = vrot.lane.b32.xlu0 %v5380_v13, %s4173_s21 }
 0x2f4   :  { %v3938_v31 = vpop.eup %3937 }
 0x2f5   :  { %v5420_v19 = vpop.permute.xlu1 %2954  ;;  %v5422_v23 = vpop.permute.xlu0 %2952 }
 0x2f6   :  { %7739 = vst [vmem:[#allocation72_spill] sm:$0xff] %v5420_v19  ;;  %7740 = vst [vmem:[#allocation73_spill] sm:$0xff] %v5422_v23  ;;  %v4126_v23 = vld [vmem:[%s7636_s0 + $0xa0] sm:$0xff]  ;;  %v3940_v47 = vpop.eup %3939 }
 0x2f7   :  { %2718 = vrot.lane.b32.xlu1 %v5375_v1, %s4174_s22  ;;  %2716 = vrot.lane.b32.xlu0 %v5380_v13, %s4174_s22  ;;  %v5440_v19 = vmul.f32 %v4126_v23, %v3936_v45  ;;  %v1423_v23 = vadd.f32 1.0, %v3938_v31  ;;  %v1422_v44 = vadd.f32 1.0, %v3940_v47 }
 0x2f9   :  { %v5428_v37 = vpop.permute.xlu1 %1678  ;;  %v5430_v61 = vpop.permute.xlu0 %1676  ;;  %7744 = vst [vmem:[#allocation77_spill] sm:$0xff] %v5440_v19  ;;  %3941 = vrcp.f32 %v1423_v23 }
 0x2fa   :  { %7741 = vst [vmem:[#allocation74_spill] sm:$0xff] %v5428_v37  ;;  %7742 = vst [vmem:[#allocation75_spill] sm:$0xff] %v5430_v61  ;;  %3943 = vrcp.f32 %v1422_v44 }
 0x2fb   :  { %2974 = vrot.lane.b32.xlu1 %v5375_v1, %s4175_s25  ;;  %2972 = vrot.lane.b32.xlu0 %v5380_v13, %s4175_s25 }
 0x2fd   :  { %v5446_v25 = vpop.permute.xlu1 %1934  ;;  %v5448_v36 = vpop.permute.xlu0 %1932 }
 0x2fe   :  { %7745 = vst [vmem:[#allocation78_spill] sm:$0xff] %v5446_v25  ;;  %7746 = vst [vmem:[#allocation79_spill] sm:$0xff] %v5448_v36  ;;  %v1233_v36 = vsub.f32 0.0, %v4976_v28  ;;  %v1232_v25 = vsub.f32 0.0, %v4978_v26 }
 0x2ff   :  { %1698 = vrot.lane.b32.xlu1 %v5435_v63, %s4171_s17  ;;  %1696 = vrot.lane.b32.xlu0 %v5440_v19, %s4171_s17 }
 0x300   :  { %v1322_v31 = vmul.f32 1.442695, %v1233_v36  ;;  %v1320_v47 = vmul.f32 1.442695, %v1232_v25 }
 0x301   :  { %v5454_v15 = vpop.permute.xlu1 %2190  ;;  %v5456_v45 = vpop.permute.xlu0 %2188 }
 0x302   :  { %7747 = vst [vmem:[#allocation80_spill] sm:$0xff] %v5454_v15  ;;  %7748 = vst [vmem:[#allocation81_spill] sm:$0xff] %v5456_v45  ;;  %3945 = vpow2.f32 %v1322_v31  ;;  %v4127_v31 = vld [vmem:[%s7636_s0 + $0xb8] sm:$0xff] }
 0x303   :  { %1954 = vrot.lane.b32.xlu1 %v5435_v63, %s4170_s16  ;;  %1952 = vrot.lane.b32.xlu0 %v5440_v19, %s4170_s16  ;;  %3947 = vpow2.f32 %v1320_v47  ;;  %v3942_v23 = vpop.eup %3941 }
 0x304   :  { %v3944_v25 = vpop.eup %3943  ;;  %v5495_v47 = vmul.f32 %v4127_v31, %v3942_v23 }
 0x305   :  { %v5464_v61 = vpop.permute.xlu1 %2446  ;;  %v5466_v37 = vpop.permute.xlu0 %2444 }
 0x306   :  { %7749 = vst [vmem:[#allocation82_spill] sm:$0xff] %v5464_v61  ;;  %7750 = vst [vmem:[#allocation83_spill] sm:$0xff] %v5466_v37 }
 0x307   :  { %2210 = vrot.lane.b32.xlu1 %v5435_v63, %s4172_s20  ;;  %2208 = vrot.lane.b32.xlu0 %v5440_v19, %s4172_s20 }
 0x309   :  { %v5472_v45 = vpop.permute.xlu1 %2702  ;;  %v5474_v15 = vpop.permute.xlu0 %2700 }
 0x30a   :  { %7751 = vst [vmem:[#allocation84_spill] sm:$0xff] %v5472_v45  ;;  %7752 = vst [vmem:[#allocation85_spill] sm:$0xff] %v5474_v15 }
 0x30b   :  { %2466 = vrot.lane.b32.xlu1 %v5435_v63, %s4173_s21  ;;  %2464 = vrot.lane.b32.xlu0 %v5440_v19, %s4173_s21 }
 0x30c   :  { %v3946_v37 = vpop.eup %3945 }
 0x30d   :  { %v5480_v28 = vpop.permute.xlu1 %2958  ;;  %v5482_v26 = vpop.permute.xlu0 %2956 }
 0x30e   :  { %7753 = vst [vmem:[#allocation86_spill] sm:$0xff] %v5480_v28  ;;  %7754 = vst [vmem:[#allocation87_spill] sm:$0xff] %v5482_v26  ;;  %v4128_v26 = vld [vmem:[%s7636_s0 + $0xb0] sm:$0xff]  ;;  %v3948_v61 = vpop.eup %3947 }
 0x30f   :  { %2722 = vrot.lane.b32.xlu1 %v5435_v63, %s4174_s22  ;;  %2720 = vrot.lane.b32.xlu0 %v5440_v19, %s4174_s22  ;;  %v5500_v28 = vmul.f32 %v4128_v26, %v3944_v25  ;;  %v1425_v26 = vadd.f32 1.0, %v3946_v37  ;;  %v1424_v31 = vadd.f32 1.0, %v3948_v61 }
 0x311   :  { %v5488_v36 = vpop.permute.xlu1 %1682  ;;  %v5490_v44 = vpop.permute.xlu0 %1680  ;;  %3949 = vrcp.f32 %v1425_v26 }
 0x312   :  { %7755 = vst [vmem:[#allocation88_spill] sm:$0xff] %v5488_v36  ;;  %7756 = vst [vmem:[#allocation89_spill] sm:$0xff] %v5490_v44  ;;  %3951 = vrcp.f32 %v1424_v31 }
 0x313   :  { %2978 = vrot.lane.b32.xlu1 %v5435_v63, %s4175_s25  ;;  %2976 = vrot.lane.b32.xlu0 %v5440_v19, %s4175_s25 }
 0x315   :  { %v5506_v15 = vpop.permute.xlu1 %1938  ;;  %v5508_v45 = vpop.permute.xlu0 %1936 }
 0x316   :  { %7757 = vst [vmem:[#allocation90_spill] sm:$0xff] %v5506_v15  ;;  %7758 = vst [vmem:[#allocation91_spill] sm:$0xff] %v5508_v45  ;;  %v1235_v45 = vsub.f32 0.0, %v4998_v38  ;;  %v1234_v15 = vsub.f32 0.0, %v5000_v40 }
 0x317   :  { %1702 = vrot.lane.b32.xlu1 %v5495_v47, %s4171_s17  ;;  %1700 = vrot.lane.b32.xlu0 %v5500_v28, %s4171_s17 }
 0x318   :  { %v1326_v37 = vmul.f32 1.442695, %v1235_v45  ;;  %v1324_v61 = vmul.f32 1.442695, %v1234_v15 }
 0x319   :  { %v5514_v23 = vpop.permute.xlu1 %2194  ;;  %v5516_v25 = vpop.permute.xlu0 %2192 }
 0x31a   :  { %7759 = vst [vmem:[#allocation92_spill] sm:$0xff] %v5514_v23  ;;  %7760 = vst [vmem:[#allocation93_spill] sm:$0xff] %v5516_v25  ;;  %3953 = vpow2.f32 %v1326_v37  ;;  %v4129_v37 = vld [vmem:[%s7636_s0 + $0xc8] sm:$0xff] }
 0x31b   :  { %1958 = vrot.lane.b32.xlu1 %v5495_v47, %s4170_s16  ;;  %1956 = vrot.lane.b32.xlu0 %v5500_v28, %s4170_s16  ;;  %3955 = vpow2.f32 %v1324_v61  ;;  %v3950_v26 = vpop.eup %3949 }
 0x31c   :  { %v3952_v15 = vpop.eup %3951  ;;  %v5555_v61 = vmul.f32 %v4129_v37, %v3950_v26 }
 0x31d   :  { %v5524_v44 = vpop.permute.xlu1 %2450  ;;  %v5526_v36 = vpop.permute.xlu0 %2448 }
 0x31e   :  { %7761 = vst [vmem:[#allocation94_spill] sm:$0xff] %v5524_v44  ;;  %7762 = vst [vmem:[#allocation95_spill] sm:$0xff] %v5526_v36 }
 0x31f   :  { %2214 = vrot.lane.b32.xlu1 %v5495_v47, %s4172_s20  ;;  %2212 = vrot.lane.b32.xlu0 %v5500_v28, %s4172_s20 }
 0x321   :  { %v5532_v25 = vpop.permute.xlu1 %2706  ;;  %v5534_v23 = vpop.permute.xlu0 %2704 }
 0x322   :  { %7763 = vst [vmem:[#allocation96_spill] sm:$0xff] %v5532_v25  ;;  %7764 = vst [vmem:[#allocation97_spill] sm:$0xff] %v5534_v23 }
 0x323   :  { %2470 = vrot.lane.b32.xlu1 %v5495_v47, %s4173_s21  ;;  %2468 = vrot.lane.b32.xlu0 %v5500_v28, %s4173_s21 }
 0x324   :  { %v3954_v36 = vpop.eup %3953 }
 0x325   :  { %v5540_v38 = vpop.permute.xlu1 %2962  ;;  %v5542_v40 = vpop.permute.xlu0 %2960 }
 0x326   :  { %7765 = vst [vmem:[#allocation98_spill] sm:$0xff] %v5540_v38  ;;  %7766 = vst [vmem:[#allocation99_spill] sm:$0xff] %v5542_v40  ;;  %v4130_v40 = vld [vmem:[%s7636_s0 + $0xc0] sm:$0xff]  ;;  %v3956_v44 = vpop.eup %3955 }
 0x327   :  { %2726 = vrot.lane.b32.xlu1 %v5495_v47, %s4174_s22  ;;  %2724 = vrot.lane.b32.xlu0 %v5500_v28, %s4174_s22  ;;  %v5560_v38 = vmul.f32 %v4130_v40, %v3952_v15  ;;  %v1427_v40 = vadd.f32 1.0, %v3954_v36  ;;  %v1426_v37 = vadd.f32 1.0, %v3956_v44 }
 0x329   :  { %v5548_v45 = vpop.permute.xlu1 %1686  ;;  %v5550_v31 = vpop.permute.xlu0 %1684  ;;  %3957 = vrcp.f32 %v1427_v40 }
 0x32a   :  { %7767 = vst [vmem:[#allocation100_spill] sm:$0xff] %v5548_v45  ;;  %7768 = vst [vmem:[#allocation101_spill] sm:$0xff] %v5550_v31  ;;  %3959 = vrcp.f32 %v1426_v37 }
 0x32b   :  { %2982 = vrot.lane.b32.xlu1 %v5495_v47, %s4175_s25  ;;  %2980 = vrot.lane.b32.xlu0 %v5500_v28, %s4175_s25 }
 0x32d   :  { %v5566_v23 = vpop.permute.xlu1 %1942  ;;  %v5568_v25 = vpop.permute.xlu0 %1940 }
 0x32e   :  { %7769 = vst [vmem:[#allocation102_spill] sm:$0xff] %v5566_v23  ;;  %7770 = vst [vmem:[#allocation103_spill] sm:$0xff] %v5568_v25  ;;  %v1237_v25 = vsub.f32 0.0, %v5012_v48  ;;  %v1236_v23 = vsub.f32 0.0, %v5014_v51 }
 0x32f   :  { %1706 = vrot.lane.b32.xlu1 %v5555_v61, %s4171_s17  ;;  %1704 = vrot.lane.b32.xlu0 %v5560_v38, %s4171_s17 }
 0x330   :  { %v1330_v36 = vmul.f32 1.442695, %v1237_v25  ;;  %v1328_v44 = vmul.f32 1.442695, %v1236_v23 }
 0x331   :  { %v5574_v26 = vpop.permute.xlu1 %2198  ;;  %v5576_v15 = vpop.permute.xlu0 %2196 }
 0x332   :  { %7771 = vst [vmem:[#allocation104_spill] sm:$0xff] %v5574_v26  ;;  %7772 = vst [vmem:[#allocation105_spill] sm:$0xff] %v5576_v15  ;;  %3961 = vpow2.f32 %v1330_v36  ;;  %v4131_v36 = vld [vmem:[%s7636_s0 + $0xd8] sm:$0xff] }
 0x333   :  { %1962 = vrot.lane.b32.xlu1 %v5555_v61, %s4170_s16  ;;  %1960 = vrot.lane.b32.xlu0 %v5560_v38, %s4170_s16  ;;  %3963 = vpow2.f32 %v1328_v44  ;;  %v3958_v40 = vpop.eup %3957 }
 0x334   :  { %v3960_v23 = vpop.eup %3959  ;;  %v5615_v44 = vmul.f32 %v4131_v36, %v3958_v40 }
 0x335   :  { %v5584_v31 = vpop.permute.xlu1 %2454  ;;  %v5586_v45 = vpop.permute.xlu0 %2452 }
 0x336   :  { %7773 = vst [vmem:[#allocation106_spill] sm:$0xff] %v5584_v31  ;;  %7774 = vst [vmem:[#allocation107_spill] sm:$0xff] %v5586_v45 }
 0x337   :  { %2218 = vrot.lane.b32.xlu1 %v5555_v61, %s4172_s20  ;;  %2216 = vrot.lane.b32.xlu0 %v5560_v38, %s4172_s20  ;;  %7781 = vst [vmem:[#allocation114_spill] sm:$0xff] %v5615_v44 }
 0x339   :  { %v5592_v15 = vpop.permute.xlu1 %2710  ;;  %v5594_v26 = vpop.permute.xlu0 %2708 }
 0x33a   :  { %7775 = vst [vmem:[#allocation108_spill] sm:$0xff] %v5592_v15  ;;  %7776 = vst [vmem:[#allocation109_spill] sm:$0xff] %v5594_v26 }
 0x33b   :  { %2474 = vrot.lane.b32.xlu1 %v5555_v61, %s4173_s21  ;;  %2472 = vrot.lane.b32.xlu0 %v5560_v38, %s4173_s21 }
 0x33c   :  { %v3962_v45 = vpop.eup %3961 }
 0x33d   :  { %v5600_v48 = vpop.permute.xlu1 %2966  ;;  %v5602_v51 = vpop.permute.xlu0 %2964 }
 0x33e   :  { %7777 = vst [vmem:[#allocation110_spill] sm:$0xff] %v5600_v48  ;;  %7778 = vst [vmem:[#allocation111_spill] sm:$0xff] %v5602_v51  ;;  %v4132_v51 = vld [vmem:[%s7636_s0 + $0xd0] sm:$0xff]  ;;  %v3964_v31 = vpop.eup %3963 }
 0x33f   :  { %2730 = vrot.lane.b32.xlu1 %v5555_v61, %s4174_s22  ;;  %2728 = vrot.lane.b32.xlu0 %v5560_v38, %s4174_s22  ;;  %v5620_v48 = vmul.f32 %v4132_v51, %v3960_v23  ;;  %v1429_v51 = vadd.f32 1.0, %v3962_v45  ;;  %v1428_v36 = vadd.f32 1.0, %v3964_v31 }
 0x341   :  { %v5608_v25 = vpop.permute.xlu1 %1690  ;;  %v5610_v37 = vpop.permute.xlu0 %1688  ;;  %7782 = vst [vmem:[#allocation115_spill] sm:$0xff] %v5620_v48  ;;  %3965 = vrcp.f32 %v1429_v51 }
 0x342   :  { %7779 = vst [vmem:[#allocation112_spill] sm:$0xff] %v5608_v25  ;;  %7780 = vst [vmem:[#allocation113_spill] sm:$0xff] %v5610_v37  ;;  %3967 = vrcp.f32 %v1428_v36 }
 0x343   :  { %2986 = vrot.lane.b32.xlu1 %v5555_v61, %s4175_s25  ;;  %2984 = vrot.lane.b32.xlu0 %v5560_v38, %s4175_s25 }
 0x345   :  { %v5626_v26 = vpop.permute.xlu1 %1946  ;;  %v5628_v15 = vpop.permute.xlu0 %1944 }
 0x346   :  { %7783 = vst [vmem:[#allocation116_spill] sm:$0xff] %v5626_v26  ;;  %7784 = vst [vmem:[#allocation117_spill] sm:$0xff] %v5628_v15  ;;  %v1239_v15 = vsub.f32 0.0, %v5024_v54  ;;  %v1238_v26 = vsub.f32 0.0, %v5026_v55 }
 0x347   :  { %1710 = vrot.lane.b32.xlu1 %v5615_v44, %s4171_s17  ;;  %1708 = vrot.lane.b32.xlu0 %v5620_v48, %s4171_s17 }
 0x348   :  { %v1334_v45 = vmul.f32 1.442695, %v1239_v15  ;;  %v1332_v31 = vmul.f32 1.442695, %v1238_v26 }
 0x349   :  { %v5634_v40 = vpop.permute.xlu1 %2202  ;;  %v5636_v23 = vpop.permute.xlu0 %2200 }
 0x34a   :  { %7785 = vst [vmem:[#allocation118_spill] sm:$0xff] %v5634_v40  ;;  %7786 = vst [vmem:[#allocation119_spill] sm:$0xff] %v5636_v23  ;;  %3969 = vpow2.f32 %v1334_v45  ;;  %v4133_v45 = vld [vmem:[%s7636_s0 + $0xe8] sm:$0xff] }
 0x34b   :  { %1966 = vrot.lane.b32.xlu1 %v5615_v44, %s4170_s16  ;;  %1964 = vrot.lane.b32.xlu0 %v5620_v48, %s4170_s16  ;;  %3971 = vpow2.f32 %v1332_v31  ;;  %v3966_v51 = vpop.eup %3965 }
 0x34c   :  { %v3968_v26 = vpop.eup %3967  ;;  %v5675_v31 = vmul.f32 %v4133_v45, %v3966_v51 }
 0x34d   :  { %v5644_v37 = vpop.permute.xlu1 %2458  ;;  %v5646_v25 = vpop.permute.xlu0 %2456 }
 0x34e   :  { %7787 = vst [vmem:[#allocation120_spill] sm:$0xff] %v5644_v37  ;;  %7788 = vst [vmem:[#allocation121_spill] sm:$0xff] %v5646_v25 }
 0x34f   :  { %2222 = vrot.lane.b32.xlu1 %v5615_v44, %s4172_s20  ;;  %2220 = vrot.lane.b32.xlu0 %v5620_v48, %s4172_s20 }
 0x351   :  { %v5652_v23 = vpop.permute.xlu1 %2714  ;;  %v5654_v40 = vpop.permute.xlu0 %2712 }
 0x352   :  { %7789 = vst [vmem:[#allocation122_spill] sm:$0xff] %v5652_v23  ;;  %7790 = vst [vmem:[#allocation123_spill] sm:$0xff] %v5654_v40 }
 0x353   :  { %2478 = vrot.lane.b32.xlu1 %v5615_v44, %s4173_s21  ;;  %2476 = vrot.lane.b32.xlu0 %v5620_v48, %s4173_s21 }
 0x354   :  { %v3970_v25 = vpop.eup %3969 }
 0x355   :  { %v5660_v54 = vpop.permute.xlu1 %2970  ;;  %v5662_v55 = vpop.permute.xlu0 %2968 }
 0x356   :  { %7791 = vst [vmem:[#allocation124_spill] sm:$0xff] %v5660_v54  ;;  %7792 = vst [vmem:[#allocation125_spill] sm:$0xff] %v5662_v55  ;;  %v4134_v55 = vld [vmem:[%s7636_s0 + $0xe0] sm:$0xff]  ;;  %v3972_v37 = vpop.eup %3971 }
 0x357   :  { %2734 = vrot.lane.b32.xlu1 %v5615_v44, %s4174_s22  ;;  %2732 = vrot.lane.b32.xlu0 %v5620_v48, %s4174_s22  ;;  %v5680_v54 = vmul.f32 %v4134_v55, %v3968_v26  ;;  %v1431_v55 = vadd.f32 1.0, %v3970_v25  ;;  %v1430_v45 = vadd.f32 1.0, %v3972_v37 }
 0x359   :  { %v5668_v15 = vpop.permute.xlu1 %1694  ;;  %v5670_v36 = vpop.permute.xlu0 %1692  ;;  %7795 = vst [vmem:[#allocation128_spill] sm:$0xff] %v5680_v54  ;;  %3973 = vrcp.f32 %v1431_v55 }
 0x35a   :  { %7793 = vst [vmem:[#allocation126_spill] sm:$0xff] %v5668_v15  ;;  %7794 = vst [vmem:[#allocation127_spill] sm:$0xff] %v5670_v36  ;;  %3975 = vrcp.f32 %v1430_v45 }
 0x35b   :  { %2990 = vrot.lane.b32.xlu1 %v5615_v44, %s4175_s25  ;;  %2988 = vrot.lane.b32.xlu0 %v5620_v48, %s4175_s25 }
 0x35d   :  { %v5686_v40 = vpop.permute.xlu1 %1950  ;;  %v5688_v23 = vpop.permute.xlu0 %1948 }
 0x35e   :  { %7796 = vst [vmem:[#allocation129_spill] sm:$0xff] %v5686_v40  ;;  %7797 = vst [vmem:[#allocation130_spill] sm:$0xff] %v5688_v23  ;;  %v1241_v23 = vsub.f32 0.0, %v5046_v7  ;;  %v1240_v40 = vsub.f32 0.0, %v5048_v9 }
 0x35f   :  { %1714 = vrot.lane.b32.xlu1 %v5675_v31, %s4171_s17  ;;  %1712 = vrot.lane.b32.xlu0 %v5680_v54, %s4171_s17 }
 0x360   :  { %v1338_v25 = vmul.f32 1.442695, %v1241_v23  ;;  %v1336_v37 = vmul.f32 1.442695, %v1240_v40 }
 0x361   :  { %v5694_v51 = vpop.permute.xlu1 %2206  ;;  %v5696_v26 = vpop.permute.xlu0 %2204 }
 0x362   :  { %7798 = vst [vmem:[#allocation131_spill] sm:$0xff] %v5694_v51  ;;  %7799 = vst [vmem:[#allocation132_spill] sm:$0xff] %v5696_v26  ;;  %3977 = vpow2.f32 %v1338_v25  ;;  %v4135_v25 = vld [vmem:[%s7636_s0 + $0xf8] sm:$0xff] }
 0x363   :  { %1970 = vrot.lane.b32.xlu1 %v5675_v31, %s4170_s16  ;;  %1968 = vrot.lane.b32.xlu0 %v5680_v54, %s4170_s16  ;;  %3979 = vpow2.f32 %v1336_v37  ;;  %v3974_v55 = vpop.eup %3973 }
 0x364   :  { %v3976_v40 = vpop.eup %3975  ;;  %v5735_v37 = vmul.f32 %v4135_v25, %v3974_v55 }
 0x365   :  { %v5704_v36 = vpop.permute.xlu1 %2462  ;;  %v5706_v15 = vpop.permute.xlu0 %2460 }
 0x366   :  { %7800 = vst [vmem:[#allocation133_spill] sm:$0xff] %v5704_v36  ;;  %7801 = vst [vmem:[#allocation134_spill] sm:$0xff] %v5706_v15 }
 0x367   :  { %2226 = vrot.lane.b32.xlu1 %v5675_v31, %s4172_s20  ;;  %2224 = vrot.lane.b32.xlu0 %v5680_v54, %s4172_s20 }
 0x369   :  { %v5712_v26 = vpop.permute.xlu1 %2718  ;;  %v5714_v51 = vpop.permute.xlu0 %2716 }
 0x36a   :  { %7802 = vst [vmem:[#allocation135_spill] sm:$0xff] %v5712_v26  ;;  %7803 = vst [vmem:[#allocation136_spill] sm:$0xff] %v5714_v51 }
 0x36b   :  { %2482 = vrot.lane.b32.xlu1 %v5675_v31, %s4173_s21  ;;  %2480 = vrot.lane.b32.xlu0 %v5680_v54, %s4173_s21 }
 0x36c   :  { %v3978_v15 = vpop.eup %3977 }
 0x36d   :  { %v5720_v7 = vpop.permute.xlu1 %2974  ;;  %v5722_v9 = vpop.permute.xlu0 %2972 }
 0x36e   :  { %7804 = vst [vmem:[#allocation137_spill] sm:$0xff] %v5720_v7  ;;  %7805 = vst [vmem:[#allocation138_spill] sm:$0xff] %v5722_v9  ;;  %v4136_v9 = vld [vmem:[%s7636_s0 + $0xf0] sm:$0xff]  ;;  %v3980_v36 = vpop.eup %3979 }
 0x36f   :  { %2738 = vrot.lane.b32.xlu1 %v5675_v31, %s4174_s22  ;;  %2736 = vrot.lane.b32.xlu0 %v5680_v54, %s4174_s22  ;;  %v5740_v7 = vmul.f32 %v4136_v9, %v3976_v40  ;;  %v1433_v9 = vadd.f32 1.0, %v3978_v15  ;;  %v1432_v25 = vadd.f32 1.0, %v3980_v36 }
 0x371   :  { %v5728_v23 = vpop.permute.xlu1 %1698  ;;  %v5730_v45 = vpop.permute.xlu0 %1696  ;;  %3981 = vrcp.f32 %v1433_v9 }
 0x372   :  { %7806 = vst [vmem:[#allocation139_spill] sm:$0xff] %v5728_v23  ;;  %7807 = vst [vmem:[#allocation140_spill] sm:$0xff] %v5730_v45  ;;  %3983 = vrcp.f32 %v1432_v25 }
 0x373   :  { %2994 = vrot.lane.b32.xlu1 %v5675_v31, %s4175_s25  ;;  %2992 = vrot.lane.b32.xlu0 %v5680_v54, %s4175_s25 }
 0x375   :  { %v5746_v51 = vpop.permute.xlu1 %1954  ;;  %v5748_v26 = vpop.permute.xlu0 %1952 }
 0x376   :  { %7808 = vst [vmem:[#allocation141_spill] sm:$0xff] %v5746_v51  ;;  %7809 = vst [vmem:[#allocation142_spill] sm:$0xff] %v5748_v26  ;;  %v1243_v26 = vsub.f32 0.0, %v5060_v57  ;;  %v1242_v51 = vsub.f32 0.0, %v5062_v3 }
 0x377   :  { %1718 = vrot.lane.b32.xlu1 %v5735_v37, %s4171_s17  ;;  %1716 = vrot.lane.b32.xlu0 %v5740_v7, %s4171_s17 }
 0x378   :  { %v1342_v15 = vmul.f32 1.442695, %v1243_v26  ;;  %v1340_v36 = vmul.f32 1.442695, %v1242_v51 }
 0x379   :  { %v5754_v55 = vpop.permute.xlu1 %2210  ;;  %v5756_v40 = vpop.permute.xlu0 %2208 }
 0x37a   :  { %7810 = vst [vmem:[#allocation143_spill] sm:$0xff] %v5754_v55  ;;  %7811 = vst [vmem:[#allocation144_spill] sm:$0xff] %v5756_v40  ;;  %3985 = vpow2.f32 %v1342_v15  ;;  %v4137_v15 = vld [vmem:[%s7636_s0 + $0x108] sm:$0xff] }
 0x37b   :  { %1974 = vrot.lane.b32.xlu1 %v5735_v37, %s4170_s16  ;;  %1972 = vrot.lane.b32.xlu0 %v5740_v7, %s4170_s16  ;;  %3987 = vpow2.f32 %v1340_v36  ;;  %v3982_v9 = vpop.eup %3981 }
 0x37c   :  { %v3984_v51 = vpop.eup %3983  ;;  %v5795_v36 = vmul.f32 %v4137_v15, %v3982_v9 }
 0x37d   :  { %v5764_v45 = vpop.permute.xlu1 %2466  ;;  %v5766_v23 = vpop.permute.xlu0 %2464 }
 0x37e   :  { %7812 = vst [vmem:[#allocation145_spill] sm:$0xff] %v5764_v45  ;;  %7813 = vst [vmem:[#allocation146_spill] sm:$0xff] %v5766_v23 }
 0x37f   :  { %2230 = vrot.lane.b32.xlu1 %v5735_v37, %s4172_s20  ;;  %2228 = vrot.lane.b32.xlu0 %v5740_v7, %s4172_s20 }
 0x381   :  { %v5772_v40 = vpop.permute.xlu1 %2722  ;;  %v5774_v55 = vpop.permute.xlu0 %2720 }
 0x382   :  { %7814 = vst [vmem:[#allocation147_spill] sm:$0xff] %v5772_v40  ;;  %7815 = vst [vmem:[#allocation148_spill] sm:$0xff] %v5774_v55 }
 0x383   :  { %2486 = vrot.lane.b32.xlu1 %v5735_v37, %s4173_s21  ;;  %2484 = vrot.lane.b32.xlu0 %v5740_v7, %s4173_s21 }
 0x384   :  { %v3986_v23 = vpop.eup %3985 }
 0x385   :  { %v5780_v57 = vpop.permute.xlu1 %2978  ;;  %v5782_v3 = vpop.permute.xlu0 %2976 }
 0x386   :  { %7816 = vst [vmem:[#allocation149_spill] sm:$0xff] %v5780_v57  ;;  %7817 = vst [vmem:[#allocation150_spill] sm:$0xff] %v5782_v3  ;;  %v4138_v3 = vld [vmem:[%s7636_s0 + $0x100] sm:$0xff]  ;;  %v3988_v45 = vpop.eup %3987 }
 0x387   :  { %2742 = vrot.lane.b32.xlu1 %v5735_v37, %s4174_s22  ;;  %2740 = vrot.lane.b32.xlu0 %v5740_v7, %s4174_s22  ;;  %v5800_v57 = vmul.f32 %v4138_v3, %v3984_v51  ;;  %v1435_v3 = vadd.f32 1.0, %v3986_v23  ;;  %v1434_v15 = vadd.f32 1.0, %v3988_v45 }
 0x389   :  { %v5788_v26 = vpop.permute.xlu1 %1702  ;;  %v5790_v25 = vpop.permute.xlu0 %1700  ;;  %3989 = vrcp.f32 %v1435_v3 }
 0x38a   :  { %7818 = vst [vmem:[#allocation151_spill] sm:$0xff] %v5788_v26  ;;  %7819 = vst [vmem:[#allocation152_spill] sm:$0xff] %v5790_v25  ;;  %3991 = vrcp.f32 %v1434_v15 }
 0x38b   :  { %2998 = vrot.lane.b32.xlu1 %v5735_v37, %s4175_s25  ;;  %2996 = vrot.lane.b32.xlu0 %v5740_v7, %s4175_s25 }
 0x38d   :  { %v5806_v55 = vpop.permute.xlu1 %1958  ;;  %v5808_v40 = vpop.permute.xlu0 %1956 }
 0x38e   :  { %7820 = vst [vmem:[#allocation153_spill] sm:$0xff] %v5806_v55  ;;  %7821 = vst [vmem:[#allocation154_spill] sm:$0xff] %v5808_v40  ;;  %v1245_v40 = vsub.f32 0.0, %v5072_v8  ;;  %v1244_v55 = vsub.f32 0.0, %v5078_v20 }
 0x38f   :  { %1722 = vrot.lane.b32.xlu1 %v5795_v36, %s4171_s17  ;;  %1720 = vrot.lane.b32.xlu0 %v5800_v57, %s4171_s17 }
 0x390   :  { %v1346_v23 = vmul.f32 1.442695, %v1245_v40  ;;  %v1344_v45 = vmul.f32 1.442695, %v1244_v55 }
 0x391   :  { %v5814_v9 = vpop.permute.xlu1 %2214  ;;  %v5816_v51 = vpop.permute.xlu0 %2212 }
 0x392   :  { %7822 = vst [vmem:[#allocation155_spill] sm:$0xff] %v5814_v9  ;;  %7823 = vst [vmem:[#allocation156_spill] sm:$0xff] %v5816_v51  ;;  %3993 = vpow2.f32 %v1346_v23  ;;  %v4139_v23 = vld [vmem:[%s7636_s0 + $0x118] sm:$0xff] }
 0x393   :  { %1978 = vrot.lane.b32.xlu1 %v5795_v36, %s4170_s16  ;;  %1976 = vrot.lane.b32.xlu0 %v5800_v57, %s4170_s16  ;;  %3995 = vpow2.f32 %v1344_v45  ;;  %v3990_v3 = vpop.eup %3989 }
 0x394   :  { %v3992_v55 = vpop.eup %3991  ;;  %v5855_v45 = vmul.f32 %v4139_v23, %v3990_v3 }
 0x395   :  { %v5824_v25 = vpop.permute.xlu1 %2470  ;;  %v5826_v26 = vpop.permute.xlu0 %2468 }
 0x396   :  { %7824 = vst [vmem:[#allocation157_spill] sm:$0xff] %v5824_v25  ;;  %7825 = vst [vmem:[#allocation158_spill] sm:$0xff] %v5826_v26 }
 0x397   :  { %2234 = vrot.lane.b32.xlu1 %v5795_v36, %s4172_s20  ;;  %2232 = vrot.lane.b32.xlu0 %v5800_v57, %s4172_s20 }
 0x399   :  { %v5832_v51 = vpop.permute.xlu1 %2726  ;;  %v5834_v9 = vpop.permute.xlu0 %2724 }
 0x39a   :  { %7826 = vst [vmem:[#allocation159_spill] sm:$0xff] %v5832_v51  ;;  %7827 = vst [vmem:[#allocation160_spill] sm:$0xff] %v5834_v9 }
 0x39b   :  { %2490 = vrot.lane.b32.xlu1 %v5795_v36, %s4173_s21  ;;  %2488 = vrot.lane.b32.xlu0 %v5800_v57, %s4173_s21 }
 0x39c   :  { %v3994_v26 = vpop.eup %3993 }
 0x39d   :  { %v5840_v8 = vpop.permute.xlu1 %2982  ;;  %v5842_v20 = vpop.permute.xlu0 %2980 }
 0x39e   :  { %7828 = vst [vmem:[#allocation161_spill] sm:$0xff] %v5840_v8  ;;  %7829 = vst [vmem:[#allocation162_spill] sm:$0xff] %v5842_v20  ;;  %v4140_v20 = vld [vmem:[%s7636_s0 + $0x110] sm:$0xff]  ;;  %v3996_v25 = vpop.eup %3995 }
 0x39f   :  { %2746 = vrot.lane.b32.xlu1 %v5795_v36, %s4174_s22  ;;  %2744 = vrot.lane.b32.xlu0 %v5800_v57, %s4174_s22  ;;  %v5860_v8 = vmul.f32 %v4140_v20, %v3992_v55  ;;  %v1437_v20 = vadd.f32 1.0, %v3994_v26  ;;  %v1436_v23 = vadd.f32 1.0, %v3996_v25 }
 0x3a1   :  { %v5848_v40 = vpop.permute.xlu1 %1706  ;;  %v5850_v15 = vpop.permute.xlu0 %1704  ;;  %3997 = vrcp.f32 %v1437_v20 }
 0x3a2   :  { %7830 = vst [vmem:[#allocation163_spill] sm:$0xff] %v5848_v40  ;;  %7831 = vst [vmem:[#allocation164_spill] sm:$0xff] %v5850_v15  ;;  %3999 = vrcp.f32 %v1436_v23 }
 0x3a3   :  { %3002 = vrot.lane.b32.xlu1 %v5795_v36, %s4175_s25  ;;  %3000 = vrot.lane.b32.xlu0 %v5800_v57, %s4175_s25 }
 0x3a5   :  { %v5866_v9 = vpop.permute.xlu1 %1962  ;;  %v5868_v51 = vpop.permute.xlu0 %1960 }
 0x3a6   :  { %7832 = vst [vmem:[#allocation165_spill] sm:$0xff] %v5866_v9  ;;  %7833 = vst [vmem:[#allocation166_spill] sm:$0xff] %v5868_v51  ;;  %v1247_v51 = vsub.f32 0.0, %v5102_v39  ;;  %v1246_v9 = vsub.f32 0.0, %v5108_v49 }
 0x3a7   :  { %1726 = vrot.lane.b32.xlu1 %v5855_v45, %s4171_s17  ;;  %1724 = vrot.lane.b32.xlu0 %v5860_v8, %s4171_s17 }
 0x3a8   :  { %v1350_v26 = vmul.f32 1.442695, %v1247_v51  ;;  %v1348_v25 = vmul.f32 1.442695, %v1246_v9 }
 0x3a9   :  { %v5874_v3 = vpop.permute.xlu1 %2218  ;;  %v5876_v55 = vpop.permute.xlu0 %2216 }
 0x3aa   :  { %7834 = vst [vmem:[#allocation167_spill] sm:$0xff] %v5874_v3  ;;  %7835 = vst [vmem:[#allocation168_spill] sm:$0xff] %v5876_v55  ;;  %4001 = vpow2.f32 %v1350_v26  ;;  %v4141_v26 = vld [vmem:[%s7636_s0 + $0x128] sm:$0xff] }
 0x3ab   :  { %1982 = vrot.lane.b32.xlu1 %v5855_v45, %s4170_s16  ;;  %1980 = vrot.lane.b32.xlu0 %v5860_v8, %s4170_s16  ;;  %4003 = vpow2.f32 %v1348_v25  ;;  %v3998_v20 = vpop.eup %3997 }
 0x3ac   :  { %v4000_v9 = vpop.eup %3999  ;;  %v5915_v25 = vmul.f32 %v4141_v26, %v3998_v20 }
 0x3ad   :  { %v5884_v15 = vpop.permute.xlu1 %2474  ;;  %v5886_v40 = vpop.permute.xlu0 %2472 }
 0x3ae   :  { %7836 = vst [vmem:[#allocation169_spill] sm:$0xff] %v5884_v15  ;;  %7837 = vst [vmem:[#allocation170_spill] sm:$0xff] %v5886_v40 }
 0x3af   :  { %2238 = vrot.lane.b32.xlu1 %v5855_v45, %s4172_s20  ;;  %2236 = vrot.lane.b32.xlu0 %v5860_v8, %s4172_s20 }
 0x3b1   :  { %v5892_v55 = vpop.permute.xlu1 %2730  ;;  %v5894_v3 = vpop.permute.xlu0 %2728 }
 0x3b2   :  { %7838 = vst [vmem:[#allocation171_spill] sm:$0xff] %v5892_v55  ;;  %7839 = vst [vmem:[#allocation172_spill] sm:$0xff] %v5894_v3 }
 0x3b3   :  { %2494 = vrot.lane.b32.xlu1 %v5855_v45, %s4173_s21  ;;  %2492 = vrot.lane.b32.xlu0 %v5860_v8, %s4173_s21 }
 0x3b4   :  { %v4002_v40 = vpop.eup %4001 }
 0x3b5   :  { %v5900_v39 = vpop.permute.xlu1 %2986  ;;  %v5902_v49 = vpop.permute.xlu0 %2984 }
 0x3b6   :  { %7840 = vst [vmem:[#allocation173_spill] sm:$0xff] %v5900_v39  ;;  %7841 = vst [vmem:[#allocation174_spill] sm:$0xff] %v5902_v49  ;;  %v4142_v49 = vld [vmem:[%s7636_s0 + $0x120] sm:$0xff]  ;;  %v4004_v15 = vpop.eup %4003 }
 0x3b7   :  { %2750 = vrot.lane.b32.xlu1 %v5855_v45, %s4174_s22  ;;  %2748 = vrot.lane.b32.xlu0 %v5860_v8, %s4174_s22  ;;  %v5920_v39 = vmul.f32 %v4142_v49, %v4000_v9  ;;  %v1439_v49 = vadd.f32 1.0, %v4002_v40  ;;  %v1438_v26 = vadd.f32 1.0, %v4004_v15 }
 0x3b9   :  { %v5908_v51 = vpop.permute.xlu1 %1710  ;;  %v5910_v23 = vpop.permute.xlu0 %1708  ;;  %7844 = vst [vmem:[#allocation177_spill] sm:$0xff] %v5920_v39  ;;  %4005 = vrcp.f32 %v1439_v49 }
 0x3ba   :  { %7842 = vst [vmem:[#allocation175_spill] sm:$0xff] %v5908_v51  ;;  %7843 = vst [vmem:[#allocation176_spill] sm:$0xff] %v5910_v23  ;;  %4007 = vrcp.f32 %v1438_v26 }
 0x3bb   :  { %3006 = vrot.lane.b32.xlu1 %v5855_v45, %s4175_s25  ;;  %3004 = vrot.lane.b32.xlu0 %v5860_v8, %s4175_s25 }
 0x3bd   :  { %v5926_v3 = vpop.permute.xlu1 %1966  ;;  %v5928_v55 = vpop.permute.xlu0 %1964 }
 0x3be   :  { %7845 = vst [vmem:[#allocation178_spill] sm:$0xff] %v5926_v3  ;;  %7846 = vst [vmem:[#allocation179_spill] sm:$0xff] %v5928_v55  ;;  %v1249_v55 = vsub.f32 0.0, %v5124_v6  ;;  %v1248_v3 = vsub.f32 0.0, %v5130_v5 }
 0x3bf   :  { %1730 = vrot.lane.b32.xlu1 %v5915_v25, %s4171_s17  ;;  %1728 = vrot.lane.b32.xlu0 %v5920_v39, %s4171_s17 }
 0x3c0   :  { %v1354_v40 = vmul.f32 1.442695, %v1249_v55  ;;  %v1352_v15 = vmul.f32 1.442695, %v1248_v3 }
 0x3c1   :  { %v5934_v20 = vpop.permute.xlu1 %2222  ;;  %v5936_v9 = vpop.permute.xlu0 %2220 }
 0x3c2   :  { %7847 = vst [vmem:[#allocation180_spill] sm:$0xff] %v5934_v20  ;;  %7848 = vst [vmem:[#allocation181_spill] sm:$0xff] %v5936_v9  ;;  %4009 = vpow2.f32 %v1354_v40  ;;  %v4143_v40 = vld [vmem:[%s7636_s0 + $0x138] sm:$0xff] }
 0x3c3   :  { %1986 = vrot.lane.b32.xlu1 %v5915_v25, %s4170_s16  ;;  %1984 = vrot.lane.b32.xlu0 %v5920_v39, %s4170_s16  ;;  %4011 = vpow2.f32 %v1352_v15  ;;  %v4006_v49 = vpop.eup %4005 }
 0x3c4   :  { %v4008_v3 = vpop.eup %4007  ;;  %v5975_v15 = vmul.f32 %v4143_v40, %v4006_v49 }
 0x3c5   :  { %v5944_v23 = vpop.permute.xlu1 %2478  ;;  %v5946_v51 = vpop.permute.xlu0 %2476 }
 0x3c6   :  { %7849 = vst [vmem:[#allocation182_spill] sm:$0xff] %v5944_v23  ;;  %7850 = vst [vmem:[#allocation183_spill] sm:$0xff] %v5946_v51 }
 0x3c7   :  { %2242 = vrot.lane.b32.xlu1 %v5915_v25, %s4172_s20  ;;  %2240 = vrot.lane.b32.xlu0 %v5920_v39, %s4172_s20 }
 0x3c9   :  { %v5952_v9 = vpop.permute.xlu1 %2734  ;;  %v5954_v20 = vpop.permute.xlu0 %2732 }
 0x3ca   :  { %7851 = vst [vmem:[#allocation184_spill] sm:$0xff] %v5952_v9  ;;  %7852 = vst [vmem:[#allocation185_spill] sm:$0xff] %v5954_v20 }
 0x3cb   :  { %2498 = vrot.lane.b32.xlu1 %v5915_v25, %s4173_s21  ;;  %2496 = vrot.lane.b32.xlu0 %v5920_v39, %s4173_s21 }
 0x3cc   :  { %v4010_v51 = vpop.eup %4009 }
 0x3cd   :  { %v5960_v6 = vpop.permute.xlu1 %2990  ;;  %v5962_v5 = vpop.permute.xlu0 %2988 }
 0x3ce   :  { %7853 = vst [vmem:[#allocation186_spill] sm:$0xff] %v5960_v6  ;;  %7854 = vst [vmem:[#allocation187_spill] sm:$0xff] %v5962_v5  ;;  %v4144_v5 = vld [vmem:[%s7636_s0 + $0x130] sm:$0xff]  ;;  %v4012_v23 = vpop.eup %4011 }
 0x3cf   :  { %2754 = vrot.lane.b32.xlu1 %v5915_v25, %s4174_s22  ;;  %2752 = vrot.lane.b32.xlu0 %v5920_v39, %s4174_s22  ;;  %v5980_v6 = vmul.f32 %v4144_v5, %v4008_v3  ;;  %v1441_v5 = vadd.f32 1.0, %v4010_v51  ;;  %v1440_v40 = vadd.f32 1.0, %v4012_v23 }
 0x3d1   :  { %v5968_v55 = vpop.permute.xlu1 %1714  ;;  %v5970_v26 = vpop.permute.xlu0 %1712  ;;  %7857 = vst [vmem:[#allocation190_spill] sm:$0xff] %v5980_v6  ;;  %4013 = vrcp.f32 %v1441_v5 }
 0x3d2   :  { %7855 = vst [vmem:[#allocation188_spill] sm:$0xff] %v5968_v55  ;;  %7856 = vst [vmem:[#allocation189_spill] sm:$0xff] %v5970_v26  ;;  %4015 = vrcp.f32 %v1440_v40 }
 0x3d3   :  { %3010 = vrot.lane.b32.xlu1 %v5915_v25, %s4175_s25  ;;  %3008 = vrot.lane.b32.xlu0 %v5920_v39, %s4175_s25 }
 0x3d5   :  { %v5986_v20 = vpop.permute.xlu1 %1970  ;;  %v5988_v9 = vpop.permute.xlu0 %1968 }
 0x3d6   :  { %7858 = vst [vmem:[#allocation191_spill] sm:$0xff] %v5986_v20  ;;  %7859 = vst [vmem:[#allocation192_spill] sm:$0xff] %v5988_v9  ;;  %v1251_v9 = vsub.f32 0.0, %v5144_v58  ;;  %v1250_v20 = vsub.f32 0.0, %v5150_v24 }
 0x3d7   :  { %1734 = vrot.lane.b32.xlu1 %v5975_v15, %s4171_s17  ;;  %1732 = vrot.lane.b32.xlu0 %v5980_v6, %s4171_s17 }
 0x3d8   :  { %v1358_v51 = vmul.f32 1.442695, %v1251_v9  ;;  %v1356_v23 = vmul.f32 1.442695, %v1250_v20 }
 0x3d9   :  { %v5994_v49 = vpop.permute.xlu1 %2226  ;;  %v5996_v3 = vpop.permute.xlu0 %2224 }
 0x3da   :  { %7860 = vst [vmem:[#allocation193_spill] sm:$0xff] %v5994_v49  ;;  %7861 = vst [vmem:[#allocation194_spill] sm:$0xff] %v5996_v3  ;;  %4017 = vpow2.f32 %v1358_v51  ;;  %v4145_v51 = vld [vmem:[%s7636_s0 + $0x148] sm:$0xff] }
 0x3db   :  { %1990 = vrot.lane.b32.xlu1 %v5975_v15, %s4170_s16  ;;  %1988 = vrot.lane.b32.xlu0 %v5980_v6, %s4170_s16  ;;  %4019 = vpow2.f32 %v1356_v23  ;;  %v4014_v5 = vpop.eup %4013 }
 0x3dc   :  { %v4016_v20 = vpop.eup %4015  ;;  %v6035_v23 = vmul.f32 %v4145_v51, %v4014_v5 }
 0x3dd   :  { %v6004_v26 = vpop.permute.xlu1 %2482  ;;  %v6006_v55 = vpop.permute.xlu0 %2480 }
 0x3de   :  { %7862 = vst [vmem:[#allocation195_spill] sm:$0xff] %v6004_v26  ;;  %7863 = vst [vmem:[#allocation196_spill] sm:$0xff] %v6006_v55 }
 0x3df   :  { %2246 = vrot.lane.b32.xlu1 %v5975_v15, %s4172_s20  ;;  %2244 = vrot.lane.b32.xlu0 %v5980_v6, %s4172_s20 }
 0x3e1   :  { %v6012_v3 = vpop.permute.xlu1 %2738  ;;  %v6014_v49 = vpop.permute.xlu0 %2736 }
 0x3e2   :  { %7864 = vst [vmem:[#allocation197_spill] sm:$0xff] %v6012_v3  ;;  %7865 = vst [vmem:[#allocation198_spill] sm:$0xff] %v6014_v49 }
 0x3e3   :  { %2502 = vrot.lane.b32.xlu1 %v5975_v15, %s4173_s21  ;;  %2500 = vrot.lane.b32.xlu0 %v5980_v6, %s4173_s21 }
 0x3e4   :  { %v4018_v55 = vpop.eup %4017 }
 0x3e5   :  { %v6020_v58 = vpop.permute.xlu1 %2994  ;;  %v6022_v24 = vpop.permute.xlu0 %2992 }
 0x3e6   :  { %7866 = vst [vmem:[#allocation199_spill] sm:$0xff] %v6020_v58  ;;  %7867 = vst [vmem:[#allocation200_spill] sm:$0xff] %v6022_v24  ;;  %v4146_v24 = vld [vmem:[%s7636_s0 + $0x140] sm:$0xff]  ;;  %v4020_v26 = vpop.eup %4019 }
 0x3e7   :  { %2758 = vrot.lane.b32.xlu1 %v5975_v15, %s4174_s22  ;;  %2756 = vrot.lane.b32.xlu0 %v5980_v6, %s4174_s22  ;;  %v6040_v58 = vmul.f32 %v4146_v24, %v4016_v20  ;;  %v1443_v24 = vadd.f32 1.0, %v4018_v55  ;;  %v1442_v51 = vadd.f32 1.0, %v4020_v26 }
 0x3e9   :  { %v6028_v9 = vpop.permute.xlu1 %1718  ;;  %v6030_v40 = vpop.permute.xlu0 %1716  ;;  %4021 = vrcp.f32 %v1443_v24 }
 0x3ea   :  { %7868 = vst [vmem:[#allocation201_spill] sm:$0xff] %v6028_v9  ;;  %7869 = vst [vmem:[#allocation202_spill] sm:$0xff] %v6030_v40  ;;  %4023 = vrcp.f32 %v1442_v51 }
 0x3eb   :  { %3014 = vrot.lane.b32.xlu1 %v5975_v15, %s4175_s25  ;;  %3012 = vrot.lane.b32.xlu0 %v5980_v6, %s4175_s25 }
 0x3ed   :  { %v6046_v49 = vpop.permute.xlu1 %1974  ;;  %v6048_v3 = vpop.permute.xlu0 %1972 }
 0x3ee   :  { %7870 = vst [vmem:[#allocation203_spill] sm:$0xff] %v6046_v49  ;;  %7871 = vst [vmem:[#allocation204_spill] sm:$0xff] %v6048_v3  ;;  %v1253_v3 = vsub.f32 0.0, %v5174_v52  ;;  %v1252_v49 = vsub.f32 0.0, %v5180_v22 }
 0x3ef   :  { %1738 = vrot.lane.b32.xlu1 %v6035_v23, %s4171_s17  ;;  %1736 = vrot.lane.b32.xlu0 %v6040_v58, %s4171_s17 }
 0x3f0   :  { %v1362_v55 = vmul.f32 1.442695, %v1253_v3  ;;  %v1360_v26 = vmul.f32 1.442695, %v1252_v49 }
 0x3f1   :  { %v6054_v5 = vpop.permute.xlu1 %2230  ;;  %v6056_v20 = vpop.permute.xlu0 %2228 }
 0x3f2   :  { %7872 = vst [vmem:[#allocation205_spill] sm:$0xff] %v6054_v5  ;;  %7873 = vst [vmem:[#allocation206_spill] sm:$0xff] %v6056_v20  ;;  %4025 = vpow2.f32 %v1362_v55  ;;  %v4147_v55 = vld [vmem:[%s7636_s0 + $0x158] sm:$0xff] }
 0x3f3   :  { %1994 = vrot.lane.b32.xlu1 %v6035_v23, %s4170_s16  ;;  %1992 = vrot.lane.b32.xlu0 %v6040_v58, %s4170_s16  ;;  %4027 = vpow2.f32 %v1360_v26  ;;  %v4022_v24 = vpop.eup %4021 }
 0x3f4   :  { %v4024_v49 = vpop.eup %4023  ;;  %v6095_v26 = vmul.f32 %v4147_v55, %v4022_v24 }
 0x3f5   :  { %v6064_v40 = vpop.permute.xlu1 %2486  ;;  %v6066_v9 = vpop.permute.xlu0 %2484 }
 0x3f6   :  { %7874 = vst [vmem:[#allocation207_spill] sm:$0xff] %v6064_v40  ;;  %7875 = vst [vmem:[#allocation208_spill] sm:$0xff] %v6066_v9 }
 0x3f7   :  { %2250 = vrot.lane.b32.xlu1 %v6035_v23, %s4172_s20  ;;  %2248 = vrot.lane.b32.xlu0 %v6040_v58, %s4172_s20 }
 0x3f9   :  { %v6072_v20 = vpop.permute.xlu1 %2742  ;;  %v6074_v5 = vpop.permute.xlu0 %2740 }
 0x3fa   :  { %7876 = vst [vmem:[#allocation209_spill] sm:$0xff] %v6072_v20  ;;  %7877 = vst [vmem:[#allocation210_spill] sm:$0xff] %v6074_v5 }
 0x3fb   :  { %2506 = vrot.lane.b32.xlu1 %v6035_v23, %s4173_s21  ;;  %2504 = vrot.lane.b32.xlu0 %v6040_v58, %s4173_s21 }
 0x3fc   :  { %v4026_v9 = vpop.eup %4025 }
 0x3fd   :  { %v6080_v22 = vpop.permute.xlu1 %2998  ;;  %v6082_v52 = vpop.permute.xlu0 %2996 }
 0x3fe   :  { %7878 = vst [vmem:[#allocation211_spill] sm:$0xff] %v6080_v22  ;;  %7879 = vst [vmem:[#allocation212_spill] sm:$0xff] %v6082_v52  ;;  %v4148_v52 = vld [vmem:[%s7636_s0 + $0x150] sm:$0xff]  ;;  %v4028_v40 = vpop.eup %4027 }
 0x3ff   :  { %2762 = vrot.lane.b32.xlu1 %v6035_v23, %s4174_s22  ;;  %2760 = vrot.lane.b32.xlu0 %v6040_v58, %s4174_s22  ;;  %v6100_v22 = vmul.f32 %v4148_v52, %v4024_v49  ;;  %v1445_v52 = vadd.f32 1.0, %v4026_v9  ;;  %v1444_v55 = vadd.f32 1.0, %v4028_v40 }
 0x401   :  { %v6088_v3 = vpop.permute.xlu1 %1722  ;;  %v6090_v51 = vpop.permute.xlu0 %1720  ;;  %4029 = vrcp.f32 %v1445_v52 }
 0x402   :  { %7880 = vst [vmem:[#allocation213_spill] sm:$0xff] %v6088_v3  ;;  %7881 = vst [vmem:[#allocation214_spill] sm:$0xff] %v6090_v51  ;;  %4031 = vrcp.f32 %v1444_v55 }
 0x403   :  { %3018 = vrot.lane.b32.xlu1 %v6035_v23, %s4175_s25  ;;  %3016 = vrot.lane.b32.xlu0 %v6040_v58, %s4175_s25 }
 0x405   :  { %v6106_v5 = vpop.permute.xlu1 %1978  ;;  %v6108_v20 = vpop.permute.xlu0 %1976 }
 0x406   :  { %7882 = vst [vmem:[#allocation215_spill] sm:$0xff] %v6106_v5  ;;  %7883 = vst [vmem:[#allocation216_spill] sm:$0xff] %v6108_v20  ;;  %v1255_v20 = vsub.f32 0.0, %v5196_v34  ;;  %v1254_v5 = vsub.f32 0.0, %v5202_v27 }
 0x407   :  { %1742 = vrot.lane.b32.xlu1 %v6095_v26, %s4171_s17  ;;  %1740 = vrot.lane.b32.xlu0 %v6100_v22, %s4171_s17 }
 0x408   :  { %v1366_v9 = vmul.f32 1.442695, %v1255_v20  ;;  %v1364_v40 = vmul.f32 1.442695, %v1254_v5 }
 0x409   :  { %v6114_v24 = vpop.permute.xlu1 %2234  ;;  %v6116_v49 = vpop.permute.xlu0 %2232 }
 0x40a   :  { %7884 = vst [vmem:[#allocation217_spill] sm:$0xff] %v6114_v24  ;;  %7885 = vst [vmem:[#allocation218_spill] sm:$0xff] %v6116_v49  ;;  %4033 = vpow2.f32 %v1366_v9  ;;  %v4149_v9 = vld [vmem:[%s7636_s0 + $0x168] sm:$0xff] }
 0x40b   :  { %1998 = vrot.lane.b32.xlu1 %v6095_v26, %s4170_s16  ;;  %1996 = vrot.lane.b32.xlu0 %v6100_v22, %s4170_s16  ;;  %4035 = vpow2.f32 %v1364_v40  ;;  %v4030_v52 = vpop.eup %4029 }
 0x40c   :  { %v4032_v5 = vpop.eup %4031  ;;  %v6155_v40 = vmul.f32 %v4149_v9, %v4030_v52 }
 0x40d   :  { %v6124_v51 = vpop.permute.xlu1 %2490  ;;  %v6126_v3 = vpop.permute.xlu0 %2488 }
 0x40e   :  { %7886 = vst [vmem:[#allocation219_spill] sm:$0xff] %v6124_v51  ;;  %7887 = vst [vmem:[#allocation220_spill] sm:$0xff] %v6126_v3 }
 0x40f   :  { %2254 = vrot.lane.b32.xlu1 %v6095_v26, %s4172_s20  ;;  %2252 = vrot.lane.b32.xlu0 %v6100_v22, %s4172_s20 }
 0x411   :  { %v6132_v49 = vpop.permute.xlu1 %2746  ;;  %v6134_v24 = vpop.permute.xlu0 %2744 }
 0x412   :  { %7888 = vst [vmem:[#allocation221_spill] sm:$0xff] %v6132_v49  ;;  %7889 = vst [vmem:[#allocation222_spill] sm:$0xff] %v6134_v24 }
 0x413   :  { %2510 = vrot.lane.b32.xlu1 %v6095_v26, %s4173_s21  ;;  %2508 = vrot.lane.b32.xlu0 %v6100_v22, %s4173_s21 }
 0x414   :  { %v4034_v3 = vpop.eup %4033 }
 0x415   :  { %v6140_v34 = vpop.permute.xlu1 %3002  ;;  %v6142_v27 = vpop.permute.xlu0 %3000 }
 0x416   :  { %7890 = vst [vmem:[#allocation223_spill] sm:$0xff] %v6140_v34  ;;  %7891 = vst [vmem:[#allocation224_spill] sm:$0xff] %v6142_v27  ;;  %v4150_v27 = vld [vmem:[%s7636_s0 + $0x160] sm:$0xff]  ;;  %v4036_v51 = vpop.eup %4035 }
 0x417   :  { %2766 = vrot.lane.b32.xlu1 %v6095_v26, %s4174_s22  ;;  %2764 = vrot.lane.b32.xlu0 %v6100_v22, %s4174_s22  ;;  %v6160_v34 = vmul.f32 %v4150_v27, %v4032_v5  ;;  %v1447_v27 = vadd.f32 1.0, %v4034_v3  ;;  %v1446_v9 = vadd.f32 1.0, %v4036_v51  ;;  %v1256_v3 = vsub.f32 0.0, %v5214_v32 }
 0x419   :  { %v6148_v20 = vpop.permute.xlu1 %1726  ;;  %v6150_v55 = vpop.permute.xlu0 %1724  ;;  %4037 = vrcp.f32 %v1447_v27 }
 0x41a   :  { %7892 = vst [vmem:[#allocation225_spill] sm:$0xff] %v6148_v20  ;;  %7893 = vst [vmem:[#allocation226_spill] sm:$0xff] %v6150_v55  ;;  %4039 = vrcp.f32 %v1446_v9  ;;  %v1257_v55 = vsub.f32 0.0, %v5208_v59  ;;  %v1258_v20 = vsub.f32 0.0, %v5226_v18 }
 0x41b   :  { %3022 = vrot.lane.b32.xlu1 %v6095_v26, %s4175_s25  ;;  %3020 = vrot.lane.b32.xlu0 %v6100_v22, %s4175_s25 }
 0x41c   :  { %v1370_v27 = vmul.f32 1.442695, %v1257_v55 }
 0x41d   :  { %v6166_v24 = vpop.permute.xlu1 %1982  ;;  %v6168_v49 = vpop.permute.xlu0 %1980 }
 0x41e   :  { %7894 = vst [vmem:[#allocation227_spill] sm:$0xff] %v6166_v24  ;;  %7895 = vst [vmem:[#allocation228_spill] sm:$0xff] %v6168_v49  ;;  %4041 = vpow2.f32 %v1370_v27 }
 0x41f   :  { %1746 = vrot.lane.b32.xlu1 %v6155_v40, %s4171_s17  ;;  %1744 = vrot.lane.b32.xlu0 %v6160_v34, %s4171_s17 }
 0x421   :  { %v6174_v52 = vpop.permute.xlu1 %2238  ;;  %v6176_v5 = vpop.permute.xlu0 %2236 }
 0x422   :  { %7896 = vst [vmem:[#allocation229_spill] sm:$0xff] %v6174_v52  ;;  %7897 = vst [vmem:[#allocation230_spill] sm:$0xff] %v6176_v5  ;;  %v1368_v52 = vmul.f32 1.442695, %v1256_v3 }
 0x423   :  { %2002 = vrot.lane.b32.xlu1 %v6155_v40, %s4170_s16  ;;  %2000 = vrot.lane.b32.xlu0 %v6160_v34, %s4170_s16  ;;  %v4038_v9 = vpop.eup %4037 }
 0x424   :  { %4043 = vpow2.f32 %v1368_v52  ;;  %v4040_v55 = vpop.eup %4039  ;;  %v4152_v52 = vld [vmem:[%s7636_s0 + $0x170] sm:$0xff] }
 0x425   :  { %v6182_v49 = vpop.permute.xlu1 %2494  ;;  %v6184_v24 = vpop.permute.xlu0 %2492  ;;  %v6220_v27 = vmul.f32 %v4152_v52, %v4040_v55 }
 0x426   :  { %7898 = vst [vmem:[#allocation231_spill] sm:$0xff] %v6182_v49  ;;  %7899 = vst [vmem:[#allocation232_spill] sm:$0xff] %v6184_v24 }
 0x427   :  { %2258 = vrot.lane.b32.xlu1 %v6155_v40, %s4172_s20  ;;  %2256 = vrot.lane.b32.xlu0 %v6160_v34, %s4172_s20 }
 0x429   :  { %v6192_v51 = vpop.permute.xlu1 %2750  ;;  %v6194_v5 = vpop.permute.xlu0 %2748 }
 0x42a   :  { %7900 = vst [vmem:[#allocation233_spill] sm:$0xff] %v6192_v51  ;;  %7901 = vst [vmem:[#allocation234_spill] sm:$0xff] %v6194_v5 }
 0x42b   :  { %2514 = vrot.lane.b32.xlu1 %v6155_v40, %s4173_s21  ;;  %2512 = vrot.lane.b32.xlu0 %v6160_v34, %s4173_s21 }
 0x42d   :  { %v6200_v59 = vpop.permute.xlu1 %3006  ;;  %v6202_v32 = vpop.permute.xlu0 %3004 }
 0x42e   :  { %7902 = vst [vmem:[#allocation235_spill] sm:$0xff] %v6200_v59  ;;  %7903 = vst [vmem:[#allocation236_spill] sm:$0xff] %v6202_v32  ;;  %v4151_v59 = vld [vmem:[%s7636_s0 + $0x178] sm:$0xff] }
 0x42f   :  { %2770 = vrot.lane.b32.xlu1 %v6155_v40, %s4174_s22  ;;  %2768 = vrot.lane.b32.xlu0 %v6160_v34, %s4174_s22  ;;  %v6215_v51 = vmul.f32 %v4151_v59, %v4038_v9  ;;  %v4042_v59 = vpop.eup %4041 }
 0x430   :  { %v4044_v9 = vpop.eup %4043  ;;  %v1449_v49 = vadd.f32 1.0, %v4042_v59 }
 0x431   :  { %v6208_v3 = vpop.permute.xlu1 %1730  ;;  %v6210_v5 = vpop.permute.xlu0 %1728 }
 0x432   :  { %7904 = vst [vmem:[#allocation237_spill] sm:$0xff] %v6208_v3  ;;  %7905 = vst [vmem:[#allocation238_spill] sm:$0xff] %v6210_v5  ;;  %v1259_v3 = vsub.f32 0.0, %v5220_v17  ;;  %4045 = vrcp.f32 %v1449_v49 }
 0x433   :  { %3026 = vrot.lane.b32.xlu1 %v6155_v40, %s4175_s25  ;;  %3024 = vrot.lane.b32.xlu0 %v6160_v34, %s4175_s25 }
 0x435   :  { %v6226_v32 = vpop.permute.xlu1 %1986  ;;  %v6228_v24 = vpop.permute.xlu0 %1984 }
 0x436   :  { %7906 = vst [vmem:[#allocation239_spill] sm:$0xff] %v6226_v32  ;;  %7907 = vst [vmem:[#allocation240_spill] sm:$0xff] %v6228_v24  ;;  %v1448_v24 = vadd.f32 1.0, %v4044_v9  ;;  %v1374_v9 = vmul.f32 1.442695, %v1259_v3 }
 0x437   :  { %1750 = vrot.lane.b32.xlu1 %v6215_v51, %s4171_s17  ;;  %1748 = vrot.lane.b32.xlu0 %v6220_v27, %s4171_s17 }
 0x438   :  { %4047 = vrcp.f32 %v1448_v24 }
 0x439   :  { %v6234_v55 = vpop.permute.xlu1 %2242  ;;  %v6236_v52 = vpop.permute.xlu0 %2240  ;;  %4049 = vpow2.f32 %v1374_v9 }
 0x43a   :  { %7908 = vst [vmem:[#allocation241_spill] sm:$0xff] %v6234_v55  ;;  %7909 = vst [vmem:[#allocation242_spill] sm:$0xff] %v6236_v52  ;;  %v1260_v55 = vsub.f32 0.0, %v5248_v50 }
 0x43b   :  { %2006 = vrot.lane.b32.xlu1 %v6215_v51, %s4170_s16  ;;  %2004 = vrot.lane.b32.xlu0 %v6220_v27, %s4170_s16 }
 0x43c   :  { %v4046_v24 = vpop.eup %4045 }
 0x43d   :  { %v6242_v32 = vpop.permute.xlu1 %2498  ;;  %v6244_v5 = vpop.permute.xlu0 %2496 }
 0x43e   :  { %7910 = vst [vmem:[#allocation243_spill] sm:$0xff] %v6242_v32  ;;  %7911 = vst [vmem:[#allocation244_spill] sm:$0xff] %v6244_v5  ;;  %v1372_v32 = vmul.f32 1.442695, %v1258_v20 }
 0x43f   :  { %2262 = vrot.lane.b32.xlu1 %v6215_v51, %s4172_s20  ;;  %2260 = vrot.lane.b32.xlu0 %v6220_v27, %s4172_s20 }
 0x440   :  { %4051 = vpow2.f32 %v1372_v32  ;;  %v4153_v32 = vld [vmem:[%s7636_s0 + $0x188] sm:$0xff] }
 0x441   :  { %v6252_v59 = vpop.permute.xlu1 %2754  ;;  %v6254_v52 = vpop.permute.xlu0 %2752  ;;  %v6279_v9 = vmul.f32 %v4153_v32, %v4046_v24 }
 0x442   :  { %7912 = vst [vmem:[#allocation245_spill] sm:$0xff] %v6252_v59  ;;  %7913 = vst [vmem:[#allocation246_spill] sm:$0xff] %v6254_v52  ;;  %v4048_v3 = vpop.eup %4047 }
 0x443   :  { %2518 = vrot.lane.b32.xlu1 %v6215_v51, %s4173_s21  ;;  %2516 = vrot.lane.b32.xlu0 %v6220_v27, %s4173_s21  ;;  %v4050_v5 = vpop.eup %4049 }
 0x445   :  { %v6260_v17 = vpop.permute.xlu1 %3010  ;;  %v6262_v18 = vpop.permute.xlu0 %3008 }
 0x446   :  { %7914 = vst [vmem:[#allocation247_spill] sm:$0xff] %v6260_v17  ;;  %7915 = vst [vmem:[#allocation248_spill] sm:$0xff] %v6262_v18  ;;  %v4154_v18 = vld [vmem:[%s7636_s0 + $0x180] sm:$0xff] }
 0x447   :  { %2774 = vrot.lane.b32.xlu1 %v6215_v51, %s4174_s22  ;;  %2772 = vrot.lane.b32.xlu0 %v6220_v27, %s4174_s22  ;;  %v6284_v17 = vmul.f32 %v4154_v18, %v4048_v3 }
 0x449   :  { %v6268_v49 = vpop.permute.xlu1 %1734  ;;  %v6270_v20 = vpop.permute.xlu0 %1732 }
 0x44a   :  { %7916 = vst [vmem:[#allocation249_spill] sm:$0xff] %v6268_v49  ;;  %7917 = vst [vmem:[#allocation250_spill] sm:$0xff] %v6270_v20  ;;  %v4052_v20 = vpop.eup %4051  ;;  %v1451_v49 = vadd.f32 1.0, %v4050_v5 }
 0x44b   :  { %3030 = vrot.lane.b32.xlu1 %v6215_v51, %s4175_s25  ;;  %3028 = vrot.lane.b32.xlu0 %v6220_v27, %s4175_s25  ;;  %v1450_v18 = vadd.f32 1.0, %v4052_v20 }
 0x44c   :  { %4053 = vrcp.f32 %v1451_v49 }
 0x44d   :  { %v6286_v52 = vpop.permute.xlu1 %1990  ;;  %v6288_v59 = vpop.permute.xlu0 %1988  ;;  %4055 = vrcp.f32 %v1450_v18 }
 0x44e   :  { %7918 = vst [vmem:[#allocation251_spill] sm:$0xff] %v6286_v52  ;;  %7919 = vst [vmem:[#allocation252_spill] sm:$0xff] %v6288_v59  ;;  %v1261_v52 = vsub.f32 0.0, %v5242_v4 }
 0x44f   :  { %1754 = vrot.lane.b32.xlu1 %v6279_v9, %s4171_s17  ;;  %1752 = vrot.lane.b32.xlu0 %v6284_v17, %s4171_s17 }
 0x450   :  { %v1378_v20 = vmul.f32 1.442695, %v1261_v52 }
 0x451   :  { %v6294_v24 = vpop.permute.xlu1 %2246  ;;  %v6296_v32 = vpop.permute.xlu0 %2244 }
 0x452   :  { %7920 = vst [vmem:[#allocation253_spill] sm:$0xff] %v6294_v24  ;;  %7921 = vst [vmem:[#allocation254_spill] sm:$0xff] %v6296_v32  ;;  %4057 = vpow2.f32 %v1378_v20 }
 0x453   :  { %2010 = vrot.lane.b32.xlu1 %v6279_v9, %s4170_s16  ;;  %2008 = vrot.lane.b32.xlu0 %v6284_v17, %s4170_s16 }
 0x455   :  { %v6302_v3 = vpop.permute.xlu1 %2502  ;;  %v6304_v59 = vpop.permute.xlu0 %2500 }
 0x456   :  { %7922 = vst [vmem:[#allocation255_spill] sm:$0xff] %v6302_v3  ;;  %7923 = vst [vmem:[#allocation256_spill] sm:$0xff] %v6304_v59  ;;  %v1376_v3 = vmul.f32 1.442695, %v1260_v55  ;;  %v4054_v52 = vpop.eup %4053 }
 0x457   :  { %2266 = vrot.lane.b32.xlu1 %v6279_v9, %s4172_s20  ;;  %2264 = vrot.lane.b32.xlu0 %v6284_v17, %s4172_s20  ;;  %v4056_v18 = vpop.eup %4055 }
 0x458   :  { %4059 = vpow2.f32 %v1376_v3  ;;  %v4155_v3 = vld [vmem:[%s7636_s0 + $0x198] sm:$0xff] }
 0x459   :  { %v6312_v5 = vpop.permute.xlu1 %2758  ;;  %v6314_v32 = vpop.permute.xlu0 %2756  ;;  %v6339_v20 = vmul.f32 %v4155_v3, %v4054_v52 }
 0x45a   :  { %7924 = vst [vmem:[#allocation257_spill] sm:$0xff] %v6312_v5  ;;  %7925 = vst [vmem:[#allocation258_spill] sm:$0xff] %v6314_v32 }
 0x45b   :  { %2522 = vrot.lane.b32.xlu1 %v6279_v9, %s4173_s21  ;;  %2520 = vrot.lane.b32.xlu0 %v6284_v17, %s4173_s21 }
 0x45c   :  { %v4058_v59 = vpop.eup %4057 }
 0x45d   :  { %v6320_v4 = vpop.permute.xlu1 %3014  ;;  %v6322_v50 = vpop.permute.xlu0 %3012 }
 0x45e   :  { %7926 = vst [vmem:[#allocation259_spill] sm:$0xff] %v6320_v4  ;;  %7927 = vst [vmem:[#allocation260_spill] sm:$0xff] %v6322_v50  ;;  %v4156_v50 = vld [vmem:[%s7636_s0 + $0x190] sm:$0xff] }
 0x45f   :  { %2778 = vrot.lane.b32.xlu1 %v6279_v9, %s4174_s22  ;;  %2776 = vrot.lane.b32.xlu0 %v6284_v17, %s4174_s22  ;;  %v6344_v4 = vmul.f32 %v4156_v50, %v4056_v18  ;;  %v1263_v50 = vsub.f32 0.0, %v5254_v60 }
 0x461   :  { %v6328_v55 = vpop.permute.xlu1 %1738  ;;  %v6330_v49 = vpop.permute.xlu0 %1736 }
 0x462   :  { %7928 = vst [vmem:[#allocation261_spill] sm:$0xff] %v6328_v55  ;;  %7929 = vst [vmem:[#allocation262_spill] sm:$0xff] %v6330_v49  ;;  %v4060_v24 = vpop.eup %4059  ;;  %v1453_v49 = vadd.f32 1.0, %v4058_v59  ;;  %v1382_v55 = vmul.f32 1.442695, %v1263_v50 }
 0x463   :  { %3034 = vrot.lane.b32.xlu1 %v6279_v9, %s4175_s25  ;;  %3032 = vrot.lane.b32.xlu0 %v6284_v17, %s4175_s25  ;;  %v1452_v18 = vadd.f32 1.0, %v4060_v24 }
 0x464   :  { %4061 = vrcp.f32 %v1453_v49 }
 0x465   :  { %v6346_v32 = vpop.permute.xlu1 %1994  ;;  %v6348_v5 = vpop.permute.xlu0 %1992  ;;  %4063 = vrcp.f32 %v1452_v18 }
 0x466   :  { %7930 = vst [vmem:[#allocation263_spill] sm:$0xff] %v6346_v32  ;;  %7931 = vst [vmem:[#allocation264_spill] sm:$0xff] %v6348_v5  ;;  %4065 = vpow2.f32 %v1382_v55 }
 0x467   :  { %1758 = vrot.lane.b32.xlu1 %v6339_v20, %s4171_s17  ;;  %1756 = vrot.lane.b32.xlu0 %v6344_v4, %s4171_s17 }
 0x469   :  { %v6354_v52 = vpop.permute.xlu1 %2250  ;;  %v6356_v3 = vpop.permute.xlu0 %2248 }
 0x46a   :  { %7932 = vst [vmem:[#allocation265_spill] sm:$0xff] %v6354_v52  ;;  %7933 = vst [vmem:[#allocation266_spill] sm:$0xff] %v6356_v3  ;;  %v1262_v52 = vsub.f32 0.0, %v5260_v14 }
 0x46b   :  { %2014 = vrot.lane.b32.xlu1 %v6339_v20, %s4170_s16  ;;  %2012 = vrot.lane.b32.xlu0 %v6344_v4, %s4170_s16 }
 0x46c   :  { %v1380_v24 = vmul.f32 1.442695, %v1262_v52 }
 0x46d   :  { %v6363_v5 = vpop.permute.xlu1 %2506  ;;  %v6365_v32 = vpop.permute.xlu0 %2504 }
 0x46e   :  { %7934 = vst [vmem:[#allocation267_spill] sm:$0xff] %v6363_v5  ;;  %7935 = vst [vmem:[#allocation268_spill] sm:$0xff] %v6365_v32  ;;  %4067 = vpow2.f32 %v1380_v24  ;;  %v4062_v50 = vpop.eup %4061  ;;  %v4157_v24 = vld [vmem:[%s7636_s0 + $0x1a8] sm:$0xff] }
 0x46f   :  { %2270 = vrot.lane.b32.xlu1 %v6339_v20, %s4172_s20  ;;  %2268 = vrot.lane.b32.xlu0 %v6344_v4, %s4172_s20  ;;  %v4064_v18 = vpop.eup %4063 }
 0x471   :  { %v6372_v60 = vpop.permute.xlu1 %2762  ;;  %v6374_v59 = vpop.permute.xlu0 %2760 }
 0x472   :  { %7936 = vst [vmem:[#allocation269_spill] sm:$0xff] %v6372_v60  ;;  %7937 = vst [vmem:[#allocation270_spill] sm:$0xff] %v6374_v59  ;;  %v4158_v59 = vld [vmem:[%s7636_s0 + $0x1a0] sm:$0xff] }
 0x473   :  { %2526 = vrot.lane.b32.xlu1 %v6339_v20, %s4173_s21  ;;  %2524 = vrot.lane.b32.xlu0 %v6344_v4, %s4173_s21  ;;  %v6404_v60 = vmul.f32 %v4158_v59, %v4064_v18  ;;  %v1264_v18 = vsub.f32 0.0, %v5274_v43 }
 0x475   :  { %v6380_v14 = vpop.permute.xlu1 %3018  ;;  %v6382_v49 = vpop.permute.xlu0 %3016  ;;  %7942 = vst [vmem:[#allocation275_spill] sm:$0xff] %v6404_v60 }
 0x476   :  { %7938 = vst [vmem:[#allocation271_spill] sm:$0xff] %v6380_v14  ;;  %7939 = vst [vmem:[#allocation272_spill] sm:$0xff] %v6382_v49  ;;  %v4066_v49 = vpop.eup %4065  ;;  %v6399_v14 = vmul.f32 %v4157_v24, %v4062_v50 }
 0x477   :  { %2782 = vrot.lane.b32.xlu1 %v6339_v20, %s4174_s22  ;;  %2780 = vrot.lane.b32.xlu0 %v6344_v4, %s4174_s22  ;;  %v1455_v50 = vadd.f32 1.0, %v4066_v49  ;;  %v1384_v49 = vmul.f32 1.442695, %v1264_v18 }
 0x478   :  { %v4068_v24 = vpop.eup %4067 }
 0x479   :  { %v6388_v55 = vpop.permute.xlu1 %1742  ;;  %v6390_v52 = vpop.permute.xlu0 %1740  ;;  %4069 = vrcp.f32 %v1455_v50 }
 0x47a   :  { %7940 = vst [vmem:[#allocation273_spill] sm:$0xff] %v6388_v55  ;;  %7941 = vst [vmem:[#allocation274_spill] sm:$0xff] %v6390_v52  ;;  %v1265_v52 = vsub.f32 0.0, %v5267_v53  ;;  %v1454_v53 = vadd.f32 1.0, %v4068_v24 }
 0x47b   :  { %3038 = vrot.lane.b32.xlu1 %v6339_v20, %s4175_s25  ;;  %3036 = vrot.lane.b32.xlu0 %v6344_v4, %s4175_s25 }
 0x47c   :  { %v1386_v59 = vmul.f32 1.442695, %v1265_v52 }
 0x47d   :  { %v6406_v32 = vpop.permute.xlu1 %1998  ;;  %v6408_v5 = vpop.permute.xlu0 %1996 }
 0x47e   :  { %7943 = vst [vmem:[#allocation276_spill] sm:$0xff] %v6406_v32  ;;  %7944 = vst [vmem:[#allocation277_spill] sm:$0xff] %v6408_v5  ;;  %4071 = vpow2.f32 %v1386_v59 }
 0x47f   :  { %1762 = vrot.lane.b32.xlu1 %v6399_v14, %s4171_s17  ;;  %1760 = vrot.lane.b32.xlu0 %v6404_v60, %s4171_s17  ;;  %4073 = vrcp.f32 %v1454_v53  ;;  %v4159_v53 = vld [vmem:[%s7636_s0 + $0x1b8] sm:$0xff] }
 0x480   :  { %4075 = vpow2.f32 %v1384_v49 }
 0x481   :  { %v6415_v55 = vpop.permute.xlu1 %2254  ;;  %v6417_v3 = vpop.permute.xlu0 %2252 }
 0x482   :  { %7945 = vst [vmem:[#allocation278_spill] sm:$0xff] %v6415_v55  ;;  %7946 = vst [vmem:[#allocation279_spill] sm:$0xff] %v6417_v3 }
 0x483   :  { %2018 = vrot.lane.b32.xlu1 %v6399_v14, %s4170_s16  ;;  %2016 = vrot.lane.b32.xlu0 %v6404_v60, %s4170_s16  ;;  %v4070_v59 = vpop.eup %4069 }
 0x484   :  { %v6451_v49 = vmul.f32 %v4159_v53, %v4070_v59  ;;  %v4160_v59 = vld [vmem:[%s7636_s0 + $0x1b0] sm:$0xff] }
 0x485   :  { %v6424_v5 = vpop.permute.xlu1 %2510  ;;  %v6426_v32 = vpop.permute.xlu0 %2508 }
 0x486   :  { %7947 = vst [vmem:[#allocation280_spill] sm:$0xff] %v6424_v5  ;;  %7948 = vst [vmem:[#allocation281_spill] sm:$0xff] %v6426_v32 }
 0x487   :  { %2274 = vrot.lane.b32.xlu1 %v6399_v14, %s4172_s20  ;;  %2272 = vrot.lane.b32.xlu0 %v6404_v60, %s4172_s20 }
 0x488   :  { %v4072_v18 = vpop.eup %4071 }
 0x489   :  { %v6432_v43 = vpop.permute.xlu1 %2766  ;;  %v6434_v52 = vpop.permute.xlu0 %2764  ;;  %v1457_v32 = vadd.f32 1.0, %v4072_v18 }
 0x48a   :  { %7949 = vst [vmem:[#allocation282_spill] sm:$0xff] %v6432_v43  ;;  %7950 = vst [vmem:[#allocation283_spill] sm:$0xff] %v6434_v52 }
 0x48b   :  { %2530 = vrot.lane.b32.xlu1 %v6399_v14, %s4173_s21  ;;  %2528 = vrot.lane.b32.xlu0 %v6404_v60, %s4173_s21  ;;  %4077 = vrcp.f32 %v1457_v32 }
 0x48d   :  { %v6440_v50 = vpop.permute.xlu1 %3022  ;;  %v6442_v24 = vpop.permute.xlu0 %3020 }
 0x48e   :  { %7951 = vst [vmem:[#allocation284_spill] sm:$0xff] %v6440_v50  ;;  %7952 = vst [vmem:[#allocation285_spill] sm:$0xff] %v6442_v24  ;;  %v4074_v50 = vpop.eup %4073  ;;  %v1267_v24 = vsub.f32 0.0, %v5280_v42  ;;  %v1266_v42 = vsub.f32 0.0, %v5286_v16 }
 0x48f   :  { %2786 = vrot.lane.b32.xlu1 %v6399_v14, %s4174_s22  ;;  %2784 = vrot.lane.b32.xlu0 %v6404_v60, %s4174_s22  ;;  %v4076_v5 = vpop.eup %4075  ;;  %v6465_v53 = vmul.f32 %v4160_v59, %v4074_v50 }
 0x490   :  { %v1390_v3 = vmul.f32 1.442695, %v1267_v24  ;;  %v1456_v18 = vadd.f32 1.0, %v4076_v5  ;;  %v1388_v50 = vmul.f32 1.442695, %v1266_v42  ;;  %v4161_v42 = vld [vmem:[%s7636_s0 + $0x1c8] sm:$0xff] }
 0x491   :  { %v6453_v52 = vpop.permute.xlu1 %1746  ;;  %v6455_v43 = vpop.permute.xlu0 %1744  ;;  %7955 = vst [vmem:[#allocation288_spill] sm:$0xff] %v6465_v53 }
 0x492   :  { %7953 = vst [vmem:[#allocation286_spill] sm:$0xff] %v6453_v52  ;;  %7954 = vst [vmem:[#allocation287_spill] sm:$0xff] %v6455_v43  ;;  %4079 = vpow2.f32 %v1390_v3 }
 0x493   :  { %3040 = vrot.lane.b32.xlu0 %v6404_v60, %s4175_s25  ;;  %1766 = vrot.lane.b32.xlu1 %v6451_v49, %s4171_s17  ;;  %4081 = vrcp.f32 %v1456_v18 }
 0x494   :  { %4083 = vpow2.f32 %v1388_v50 }
 0x495   :  { %v6467_v52 = vpop.permute.xlu1 %2002  ;;  %v6469_v43 = vpop.permute.xlu0 %2000 }
 0x496   :  { %7956 = vst [vmem:[#allocation289_spill] sm:$0xff] %v6467_v52  ;;  %7957 = vst [vmem:[#allocation290_spill] sm:$0xff] %v6469_v43  ;;  %v4078_v3 = vpop.eup %4077 }
 0x497   :  { %2022 = vrot.lane.b32.xlu1 %v6451_v49, %s4170_s16  ;;  %1764 = vrot.lane.b32.xlu0 %v6465_v53, %s4171_s17  ;;  %v6503_v18 = vmul.f32 %v4161_v42, %v4078_v3  ;;  %v4162_v3 = vld [vmem:[%s7636_s0 + $0x1c0] sm:$0xff] }
 0x499   :  { %v6476_v55 = vpop.permute.xlu1 %2258  ;;  %v6478_v60 = vpop.permute.xlu0 %2256 }
 0x49a   :  { %7958 = vst [vmem:[#allocation291_spill] sm:$0xff] %v6476_v55  ;;  %7959 = vst [vmem:[#allocation292_spill] sm:$0xff] %v6478_v60 }
 0x49b   :  { %2278 = vrot.lane.b32.xlu1 %v6451_v49, %s4172_s20  ;;  %2020 = vrot.lane.b32.xlu0 %v6465_v53, %s4170_s16 }
 0x49c   :  { %v4080_v59 = vpop.eup %4079 }
 0x49d   :  { %v6484_v16 = vpop.permute.xlu1 %2514  ;;  %v6486_v24 = vpop.permute.xlu0 %2512 }
 0x49e   :  { %7960 = vst [vmem:[#allocation293_spill] sm:$0xff] %v6484_v16  ;;  %7961 = vst [vmem:[#allocation294_spill] sm:$0xff] %v6486_v24  ;;  %v1459_v16 = vadd.f32 1.0, %v4080_v59 }
 0x49f   :  { %2534 = vrot.lane.b32.xlu1 %v6451_v49, %s4173_s21  ;;  %2276 = vrot.lane.b32.xlu0 %v6465_v53, %s4172_s20 }
 0x4a0   :  { %4085 = vrcp.f32 %v1459_v16 }
 0x4a1   :  { %v6492_v32 = vpop.permute.xlu1 %2770  ;;  %v6494_v5 = vpop.permute.xlu0 %2768 }
 0x4a2   :  { %7962 = vst [vmem:[#allocation295_spill] sm:$0xff] %v6492_v32  ;;  %7963 = vst [vmem:[#allocation296_spill] sm:$0xff] %v6494_v5  ;;  %v4082_v32 = vpop.eup %4081  ;;  %v1269_v5 = vsub.f32 0.0, %v5292_v12  ;;  %v1268_v12 = vsub.f32 0.0, %v5298_v0 }
 0x4a3   :  { %2790 = vrot.lane.b32.xlu1 %v6451_v49, %s4174_s22  ;;  %2532 = vrot.lane.b32.xlu0 %v6465_v53, %s4173_s21  ;;  %v4084_v60 = vpop.eup %4083  ;;  %v6517_v42 = vmul.f32 %v4162_v3, %v4082_v32 }
 0x4a4   :  { %v1394_v55 = vmul.f32 1.442695, %v1269_v5  ;;  %v1458_v59 = vadd.f32 1.0, %v4084_v60  ;;  %v1392_v32 = vmul.f32 1.442695, %v1268_v12  ;;  %v4163_v12 = vld [vmem:[%s7636_s0 + $0x1d8] sm:$0xff] }
 0x4a5   :  { %v6505_v50 = vpop.permute.xlu1 %3026  ;;  %v6507_v24 = vpop.permute.xlu0 %3024 }
 0x4a6   :  { %7964 = vst [vmem:[#allocation297_spill] sm:$0xff] %v6505_v50  ;;  %7965 = vst [vmem:[#allocation298_spill] sm:$0xff] %v6507_v24  ;;  %4087 = vpow2.f32 %v1394_v55 }
 0x4a7   :  { %2788 = vrot.lane.b32.xlu0 %v6465_v53, %s4174_s22  ;;  %1770 = vrot.lane.b32.xlu1 %v6503_v18, %s4171_s17  ;;  %4089 = vrcp.f32 %v1458_v59 }
 0x4a8   :  { %4091 = vpow2.f32 %v1392_v32 }
 0x4a9   :  { %v6519_v50 = vpop.permute.xlu1 %1750  ;;  %v6521_v24 = vpop.permute.xlu0 %1748 }
 0x4aa   :  { %7966 = vst [vmem:[#allocation299_spill] sm:$0xff] %v6519_v50  ;;  %7967 = vst [vmem:[#allocation300_spill] sm:$0xff] %v6521_v24  ;;  %v4086_v16 = vpop.eup %4085 }
 0x4ab   :  { %2026 = vrot.lane.b32.xlu1 %v6503_v18, %s4170_s16  ;;  %1768 = vrot.lane.b32.xlu0 %v6517_v42, %s4171_s17  ;;  %v6555_v59 = vmul.f32 %v4163_v12, %v4086_v16  ;;  %v4164_v16 = vld [vmem:[%s7636_s0 + $0x1d0] sm:$0xff] }
 0x4ad   :  { %v6528_v43 = vpop.permute.xlu1 %2006  ;;  %v6530_v52 = vpop.permute.xlu0 %2004 }
 0x4ae   :  { %7968 = vst [vmem:[#allocation301_spill] sm:$0xff] %v6528_v43  ;;  %7969 = vst [vmem:[#allocation302_spill] sm:$0xff] %v6530_v52 }
 0x4af   :  { %2282 = vrot.lane.b32.xlu1 %v6503_v18, %s4172_s20  ;;  %2024 = vrot.lane.b32.xlu0 %v6517_v42, %s4170_s16 }
 0x4b0   :  { %v4088_v3 = vpop.eup %4087 }
 0x4b1   :  { %v6536_v0 = vpop.permute.xlu1 %2262  ;;  %v6538_v5 = vpop.permute.xlu0 %2260 }
 0x4b2   :  { %7970 = vst [vmem:[#allocation303_spill] sm:$0xff] %v6536_v0  ;;  %7971 = vst [vmem:[#allocation304_spill] sm:$0xff] %v6538_v5  ;;  %v1461_v0 = vadd.f32 1.0, %v4088_v3 }
 0x4b3   :  { %2538 = vrot.lane.b32.xlu1 %v6503_v18, %s4173_s21  ;;  %2280 = vrot.lane.b32.xlu0 %v6517_v42, %s4172_s20 }
 0x4b4   :  { %4093 = vrcp.f32 %v1461_v0 }
 0x4b5   :  { %v6544_v60 = vpop.permute.xlu1 %2518  ;;  %v6546_v55 = vpop.permute.xlu0 %2516 }
 0x4b6   :  { %7972 = vst [vmem:[#allocation305_spill] sm:$0xff] %v6544_v60  ;;  %7973 = vst [vmem:[#allocation306_spill] sm:$0xff] %v6546_v55  ;;  %v4090_v60 = vpop.eup %4089  ;;  %v1271_v55 = vsub.f32 0.0, %v5304_v46  ;;  %v1270_v46 = vsub.f32 0.0, %v5310_v62 }
 0x4b7   :  { %2794 = vrot.lane.b32.xlu1 %v6503_v18, %s4174_s22  ;;  %2536 = vrot.lane.b32.xlu0 %v6517_v42, %s4173_s21  ;;  %v4092_v52 = vpop.eup %4091  ;;  %v6569_v12 = vmul.f32 %v4164_v16, %v4090_v60 }
 0x4b8   :  { %v1398_v43 = vmul.f32 1.442695, %v1271_v55  ;;  %v1460_v3 = vadd.f32 1.0, %v4092_v52  ;;  %v1396_v60 = vmul.f32 1.442695, %v1270_v46  ;;  %v4165_v46 = vld [vmem:[%s7636_s0 + $0x1e8] sm:$0xff] }
 0x4b9   :  { %v6557_v32 = vpop.permute.xlu1 %2774  ;;  %v6559_v5 = vpop.permute.xlu0 %2772 }
 0x4ba   :  { %7974 = vst [vmem:[#allocation307_spill] sm:$0xff] %v6557_v32  ;;  %7975 = vst [vmem:[#allocation308_spill] sm:$0xff] %v6559_v5  ;;  %4095 = vpow2.f32 %v1398_v43 }
 0x4bb   :  { %2792 = vrot.lane.b32.xlu0 %v6517_v42, %s4174_s22  ;;  %1774 = vrot.lane.b32.xlu1 %v6555_v59, %s4171_s17  ;;  %4097 = vrcp.f32 %v1460_v3 }
 0x4bc   :  { %4099 = vpow2.f32 %v1396_v60 }
 0x4bd   :  { %v6571_v32 = vpop.permute.xlu1 %3030  ;;  %v6573_v5 = vpop.permute.xlu0 %3028 }
 0x4be   :  { %7976 = vst [vmem:[#allocation309_spill] sm:$0xff] %v6571_v32  ;;  %7977 = vst [vmem:[#allocation310_spill] sm:$0xff] %v6573_v5  ;;  %v4094_v0 = vpop.eup %4093 }
 0x4bf   :  { %2030 = vrot.lane.b32.xlu1 %v6555_v59, %s4170_s16  ;;  %1772 = vrot.lane.b32.xlu0 %v6569_v12, %s4171_s17  ;;  %v6607_v3 = vmul.f32 %v4165_v46, %v4094_v0 }
 0x4c1   :  { %v6580_v24 = vpop.permute.xlu1 %1754  ;;  %v6582_v50 = vpop.permute.xlu0 %1752 }
 0x4c2   :  { %7978 = vst [vmem:[#allocation311_spill] sm:$0xff] %v6580_v24  ;;  %7979 = vst [vmem:[#allocation312_spill] sm:$0xff] %v6582_v50  ;;  %v8031_v50 = vld [vmem:[#allocation7_spill] sm:$0xff] }
 0x4c3   :  { %2286 = vrot.lane.b32.xlu1 %v6555_v59, %s4172_s20  ;;  %2028 = vrot.lane.b32.xlu0 %v6569_v12, %s4170_s16 }
 0x4c4   :  { %v4096_v16 = vpop.eup %4095 }
 0x4c5   :  { %v6588_v62 = vpop.permute.xlu1 %2010  ;;  %v6590_v55 = vpop.permute.xlu0 %2008 }
 0x4c6   :  { %7980 = vst [vmem:[#allocation313_spill] sm:$0xff] %v6588_v62  ;;  %7981 = vst [vmem:[#allocation314_spill] sm:$0xff] %v6590_v55  ;;  %v4098_v32 = vpop.eup %4097  ;;  %v4166_v55 = vld [vmem:[%s7636_s0 + $0x1e0] sm:$0xff] }
 0x4c7   :  { %2542 = vrot.lane.b32.xlu1 %v6555_v59, %s4173_s21  ;;  %2284 = vrot.lane.b32.xlu0 %v6569_v12, %s4172_s20  ;;  %v6620_v62 = vmul.f32 %v4166_v55, %v4098_v32 }
 0x4c9   :  { %v6596_v43 = vpop.permute.xlu1 %2266  ;;  %v6598_v52 = vpop.permute.xlu0 %2264 }
 0x4ca   :  { %7982 = vst [vmem:[#allocation315_spill] sm:$0xff] %v6596_v43  ;;  %7983 = vst [vmem:[#allocation316_spill] sm:$0xff] %v6598_v52  ;;  %v1463_v52 = vadd.f32 1.0, %v4096_v16  ;;  %v4100_v43 = vpop.eup %4099 }
 0x4cb   :  { %2798 = vrot.lane.b32.xlu1 %v6555_v59, %s4174_s22  ;;  %2540 = vrot.lane.b32.xlu0 %v6569_v12, %s4173_s21 }
 0x4cc   :  { %4101 = vrcp.f32 %v1463_v52 }
 0x4cd   :  { %v6609_v60 = vpop.permute.xlu1 %2522  ;;  %v6611_v5 = vpop.permute.xlu0 %2520 }
 0x4ce   :  { %7984 = vst [vmem:[#allocation317_spill] sm:$0xff] %v6609_v60  ;;  %7985 = vst [vmem:[#allocation318_spill] sm:$0xff] %v6611_v5  ;;  %v1462_v5 = vadd.f32 1.0, %v4100_v43 }
 0x4cf   :  { %2796 = vrot.lane.b32.xlu0 %v6569_v12, %s4174_s22  ;;  %1778 = vrot.lane.b32.xlu1 %v6607_v3, %s4171_s17 }
 0x4d0   :  { %4103 = vrcp.f32 %v1462_v5  ;;  %v4167_v5 = vld [vmem:[%s7636_s0 + $0x1f8] sm:$0xff] }
 0x4d1   :  { %v6622_v0 = vpop.permute.xlu1 %2778  ;;  %v6624_v46 = vpop.permute.xlu0 %2776 }
 0x4d2   :  { %7986 = vst [vmem:[#allocation319_spill] sm:$0xff] %v6622_v0  ;;  %7987 = vst [vmem:[#allocation320_spill] sm:$0xff] %v6624_v46 }
 0x4d3   :  { %2034 = vrot.lane.b32.xlu1 %v6607_v3, %s4170_s16  ;;  %1776 = vrot.lane.b32.xlu0 %v6620_v62, %s4171_s17 }
 0x4d5   :  { %v6630_v16 = vpop.permute.xlu1 %3034  ;;  %v6632_v60 = vpop.permute.xlu0 %3032 }
 0x4d6   :  { %7988 = vst [vmem:[#allocation321_spill] sm:$0xff] %v6630_v16  ;;  %7989 = vst [vmem:[#allocation322_spill] sm:$0xff] %v6632_v60  ;;  %v4102_v60 = vpop.eup %4101 }
 0x4d7   :  { %2290 = vrot.lane.b32.xlu1 %v6607_v3, %s4172_s20  ;;  %2032 = vrot.lane.b32.xlu0 %v6620_v62, %s4170_s16  ;;  %v6657_v16 = vmul.f32 %v4167_v5, %v4102_v60 }
 0x4d9   :  { %v6638_v32 = vpop.permute.xlu1 %1758  ;;  %v6640_v55 = vpop.permute.xlu0 %1756 }
 0x4da   :  { %7990 = vst [vmem:[#allocation323_spill] sm:$0xff] %v6638_v32  ;;  %7991 = vst [vmem:[#allocation324_spill] sm:$0xff] %v6640_v55 }
 0x4db   :  { %2546 = vrot.lane.b32.xlu1 %v6607_v3, %s4173_s21  ;;  %2288 = vrot.lane.b32.xlu0 %v6620_v62, %s4172_s20 }
 0x4dd   :  { %v6646_v43 = vpop.permute.xlu1 %2014  ;;  %v6648_v52 = vpop.permute.xlu0 %2012 }
 0x4de   :  { %7992 = vst [vmem:[#allocation325_spill] sm:$0xff] %v6646_v43  ;;  %7993 = vst [vmem:[#allocation326_spill] sm:$0xff] %v6648_v52  ;;  %v4104_v43 = vpop.eup %4103  ;;  %v4168_v52 = vld [vmem:[%s7636_s0 + $0x1f0] sm:$0xff]  ;;  %s4176_s0 = smov 16  }
 0x4df   :  { %2802 = vrot.lane.b32.xlu1 %v6607_v3, %s4174_s22  ;;  %2544 = vrot.lane.b32.xlu0 %v6620_v62, %s4173_s21  ;;  %v6670_v55 = vmul.f32 %v4168_v52, %v4104_v43 }
 0x4e1   :  { %v6659_v46 = vpop.permute.xlu1 %2270  ;;  %v6661_v0 = vpop.permute.xlu0 %2268 }
 0x4e2   :  { %7994 = vst [vmem:[#allocation327_spill] sm:$0xff] %v6659_v46  ;;  %7995 = vst [vmem:[#allocation328_spill] sm:$0xff] %v6661_v0 }
 0x4e3   :  { %2800 = vrot.lane.b32.xlu0 %v6620_v62, %s4174_s22  ;;  %1782 = vrot.lane.b32.xlu1 %v6657_v16, %s4171_s17 }
 0x4e5   :  { %v6672_v32 = vpop.permute.xlu1 %2526  ;;  %v6674_v60 = vpop.permute.xlu0 %2524 }
 0x4e6   :  { %7996 = vst [vmem:[#allocation329_spill] sm:$0xff] %v6672_v32  ;;  %7997 = vst [vmem:[#allocation330_spill] sm:$0xff] %v6674_v60 }
 0x4e7   :  { %2038 = vrot.lane.b32.xlu1 %v6657_v16, %s4170_s16  ;;  %1780 = vrot.lane.b32.xlu0 %v6670_v55, %s4171_s17 }
 0x4e9   :  { %v6680_v5 = vpop.permute.xlu1 %2782  ;;  %v6682_v0 = vpop.permute.xlu0 %2780 }
 0x4ea   :  { %7998 = vst [vmem:[#allocation331_spill] sm:$0xff] %v6680_v5  ;;  %7999 = vst [vmem:[#allocation332_spill] sm:$0xff] %v6682_v0 }
 0x4eb   :  { %2294 = vrot.lane.b32.xlu1 %v6657_v16, %s4172_s20  ;;  %2036 = vrot.lane.b32.xlu0 %v6670_v55, %s4170_s16 }
 0x4ed   :  { %v6688_v43 = vpop.permute.xlu1 %3038  ;;  %v6690_v52 = vpop.permute.xlu0 %3036 }
 0x4ee   :  { %8000 = vst [vmem:[#allocation333_spill] sm:$0xff] %v6688_v43  ;;  %8001 = vst [vmem:[#allocation334_spill] sm:$0xff] %v6690_v52 }
 0x4ef   :  { %2550 = vrot.lane.b32.xlu1 %v6657_v16, %s4173_s21  ;;  %2292 = vrot.lane.b32.xlu0 %v6670_v55, %s4172_s20 }
 0x4f1   :  { %v6696_v60 = vpop.permute.xlu1 %1762  ;;  %v6698_v5 = vpop.permute.xlu0 %1760 }
 0x4f2   :  { %8002 = vst [vmem:[#allocation335_spill] sm:$0xff] %v6696_v60  ;;  %8003 = vst [vmem:[#allocation336_spill] sm:$0xff] %v6698_v5  ;;  %v8027_v5 = vld [vmem:[#allocation3_spill] sm:$0xff] }
 0x4f3   :  { %2806 = vrot.lane.b32.xlu1 %v6657_v16, %s4174_s22  ;;  %2548 = vrot.lane.b32.xlu0 %v6670_v55, %s4173_s21 }
 0x4f5   :  { %v6704_v0 = vpop.permute.xlu1 %2018  ;;  %v6706_v43 = vpop.permute.xlu0 %2016 }
 0x4f6   :  { %8004 = vst [vmem:[#allocation337_spill] sm:$0xff] %v6704_v0  ;;  %8005 = vst [vmem:[#allocation338_spill] sm:$0xff] %v6706_v43 }
 0x4f7   :  { %3042 = vrot.lane.b32.xlu1 %v6399_v14, %s4175_s25  ;;  %2804 = vrot.lane.b32.xlu0 %v6670_v55, %s4174_s22 }
 0x4f9   :  { %v6712_v52 = vpop.permute.xlu1 %2274  ;;  %v6714_v32 = vpop.permute.xlu0 %2272 }
 0x4fa   :  { %8006 = vst [vmem:[#allocation339_spill] sm:$0xff] %v6712_v52  ;;  %8007 = vst [vmem:[#allocation340_spill] sm:$0xff] %v6714_v32 }
 0x4fb   :  { %3046 = vrot.lane.b32.xlu1 %v6451_v49, %s4175_s25  ;;  %3044 = vrot.lane.b32.xlu0 %v6465_v53, %s4175_s25 }
 0x4fd   :  { %v6720_v46 = vpop.permute.xlu1 %2530  ;;  %v6722_v0 = vpop.permute.xlu0 %2528 }
 0x4fe   :  { %8008 = vst [vmem:[#allocation341_spill] sm:$0xff] %v6720_v46  ;;  %8009 = vst [vmem:[#allocation342_spill] sm:$0xff] %v6722_v0 }
 0x4ff   :  { %3050 = vrot.lane.b32.xlu1 %v6503_v18, %s4175_s25  ;;  %3048 = vrot.lane.b32.xlu0 %v6517_v42, %s4175_s25 }
 0x501   :  { %v6728_v43 = vpop.permute.xlu1 %2786  ;;  %v6730_v52 = vpop.permute.xlu0 %2784 }
 0x502   :  { %8010 = vst [vmem:[#allocation343_spill] sm:$0xff] %v6728_v43  ;;  %8011 = vst [vmem:[#allocation344_spill] sm:$0xff] %v6730_v52 }
 0x503   :  { %3054 = vrot.lane.b32.xlu1 %v6555_v59, %s4175_s25  ;;  %3052 = vrot.lane.b32.xlu0 %v6569_v12, %s4175_s25 }
 0x505   :  { %v6736_v32 = vpop.permute.xlu0 %3040  ;;  %v6738_v46 = vpop.permute.xlu1 %1766 }
 0x506   :  { %8012 = vst [vmem:[#allocation345_spill] sm:$0xff] %v6736_v32  ;;  %8013 = vst [vmem:[#allocation346_spill] sm:$0xff] %v6738_v46 }
 0x507   :  { %3058 = vrot.lane.b32.xlu1 %v6607_v3, %s4175_s25  ;;  %3056 = vrot.lane.b32.xlu0 %v6620_v62, %s4175_s25 }
 0x509   :  { %v6744_v0 = vpop.permute.xlu1 %2022  ;;  %v6746_v43 = vpop.permute.xlu0 %1764 }
 0x50a   :  { %8014 = vst [vmem:[#allocation347_spill] sm:$0xff] %v6744_v0  ;;  %8015 = vst [vmem:[#allocation348_spill] sm:$0xff] %v6746_v43 }
 0x50b   :  { %3062 = vrot.lane.b32.xlu1 %v6657_v16, %s4175_s25  ;;  %3060 = vrot.lane.b32.xlu0 %v6670_v55, %s4175_s25 }
 0x50d   :  { %v6752_v52 = vpop.permute.xlu1 %2278  ;;  %v6754_v32 = vpop.permute.xlu0 %2020 }
 0x50e   :  { %8016 = vst [vmem:[#allocation349_spill] sm:$0xff] %v6752_v52  ;;  %8017 = vst [vmem:[#allocation350_spill] sm:$0xff] %v6754_v32 }
 0x50f   :  { %3194 = vrot.lane.b32.xlu1 %v4845_v35, %s4176_s0  ;;  %3192 = vrot.lane.b32.xlu0 %v4856_v41, %s4176_s0 }
 0x511   :  { %v6760_v0 = vpop.permute.xlu1 %2534  ;;  %v6762_v43 = vpop.permute.xlu0 %2276 }
 0x512   :  { %8018 = vst [vmem:[#allocation351_spill] sm:$0xff] %v6760_v0  ;;  %8019 = vst [vmem:[#allocation352_spill] sm:$0xff] %v6762_v43 }
 0x513   :  { %3198 = vrot.lane.b32.xlu1 %v4879_v56, %s4176_s0  ;;  %3196 = vrot.lane.b32.xlu0 %v4902_v2, %s4176_s0 }
 0x515   :  { %v6768_v52 = vpop.permute.xlu1 %2790  ;;  %v6770_v32 = vpop.permute.xlu0 %2532 }
 0x516   :  { %8020 = vst [vmem:[#allocation353_spill] sm:$0xff] %v6768_v52  ;;  %8021 = vst [vmem:[#allocation354_spill] sm:$0xff] %v6770_v32  ;;  %v8026_v32 = vld [vmem:[#allocation2_spill] sm:$0xff] }
 0x517   :  { %3202 = vrot.lane.b32.xlu1 %v4935_v10, %s4176_s0  ;;  %3200 = vrot.lane.b32.xlu0 %v4940_v11, %s4176_s0 }
 0x519   :  { %v6776_v46 = vpop.permute.xlu0 %2788  ;;  %v6778_v0 = vpop.permute.xlu1 %1770 }
 0x51a   :  { %8022 = vst [vmem:[#allocation355_spill] sm:$0xff] %v6776_v46  ;;  %8023 = vst [vmem:[#allocation356_spill] sm:$0xff] %v6778_v0  ;;  %v8030_v0 = vld [vmem:[#allocation6_spill] sm:$0xff] }
 0x51b   :  { %3206 = vrot.lane.b32.xlu1 %v4983_v30, %s4176_s0  ;;  %3204 = vrot.lane.b32.xlu0 %v4988_v33, %s4176_s0 }
 0x51d   :  { %v6784_v43 = vpop.permute.xlu1 %2026  ;;  %v6786_v52 = vpop.permute.xlu0 %1768 }
 0x51e   :  { %8024 = vst [vmem:[#allocation357_spill] sm:$0xff] %v6784_v43  ;;  %8025 = vst [vmem:[#allocation358_spill] sm:$0xff] %v6786_v52  ;;  %v8034_v52 = vld [vmem:[#allocation20_spill] sm:$0xff] }
 0x51f   :  { %3210 = vrot.lane.b32.xlu1 %v8026_v32, %s4176_s0  ;;  %3208 = vrot.lane.b32.xlu0 %v8027_v5, %s4176_s0  ;;  %v8035_v32 = vld [vmem:[#allocation21_spill] sm:$0xff] }
 0x521   :  { %v6792_v60 = vpop.permute.xlu1 %2282  ;;  %v6794_v46 = vpop.permute.xlu0 %2024 }
 0x522   :  { %8028 = vst [vmem:[#allocation359_spill] sm:$0xff] %v6792_v60  ;;  %8029 = vst [vmem:[#allocation360_spill] sm:$0xff] %v6794_v46  ;;  %v8038_v46 = vld [vmem:[#allocation34_spill] sm:$0xff] }
 0x523   :  { %3214 = vrot.lane.b32.xlu1 %v8030_v0, %s4176_s0  ;;  %3212 = vrot.lane.b32.xlu0 %v8031_v50, %s4176_s0  ;;  %v8039_v0 = vld [vmem:[#allocation35_spill] sm:$0xff] }
 0x525   :  { %v6800_v24 = vpop.permute.xlu1 %2538  ;;  %v6802_v43 = vpop.permute.xlu0 %2280 }
 0x526   :  { %8032 = vst [vmem:[#allocation361_spill] sm:$0xff] %v6800_v24  ;;  %8033 = vst [vmem:[#allocation362_spill] sm:$0xff] %v6802_v43 }
 0x527   :  { %3218 = vrot.lane.b32.xlu1 %v8034_v52, %s4176_s0  ;;  %3216 = vrot.lane.b32.xlu0 %v8035_v32, %s4176_s0 }
 0x529   :  { %v6808_v5 = vpop.permute.xlu1 %2794  ;;  %v6810_v60 = vpop.permute.xlu0 %2536 }
 0x52a   :  { %8036 = vst [vmem:[#allocation363_spill] sm:$0xff] %v6808_v5  ;;  %8037 = vst [vmem:[#allocation364_spill] sm:$0xff] %v6810_v60 }
 0x52b   :  { %3222 = vrot.lane.b32.xlu1 %v8038_v46, %s4176_s0  ;;  %3220 = vrot.lane.b32.xlu0 %v8039_v0, %s4176_s0 }
 0x52d   :  { %v6816_v50 = vpop.permute.xlu0 %2792  ;;  %v6818_v24 = vpop.permute.xlu1 %1774 }
 0x52e   :  { %8040 = vst [vmem:[#allocation365_spill] sm:$0xff] %v6816_v50 }
 0x52f   :  { %3226 = vrot.lane.b32.xlu1 %v5315_v29, %s4176_s0  ;;  %3224 = vrot.lane.b32.xlu0 %v5320_v21, %s4176_s0 }
 0x531   :  { %v6824_v43 = vpop.permute.xlu1 %2030  ;;  %v1773_v5 = vpop.permute.xlu0 %1772 }
 0x532   :  { %v1906_v0 = vadd.f32 %v1773_v5, %v6569_v12 }
 0x533   :  { %3230 = vrot.lane.b32.xlu1 %v5375_v1, %s4176_s0  ;;  %3228 = vrot.lane.b32.xlu0 %v5380_v13, %s4176_s0 }
 0x535   :  { %v6830_v60 = vpop.permute.xlu1 %2286  ;;  %v2029_v50 = vpop.permute.xlu0 %2028 }
 0x536   :  { %v2162_v13 = vadd.f32 %v2029_v50, %v1906_v0 }
 0x537   :  { %3234 = vrot.lane.b32.xlu1 %v5435_v63, %s4176_s0  ;;  %3232 = vrot.lane.b32.xlu0 %v5440_v19, %s4176_s0 }
 0x539   :  { %v6836_v29 = vpop.permute.xlu1 %2542  ;;  %v2285_v21 = vpop.permute.xlu0 %2284 }
 0x53a   :  { %v2418_v32 = vadd.f32 %v2285_v21, %v2162_v13 }
 0x53b   :  { %3238 = vrot.lane.b32.xlu1 %v5495_v47, %s4176_s0  ;;  %3236 = vrot.lane.b32.xlu0 %v5500_v28, %s4176_s0 }
 0x53d   :  { %v6843_v1 = vpop.permute.xlu1 %2798  ;;  %v2541_v46 = vpop.permute.xlu0 %2540 }
 0x53e   :  { %v2674_v19 = vadd.f32 %v2541_v46, %v2418_v32 }
 0x53f   :  { %3242 = vrot.lane.b32.xlu1 %v5555_v61, %s4176_s0  ;;  %3240 = vrot.lane.b32.xlu0 %v5560_v38, %s4176_s0 }
 0x541   :  { %v2797_v63 = vpop.permute.xlu0 %2796  ;;  %v1779_v5 = vpop.permute.xlu1 %1778 }
 0x542   :  { %v6849_v52 = vadd.f32 %v2797_v63, %v2674_v19  ;;  %v1909_v50 = vadd.f32 %v1779_v5, %v6607_v3 }
 0x543   :  { %3246 = vrot.lane.b32.xlu1 %v5615_v44, %s4176_s0  ;;  %3244 = vrot.lane.b32.xlu0 %v5620_v48, %s4176_s0 }
 0x545   :  { %v2035_v21 = vpop.permute.xlu1 %2034  ;;  %v1777_v13 = vpop.permute.xlu0 %1776 }
 0x546   :  { %v2165_v0 = vadd.f32 %v2035_v21, %v1909_v50  ;;  %v1908_v19 = vadd.f32 %v1777_v13, %v6620_v62 }
 0x547   :  { %3250 = vrot.lane.b32.xlu1 %v5675_v31, %s4176_s0  ;;  %3248 = vrot.lane.b32.xlu0 %v5680_v54, %s4176_s0 }
 0x549   :  { %v2291_v63 = vpop.permute.xlu1 %2290  ;;  %v2033_v46 = vpop.permute.xlu0 %2032 }
 0x54a   :  { %v2421_v32 = vadd.f32 %v2291_v63, %v2165_v0  ;;  %v2164_v44 = vadd.f32 %v2033_v46, %v1908_v19 }
 0x54b   :  { %3254 = vrot.lane.b32.xlu1 %v5735_v37, %s4176_s0  ;;  %3252 = vrot.lane.b32.xlu0 %v5740_v7, %s4176_s0 }
 0x54d   :  { %v2547_v5 = vpop.permute.xlu1 %2546  ;;  %v2289_v50 = vpop.permute.xlu0 %2288 }
 0x54e   :  { %v2677_v21 = vadd.f32 %v2547_v5, %v2421_v32  ;;  %v2420_v48 = vadd.f32 %v2289_v50, %v2164_v44 }
 0x54f   :  { %3258 = vrot.lane.b32.xlu1 %v5795_v36, %s4176_s0  ;;  %3256 = vrot.lane.b32.xlu0 %v5800_v57, %s4176_s0 }
 0x551   :  { %v2803_v13 = vpop.permute.xlu1 %2802  ;;  %v2545_v54 = vpop.permute.xlu0 %2544 }
 0x552   :  { %v6869_v0 = vadd.f32 %v2803_v13, %v2677_v21  ;;  %v2676_v19 = vadd.f32 %v2545_v54, %v2420_v48 }
 0x553   :  { %3262 = vrot.lane.b32.xlu1 %v5855_v45, %s4176_s0  ;;  %3260 = vrot.lane.b32.xlu0 %v5860_v8, %s4176_s0 }
 0x555   :  { %v2801_v63 = vpop.permute.xlu0 %2800  ;;  %v1783_v46 = vpop.permute.xlu1 %1782 }
 0x556   :  { %v6875_v44 = vadd.f32 %v2801_v63, %v2676_v19  ;;  %v1911_v32 = vadd.f32 %v1783_v46, %v6657_v16 }
 0x557   :  { %3266 = vrot.lane.b32.xlu1 %v5915_v25, %s4176_s0  ;;  %3264 = vrot.lane.b32.xlu0 %v5920_v39, %s4176_s0 }
 0x559   :  { %v2039_v5 = vpop.permute.xlu1 %2038  ;;  %v1781_v48 = vpop.permute.xlu0 %1780 }
 0x55a   :  { %v2167_v54 = vadd.f32 %v2039_v5, %v1911_v32  ;;  %v1910_v50 = vadd.f32 %v1781_v48, %v6670_v55 }
 0x55b   :  { %3270 = vrot.lane.b32.xlu1 %v5975_v15, %s4176_s0  ;;  %3268 = vrot.lane.b32.xlu0 %v5980_v6, %s4176_s0 }
 0x55d   :  { %v2295_v21 = vpop.permute.xlu1 %2294  ;;  %v2037_v13 = vpop.permute.xlu0 %2036 }
 0x55e   :  { %v2423_v19 = vadd.f32 %v2295_v21, %v2167_v54  ;;  %v2166_v63 = vadd.f32 %v2037_v13, %v1910_v50 }
 0x55f   :  { %3274 = vrot.lane.b32.xlu1 %v6035_v23, %s4176_s0  ;;  %3272 = vrot.lane.b32.xlu0 %v6040_v58, %s4176_s0 }
 0x561   :  { %v2551_v46 = vpop.permute.xlu1 %2550  ;;  %v2293_v32 = vpop.permute.xlu0 %2292 }
 0x562   :  { %v2679_v5 = vadd.f32 %v2551_v46, %v2423_v19  ;;  %v2422_v39 = vadd.f32 %v2293_v32, %v2166_v63  ;;  %v1907_v63 = vadd.f32 %v6818_v24, %v6555_v59  ;;  %v8044_v32 = vld [vmem:[#allocation31_spill] sm:$0xff] }
 0x563   :  { %3278 = vrot.lane.b32.xlu1 %v6095_v26, %s4176_s0  ;;  %3276 = vrot.lane.b32.xlu0 %v6100_v22, %s4176_s0 }
 0x564   :  { %v2163_v46 = vadd.f32 %v6824_v43, %v1907_v63  ;;  %v8048_v63 = vld [vmem:[#allocation23_spill] sm:$0xff] }
 0x565   :  { %v2807_v48 = vpop.permute.xlu1 %2806  ;;  %v2549_v6 = vpop.permute.xlu0 %2548 }
 0x566   :  { %v2935_v54 = vadd.f32 %v2807_v48, %v2679_v5  ;;  %v2678_v50 = vadd.f32 %v2549_v6, %v2422_v39  ;;  %v1850_v5 = vadd.f32 %v8044_v32, %v4902_v2  ;;  %v2419_v48 = vadd.f32 %v6830_v60, %v2163_v46  ;;  %v8049_v60 = vld [vmem:[#allocation4_spill] sm:$0xff] }
 0x567   :  { %3282 = vrot.lane.b32.xlu1 %v6155_v40, %s4176_s0  ;;  %3280 = vrot.lane.b32.xlu0 %v6160_v34, %s4176_s0 }
 0x568   :  { %v2675_v43 = vadd.f32 %v6836_v29, %v2419_v48  ;;  %v8053_v48 = vld [vmem:[#allocation11_spill] sm:$0xff] }
 0x569   :  { %v6899_v21 = vpop.permute.xlu1 %3042  ;;  %v2805_v13 = vpop.permute.xlu0 %2804 }
 0x56a   :  { %8041 = vst [vmem:[#allocation366_spill] sm:$0xff] %v6899_v21  ;;  %v2934_v19 = vadd.f32 %v2805_v13, %v2678_v50  ;;  %v8045_v50 = vld [vmem:[#allocation5_spill] sm:$0xff]  ;;  %v2931_v2 = vadd.f32 %v6843_v1, %v2675_v43  ;;  %v8056_v43 = vld [vmem:[#allocation8_spill] sm:$0xff] }
 0x56b   :  { %3286 = vrot.lane.b32.xlu1 %v6215_v51, %s4176_s0  ;;  %3284 = vrot.lane.b32.xlu0 %v6220_v27, %s4176_s0  ;;  %v1849_v24 = vadd.f32 %v8045_v50, %v4845_v35  ;;  %v8050_v35 = vld [vmem:[#allocation9_spill] sm:$0xff] }
 0x56c   :  { %v1848_v32 = vadd.f32 %v8050_v35, %v4856_v41  ;;  %v8055_v1 = vld [vmem:[#allocation25_spill] sm:$0xff] }
 0x56d   :  { %v6907_v39 = vpop.permute.xlu1 %3046  ;;  %v6909_v6 = vpop.permute.xlu0 %3044  ;;  %v2105_v46 = vadd.f32 %v8049_v60, %v1849_v24  ;;  %v8057_v41 = vld [vmem:[#allocation13_spill] sm:$0xff] }
 0x56e   :  { %8042 = vst [vmem:[#allocation367_spill] sm:$0xff] %v6907_v39  ;;  %8043 = vst [vmem:[#allocation368_spill] sm:$0xff] %v6909_v6  ;;  %v2106_v6 = vadd.f32 %v8048_v63, %v1850_v5  ;;  %v2104_v21 = vadd.f32 %v8053_v48, %v1848_v32  ;;  %v8054_v5 = vld [vmem:[#allocation275_spill] sm:$0xff]  ;;  %v8061_v48 = vld [vmem:[#allocation10_spill] sm:$0xff] }
 0x56f   :  { %3290 = vrot.lane.b32.xlu1 %v6279_v9, %s4176_s0  ;;  %3288 = vrot.lane.b32.xlu0 %v6284_v17, %s4176_s0  ;;  %v2361_v63 = vadd.f32 %v8056_v43, %v2105_v46  ;;  %v8066_v43 = vld [vmem:[#allocation12_spill] sm:$0xff] }
 0x570   :  { %v2362_v24 = vadd.f32 %v8055_v1, %v2106_v6  ;;  %v2360_v60 = vadd.f32 %v8057_v41, %v2104_v21  ;;  %v8063_v21 = vld [vmem:[#allocation19_spill] sm:$0xff]  ;;  %v8067_v41 = vld [vmem:[#allocation16_spill] sm:$0xff] }
 0x571   :  { %v6921_v13 = vpop.permute.xlu1 %3050  ;;  %v6923_v39 = vpop.permute.xlu0 %3048 }
 0x572   :  { %8046 = vst [vmem:[#allocation31_spill] sm:$0xff] %v6921_v13  ;;  %8047 = vst [vmem:[#allocation5_spill] sm:$0xff] %v6923_v39 }
 0x573   :  { %3294 = vrot.lane.b32.xlu1 %v6339_v20, %s4176_s0  ;;  %3292 = vrot.lane.b32.xlu0 %v6344_v4, %s4176_s0 }
 0x575   :  { %v3055_v50 = vpop.permute.xlu1 %3054  ;;  %v3053_v13 = vpop.permute.xlu0 %3052 }
 0x576   :  { %v6935_v39 = vadd.f32 %v3055_v50, %v2931_v2  ;;  %v6938_v29 = vadd.f32 %v3053_v13, %v6849_v52  ;;  %v8058_v50 = vld [vmem:[#allocation17_spill] sm:$0xff] }
 0x577   :  { %3298 = vrot.lane.b32.xlu1 %v6399_v14, %s4176_s0  ;;  %3296 = vrot.lane.b32.xlu0 %v8054_v5, %s4176_s0  ;;  %v1851_v52 = vadd.f32 %v8058_v50, %v4879_v56  ;;  %v8064_v56 = vld [vmem:[#allocation32_spill] sm:$0xff]  ;;  %v8069_v50 = vld [vmem:[#allocation22_spill] sm:$0xff] }
 0x578   :  { %8051 = vst [vmem:[#allocation23_spill] sm:$0xff] %v6935_v39  ;;  %8052 = vst [vmem:[#allocation4_spill] sm:$0xff] %v6938_v29  ;;  %v2617_v29 = vadd.f32 %v8061_v48, %v2361_v63  ;;  %v8062_v39 = vld [vmem:[#allocation15_spill] sm:$0xff]  ;;  %v1853_v46 = vadd.f32 %v8064_v56, %v4935_v10  ;;  %v8068_v63 = vld [vmem:[#allocation33_spill] sm:$0xff] }
 0x579   :  { %v3059_v35 = vpop.permute.xlu1 %3058  ;;  %v3057_v2 = vpop.permute.xlu0 %3056  ;;  %v2616_v5 = vadd.f32 %v8062_v39, %v2360_v60  ;;  %v2107_v6 = vadd.f32 %v8063_v21, %v1851_v52  ;;  %v1852_v39 = vadd.f32 %v8068_v63, %v4940_v11  ;;  %v8071_v10 = vld [vmem:[#allocation14_spill] sm:$0xff]  ;;  %v8079_v63 = vld [vmem:[#allocation47_spill] sm:$0xff] }
 0x57a   :  { %v6951_v13 = vadd.f32 %v3059_v35, %v6869_v0  ;;  %v6954_v32 = vadd.f32 %v3057_v2, %v6875_v44  ;;  %v8065_v0 = vld [vmem:[#allocation27_spill] sm:$0xff]  ;;  %v2873_v44 = vadd.f32 %v8066_v43, %v2617_v29  ;;  %v8073_v11 = vld [vmem:[#allocation18_spill] sm:$0xff] }
 0x57b   :  { %3302 = vrot.lane.b32.xlu1 %v6451_v49, %s4176_s0  ;;  %3300 = vrot.lane.b32.xlu0 %v6465_v53, %s4176_s0  ;;  %v2618_v1 = vadd.f32 %v8065_v0, %v2362_v24  ;;  %v2872_v35 = vadd.f32 %v8067_v41, %v2616_v5  ;;  %v2363_v48 = vadd.f32 %v8069_v50, %v2107_v6  ;;  %v8072_v24 = vld [vmem:[#allocation37_spill] sm:$0xff]  ;;  %v8074_v5 = vld [vmem:[#allocation24_spill] sm:$0xff]  ;;  %v8075_v0 = vld [vmem:[#allocation38_spill] sm:$0xff] }
 0x57c   :  { %8059 = vst [vmem:[#allocation9_spill] sm:$0xff] %v6951_v13  ;;  %8060 = vst [vmem:[#allocation11_spill] sm:$0xff] %v6954_v32  ;;  %v8070_v32 = vld [vmem:[#allocation36_spill] sm:$0xff]  ;;  %v3129_v21 = vadd.f32 %v8071_v10, %v2873_v44  ;;  %v2108_v56 = vadd.f32 %v8072_v24, %v1852_v39  ;;  %v8078_v44 = vld [vmem:[#allocation46_spill] sm:$0xff]  ;;  %v1854_v39 = vadd.f32 %v8079_v63, %v4988_v33 }
 0x57d   :  { %v3063_v60 = vpop.permute.xlu1 %3062  ;;  %v3061_v2 = vpop.permute.xlu0 %3060  ;;  %v2109_v13 = vadd.f32 %v8070_v32, %v1853_v46  ;;  %v3128_v29 = vadd.f32 %v8073_v11, %v2872_v35  ;;  %v2619_v6 = vadd.f32 %v8074_v5, %v2363_v48  ;;  %v1855_v41 = vadd.f32 %v8078_v44, %v4983_v30  ;;  %v8080_v50 = vld [vmem:[#allocation26_spill] sm:$0xff]  ;;  %v8081_v35 = vld [vmem:[#allocation40_spill] sm:$0xff]  ;;  %v8090_v44 = vld [vmem:[#allocation53_spill] sm:$0xff] }
 0x57e   :  { %v6972_v53 = vadd.f32 %v3063_v60, %v2935_v54  ;;  %v6974_v52 = vadd.f32 %v3061_v2, %v2934_v19  ;;  %v8076_v54 = vld [vmem:[#allocation29_spill] sm:$0xff]  ;;  %v8077_v19 = vld [vmem:[#allocation39_spill] sm:$0xff]  ;;  %v8085_v30 = vld [vmem:[#allocation28_spill] sm:$0xff] }
 0x57f   :  { %3306 = vrot.lane.b32.xlu1 %v6503_v18, %s4176_s0  ;;  %3304 = vrot.lane.b32.xlu0 %v6517_v42, %s4176_s0  ;;  %v2365_v32 = vadd.f32 %v8075_v0, %v2109_v13  ;;  %v2874_v46 = vadd.f32 %v8076_v54, %v2618_v1  ;;  %v2364_v43 = vadd.f32 %v8077_v19, %v2108_v56  ;;  %v8082_v13 = vld [vmem:[#allocation41_spill] sm:$0xff]  ;;  %v8083_v1 = vld [vmem:[#allocation50_spill] sm:$0xff]  ;;  %v8084_v56 = vld [vmem:[#allocation51_spill] sm:$0xff] }
 0x580   :  { %v2875_v10 = vadd.f32 %v8080_v50, %v2619_v6  ;;  %v2111_v0 = vadd.f32 %v8083_v1, %v1855_v41  ;;  %v2110_v54 = vadd.f32 %v8084_v56, %v1854_v39  ;;  %v8087_v6 = vld [vmem:[#allocation42_spill] sm:$0xff]  ;;  %v8096_v56 = vld [vmem:[#allocation55_spill] sm:$0xff] }
 0x581   :  { %v3195_v60 = vpop.permute.xlu1 %3194  ;;  %v3193_v2 = vpop.permute.xlu0 %3192  ;;  %v2621_v24 = vadd.f32 %v8081_v35, %v2365_v32  ;;  %v2620_v5 = vadd.f32 %v8082_v13, %v2364_v43  ;;  %v8089_v43 = vld [vmem:[#allocation52_spill] sm:$0xff]  ;;  %v8094_v35 = vld [vmem:[#allocation61_spill] sm:$0xff]  ;;  %v8095_v1 = vld [vmem:[#allocation54_spill] sm:$0xff] }
 0x582   :  { %v3385_v48 = vadd.f32 %v3195_v60, %v3129_v21  ;;  %v3384_v11 = vadd.f32 %v3193_v2, %v3128_v29  ;;  %v3131_v33 = vadd.f32 %v8085_v30, %v2875_v10  ;;  %v8086_v21 = vld [vmem:[#allocation30_spill] sm:$0xff]  ;;  %v2366_v41 = vadd.f32 %v8090_v44, %v2110_v54  ;;  %v8092_v2 = vld [vmem:[#allocation60_spill] sm:$0xff]  ;;  %v8093_v10 = vld [vmem:[#allocation3_spill] sm:$0xff] }
 0x583   :  { %3310 = vrot.lane.b32.xlu1 %v6555_v59, %s4176_s0  ;;  %3308 = vrot.lane.b32.xlu0 %v6569_v12, %s4176_s0  ;;  %v3130_v29 = vadd.f32 %v8086_v21, %v2874_v46  ;;  %v2877_v32 = vadd.f32 %v8087_v6, %v2621_v24  ;;  %v8088_v59 = vld [vmem:[#allocation43_spill] sm:$0xff]  ;;  %v2367_v12 = vadd.f32 %v8089_v43, %v2111_v0  ;;  %v8091_v60 = vld [vmem:[#allocation2_spill] sm:$0xff]  ;;  %v8098_v54 = vld [vmem:[#allocation45_spill] sm:$0xff] }
 0x584   :  { %3450 = vst.msk [vmem:[%s7638_s4 + $0x8] sm:$0xff] %vm3448_vm1, %v3385_v48  ;;  %3449 = vst.msk [vmem:[%s7638_s4] sm:$0xff] %vm3448_vm1, %v3384_v11  ;;  %v2876_v19 = vadd.f32 %v8088_v59, %v2620_v5  ;;  %v1857_v50 = vadd.f32 %v8092_v2, %v8091_v60  ;;  %v1856_v48 = vadd.f32 %v8094_v35, %v8093_v10  ;;  %v8097_v5 = vld [vmem:[#allocation44_spill] sm:$0xff]  ;;  %v8100_v59 = vld [vmem:[#allocation65_spill] sm:$0xff] }
 0x585   :  { %v3199_v63 = vpop.permute.xlu1 %3198  ;;  %v3197_v39 = vpop.permute.xlu0 %3196  ;;  %v2623_v46 = vadd.f32 %v8095_v1, %v2367_v12  ;;  %v2622_v24 = vadd.f32 %v8096_v56, %v2366_v41  ;;  %v3133_v0 = vadd.f32 %v8097_v5, %v2877_v32  ;;  %v8099_v21 = vld [vmem:[#allocation64_spill] sm:$0xff]  ;;  %v8103_v32 = vld [vmem:[#allocation6_spill] sm:$0xff]  ;;  %v8105_v44 = vld [vmem:[#allocation7_spill] sm:$0xff] }
 0x586   :  { %v3387_v13 = vadd.f32 %v3199_v63, %v3131_v33  ;;  %v3386_v11 = vadd.f32 %v3197_v39, %v3130_v29  ;;  %v3132_v30 = vadd.f32 %v8098_v54, %v2876_v19  ;;  %v2113_v6 = vadd.f32 %v8099_v21, %v1857_v50  ;;  %v8102_v33 = vld [vmem:[#allocation57_spill] sm:$0xff]  ;;  %v8104_v19 = vld [vmem:[#allocation74_spill] sm:$0xff]  ;;  %v8106_v41 = vld [vmem:[#allocation75_spill] sm:$0xff] }
 0x587   :  { %3314 = vrot.lane.b32.xlu1 %v6607_v3, %s4176_s0  ;;  %3312 = vrot.lane.b32.xlu0 %v6620_v62, %s4176_s0  ;;  %v2112_v43 = vadd.f32 %v8100_v59, %v1856_v48  ;;  %v8101_v3 = vld [vmem:[#allocation56_spill] sm:$0xff]  ;;  %v2878_v29 = vadd.f32 %v8102_v33, %v2622_v24  ;;  %v1859_v12 = vadd.f32 %v8104_v19, %v8103_v32  ;;  %v8107_v2 = vld [vmem:[#allocation66_spill] sm:$0xff]  ;;  %v8108_v10 = vld [vmem:[#allocation67_spill] sm:$0xff] }
 0x588   :  { %3452 = vst.msk [vmem:[%s7638_s4 + $0x18] sm:$0xff] %vm3448_vm1, %v3387_v13  ;;  %3451 = vst.msk [vmem:[%s7638_s4 + $0x10] sm:$0xff] %vm3448_vm1, %v3386_v11  ;;  %v2879_v62 = vadd.f32 %v8101_v3, %v2623_v46  ;;  %v1858_v63 = vadd.f32 %v8106_v41, %v8105_v44  ;;  %v2369_v50 = vadd.f32 %v8107_v2, %v2113_v6  ;;  %v8109_v1 = vld [vmem:[#allocation78_spill] sm:$0xff]  ;;  %v8110_v56 = vld [vmem:[#allocation79_spill] sm:$0xff] }
 0x589   :  { %v3203_v39 = vpop.permute.xlu1 %3202  ;;  %v3201_v60 = vpop.permute.xlu0 %3200  ;;  %v2368_v35 = vadd.f32 %v8108_v10, %v2112_v43  ;;  %v2115_v11 = vadd.f32 %v8109_v1, %v1859_v12  ;;  %v8111_v24 = vld [vmem:[#allocation58_spill] sm:$0xff]  ;;  %v8112_v54 = vld [vmem:[#allocation59_spill] sm:$0xff]  ;;  %v8113_v59 = vld [vmem:[#allocation68_spill] sm:$0xff] }
 0x58a   :  { %v3389_v48 = vadd.f32 %v3203_v39, %v3133_v0  ;;  %v3388_v13 = vadd.f32 %v3201_v60, %v3132_v30  ;;  %v2114_v46 = vadd.f32 %v8110_v56, %v1858_v63  ;;  %v3135_v5 = vadd.f32 %v8111_v24, %v2879_v62  ;;  %v8114_v3 = vld [vmem:[#allocation69_spill] sm:$0xff]  ;;  %v8117_v62 = vld [vmem:[#allocation20_spill] sm:$0xff]  ;;  %v8121_v63 = vld [vmem:[#allocation70_spill] sm:$0xff] }
 0x58b   :  { %3318 = vrot.lane.b32.xlu1 %v6657_v16, %s4176_s0  ;;  %3316 = vrot.lane.b32.xlu0 %v6670_v55, %s4176_s0  ;;  %v3134_v21 = vadd.f32 %v8112_v54, %v2878_v29  ;;  %v2625_v6 = vadd.f32 %v8113_v59, %v2369_v50  ;;  %v2624_v43 = vadd.f32 %v8114_v3, %v2368_v35  ;;  %v8115_v16 = vld [vmem:[#allocation80_spill] sm:$0xff]  ;;  %v8116_v0 = vld [vmem:[#allocation81_spill] sm:$0xff]  ;;  %v8122_v60 = vld [vmem:[#allocation71_spill] sm:$0xff] }
 0x58c   :  { %3454 = vst.msk [vmem:[%s7638_s4 + $0x28] sm:$0xff] %vm3448_vm1, %v3389_v48  ;;  %3453 = vst.msk [vmem:[%s7638_s4 + $0x20] sm:$0xff] %vm3448_vm1, %v3388_v13  ;;  %v2371_v55 = vadd.f32 %v8115_v16, %v2115_v11  ;;  %v2370_v30 = vadd.f32 %v8116_v0, %v2114_v46  ;;  %v8118_v33 = vld [vmem:[#allocation88_spill] sm:$0xff]  ;;  %v8119_v32 = vld [vmem:[#allocation21_spill] sm:$0xff] }
 0x58d   :  { %v1861_v29 = vadd.f32 %v8118_v33, %v8117_v62  ;;  %v8120_v19 = vld [vmem:[#allocation89_spill] sm:$0xff]  ;;  %v3207_v44 = vpop.permute.xlu1 %3206  ;;  %v3205_v41 = vpop.permute.xlu0 %3204  ;;  %v2881_v39 = vadd.f32 %v8121_v63, %v2625_v6  ;;  %v2880_v2 = vadd.f32 %v8122_v60, %v2624_v43  ;;  %v8123_v35 = vld [vmem:[#allocation82_spill] sm:$0xff]  ;;  %v8124_v13 = vld [vmem:[#allocation83_spill] sm:$0xff] }
 0x58e   :  { %v1860_v12 = vadd.f32 %v8120_v19, %v8119_v32  ;;  %v3391_v50 = vadd.f32 %v3207_v44, %v3135_v5  ;;  %v3390_v10 = vadd.f32 %v3205_v41, %v3134_v21  ;;  %v2627_v48 = vadd.f32 %v8123_v35, %v2371_v55  ;;  %v8125_v11 = vld [vmem:[#allocation90_spill] sm:$0xff]  ;;  %v8126_v46 = vld [vmem:[#allocation91_spill] sm:$0xff]  ;;  %v8127_v54 = vld [vmem:[#allocation72_spill] sm:$0xff] }
 0x58f   :  { %v2626_v1 = vadd.f32 %v8124_v13, %v2370_v30  ;;  %v2117_v56 = vadd.f32 %v8125_v11, %v1861_v29  ;;  %v3137_v59 = vadd.f32 %v8127_v54, %v2881_v39  ;;  %v8128_v3 = vld [vmem:[#allocation73_spill] sm:$0xff]  ;;  %v8129_v5 = vld [vmem:[#allocation84_spill] sm:$0xff]  ;;  %v8133_v32 = vld [vmem:[#allocation34_spill] sm:$0xff] }
 0x590   :  { %v2116_v24 = vadd.f32 %v8126_v46, %v1860_v12  ;;  %v3136_v16 = vadd.f32 %v8128_v3, %v2880_v2  ;;  %3456 = vst.msk [vmem:[%s7638_s4 + $0x38] sm:$0xff] %vm3448_vm1, %v3391_v50  ;;  %3455 = vst.msk [vmem:[%s7638_s4 + $0x30] sm:$0xff] %vm3448_vm1, %v3390_v10  ;;  %v2883_v21 = vadd.f32 %v8129_v5, %v2627_v48  ;;  %v8130_v6 = vld [vmem:[#allocation85_spill] sm:$0xff]  ;;  %v8131_v55 = vld [vmem:[#allocation92_spill] sm:$0xff] }
 0x591   :  { %v2882_v43 = vadd.f32 %v8130_v6, %v2626_v1  ;;  %v2373_v0 = vadd.f32 %v8131_v55, %v2117_v56  ;;  %v8132_v30 = vld [vmem:[#allocation93_spill] sm:$0xff]  ;;  %v3211_v33 = vpop.permute.xlu1 %3210  ;;  %v3209_v29 = vpop.permute.xlu0 %3208  ;;  %v8134_v19 = vld [vmem:[#allocation100_spill] sm:$0xff]  ;;  %v8135_v44 = vld [vmem:[#allocation35_spill] sm:$0xff] }
 0x592   :  { %v2372_v62 = vadd.f32 %v8132_v30, %v2116_v24  ;;  %v1863_v12 = vadd.f32 %v8134_v19, %v8133_v32  ;;  %v8136_v41 = vld [vmem:[#allocation101_spill] sm:$0xff]  ;;  %v3393_v39 = vadd.f32 %v3211_v33, %v3137_v59  ;;  %v3392_v60 = vadd.f32 %v3209_v29, %v3136_v16  ;;  %v8137_v2 = vld [vmem:[#allocation94_spill] sm:$0xff]  ;;  %v8138_v10 = vld [vmem:[#allocation95_spill] sm:$0xff] }
 0x593   :  { %v1862_v63 = vadd.f32 %v8136_v41, %v8135_v44  ;;  %v2629_v50 = vadd.f32 %v8137_v2, %v2373_v0  ;;  %v8139_v48 = vld [vmem:[#allocation86_spill] sm:$0xff]  ;;  %v8140_v1 = vld [vmem:[#allocation87_spill] sm:$0xff]  ;;  %v8143_v59 = vld [vmem:[#allocation96_spill] sm:$0xff] }
 0x594   :  { %v2628_v35 = vadd.f32 %v8138_v10, %v2372_v62  ;;  %v3139_v13 = vadd.f32 %v8139_v48, %v2883_v21  ;;  %v3138_v11 = vadd.f32 %v8140_v1, %v2882_v43  ;;  %v8141_v56 = vld [vmem:[#allocation102_spill] sm:$0xff]  ;;  %v8142_v24 = vld [vmem:[#allocation103_spill] sm:$0xff]  ;;  %3458 = vst.msk [vmem:[%s7638_s4 + $0x48] sm:$0xff] %vm3448_vm1, %v3393_v39  ;;  %3457 = vst.msk [vmem:[%s7638_s4 + $0x40] sm:$0xff] %vm3448_vm1, %v3392_v60 }
 0x595   :  { %v2119_v46 = vadd.f32 %v8141_v56, %v1863_v12  ;;  %v2118_v54 = vadd.f32 %v8142_v24, %v1862_v63  ;;  %v2885_v3 = vadd.f32 %v8143_v59, %v2629_v50  ;;  %v8144_v16 = vld [vmem:[#allocation97_spill] sm:$0xff]  ;;  %v8145_v21 = vld [vmem:[#allocation48_spill] sm:$0xff]  ;;  %v3215_v62 = vpop.permute.xlu1 %3214  ;;  %v3213_v33 = vpop.permute.xlu0 %3212  ;;  %v8153_v50 = vld [vmem:[#allocation98_spill] sm:$0xff] }
 0x596   :  { %v2884_v5 = vadd.f32 %v8144_v16, %v2628_v35  ;;  %v8146_v6 = vld [vmem:[#allocation112_spill] sm:$0xff]  ;;  %v8147_v55 = vld [vmem:[#allocation49_spill] sm:$0xff]  ;;  %v3395_v44 = vadd.f32 %v3215_v62, %v3139_v13  ;;  %v3394_v41 = vadd.f32 %v3213_v33, %v3138_v11  ;;  %v8154_v35 = vld [vmem:[#allocation99_spill] sm:$0xff] }
 0x597   :  { %v1865_v43 = vadd.f32 %v8146_v6, %v8145_v21  ;;  %v8148_v0 = vld [vmem:[#allocation113_spill] sm:$0xff]  ;;  %v8149_v29 = vld [vmem:[#allocation104_spill] sm:$0xff]  ;;  %v3141_v10 = vadd.f32 %v8153_v50, %v2885_v3  ;;  %v8155_v1 = vld [vmem:[#allocation106_spill] sm:$0xff] }
 0x598   :  { %v1864_v30 = vadd.f32 %v8148_v0, %v8147_v55  ;;  %v2375_v32 = vadd.f32 %v8149_v29, %v2119_v46  ;;  %v8150_v19 = vld [vmem:[#allocation105_spill] sm:$0xff]  ;;  %v8151_v63 = vld [vmem:[#allocation116_spill] sm:$0xff]  ;;  %v3140_v48 = vadd.f32 %v8154_v35, %v2884_v5  ;;  %v8156_v24 = vld [vmem:[#allocation107_spill] sm:$0xff]  ;;  %3460 = vst.msk [vmem:[%s7638_s4 + $0x58] sm:$0xff] %vm3448_vm1, %v3395_v44 }
 0x599   :  { %v2374_v12 = vadd.f32 %v8150_v19, %v2118_v54  ;;  %v2121_v39 = vadd.f32 %v8151_v63, %v1865_v43  ;;  %v8152_v60 = vld [vmem:[#allocation117_spill] sm:$0xff]  ;;  %3459 = vst.msk [vmem:[%s7638_s4 + $0x50] sm:$0xff] %vm3448_vm1, %v3394_v41  ;;  %v8157_v13 = vld [vmem:[#allocation118_spill] sm:$0xff]  ;;  %v8158_v46 = vld [vmem:[#allocation119_spill] sm:$0xff]  ;;  %v3219_v55 = vpop.permute.xlu1 %3218  ;;  %v3217_v0 = vpop.permute.xlu0 %3216 }
 0x59a   :  { %v2120_v2 = vadd.f32 %v8152_v60, %v1864_v30  ;;  %v2631_v56 = vadd.f32 %v8155_v1, %v2375_v32  ;;  %v8159_v3 = vld [vmem:[#allocation62_spill] sm:$0xff]  ;;  %v8161_v21 = vld [vmem:[#allocation63_spill] sm:$0xff]  ;;  %v8163_v30 = vld [vmem:[#allocation108_spill] sm:$0xff]  ;;  %v3397_v32 = vadd.f32 %v3219_v55, %v3141_v10  ;;  %v3396_v19 = vadd.f32 %v3217_v0, %v3140_v48 }
 0x59b   :  { %v2630_v59 = vadd.f32 %v8156_v24, %v2374_v12  ;;  %v2377_v11 = vadd.f32 %v8157_v13, %v2121_v39  ;;  %v8160_v16 = vld [vmem:[#allocation126_spill] sm:$0xff]  ;;  %v8162_v6 = vld [vmem:[#allocation127_spill] sm:$0xff]  ;;  %v8164_v33 = vld [vmem:[#allocation109_spill] sm:$0xff] }
 0x59c   :  { %v2376_v54 = vadd.f32 %v8158_v46, %v2120_v2  ;;  %v1867_v5 = vadd.f32 %v8160_v16, %v8159_v3  ;;  %v1866_v43 = vadd.f32 %v8162_v6, %v8161_v21  ;;  %v2887_v62 = vadd.f32 %v8163_v30, %v2631_v56  ;;  %v8165_v12 = vld [vmem:[#allocation120_spill] sm:$0xff]  ;;  %v8166_v41 = vld [vmem:[#allocation121_spill] sm:$0xff]  ;;  %v8168_v2 = vld [vmem:[#allocation130_spill] sm:$0xff]  ;;  %3462 = vst.msk [vmem:[%s7638_s4 + $0x68] sm:$0xff] %vm3448_vm1, %v3397_v32 }
 0x59d   :  { %v2886_v29 = vadd.f32 %v8164_v33, %v2630_v59  ;;  %v2633_v44 = vadd.f32 %v8165_v12, %v2377_v11  ;;  %v8167_v39 = vld [vmem:[#allocation129_spill] sm:$0xff]  ;;  %v8169_v35 = vld [vmem:[#allocation110_spill] sm:$0xff]  ;;  %v8170_v24 = vld [vmem:[#allocation111_spill] sm:$0xff]  ;;  %3461 = vst.msk [vmem:[%s7638_s4 + $0x60] sm:$0xff] %vm3448_vm1, %v3396_v19  ;;  %v3223_v16 = vpop.permute.xlu1 %3222 }
 0x59e   :  { %v2632_v63 = vadd.f32 %v8166_v41, %v2376_v54  ;;  %v2123_v60 = vadd.f32 %v8167_v39, %v1867_v5  ;;  %v2122_v50 = vadd.f32 %v8168_v2, %v1866_v43  ;;  %v3143_v1 = vadd.f32 %v8169_v35, %v2887_v62  ;;  %v8171_v10 = vld [vmem:[#allocation122_spill] sm:$0xff]  ;;  %v8172_v56 = vld [vmem:[#allocation123_spill] sm:$0xff]  ;;  %v8174_v54 = vld [vmem:[#allocation132_spill] sm:$0xff]  ;;  %v3221_v5 = vpop.permute.xlu0 %3220 }
 0x59f   :  { %v3142_v13 = vadd.f32 %v8170_v24, %v2886_v29  ;;  %v2889_v48 = vadd.f32 %v8171_v10, %v2633_v44  ;;  %v8173_v11 = vld [vmem:[#allocation131_spill] sm:$0xff]  ;;  %v8175_v21 = vld [vmem:[#allocation76_spill] sm:$0xff]  ;;  %v8177_v55 = vld [vmem:[#allocation77_spill] sm:$0xff] }
 0x5a0   :  { %v2888_v59 = vadd.f32 %v8172_v56, %v2632_v63  ;;  %v2379_v46 = vadd.f32 %v8173_v11, %v2123_v60  ;;  %v2378_v3 = vadd.f32 %v8174_v54, %v2122_v50  ;;  %v8176_v6 = vld [vmem:[#allocation139_spill] sm:$0xff]  ;;  %v8178_v0 = vld [vmem:[#allocation140_spill] sm:$0xff]  ;;  %v3399_v62 = vadd.f32 %v3223_v16, %v3143_v1  ;;  %v8179_v29 = vld [vmem:[#allocation133_spill] sm:$0xff] }
 0x5a1   :  { %v1869_v43 = vadd.f32 %v8176_v6, %v8175_v21  ;;  %v1868_v30 = vadd.f32 %v8178_v0, %v8177_v55  ;;  %v3398_v33 = vadd.f32 %v3221_v5, %v3142_v13  ;;  %v8180_v19 = vld [vmem:[#allocation134_spill] sm:$0xff]  ;;  %v8181_v44 = vld [vmem:[#allocation124_spill] sm:$0xff]  ;;  %v8182_v63 = vld [vmem:[#allocation125_spill] sm:$0xff] }
 0x5a2   :  { %v2635_v32 = vadd.f32 %v8179_v29, %v2379_v46  ;;  %v2634_v12 = vadd.f32 %v8180_v19, %v2378_v3  ;;  %v3145_v41 = vadd.f32 %v8181_v44, %v2889_v48  ;;  %v3144_v39 = vadd.f32 %v8182_v63, %v2888_v59  ;;  %v8183_v60 = vld [vmem:[#allocation141_spill] sm:$0xff]  ;;  %v8184_v50 = vld [vmem:[#allocation142_spill] sm:$0xff]  ;;  %3464 = vst.msk [vmem:[%s7638_s4 + $0x78] sm:$0xff] %vm3448_vm1, %v3399_v62  ;;  %v8185_v1 = vld [vmem:[#allocation135_spill] sm:$0xff]  ;;  %v3227_v46 = vpop.permute.xlu1 %3226  ;;  %v3225_v54 = vpop.permute.xlu0 %3224 }
 0x5a3   :  { %v2125_v2 = vadd.f32 %v8183_v60, %v1869_v43  ;;  %v2124_v35 = vadd.f32 %v8184_v50, %v1868_v30  ;;  %3463 = vst.msk [vmem:[%s7638_s4 + $0x70] sm:$0xff] %vm3448_vm1, %v3398_v33  ;;  %v8186_v13 = vld [vmem:[#allocation136_spill] sm:$0xff]  ;;  %v8187_v48 = vld [vmem:[#allocation151_spill] sm:$0xff]  ;;  %v8191_v55 = vld [vmem:[#allocation153_spill] sm:$0xff] }
 0x5a4   :  { %v2891_v24 = vadd.f32 %v8185_v1, %v2635_v32  ;;  %v2890_v10 = vadd.f32 %v8186_v13, %v2634_v12  ;;  %v1871_v56 = vadd.f32 %v8187_v48, %v5495_v47  ;;  %v8188_v59 = vld [vmem:[#allocation152_spill] sm:$0xff]  ;;  %v8189_v3 = vld [vmem:[#allocation143_spill] sm:$0xff]  ;;  %v3401_v6 = vadd.f32 %v3227_v46, %v3145_v41  ;;  %v8192_v30 = vld [vmem:[#allocation154_spill] sm:$0xff] }
 0x5a5   :  { %v1870_v11 = vadd.f32 %v8188_v59, %v5500_v28  ;;  %v2381_v16 = vadd.f32 %v8189_v3, %v2125_v2  ;;  %v8190_v5 = vld [vmem:[#allocation144_spill] sm:$0xff]  ;;  %v3400_v43 = vadd.f32 %v3225_v54, %v3144_v39  ;;  %v8193_v33 = vld [vmem:[#allocation137_spill] sm:$0xff]  ;;  %v8194_v32 = vld [vmem:[#allocation138_spill] sm:$0xff] }
 0x5a6   :  { %v2380_v21 = vadd.f32 %v8190_v5, %v2124_v35  ;;  %v2127_v0 = vadd.f32 %v8191_v55, %v1871_v56  ;;  %v3147_v29 = vadd.f32 %v8193_v33, %v2891_v24  ;;  %v3146_v19 = vadd.f32 %v8194_v32, %v2890_v10  ;;  %v8195_v47 = vld [vmem:[#allocation145_spill] sm:$0xff]  ;;  %v8196_v44 = vld [vmem:[#allocation146_spill] sm:$0xff]  ;;  %3466 = vst.msk [vmem:[%s7638_s4 + $0x88] sm:$0xff] %vm3448_vm1, %v3401_v6  ;;  %v8197_v41 = vld [vmem:[#allocation155_spill] sm:$0xff]  ;;  %v3231_v24 = vpop.permute.xlu1 %3230  ;;  %v3229_v13 = vpop.permute.xlu0 %3228 }
 0x5a7   :  { %v2126_v62 = vadd.f32 %v8192_v30, %v1870_v11  ;;  %v2637_v12 = vadd.f32 %v8195_v47, %v2381_v16  ;;  %3465 = vst.msk [vmem:[%s7638_s4 + $0x80] sm:$0xff] %vm3448_vm1, %v3400_v43  ;;  %v8198_v39 = vld [vmem:[#allocation156_spill] sm:$0xff]  ;;  %v8199_v2 = vld [vmem:[#allocation163_spill] sm:$0xff]  ;;  %v8203_v54 = vld [vmem:[#allocation157_spill] sm:$0xff] }
 0x5a8   :  { %v2636_v28 = vadd.f32 %v8196_v44, %v2380_v21  ;;  %v2383_v63 = vadd.f32 %v8197_v41, %v2127_v0  ;;  %v1873_v50 = vadd.f32 %v8199_v2, %v5555_v61  ;;  %v8200_v35 = vld [vmem:[#allocation164_spill] sm:$0xff]  ;;  %v8201_v10 = vld [vmem:[#allocation147_spill] sm:$0xff]  ;;  %v3403_v11 = vadd.f32 %v3231_v24, %v3147_v29  ;;  %v8204_v16 = vld [vmem:[#allocation158_spill] sm:$0xff] }
 0x5a9   :  { %v2382_v60 = vadd.f32 %v8198_v39, %v2126_v62  ;;  %v1872_v1 = vadd.f32 %v8200_v35, %v5560_v38  ;;  %v2893_v48 = vadd.f32 %v8201_v10, %v2637_v12  ;;  %v8202_v56 = vld [vmem:[#allocation148_spill] sm:$0xff]  ;;  %v3402_v46 = vadd.f32 %v3229_v13, %v3146_v19  ;;  %v8205_v21 = vld [vmem:[#allocation165_spill] sm:$0xff]  ;;  %v8206_v43 = vld [vmem:[#allocation166_spill] sm:$0xff] }
 0x5aa   :  { %v2892_v59 = vadd.f32 %v8202_v56, %v2636_v28  ;;  %v2639_v3 = vadd.f32 %v8203_v54, %v2383_v63  ;;  %v2129_v6 = vadd.f32 %v8205_v21, %v1873_v50  ;;  %v8207_v61 = vld [vmem:[#allocation149_spill] sm:$0xff]  ;;  %v8208_v30 = vld [vmem:[#allocation150_spill] sm:$0xff]  ;;  %3468 = vst.msk [vmem:[%s7638_s4 + $0x98] sm:$0xff] %vm3448_vm1, %v3403_v11  ;;  %v8209_v62 = vld [vmem:[#allocation159_spill] sm:$0xff]  ;;  %v3235_v28 = vpop.permute.xlu1 %3234  ;;  %v3233_v41 = vpop.permute.xlu0 %3232 }
 0x5ab   :  { %v2638_v5 = vadd.f32 %v8204_v16, %v2382_v60  ;;  %v2128_v55 = vadd.f32 %v8206_v43, %v1872_v1  ;;  %v3149_v0 = vadd.f32 %v8207_v61, %v2893_v48  ;;  %3467 = vst.msk [vmem:[%s7638_s4 + $0x90] sm:$0xff] %vm3448_vm1, %v3402_v46  ;;  %v8210_v29 = vld [vmem:[#allocation160_spill] sm:$0xff]  ;;  %v8211_v19 = vld [vmem:[#allocation167_spill] sm:$0xff]  ;;  %v8213_v63 = vld [vmem:[#allocation114_spill] sm:$0xff] }
 0x5ac   :  { %v3148_v38 = vadd.f32 %v8208_v30, %v2892_v59  ;;  %v2895_v33 = vadd.f32 %v8209_v62, %v2639_v3  ;;  %v2385_v47 = vadd.f32 %v8211_v19, %v2129_v6  ;;  %v8212_v12 = vld [vmem:[#allocation168_spill] sm:$0xff]  ;;  %v8214_v39 = vld [vmem:[#allocation175_spill] sm:$0xff]  ;;  %v8217_v13 = vld [vmem:[#allocation169_spill] sm:$0xff] }
 0x5ad   :  { %v2894_v32 = vadd.f32 %v8210_v29, %v2638_v5  ;;  %v2384_v44 = vadd.f32 %v8212_v12, %v2128_v55  ;;  %v1875_v60 = vadd.f32 %v8214_v39, %v8213_v63  ;;  %v8215_v2 = vld [vmem:[#allocation115_spill] sm:$0xff]  ;;  %v8216_v50 = vld [vmem:[#allocation176_spill] sm:$0xff]  ;;  %v3405_v1 = vadd.f32 %v3235_v28, %v3149_v0  ;;  %v8218_v48 = vld [vmem:[#allocation170_spill] sm:$0xff] }
 0x5ae   :  { %v1874_v35 = vadd.f32 %v8216_v50, %v8215_v2  ;;  %v3404_v24 = vadd.f32 %v3233_v41, %v3148_v38  ;;  %v2641_v10 = vadd.f32 %v8217_v13, %v2385_v47  ;;  %v8219_v59 = vld [vmem:[#allocation161_spill] sm:$0xff]  ;;  %v8220_v46 = vld [vmem:[#allocation162_spill] sm:$0xff]  ;;  %v8222_v5 = vld [vmem:[#allocation179_spill] sm:$0xff]  ;;  %v3239_v29 = vpop.permute.xlu1 %3238 }
 0x5af   :  { %v2640_v56 = vadd.f32 %v8218_v48, %v2384_v44  ;;  %v3151_v11 = vadd.f32 %v8219_v59, %v2895_v33  ;;  %v3150_v54 = vadd.f32 %v8220_v46, %v2894_v32  ;;  %v8221_v3 = vld [vmem:[#allocation178_spill] sm:$0xff]  ;;  %3470 = vst.msk [vmem:[%s7638_s4 + $0xa8] sm:$0xff] %vm3448_vm1, %v3405_v1  ;;  %v8223_v6 = vld [vmem:[#allocation171_spill] sm:$0xff]  ;;  %v8224_v55 = vld [vmem:[#allocation172_spill] sm:$0xff]  ;;  %v3237_v32 = vpop.permute.xlu0 %3236 }
 0x5b0   :  { %v2131_v16 = vadd.f32 %v8221_v3, %v1875_v60  ;;  %v2130_v21 = vadd.f32 %v8222_v5, %v1874_v35  ;;  %3469 = vst.msk [vmem:[%s7638_s4 + $0xa0] sm:$0xff] %vm3448_vm1, %v3404_v24  ;;  %v2897_v43 = vadd.f32 %v8223_v6, %v2641_v10  ;;  %v8225_v0 = vld [vmem:[#allocation188_spill] sm:$0xff]  ;;  %v8227_v62 = vld [vmem:[#allocation189_spill] sm:$0xff]  ;;  %v8230_v63 = vld [vmem:[#allocation191_spill] sm:$0xff] }
 0x5b1   :  { %v2896_v61 = vadd.f32 %v8224_v55, %v2640_v56  ;;  %v1877_v30 = vadd.f32 %v8225_v0, %v5675_v31  ;;  %v8226_v38 = vld [vmem:[#allocation128_spill] sm:$0xff]  ;;  %v8229_v12 = vld [vmem:[#allocation181_spill] sm:$0xff]  ;;  %v3407_v28 = vadd.f32 %v3239_v29, %v3151_v11  ;;  %v3406_v41 = vadd.f32 %v3237_v32, %v3150_v54  ;;  %v8233_v1 = vld [vmem:[#allocation174_spill] sm:$0xff] }
 0x5b2   :  { %v1876_v33 = vadd.f32 %v8227_v62, %v8226_v38  ;;  %v8228_v19 = vld [vmem:[#allocation180_spill] sm:$0xff]  ;;  %v2386_v44 = vadd.f32 %v8229_v12, %v2130_v21  ;;  %v8232_v50 = vld [vmem:[#allocation173_spill] sm:$0xff]  ;;  %v8234_v31 = vld [vmem:[#allocation182_spill] sm:$0xff]  ;;  %v3243_v21 = vpop.permute.xlu1 %3242 }
 0x5b3   :  { %v2387_v47 = vadd.f32 %v8228_v19, %v2131_v16  ;;  %v2133_v39 = vadd.f32 %v8230_v63, %v1877_v30  ;;  %v8231_v60 = vld [vmem:[#allocation192_spill] sm:$0xff]  ;;  %v3153_v35 = vadd.f32 %v8232_v50, %v2897_v43  ;;  %v3152_v24 = vadd.f32 %v8233_v1, %v2896_v61  ;;  %v8235_v10 = vld [vmem:[#allocation183_spill] sm:$0xff]  ;;  %3472 = vst.msk [vmem:[%s7638_s4 + $0xb8] sm:$0xff] %vm3448_vm1, %v3407_v28  ;;  %v8236_v56 = vld [vmem:[#allocation193_spill] sm:$0xff]  ;;  %v3241_v6 = vpop.permute.xlu0 %3240 }
 0x5b4   :  { %v2132_v2 = vadd.f32 %v8231_v60, %v1876_v33  ;;  %v2642_v48 = vadd.f32 %v8235_v10, %v2386_v44  ;;  %3471 = vst.msk [vmem:[%s7638_s4 + $0xb0] sm:$0xff] %vm3448_vm1, %v3406_v41  ;;  %v8237_v11 = vld [vmem:[#allocation194_spill] sm:$0xff]  ;;  %v8238_v54 = vld [vmem:[#allocation201_spill] sm:$0xff]  ;;  %v8240_v43 = vld [vmem:[#allocation184_spill] sm:$0xff] }
 0x5b5   :  { %v2643_v13 = vadd.f32 %v8234_v31, %v2387_v47  ;;  %v2389_v59 = vadd.f32 %v8236_v56, %v2133_v39  ;;  %v1879_v3 = vadd.f32 %v8238_v54, %v5735_v37  ;;  %v8239_v16 = vld [vmem:[#allocation202_spill] sm:$0xff]  ;;  %v8241_v61 = vld [vmem:[#allocation185_spill] sm:$0xff]  ;;  %v3409_v30 = vadd.f32 %v3243_v21, %v3153_v35  ;;  %v8242_v62 = vld [vmem:[#allocation195_spill] sm:$0xff] }
 0x5b6   :  { %v2388_v46 = vadd.f32 %v8237_v11, %v2132_v2  ;;  %v1878_v5 = vadd.f32 %v8239_v16, %v5740_v7  ;;  %v2898_v0 = vadd.f32 %v8241_v61, %v2642_v48  ;;  %v3408_v38 = vadd.f32 %v3241_v6, %v3152_v24  ;;  %v8243_v29 = vld [vmem:[#allocation196_spill] sm:$0xff]  ;;  %v8244_v19 = vld [vmem:[#allocation203_spill] sm:$0xff]  ;;  %v8246_v37 = vld [vmem:[#allocation186_spill] sm:$0xff]  ;;  %v3247_v31 = vpop.permute.xlu1 %3246 }
 0x5b7   :  { %v2899_v55 = vadd.f32 %v8240_v43, %v2643_v13  ;;  %v2645_v33 = vadd.f32 %v8242_v62, %v2389_v59  ;;  %v2135_v47 = vadd.f32 %v8244_v19, %v1879_v3  ;;  %v8245_v12 = vld [vmem:[#allocation204_spill] sm:$0xff]  ;;  %v8247_v41 = vld [vmem:[#allocation187_spill] sm:$0xff]  ;;  %3474 = vst.msk [vmem:[%s7638_s4 + $0xc8] sm:$0xff] %vm3448_vm1, %v3409_v30  ;;  %v8248_v63 = vld [vmem:[#allocation197_spill] sm:$0xff]  ;;  %v3245_v13 = vpop.permute.xlu0 %3244 }
 0x5b8   :  { %v2644_v32 = vadd.f32 %v8243_v29, %v2388_v46  ;;  %v2134_v44 = vadd.f32 %v8245_v12, %v1878_v5  ;;  %v3154_v7 = vadd.f32 %v8247_v41, %v2898_v0  ;;  %3473 = vst.msk [vmem:[%s7638_s4 + $0xc0] sm:$0xff] %vm3448_vm1, %v3408_v38  ;;  %v8249_v60 = vld [vmem:[#allocation198_spill] sm:$0xff]  ;;  %v8250_v50 = vld [vmem:[#allocation205_spill] sm:$0xff]  ;;  %v8254_v54 = vld [vmem:[#allocation207_spill] sm:$0xff] }
 0x5b9   :  { %v3155_v28 = vadd.f32 %v8246_v37, %v2899_v55  ;;  %v2901_v39 = vadd.f32 %v8248_v63, %v2645_v33  ;;  %v2391_v35 = vadd.f32 %v8250_v50, %v2135_v47  ;;  %v8251_v1 = vld [vmem:[#allocation206_spill] sm:$0xff]  ;;  %v8252_v10 = vld [vmem:[#allocation213_spill] sm:$0xff]  ;;  %v8255_v16 = vld [vmem:[#allocation208_spill] sm:$0xff] }
 0x5ba   :  { %v2900_v2 = vadd.f32 %v8249_v60, %v2644_v32  ;;  %v2390_v24 = vadd.f32 %v8251_v1, %v2134_v44  ;;  %v1881_v48 = vadd.f32 %v8252_v10, %v5795_v36  ;;  %v8253_v56 = vld [vmem:[#allocation214_spill] sm:$0xff]  ;;  %v3410_v46 = vadd.f32 %v3245_v13, %v3154_v7  ;;  %v8256_v21 = vld [vmem:[#allocation199_spill] sm:$0xff]  ;;  %v8257_v43 = vld [vmem:[#allocation200_spill] sm:$0xff]  ;;  %v3251_v12 = vpop.permute.xlu1 %3250 }
 0x5bb   :  { %v1880_v59 = vadd.f32 %v8253_v56, %v5800_v57  ;;  %v3411_v11 = vadd.f32 %v3247_v31, %v3155_v28  ;;  %v2647_v3 = vadd.f32 %v8254_v54, %v2391_v35  ;;  %v3157_v6 = vadd.f32 %v8256_v21, %v2901_v39  ;;  %v8258_v61 = vld [vmem:[#allocation215_spill] sm:$0xff]  ;;  %v8259_v30 = vld [vmem:[#allocation216_spill] sm:$0xff]  ;;  %v8260_v57 = vld [vmem:[#allocation209_spill] sm:$0xff]  ;;  %v3249_v44 = vpop.permute.xlu0 %3248 }
 0x5bc   :  { %v2646_v5 = vadd.f32 %v8255_v16, %v2390_v24  ;;  %v3156_v55 = vadd.f32 %v8257_v43, %v2900_v2  ;;  %v2137_v0 = vadd.f32 %v8258_v61, %v1881_v48  ;;  %3475 = vst.msk [vmem:[%s7638_s4 + $0xd0] sm:$0xff] %vm3448_vm1, %v3410_v46  ;;  %v8261_v62 = vld [vmem:[#allocation210_spill] sm:$0xff]  ;;  %v8262_v29 = vld [vmem:[#allocation225_spill] sm:$0xff]  ;;  %v8266_v60 = vld [vmem:[#allocation227_spill] sm:$0xff] }
 0x5bd   :  { %v2136_v38 = vadd.f32 %v8259_v30, %v1880_v59  ;;  %3476 = vst.msk [vmem:[%s7638_s4 + $0xd8] sm:$0xff] %vm3448_vm1, %v3411_v11  ;;  %v2903_v36 = vadd.f32 %v8260_v57, %v2647_v3  ;;  %v1883_v32 = vadd.f32 %v8262_v29, %v5855_v45  ;;  %v8263_v19 = vld [vmem:[#allocation226_spill] sm:$0xff]  ;;  %v8264_v37 = vld [vmem:[#allocation217_spill] sm:$0xff]  ;;  %v3413_v63 = vadd.f32 %v3251_v12, %v3157_v6  ;;  %v8267_v50 = vld [vmem:[#allocation228_spill] sm:$0xff] }
 0x5be   :  { %v2902_v33 = vadd.f32 %v8261_v62, %v2646_v5  ;;  %v1882_v47 = vadd.f32 %v8263_v19, %v5860_v8  ;;  %v2393_v28 = vadd.f32 %v8264_v37, %v2137_v0  ;;  %v8265_v41 = vld [vmem:[#allocation218_spill] sm:$0xff]  ;;  %v3412_v39 = vadd.f32 %v3249_v44, %v3156_v55  ;;  %v8268_v1 = vld [vmem:[#allocation211_spill] sm:$0xff]  ;;  %v8269_v31 = vld [vmem:[#allocation212_spill] sm:$0xff]  ;;  %v3255_v6 = vpop.permute.xlu1 %3254 }
 0x5bf   :  { %v2392_v7 = vadd.f32 %v8265_v41, %v2136_v38  ;;  %v2139_v2 = vadd.f32 %v8266_v60, %v1883_v32  ;;  %v3159_v24 = vadd.f32 %v8268_v1, %v2903_v36  ;;  %v8270_v45 = vld [vmem:[#allocation219_spill] sm:$0xff]  ;;  %v8271_v48 = vld [vmem:[#allocation220_spill] sm:$0xff]  ;;  %3478 = vst.msk [vmem:[%s7638_s4 + $0xe8] sm:$0xff] %vm3448_vm1, %v3413_v63  ;;  %v8272_v56 = vld [vmem:[#allocation229_spill] sm:$0xff]  ;;  %v3253_v43 = vpop.permute.xlu0 %3252 }
 0x5c0   :  { %v2138_v35 = vadd.f32 %v8267_v50, %v1882_v47  ;;  %v3158_v13 = vadd.f32 %v8269_v31, %v2902_v33  ;;  %v2649_v10 = vadd.f32 %v8270_v45, %v2393_v28  ;;  %3477 = vst.msk [vmem:[%s7638_s4 + $0xe0] sm:$0xff] %vm3448_vm1, %v3412_v39  ;;  %v8273_v11 = vld [vmem:[#allocation230_spill] sm:$0xff]  ;;  %v8274_v54 = vld [vmem:[#allocation237_spill] sm:$0xff]  ;;  %v8279_v36 = vld [vmem:[#allocation231_spill] sm:$0xff] }
 0x5c1   :  { %v2648_v8 = vadd.f32 %v8271_v48, %v2392_v7  ;;  %v2395_v59 = vadd.f32 %v8272_v56, %v2139_v2  ;;  %v1885_v3 = vadd.f32 %v8274_v54, %v5915_v25  ;;  %v8275_v16 = vld [vmem:[#allocation177_spill] sm:$0xff]  ;;  %v8276_v5 = vld [vmem:[#allocation238_spill] sm:$0xff]  ;;  %v3415_v38 = vadd.f32 %v3255_v6, %v3159_v24  ;;  %v8280_v33 = vld [vmem:[#allocation232_spill] sm:$0xff] }
 0x5c2   :  { %v2394_v46 = vadd.f32 %v8273_v11, %v2138_v35  ;;  %v1884_v21 = vadd.f32 %v8276_v5, %v8275_v16  ;;  %v8277_v55 = vld [vmem:[#allocation221_spill] sm:$0xff]  ;;  %v8278_v0 = vld [vmem:[#allocation222_spill] sm:$0xff]  ;;  %v3414_v57 = vadd.f32 %v3253_v43, %v3158_v13  ;;  %v8281_v32 = vld [vmem:[#allocation239_spill] sm:$0xff]  ;;  %v3259_v1 = vpop.permute.xlu1 %3258 }
 0x5c3   :  { %v2905_v61 = vadd.f32 %v8277_v55, %v2649_v10  ;;  %v2904_v30 = vadd.f32 %v8278_v0, %v2648_v8  ;;  %v2651_v62 = vadd.f32 %v8279_v36, %v2395_v59  ;;  %v2141_v19 = vadd.f32 %v8281_v32, %v1885_v3  ;;  %v8282_v47 = vld [vmem:[#allocation240_spill] sm:$0xff]  ;;  %v8283_v25 = vld [vmem:[#allocation223_spill] sm:$0xff]  ;;  %3480 = vst.msk [vmem:[%s7638_s4 + $0xf8] sm:$0xff] %vm3448_vm1, %v3415_v38  ;;  %v8285_v41 = vld [vmem:[#allocation233_spill] sm:$0xff]  ;;  %v3257_v24 = vpop.permute.xlu0 %3256 }
 0x5c4   :  { %v2650_v29 = vadd.f32 %v8280_v33, %v2394_v46  ;;  %v2140_v12 = vadd.f32 %v8282_v47, %v1884_v21  ;;  %v8284_v37 = vld [vmem:[#allocation224_spill] sm:$0xff]  ;;  %3479 = vst.msk [vmem:[%s7638_s4 + $0xf0] sm:$0xff] %vm3448_vm1, %v3414_v57  ;;  %v8286_v63 = vld [vmem:[#allocation234_spill] sm:$0xff]  ;;  %v8287_v60 = vld [vmem:[#allocation241_spill] sm:$0xff] }
 0x5c5   :  { %v3161_v44 = vadd.f32 %v8283_v25, %v2905_v61  ;;  %v3160_v28 = vadd.f32 %v8284_v37, %v2904_v30  ;;  %v2907_v7 = vadd.f32 %v8285_v41, %v2651_v62  ;;  %v2397_v2 = vadd.f32 %v8287_v60, %v2141_v19  ;;  %v8288_v50 = vld [vmem:[#allocation242_spill] sm:$0xff]  ;;  %v8289_v31 = vld [vmem:[#allocation249_spill] sm:$0xff]  ;;  %v8292_v59 = vld [vmem:[#allocation243_spill] sm:$0xff] }
 0x5c6   :  { %v2906_v39 = vadd.f32 %v8286_v63, %v2650_v29  ;;  %v2396_v35 = vadd.f32 %v8288_v50, %v2140_v12  ;;  %v1887_v13 = vadd.f32 %v8289_v31, %v5975_v15  ;;  %v8290_v45 = vld [vmem:[#allocation190_spill] sm:$0xff]  ;;  %v8293_v46 = vld [vmem:[#allocation244_spill] sm:$0xff]  ;;  %v8294_v3 = vld [vmem:[#allocation235_spill] sm:$0xff]  ;;  %v3263_v29 = vpop.permute.xlu1 %3262 }
 0x5c7   :  { %v8291_v10 = vld [vmem:[#allocation250_spill] sm:$0xff]  ;;  %v3417_v8 = vadd.f32 %v3259_v1, %v3161_v44  ;;  %v3416_v56 = vadd.f32 %v3257_v24, %v3160_v28  ;;  %v2653_v11 = vadd.f32 %v8292_v59, %v2397_v2  ;;  %v3163_v16 = vadd.f32 %v8294_v3, %v2907_v7  ;;  %v8295_v5 = vld [vmem:[#allocation236_spill] sm:$0xff]  ;;  %v8296_v6 = vld [vmem:[#allocation251_spill] sm:$0xff]  ;;  %v3261_v32 = vpop.permute.xlu0 %3260 }
 0x5c8   :  { %v1886_v48 = vadd.f32 %v8291_v10, %v8290_v45  ;;  %v2652_v54 = vadd.f32 %v8293_v46, %v2396_v35  ;;  %v3162_v21 = vadd.f32 %v8295_v5, %v2906_v39  ;;  %v2143_v43 = vadd.f32 %v8296_v6, %v1887_v13  ;;  %v8297_v55 = vld [vmem:[#allocation252_spill] sm:$0xff]  ;;  %v8298_v15 = vld [vmem:[#allocation245_spill] sm:$0xff]  ;;  %v8299_v30 = vld [vmem:[#allocation246_spill] sm:$0xff] }
 0x5c9   :  { %3482 = vst.msk [vmem:[%s7638_s4 + $0x108] sm:$0xff] %vm3448_vm1, %v3417_v8  ;;  %3481 = vst.msk [vmem:[%s7638_s4 + $0x100] sm:$0xff] %vm3448_vm1, %v3416_v56  ;;  %v2909_v0 = vadd.f32 %v8298_v15, %v2653_v11  ;;  %v8300_v57 = vld [vmem:[#allocation261_spill] sm:$0xff]  ;;  %v8301_v62 = vld [vmem:[#allocation262_spill] sm:$0xff]  ;;  %v3419_v44 = vadd.f32 %v3263_v29, %v3163_v16 }
 0x5ca   :  { %v2142_v61 = vadd.f32 %v8297_v55, %v1886_v48  ;;  %v2908_v38 = vadd.f32 %v8299_v30, %v2652_v54  ;;  %v1889_v36 = vadd.f32 %v8300_v57, %v6035_v23  ;;  %v1888_v33 = vadd.f32 %v8301_v62, %v6040_v58  ;;  %v8302_v19 = vld [vmem:[#allocation253_spill] sm:$0xff]  ;;  %v8303_v12 = vld [vmem:[#allocation254_spill] sm:$0xff]  ;;  %v8304_v28 = vld [vmem:[#allocation263_spill] sm:$0xff]  ;;  %v3267_v59 = vpop.permute.xlu1 %3266 }
 0x5cb   :  { %v2399_v47 = vadd.f32 %v8302_v19, %v2143_v43  ;;  %v3418_v37 = vadd.f32 %v3261_v32, %v3162_v21  ;;  %v8305_v7 = vld [vmem:[#allocation264_spill] sm:$0xff]  ;;  %v8306_v39 = vld [vmem:[#allocation247_spill] sm:$0xff]  ;;  %3484 = vst.msk [vmem:[%s7638_s4 + $0x118] sm:$0xff] %vm3448_vm1, %v3419_v44  ;;  %v8310_v24 = vld [vmem:[#allocation265_spill] sm:$0xff]  ;;  %v3265_v11 = vpop.permute.xlu0 %3264 }
 0x5cc   :  { %v2398_v25 = vadd.f32 %v8303_v12, %v2142_v61  ;;  %v2145_v41 = vadd.f32 %v8304_v28, %v1889_v36  ;;  %v2144_v63 = vadd.f32 %v8305_v7, %v1888_v33  ;;  %v3165_v60 = vadd.f32 %v8306_v39, %v2909_v0  ;;  %v8307_v2 = vld [vmem:[#allocation248_spill] sm:$0xff]  ;;  %v8308_v23 = vld [vmem:[#allocation255_spill] sm:$0xff]  ;;  %v8311_v13 = vld [vmem:[#allocation266_spill] sm:$0xff] }
 0x5cd   :  { %v3164_v50 = vadd.f32 %v8307_v2, %v2908_v38  ;;  %v2655_v35 = vadd.f32 %v8308_v23, %v2399_v47  ;;  %v8309_v1 = vld [vmem:[#allocation256_spill] sm:$0xff]  ;;  %3483 = vst.msk [vmem:[%s7638_s4 + $0x110] sm:$0xff] %vm3448_vm1, %v3418_v37  ;;  %v8312_v10 = vld [vmem:[#allocation273_spill] sm:$0xff]  ;;  %v8313_v8 = vld [vmem:[#allocation274_spill] sm:$0xff] }
 0x5ce   :  { %v2654_v58 = vadd.f32 %v8309_v1, %v2398_v25  ;;  %v2401_v31 = vadd.f32 %v8310_v24, %v2145_v41  ;;  %v2400_v45 = vadd.f32 %v8311_v13, %v2144_v63  ;;  %v1891_v48 = vadd.f32 %v8312_v10, %v6095_v26  ;;  %v8314_v46 = vld [vmem:[#allocation257_spill] sm:$0xff]  ;;  %v8315_v3 = vld [vmem:[#allocation258_spill] sm:$0xff]  ;;  %v8316_v6 = vld [vmem:[#allocation267_spill] sm:$0xff]  ;;  %v3271_v44 = vpop.permute.xlu1 %3270 }
 0x5cf   :  { %v1890_v56 = vadd.f32 %v8313_v8, %v6100_v22  ;;  %v2911_v54 = vadd.f32 %v8314_v46, %v2655_v35  ;;  %v3421_v5 = vadd.f32 %v3267_v59, %v3165_v60  ;;  %v3420_v21 = vadd.f32 %v3265_v11, %v3164_v50  ;;  %v8317_v55 = vld [vmem:[#allocation268_spill] sm:$0xff]  ;;  %v8319_v30 = vld [vmem:[#allocation277_spill] sm:$0xff]  ;;  %v8320_v26 = vld [vmem:[#allocation259_spill] sm:$0xff]  ;;  %v3269_v37 = vpop.permute.xlu0 %3268 }
 0x5d0   :  { %v2910_v16 = vadd.f32 %v8315_v3, %v2654_v58  ;;  %v2657_v43 = vadd.f32 %v8316_v6, %v2401_v31  ;;  %v2656_v61 = vadd.f32 %v8317_v55, %v2400_v45  ;;  %v8318_v15 = vld [vmem:[#allocation276_spill] sm:$0xff]  ;;  %v8322_v62 = vld [vmem:[#allocation269_spill] sm:$0xff]  ;;  %v8323_v29 = vld [vmem:[#allocation270_spill] sm:$0xff] }
 0x5d1   :  { %v2147_v0 = vadd.f32 %v8318_v15, %v1891_v48  ;;  %v2146_v38 = vadd.f32 %v8319_v30, %v1890_v56  ;;  %v3167_v57 = vadd.f32 %v8320_v26, %v2911_v54  ;;  %v8321_v36 = vld [vmem:[#allocation260_spill] sm:$0xff]  ;;  %3486 = vst.msk [vmem:[%s7638_s4 + $0x128] sm:$0xff] %vm3448_vm1, %v3421_v5  ;;  %3485 = vst.msk [vmem:[%s7638_s4 + $0x120] sm:$0xff] %vm3448_vm1, %v3420_v21  ;;  %v8324_v19 = vld [vmem:[#allocation278_spill] sm:$0xff] }
 0x5d2   :  { %v3166_v22 = vadd.f32 %v8321_v36, %v2910_v16  ;;  %v2913_v33 = vadd.f32 %v8322_v62, %v2657_v43  ;;  %v2912_v32 = vadd.f32 %v8323_v29, %v2656_v61  ;;  %v8325_v12 = vld [vmem:[#allocation279_spill] sm:$0xff]  ;;  %v8326_v28 = vld [vmem:[#allocation286_spill] sm:$0xff]  ;;  %v8328_v2 = vld [vmem:[#allocation280_spill] sm:$0xff]  ;;  %v3275_v3 = vpop.permute.xlu1 %3274 }
 0x5d3   :  { %v2403_v47 = vadd.f32 %v8324_v19, %v2147_v0  ;;  %v2402_v25 = vadd.f32 %v8325_v12, %v2146_v38  ;;  %v1893_v41 = vadd.f32 %v8326_v28, %v6155_v40  ;;  %v8327_v7 = vld [vmem:[#allocation287_spill] sm:$0xff]  ;;  %v3423_v39 = vadd.f32 %v3271_v44, %v3167_v57  ;;  %v8329_v23 = vld [vmem:[#allocation281_spill] sm:$0xff]  ;;  %v8331_v24 = vld [vmem:[#allocation272_spill] sm:$0xff]  ;;  %v3273_v16 = vpop.permute.xlu0 %3272 }
 0x5d4   :  { %v1892_v63 = vadd.f32 %v8327_v7, %v6160_v34  ;;  %v3422_v60 = vadd.f32 %v3269_v37, %v3166_v22  ;;  %v8330_v1 = vld [vmem:[#allocation271_spill] sm:$0xff]  ;;  %v3168_v31 = vadd.f32 %v8331_v24, %v2912_v32  ;;  %v8332_v13 = vld [vmem:[#allocation289_spill] sm:$0xff]  ;;  %v8333_v10 = vld [vmem:[#allocation290_spill] sm:$0xff] }
 0x5d5   :  { %v2659_v50 = vadd.f32 %v8328_v2, %v2403_v47  ;;  %v2658_v35 = vadd.f32 %v8329_v23, %v2402_v25  ;;  %v3169_v58 = vadd.f32 %v8330_v1, %v2913_v33  ;;  %v2149_v45 = vadd.f32 %v8332_v13, %v1893_v41  ;;  %3488 = vst.msk [vmem:[%s7638_s4 + $0x138] sm:$0xff] %vm3448_vm1, %v3423_v39  ;;  %v8334_v34 = vld [vmem:[#allocation282_spill] sm:$0xff]  ;;  %v8335_v8 = vld [vmem:[#allocation283_spill] sm:$0xff]  ;;  %v8337_v46 = vld [vmem:[#allocation300_spill] sm:$0xff] }
 0x5d6   :  { %v2148_v48 = vadd.f32 %v8333_v10, %v1892_v63  ;;  %3487 = vst.msk [vmem:[%s7638_s4 + $0x130] sm:$0xff] %vm3448_vm1, %v3422_v60  ;;  %v8336_v59 = vld [vmem:[#allocation299_spill] sm:$0xff]  ;;  %v1894_v54 = vadd.f32 %v8337_v46, %v6220_v27  ;;  %v8339_v6 = vld [vmem:[#allocation292_spill] sm:$0xff]  ;;  %v3424_v61 = vadd.f32 %v3273_v16, %v3168_v31  ;;  %v8340_v15 = vld [vmem:[#allocation301_spill] sm:$0xff]  ;;  %v3279_v28 = vpop.permute.xlu1 %3278 }
 0x5d7   :  { %v2915_v40 = vadd.f32 %v8334_v34, %v2659_v50  ;;  %v2914_v56 = vadd.f32 %v8335_v8, %v2658_v35  ;;  %v1895_v11 = vadd.f32 %v8336_v59, %v6215_v51  ;;  %v8338_v5 = vld [vmem:[#allocation291_spill] sm:$0xff]  ;;  %v3425_v55 = vadd.f32 %v3275_v3, %v3169_v58  ;;  %v8341_v30 = vld [vmem:[#allocation302_spill] sm:$0xff]  ;;  %v8342_v26 = vld [vmem:[#allocation284_spill] sm:$0xff]  ;;  %v3277_v41 = vpop.permute.xlu0 %3276 }
 0x5d8   :  { %v2405_v21 = vadd.f32 %v8338_v5, %v2149_v45  ;;  %v2404_v43 = vadd.f32 %v8339_v6, %v2148_v48  ;;  %v2150_v38 = vadd.f32 %v8341_v30, %v1894_v54  ;;  %v8343_v36 = vld [vmem:[#allocation285_spill] sm:$0xff]  ;;  %v8345_v33 = vld [vmem:[#allocation294_spill] sm:$0xff]  ;;  %3489 = vst.msk [vmem:[%s7638_s4 + $0x140] sm:$0xff] %vm3448_vm1, %v3424_v61  ;;  %v8346_v29 = vld [vmem:[#allocation303_spill] sm:$0xff] }
 0x5d9   :  { %v2151_v0 = vadd.f32 %v8340_v15, %v1895_v11  ;;  %v3171_v57 = vadd.f32 %v8342_v26, %v2915_v40  ;;  %v3170_v22 = vadd.f32 %v8343_v36, %v2914_v56  ;;  %v8344_v51 = vld [vmem:[#allocation293_spill] sm:$0xff]  ;;  %3490 = vst.msk [vmem:[%s7638_s4 + $0x148] sm:$0xff] %vm3448_vm1, %v3425_v55  ;;  %v8347_v19 = vld [vmem:[#allocation304_spill] sm:$0xff]  ;;  %v8348_v12 = vld [vmem:[#allocation311_spill] sm:$0xff] }
 0x5da   :  { %v2661_v62 = vadd.f32 %v8344_v51, %v2405_v21  ;;  %v2660_v27 = vadd.f32 %v8345_v33, %v2404_v43  ;;  %v2406_v47 = vadd.f32 %v8347_v19, %v2150_v38  ;;  %v1897_v25 = vadd.f32 %v8348_v12, %v6279_v9  ;;  %v8349_v44 = vld [vmem:[#allocation312_spill] sm:$0xff]  ;;  %v8350_v7 = vld [vmem:[#allocation295_spill] sm:$0xff]  ;;  %v8352_v23 = vld [vmem:[#allocation305_spill] sm:$0xff]  ;;  %v3283_v3 = vpop.permute.xlu1 %3282 }
 0x5db   :  { %v2407_v32 = vadd.f32 %v8346_v29, %v2151_v0  ;;  %v1896_v37 = vadd.f32 %v8349_v44, %v6284_v17  ;;  %v8351_v39 = vld [vmem:[#allocation296_spill] sm:$0xff]  ;;  %v3427_v2 = vadd.f32 %v3279_v28, %v3171_v57  ;;  %v3426_v50 = vadd.f32 %v3277_v41, %v3170_v22  ;;  %v8353_v1 = vld [vmem:[#allocation306_spill] sm:$0xff]  ;;  %v8354_v24 = vld [vmem:[#allocation313_spill] sm:$0xff]  ;;  %v3281_v16 = vpop.permute.xlu0 %3280 }
 0x5dc   :  { %v2917_v63 = vadd.f32 %v8350_v7, %v2661_v62  ;;  %v2916_v60 = vadd.f32 %v8351_v39, %v2660_v27  ;;  %v2662_v58 = vadd.f32 %v8353_v1, %v2406_v47  ;;  %v2153_v31 = vadd.f32 %v8354_v24, %v1897_v25  ;;  %v8355_v13 = vld [vmem:[#allocation314_spill] sm:$0xff]  ;;  %v8356_v9 = vld [vmem:[#allocation297_spill] sm:$0xff]  ;;  %v8358_v34 = vld [vmem:[#allocation307_spill] sm:$0xff] }
 0x5dd   :  { %v2663_v35 = vadd.f32 %v8352_v23, %v2407_v32  ;;  %v2152_v45 = vadd.f32 %v8355_v13, %v1896_v37  ;;  %v8357_v48 = vld [vmem:[#allocation298_spill] sm:$0xff]  ;;  %3492 = vst.msk [vmem:[%s7638_s4 + $0x158] sm:$0xff] %vm3448_vm1, %v3427_v2  ;;  %3491 = vst.msk [vmem:[%s7638_s4 + $0x150] sm:$0xff] %vm3448_vm1, %v3426_v50  ;;  %v8359_v8 = vld [vmem:[#allocation308_spill] sm:$0xff] }
 0x5de   :  { %v3173_v10 = vadd.f32 %v8356_v9, %v2917_v63  ;;  %v3172_v17 = vadd.f32 %v8357_v48, %v2916_v60  ;;  %v2918_v56 = vadd.f32 %v8359_v8, %v2662_v58  ;;  %v8360_v59 = vld [vmem:[#allocation315_spill] sm:$0xff]  ;;  %v8361_v46 = vld [vmem:[#allocation316_spill] sm:$0xff]  ;;  %v8364_v15 = vld [vmem:[#allocation317_spill] sm:$0xff]  ;;  %v3287_v37 = vpop.permute.xlu1 %3286 }
 0x5df   :  { %v2919_v40 = vadd.f32 %v8358_v34, %v2663_v35  ;;  %v2409_v11 = vadd.f32 %v8360_v59, %v2153_v31  ;;  %v2408_v54 = vadd.f32 %v8361_v46, %v2152_v45  ;;  %v8362_v5 = vld [vmem:[#allocation323_spill] sm:$0xff]  ;;  %v8363_v6 = vld [vmem:[#allocation324_spill] sm:$0xff]  ;;  %v8365_v30 = vld [vmem:[#allocation318_spill] sm:$0xff]  ;;  %v3285_v28 = vpop.permute.xlu0 %3284 }
 0x5e0   :  { %v1899_v21 = vadd.f32 %v8362_v5, %v6339_v20  ;;  %v1898_v43 = vadd.f32 %v8363_v6, %v6344_v4  ;;  %v3429_v55 = vadd.f32 %v3283_v3, %v3173_v10  ;;  %v3428_v61 = vadd.f32 %v3281_v16, %v3172_v17  ;;  %v8366_v26 = vld [vmem:[#allocation309_spill] sm:$0xff]  ;;  %v8367_v36 = vld [vmem:[#allocation310_spill] sm:$0xff]  ;;  %v8370_v4 = vld [vmem:[#allocation319_spill] sm:$0xff] }
 0x5e1   :  { %v2665_v0 = vadd.f32 %v8364_v15, %v2409_v11  ;;  %v2664_v38 = vadd.f32 %v8365_v30, %v2408_v54  ;;  %v3175_v57 = vadd.f32 %v8366_v26, %v2919_v40  ;;  %v3174_v22 = vadd.f32 %v8367_v36, %v2918_v56  ;;  %v8368_v51 = vld [vmem:[#allocation325_spill] sm:$0xff]  ;;  %v8369_v33 = vld [vmem:[#allocation326_spill] sm:$0xff]  ;;  %v8371_v29 = vld [vmem:[#allocation320_spill] sm:$0xff] }
 0x5e2   :  { %v2155_v62 = vadd.f32 %v8368_v51, %v1899_v21  ;;  %v2154_v27 = vadd.f32 %v8369_v33, %v1898_v43  ;;  %3494 = vst.msk [vmem:[%s7638_s4 + $0x168] sm:$0xff] %vm3448_vm1, %v3429_v55  ;;  %3493 = vst.msk [vmem:[%s7638_s4 + $0x160] sm:$0xff] %vm3448_vm1, %v3428_v61  ;;  %v8372_v19 = vld [vmem:[#allocation335_spill] sm:$0xff]  ;;  %v8374_v25 = vld [vmem:[#allocation336_spill] sm:$0xff]  ;;  %v3291_v54 = vpop.permute.xlu1 %3290 }
 0x5e3   :  { %v2921_v20 = vadd.f32 %v8370_v4, %v2665_v0  ;;  %v2920_v32 = vadd.f32 %v8371_v29, %v2664_v38  ;;  %v1901_v47 = vadd.f32 %v8372_v19, %v6399_v14  ;;  %v8373_v12 = vld [vmem:[#allocation275_spill] sm:$0xff]  ;;  %v8376_v63 = vld [vmem:[#allocation328_spill] sm:$0xff]  ;;  %v3431_v60 = vadd.f32 %v3287_v37, %v3175_v57  ;;  %v8377_v50 = vld [vmem:[#allocation337_spill] sm:$0xff]  ;;  %v3289_v3 = vpop.permute.xlu0 %3288 }
 0x5e4   :  { %v1900_v44 = vadd.f32 %v8374_v25, %v8373_v12  ;;  %v8375_v41 = vld [vmem:[#allocation327_spill] sm:$0xff]  ;;  %v2410_v39 = vadd.f32 %v8376_v63, %v2154_v27  ;;  %v3430_v2 = vadd.f32 %v3285_v28, %v3174_v22  ;;  %v8378_v35 = vld [vmem:[#allocation338_spill] sm:$0xff]  ;;  %v8379_v58 = vld [vmem:[#allocation321_spill] sm:$0xff] }
 0x5e5   :  { %v2411_v7 = vadd.f32 %v8375_v41, %v2155_v62  ;;  %v2157_v23 = vadd.f32 %v8377_v50, %v1901_v47  ;;  %v3177_v24 = vadd.f32 %v8379_v58, %v2921_v20  ;;  %v8380_v31 = vld [vmem:[#allocation322_spill] sm:$0xff]  ;;  %v8381_v14 = vld [vmem:[#allocation329_spill] sm:$0xff]  ;;  %3496 = vst.msk [vmem:[%s7638_s4 + $0x178] sm:$0xff] %vm3448_vm1, %v3431_v60  ;;  %v8383_v48 = vld [vmem:[#allocation339_spill] sm:$0xff] }
 0x5e6   :  { %v2156_v1 = vadd.f32 %v8378_v35, %v1900_v44  ;;  %v3176_v13 = vadd.f32 %v8380_v31, %v2920_v32  ;;  %v8382_v9 = vld [vmem:[#allocation330_spill] sm:$0xff]  ;;  %3495 = vst.msk [vmem:[%s7638_s4 + $0x170] sm:$0xff] %vm3448_vm1, %v3430_v2  ;;  %v8384_v34 = vld [vmem:[#allocation340_spill] sm:$0xff]  ;;  %v8388_v16 = vld [vmem:[#allocation331_spill] sm:$0xff]  ;;  %v3295_v12 = vpop.permute.xlu1 %3294 }
 0x5e7   :  { %v2667_v45 = vadd.f32 %v8381_v14, %v2411_v7  ;;  %v2666_v10 = vadd.f32 %v8382_v9, %v2410_v39  ;;  %v2413_v17 = vadd.f32 %v8383_v48, %v2157_v23  ;;  %v8385_v8 = vld [vmem:[#allocation346_spill] sm:$0xff]  ;;  %v8386_v59 = vld [vmem:[#allocation288_spill] sm:$0xff]  ;;  %v3433_v43 = vadd.f32 %v3291_v54, %v3177_v24  ;;  %v8390_v61 = vld [vmem:[#allocation341_spill] sm:$0xff]  ;;  %v3293_v25 = vpop.permute.xlu0 %3292 }
 0x5e8   :  { %v2412_v40 = vadd.f32 %v8384_v34, %v2156_v1  ;;  %v1903_v56 = vadd.f32 %v8385_v8, %v6451_v49  ;;  %v8387_v11 = vld [vmem:[#allocation348_spill] sm:$0xff]  ;;  %v3432_v55 = vadd.f32 %v3289_v3, %v3176_v13  ;;  %v8391_v0 = vld [vmem:[#allocation342_spill] sm:$0xff]  ;;  %v8392_v38 = vld [vmem:[#allocation347_spill] sm:$0xff] }
 0x5e9   :  { %v1902_v46 = vadd.f32 %v8387_v11, %v8386_v59  ;;  %v2923_v5 = vadd.f32 %v8388_v16, %v2667_v45  ;;  %v8389_v21 = vld [vmem:[#allocation332_spill] sm:$0xff]  ;;  %v2669_v15 = vadd.f32 %v8390_v61, %v2413_v17  ;;  %v8393_v57 = vld [vmem:[#allocation350_spill] sm:$0xff]  ;;  %v8394_v49 = vld [vmem:[#allocation333_spill] sm:$0xff]  ;;  %3498 = vst.msk [vmem:[%s7638_s4 + $0x188] sm:$0xff] %vm3448_vm1, %v3433_v43 }
 0x5ea   :  { %v2922_v6 = vadd.f32 %v8389_v21, %v2666_v10  ;;  %v2668_v30 = vadd.f32 %v8391_v0, %v2412_v40  ;;  %v2159_v26 = vadd.f32 %v8392_v38, %v1903_v56  ;;  %v8395_v51 = vld [vmem:[#allocation334_spill] sm:$0xff]  ;;  %3497 = vst.msk [vmem:[%s7638_s4 + $0x180] sm:$0xff] %vm3448_vm1, %v3432_v55  ;;  %v8396_v33 = vld [vmem:[#allocation343_spill] sm:$0xff]  ;;  %v8397_v4 = vld [vmem:[#allocation344_spill] sm:$0xff]  ;;  %v3299_v10 = vpop.permute.xlu1 %3298 }
 0x5eb   :  { %v2158_v36 = vadd.f32 %v8393_v57, %v1902_v46  ;;  %v3179_v22 = vadd.f32 %v8394_v49, %v2923_v5  ;;  %v2925_v27 = vadd.f32 %v8396_v33, %v2669_v15  ;;  %v8398_v29 = vld [vmem:[#allocation349_spill] sm:$0xff]  ;;  %v8399_v19 = vld [vmem:[#allocation352_spill] sm:$0xff]  ;;  %v8401_v28 = vld [vmem:[#allocation358_spill] sm:$0xff]  ;;  %v3297_v48 = vpop.permute.xlu0 %3296 }
 0x5ec   :  { %v3178_v62 = vadd.f32 %v8395_v51, %v2922_v6  ;;  %v2924_v20 = vadd.f32 %v8397_v4, %v2668_v30  ;;  %v2415_v32 = vadd.f32 %v8398_v29, %v2159_v26  ;;  %v8400_v44 = vld [vmem:[#allocation356_spill] sm:$0xff]  ;;  %v1904_v41 = vadd.f32 %v8401_v28, %v6517_v42  ;;  %v8402_v39 = vld [vmem:[#allocation351_spill] sm:$0xff]  ;;  %v8403_v2 = vld [vmem:[#allocation354_spill] sm:$0xff] }
 0x5ed   :  { %v2414_v47 = vadd.f32 %v8399_v19, %v2158_v36  ;;  %v1905_v37 = vadd.f32 %v8400_v44, %v6503_v18  ;;  %v3435_v7 = vadd.f32 %v3295_v12, %v3179_v22  ;;  %v8404_v23 = vld [vmem:[#allocation345_spill] sm:$0xff]  ;;  %v8406_v24 = vld [vmem:[#allocation360_spill] sm:$0xff]  ;;  %v8407_v13 = vld [vmem:[#allocation366_spill] sm:$0xff] }
 0x5ee   :  { %v3434_v63 = vadd.f32 %v3293_v25, %v3178_v62  ;;  %v2671_v60 = vadd.f32 %v8402_v39, %v2415_v32  ;;  %v3180_v35 = vadd.f32 %v8404_v23, %v2924_v20  ;;  %v8405_v1 = vld [vmem:[#allocation357_spill] sm:$0xff]  ;;  %v2160_v31 = vadd.f32 %v8406_v24, %v1904_v41  ;;  %v8409_v45 = vld [vmem:[#allocation355_spill] sm:$0xff]  ;;  %v8411_v40 = vld [vmem:[#allocation362_spill] sm:$0xff]  ;;  %v3303_v43 = vpop.permute.xlu1 %3302 }
 0x5ef   :  { %v2670_v50 = vadd.f32 %v8403_v2, %v2414_v47  ;;  %v2161_v58 = vadd.f32 %v8405_v1, %v1905_v37  ;;  %v3181_v14 = vadd.f32 %v8407_v13, %v2925_v27  ;;  %3500 = vst.msk [vmem:[%s7638_s4 + $0x198] sm:$0xff] %vm3448_vm1, %v3435_v7  ;;  %v8408_v18 = vld [vmem:[#allocation353_spill] sm:$0xff]  ;;  %v8410_v17 = vld [vmem:[#allocation359_spill] sm:$0xff]  ;;  %v8413_v54 = vld [vmem:[#allocation364_spill] sm:$0xff]  ;;  %v3301_v55 = vpop.permute.xlu0 %3300 }
 0x5f0   :  { %3499 = vst.msk [vmem:[%s7638_s4 + $0x190] sm:$0xff] %vm3448_vm1, %v3434_v63  ;;  %v2927_v42 = vadd.f32 %v8408_v18, %v2671_v60  ;;  %v2416_v8 = vadd.f32 %v8411_v40, %v2160_v31  ;;  %v3436_v59 = vadd.f32 %v3297_v48, %v3180_v35  ;;  %v8412_v11 = vld [vmem:[#allocation361_spill] sm:$0xff]  ;;  %v8414_v16 = vld [vmem:[#allocation367_spill] sm:$0xff]  ;;  %v8415_v21 = vld [vmem:[#allocation368_spill] sm:$0xff] }
 0x5f1   :  { %v2926_v9 = vadd.f32 %v8409_v45, %v2670_v50  ;;  %v2417_v34 = vadd.f32 %v8410_v17, %v2161_v58  ;;  %v3437_v56 = vadd.f32 %v3299_v10, %v3181_v14  ;;  %v8416_v61 = vld [vmem:[#allocation363_spill] sm:$0xff]  ;;  %v8417_v0 = vld [vmem:[#allocation365_spill] sm:$0xff]  ;;  %v8421_v19 = vld [vmem:[#allocation4_spill] sm:$0xff] }
 0x5f2   :  { %v2672_v3 = vadd.f32 %v8413_v54, %v2416_v8  ;;  %v3183_v5 = vadd.f32 %v8414_v16, %v2927_v42  ;;  %3501 = vst.msk [vmem:[%s7638_s4 + $0x1a0] sm:$0xff] %vm3448_vm1, %v3436_v59  ;;  %v8418_v57 = vld [vmem:[#allocation31_spill] sm:$0xff]  ;;  %v8419_v49 = vld [vmem:[#allocation5_spill] sm:$0xff]  ;;  %v3307_v51 = vpop.permute.xlu1 %3306 }
 0x5f3   :  { %v2673_v46 = vadd.f32 %v8412_v11, %v2417_v34  ;;  %v3182_v6 = vadd.f32 %v8415_v21, %v2926_v9  ;;  %3502 = vst.msk [vmem:[%s7638_s4 + $0x1a8] sm:$0xff] %vm3448_vm1, %v3437_v56  ;;  %v3305_v62 = vpop.permute.xlu0 %3304  ;;  %v8420_v29 = vld [vmem:[#allocation23_spill] sm:$0xff]  ;;  %v8422_v44 = vld [vmem:[#allocation9_spill] sm:$0xff] }
 0x5f4   :  { %v2928_v30 = vadd.f32 %v8417_v0, %v2672_v3  ;;  %v3439_v38 = vadd.f32 %v3303_v43, %v3183_v5  ;;  %v8423_v28 = vld [vmem:[#allocation11_spill] sm:$0xff] }
 0x5f5   :  { %v2929_v15 = vadd.f32 %v8416_v61, %v2673_v46  ;;  %v3438_v26 = vadd.f32 %v3301_v55, %v3182_v6 }
 0x5f6   :  { %v3184_v22 = vadd.f32 %v8419_v49, %v2928_v30  ;;  %3504 = vst.msk [vmem:[%s7638_s4 + $0x1b8] sm:$0xff] %vm3448_vm1, %v3439_v38  ;;  %v3311_v4 = vpop.permute.xlu1 %3310 }
 0x5f7   :  { %v3185_v36 = vadd.f32 %v8418_v57, %v2929_v15  ;;  %3503 = vst.msk [vmem:[%s7638_s4 + $0x1b0] sm:$0xff] %vm3448_vm1, %v3438_v26  ;;  %v3309_v20 = vpop.permute.xlu0 %3308  ;;  %v3443_v32 = vadd.f32 %v3311_v4, %v8420_v29 }
 0x5f8   :  { %v3440_v27 = vadd.f32 %v3305_v62, %v3184_v22  ;;  %v3442_v47 = vadd.f32 %v3309_v20, %v8421_v19 }
 0x5f9   :  { %v3441_v33 = vadd.f32 %v3307_v51, %v3185_v36  ;;  %3508 = vst.msk [vmem:[%s7638_s4 + $0x1d8] sm:$0xff] %vm3448_vm1, %v3443_v32 }
 0x5fa   :  { %3505 = vst.msk [vmem:[%s7638_s4 + $0x1c0] sm:$0xff] %vm3448_vm1, %v3440_v27  ;;  %3507 = vst.msk [vmem:[%s7638_s4 + $0x1d0] sm:$0xff] %vm3448_vm1, %v3442_v47  ;;  %v3315_v12 = vpop.permute.xlu1 %3314 }
 0x5fb   :  { %3506 = vst.msk [vmem:[%s7638_s4 + $0x1c8] sm:$0xff] %vm3448_vm1, %v3441_v33  ;;  %v3313_v25 = vpop.permute.xlu0 %3312  ;;  %v3445_v37 = vadd.f32 %v3315_v12, %v8422_v44 }
 0x5fc   :  { %v3444_v41 = vadd.f32 %v3313_v25, %v8423_v28 }
 0x5fd   :  { %3510 = vst.msk [vmem:[%s7638_s4 + $0x1e8] sm:$0xff] %vm3448_vm1, %v3445_v37 }
 0x5fe   :  { %3509 = vst.msk [vmem:[%s7638_s4 + $0x1e0] sm:$0xff] %vm3448_vm1, %v3444_v41  ;;  %v3319_v7 = vpop.permute.xlu1 %3318 }
 0x5ff   :  { %v3317_v63 = vpop.permute.xlu0 %3316  ;;  %v3447_v39 = vadd.f32 %v3319_v7, %v6972_v53 }
 0x600   :  { %v3446_v60 = vadd.f32 %v3317_v63, %v6974_v52 }
 0x601   :  { %3512 = vst.msk [vmem:[%s7638_s4 + $0x1f8] sm:$0xff] %vm3448_vm1, %v3447_v39 }
 0x602   :  { %3511 = vst.msk [vmem:[%s7638_s4 + $0x1f0] sm:$0xff] %vm3448_vm1, %v3446_v60 }

</bundles_post_ra>
